<compile_context>
chip_gen: v6e
topology: v6e:2x2x1
jax: 0.10.0
libtpu: 0.0.40
codegen_flags: <defaults>
</compile_context>

<pallas_src>
import functools

import jax
import jax.numpy as jnp
from jax.experimental import pallas as pl
from jax.experimental.pallas import tpu as pltpu

BN_EPS = 1e-5
LEAKY_SLOPE = 0.1
LANE = 128
SUBLANE = 8


def _round_up(x, m):
    return (x + m - 1) // m * m


def _vmem_capacity_bytes():
    try:
        return int(pltpu.get_tpu_info().vmem_capacity_bytes)
    except Exception:
        return 64 << 20  # conservative default (v7x per-TC VMEM)


def _largest_divisor_leq(n, cap):
    cap = max(1, min(n, cap))
    for d in range(cap, 0, -1):
        if n % d == 0:
            return d
    return 1


def _plan_t_oh(oh, ow, hp, wp, cin, cout_p, kh, kw, vmem_budget):
    """Pick the output-row tile height from a VMEM budget.

    Counts the double-buffered whole-image input block, the resident
    (double-buffered) weight slab, the double-buffered f32 output tile and the
    in-kernel f32 accumulator / temporaries, with (sublane, lane) padding."""
    bytes_x = hp * _round_up(wp, SUBLANE) * _round_up(cin, LANE) * 2 * 2
    bytes_w = kh * kw * _round_up(cin, SUBLANE) * cout_p * 2 * 2
    per_row = (_round_up(ow, SUBLANE) * cout_p * 4 * 2            # out tile (dbl-buf)
               + _round_up(ow, SUBLANE) * cout_p * 4 * 3          # f32 acc + temps
               + _round_up(ow, SUBLANE) * _round_up(cin, LANE) * 2 * 2)  # windows
    avail = vmem_budget - bytes_x - bytes_w - (2 << 20)           # Mosaic scratch slack
    cap = max(1, avail // per_row)
    return _largest_divisor_leq(oh, cap)


# ---------------------------------------------------------------------------
# Shared helper: fused-im2col conv accumulator for one tile of output rows.
# ---------------------------------------------------------------------------
def _conv_tile(x_ref, w_ref, *, t_oh, ow, kh, kw, stride, cin, cout_p):
    """x_ref: (1, Hp, Wp, Cin) bf16 (whole padded image for this batch index).
    w_ref: (KH, KW, Cin, Cout_p) bf16 (fully resident).
    Returns the f32 conv accumulator of shape (t_oh * OW, Cout_p)."""
    t = pl.program_id(1)
    row0 = pl.multiple_of(t * (t_oh * stride), t_oh * stride)
    row_span = (t_oh - 1) * stride + 1
    col_span = (ow - 1) * stride + 1
    acc = jnp.zeros((t_oh * ow, cout_p), jnp.float32)
    for ki in range(kh):
        for kj in range(kw):
            win = x_ref[0, pl.ds(row0 + ki, row_span), pl.ds(kj, col_span), :]
            if stride > 1:
                # TODO(synk): strided>1 path is not exercised below; stride-heavy
                # nets would prefer phase-decomposing the input in the wrapper.
                win = win[::stride, ::stride, :]
            acc = acc + jnp.dot(win.reshape(t_oh * ow, cin), w_ref[ki, kj],
                                preferred_element_type=jnp.float32)
    return acc


# ---------------------------------------------------------------------------
# Pass 1: stats only — per-(image, row-tile) partial channel sum / sum-of-squares.
# ---------------------------------------------------------------------------
def conv_stats_kernel(x_ref, w_ref, sum_ref, sumsq_ref, *, t_oh, ow, kh, kw,
                      stride, cin, cout_p):
    acc = _conv_tile(x_ref, w_ref, t_oh=t_oh, ow=ow, kh=kh, kw=kw,
                     stride=stride, cin=cin, cout_p=cout_p)
    # Tiny partials are reduced in JAX between the passes; this keeps both grid
    # axes "parallel" (megacore-friendly even with a single Cout lane tile).
    sum_ref[...] = jnp.sum(acc, axis=0).reshape(1, 1, 1, cout_p)
    sumsq_ref[...] = jnp.sum(acc * acc, axis=0).reshape(1, 1, 1, cout_p)


# ---------------------------------------------------------------------------
# Pass 2: recompute conv tile, apply BN scale/shift + LeakyReLU(0.1), write out.
# ---------------------------------------------------------------------------
def conv_bn_lrelu_kernel(x_ref, w_ref, scale_ref, shift_ref, o_ref, *, t_oh,
                         ow, kh, kw, stride, cin, cout_p):
    acc = _conv_tile(x_ref, w_ref, t_oh=t_oh, ow=ow, kh=kh, kw=kw,
                     stride=stride, cin=cin, cout_p=cout_p)
    y = acc * scale_ref[...] + shift_ref[...]           # (1, Cp) broadcasts
    y = jnp.maximum(y, LEAKY_SLOPE * y)                 # LeakyReLU on the VPU
    o_ref[...] = y.reshape(1, t_oh, ow, cout_p).astype(o_ref.dtype)


@functools.partial(jax.jit, static_argnames=("stride", "padding"))
def cnn_block_forward(x, weight, gamma, beta, *, stride, padding):
    """x: (N, Cin, H, W); weight: (Cout, Cin, KH, KW); gamma/beta: (Cout,).
    Returns float32 NCHW (N, Cout, OH, OW), matching the PyTorch module."""
    cout, cin, kh, kw = weight.shape
    n, _, h, w = x.shape
    oh = (h + 2 * padding - kh) // stride + 1
    ow = (w + 2 * padding - kw) // stride + 1
    hp, wp = h + 2 * padding, w + 2 * padding
    cout_p = _round_up(cout, LANE)

    # NHWC, spatially zero-padded, bf16 MXU operands (f32 accumulation in-kernel).
    xp = jnp.pad(jnp.transpose(x, (0, 2, 3, 1)),
                 ((0, 0), (padding, padding), (padding, padding), (0, 0)))
    xp = xp.astype(jnp.bfloat16)
    # (KH, KW, Cin, Cout_p) resident weight slab; zero-padded Cout columns.
    wt = jnp.transpose(weight, (2, 3, 1, 0)).astype(jnp.bfloat16)
    wt = jnp.pad(wt, ((0, 0), (0, 0), (0, 0), (0, cout_p - cout)))

    vmem_cap = _vmem_capacity_bytes()
    vmem_budget = vmem_cap * 3 // 8                    # ~24 MiB v7x, ~48 MiB v5e/v6e
    vmem_limit = min(vmem_cap * 5 // 8, 96 << 20)      # ~40 MiB v7x, ~80 MiB v5e/v6e
    t_oh = _plan_t_oh(oh, ow, hp, wp, cin, cout_p, kh, kw, vmem_budget)
    n_toh = oh // t_oh
    grid = (n, n_toh)

    statics = dict(t_oh=t_oh, ow=ow, kh=kh, kw=kw, stride=stride, cin=cin,
                   cout_p=cout_p)
    x_spec = pl.BlockSpec((1, hp, wp, cin), lambda b, t: (b, 0, 0, 0))
    w_spec = pl.BlockSpec((kh, kw, cin, cout_p), lambda b, t: (0, 0, 0, 0))
    stat_spec = pl.BlockSpec((1, 1, 1, cout_p), lambda b, t: (b, t, 0, 0))
    vec_spec = pl.BlockSpec((1, cout_p), lambda b, t: (0, 0))
    out_spec = pl.BlockSpec((1, t_oh, ow, cout_p), lambda b, t: (b, t, 0, 0))
    cparams = pltpu.CompilerParams(
        dimension_semantics=("parallel", "parallel"),
        vmem_limit_bytes=vmem_limit)

    # ---- pass 1: fused-im2col conv + partial channel sum / sumsq ----------
    psum, psumsq = pl.pallas_call(
        functools.partial(conv_stats_kernel, **statics),
        out_shape=(jax.ShapeDtypeStruct((n, n_toh, 1, cout_p), jnp.float32),
                   jax.ShapeDtypeStruct((n, n_toh, 1, cout_p), jnp.float32)),
        grid=grid,
        in_specs=[x_spec, w_spec],
        out_specs=(stat_spec, stat_spec),
        compiler_params=cparams,
    )(xp, wt)

    # Finalize training-mode BN stats (biased variance) from the tiny partials.
    m_total = n * oh * ow
    ch_sum = jnp.sum(psum, axis=(0, 1, 2))
    ch_sumsq = jnp.sum(psumsq, axis=(0, 1, 2))
    mean = ch_sum / m_total
    var = jnp.maximum(ch_sumsq / m_total - mean * mean, 0.0)
    gamma_p = jnp.pad(gamma.astype(jnp.float32), (0, cout_p - cout))
    beta_p = jnp.pad(beta.astype(jnp.float32), (0, cout_p - cout))
    scale_v = gamma_p * jax.lax.rsqrt(var + BN_EPS)
    shift_v = beta_p - mean * scale_v
    scale = scale_v.reshape(1, cout_p)
    shift = shift_v.reshape(1, cout_p)

    # ---- pass 2: recompute conv + BN + LeakyReLU, lane-dense NHWC output --
    out_nhwc = pl.pallas_call(
        functools.partial(conv_bn_lrelu_kernel, **statics),
        out_shape=jax.ShapeDtypeStruct((n, oh, ow, cout_p), jnp.float32),
        grid=grid,
        in_specs=[x_spec, w_spec, vec_spec, vec_spec],
        out_specs=out_spec,
        compiler_params=cparams,
    )(xp, wt, scale, shift)

    # Strip Cout padding; transpose back to NCHW only for PyTorch parity.
    return jnp.transpose(out_nhwc[..., :cout], (0, 3, 1, 2))


def _reference(x, weight, gamma, beta, stride, padding):
    """Pure-JAX f32 reference of the PyTorch forward (training-mode BN)."""
    y = jax.lax.conv_general_dilated(
        x, weight, window_strides=(stride, stride),
        padding=[(padding, padding), (padding, padding)],
        dimension_numbers=("NCHW", "OIHW", "NCHW"))
    mean = y.mean(axis=(0, 2, 3), keepdims=True)
    var = jnp.mean((y - mean) ** 2, axis=(0, 2, 3), keepdims=True)
    yn = (y - mean) * jax.lax.rsqrt(var + BN_EPS)
    yn = yn * gamma.reshape(1, -1, 1, 1) + beta.reshape(1, -1, 1, 1)
    return jnp.where(yn > 0, yn, LEAKY_SLOPE * yn)


if __name__ == "__main__":
    # Small CNNBlock(in_channel=4, out_channel=8, kernel_size=3, stride=1, padding=1)
    N, CIN, H, W = 2, 4, 16, 16
    COUT, KH, KW = 8, 3, 3
    STRIDE, PADDING = 1, 1

    key = jax.random.PRNGKey(0)
    kx, kw_, kg, kb = jax.random.split(key, 4)

    x = jax.random.normal(kx, (N, CIN, H, W), dtype=jnp.float32)
    weight = jax.random.normal(kw_, (COUT, CIN, KH, KW), dtype=jnp.float32) * 0.1
    gamma = 1.0 + 0.1 * jax.random.normal(kg, (COUT,), dtype=jnp.float32)
    beta = 0.1 * jax.random.normal(kb, (COUT,), dtype=jnp.float32)

    y = cnn_block_forward(x, weight, gamma, beta, stride=STRIDE, padding=PADDING)
    jax.block_until_ready(y)
    assert y.shape == (N, COUT, H, W), y.shape

    # Sanity check vs. f32 reference (loose tolerance: bf16 MXU operands).
    ref = _reference(x, weight, gamma, beta, STRIDE, PADDING)
    err = float(jnp.max(jnp.abs(y - ref)))
    assert err < 1e-1, f"max abs err {err}"
    print("KERNEL_OK")
</pallas_src>

<mosaic_0001>
module attributes {stable_mosaic.version = 11 : i64} {
  func.func @conv_stats_kernel(%arg0: i32, %arg1: i32, %arg2: memref<1x18x18x4xbf16, #tpu.memory_space<vmem>>, %arg3: memref<3x3x4x128xbf16, #tpu.memory_space<vmem>>, %arg4: memref<1x1x1x128xf32, #tpu.memory_space<vmem>>, %arg5: memref<1x1x1x128xf32, #tpu.memory_space<vmem>>) attributes {dimension_semantics = [#tpu.dimension_semantics<parallel>, #tpu.dimension_semantics<parallel>], iteration_bounds = array<i64: 2, 1>, scalar_prefetch = 0 : i64, scratch_operands = 0 : i64, tpu.core_type = #tpu.core_type<tc>, window_params = [{transform_indices = @transform_0, window_bounds = array<i64: 1, 18, 18, 4>}, {pipeline_mode = #tpu.pipeline_mode<synchronous>, transform_indices = @transform_1, window_bounds = array<i64: 3, 3, 4, 128>}, {transform_indices = @transform_2, window_bounds = array<i64: 1, 1, 1, 128>}, {transform_indices = @transform_3, window_bounds = array<i64: 1, 1, 1, 128>}]} {
    %c16_i32 = arith.constant 16 : i32
    %0 = arith.muli %arg1, %c16_i32 : i32
    %1 = tpu.assume_multiple %0, 16 : i32
    %cst = arith.constant 0.000000e+00 : f32
    %2 = vector.broadcast %cst : f32 to vector<256x128xf32>
    %c0_i32 = arith.constant 0 : i32
    %3 = arith.addi %1, %c0_i32 : i32
    %c0 = arith.constant 0 : index
    %4 = arith.index_cast %3 : i32 to index
    %c0_0 = arith.constant 0 : index
    %c0_1 = arith.constant 0 : index
    %5 = vector.load %arg2[%c0, %4, %c0_0, %c0_1] : memref<1x18x18x4xbf16, #tpu.memory_space<vmem>>, vector<1x16x16x4xbf16>
    %6 = vector.shape_cast %5 : vector<1x16x16x4xbf16> to vector<16x16x4xbf16>
    %7 = vector.shape_cast %6 : vector<16x16x4xbf16> to vector<256x4xbf16>
    %c0_2 = arith.constant 0 : index
    %c0_3 = arith.constant 0 : index
    %c0_4 = arith.constant 0 : index
    %c0_5 = arith.constant 0 : index
    %8 = vector.load %arg3[%c0_2, %c0_3, %c0_4, %c0_5] : memref<3x3x4x128xbf16, #tpu.memory_space<vmem>>, vector<1x1x4x128xbf16>
    %9 = vector.shape_cast %8 : vector<1x1x4x128xbf16> to vector<4x128xbf16>
    %cst_6 = arith.constant dense<0.000000e+00> : vector<256x128xf32>
    %10 = tpu.matmul %7, %9, %cst_6 {dimension_numbers = #tpu.dot_dimension_numbers<[1], [0], [0], [1], [0, 0, 1, 1], [], []>} : vector<256x4xbf16>, vector<4x128xbf16>, vector<256x128xf32> -> vector<256x128xf32>
    %11 = arith.addf %2, %10 : vector<256x128xf32>
    %c0_i32_7 = arith.constant 0 : i32
    %12 = arith.addi %1, %c0_i32_7 : i32
    %c0_8 = arith.constant 0 : index
    %13 = arith.index_cast %12 : i32 to index
    %c1 = arith.constant 1 : index
    %c0_9 = arith.constant 0 : index
    %14 = vector.load %arg2[%c0_8, %13, %c1, %c0_9] : memref<1x18x18x4xbf16, #tpu.memory_space<vmem>>, vector<1x16x16x4xbf16>
    %15 = vector.shape_cast %14 : vector<1x16x16x4xbf16> to vector<16x16x4xbf16>
    %16 = vector.shape_cast %15 : vector<16x16x4xbf16> to vector<256x4xbf16>
    %c0_10 = arith.constant 0 : index
    %c1_11 = arith.constant 1 : index
    %c0_12 = arith.constant 0 : index
    %c0_13 = arith.constant 0 : index
    %17 = vector.load %arg3[%c0_10, %c1_11, %c0_12, %c0_13] : memref<3x3x4x128xbf16, #tpu.memory_space<vmem>>, vector<1x1x4x128xbf16>
    %18 = vector.shape_cast %17 : vector<1x1x4x128xbf16> to vector<4x128xbf16>
    %cst_14 = arith.constant dense<0.000000e+00> : vector<256x128xf32>
    %19 = tpu.matmul %16, %18, %cst_14 {dimension_numbers = #tpu.dot_dimension_numbers<[1], [0], [0], [1], [0, 0, 1, 1], [], []>} : vector<256x4xbf16>, vector<4x128xbf16>, vector<256x128xf32> -> vector<256x128xf32>
    %20 = arith.addf %11, %19 : vector<256x128xf32>
    %c0_i32_15 = arith.constant 0 : i32
    %21 = arith.addi %1, %c0_i32_15 : i32
    %c0_16 = arith.constant 0 : index
    %22 = arith.index_cast %21 : i32 to index
    %c2 = arith.constant 2 : index
    %c0_17 = arith.constant 0 : index
    %23 = vector.load %arg2[%c0_16, %22, %c2, %c0_17] : memref<1x18x18x4xbf16, #tpu.memory_space<vmem>>, vector<1x16x16x4xbf16>
    %24 = vector.shape_cast %23 : vector<1x16x16x4xbf16> to vector<16x16x4xbf16>
    %25 = vector.shape_cast %24 : vector<16x16x4xbf16> to vector<256x4xbf16>
    %c0_18 = arith.constant 0 : index
    %c2_19 = arith.constant 2 : index
    %c0_20 = arith.constant 0 : index
    %c0_21 = arith.constant 0 : index
    %26 = vector.load %arg3[%c0_18, %c2_19, %c0_20, %c0_21] : memref<3x3x4x128xbf16, #tpu.memory_space<vmem>>, vector<1x1x4x128xbf16>
    %27 = vector.shape_cast %26 : vector<1x1x4x128xbf16> to vector<4x128xbf16>
    %cst_22 = arith.constant dense<0.000000e+00> : vector<256x128xf32>
    %28 = tpu.matmul %25, %27, %cst_22 {dimension_numbers = #tpu.dot_dimension_numbers<[1], [0], [0], [1], [0, 0, 1, 1], [], []>} : vector<256x4xbf16>, vector<4x128xbf16>, vector<256x128xf32> -> vector<256x128xf32>
    %29 = arith.addf %20, %28 : vector<256x128xf32>
    %c1_i32 = arith.constant 1 : i32
    %30 = arith.addi %1, %c1_i32 : i32
    %c0_23 = arith.constant 0 : index
    %31 = arith.index_cast %30 : i32 to index
    %c0_24 = arith.constant 0 : index
    %c0_25 = arith.constant 0 : index
    %32 = vector.load %arg2[%c0_23, %31, %c0_24, %c0_25] : memref<1x18x18x4xbf16, #tpu.memory_space<vmem>>, vector<1x16x16x4xbf16>
    %33 = vector.shape_cast %32 : vector<1x16x16x4xbf16> to vector<16x16x4xbf16>
    %34 = vector.shape_cast %33 : vector<16x16x4xbf16> to vector<256x4xbf16>
    %c1_26 = arith.constant 1 : index
    %c0_27 = arith.constant 0 : index
    %c0_28 = arith.constant 0 : index
    %c0_29 = arith.constant 0 : index
    %35 = vector.load %arg3[%c1_26, %c0_27, %c0_28, %c0_29] : memref<3x3x4x128xbf16, #tpu.memory_space<vmem>>, vector<1x1x4x128xbf16>
    %36 = vector.shape_cast %35 : vector<1x1x4x128xbf16> to vector<4x128xbf16>
    %cst_30 = arith.constant dense<0.000000e+00> : vector<256x128xf32>
    %37 = tpu.matmul %34, %36, %cst_30 {dimension_numbers = #tpu.dot_dimension_numbers<[1], [0], [0], [1], [0, 0, 1, 1], [], []>} : vector<256x4xbf16>, vector<4x128xbf16>, vector<256x128xf32> -> vector<256x128xf32>
    %38 = arith.addf %29, %37 : vector<256x128xf32>
    %c1_i32_31 = arith.constant 1 : i32
    %39 = arith.addi %1, %c1_i32_31 : i32
    %c0_32 = arith.constant 0 : index
    %40 = arith.index_cast %39 : i32 to index
    %c1_33 = arith.constant 1 : index
    %c0_34 = arith.constant 0 : index
    %41 = vector.load %arg2[%c0_32, %40, %c1_33, %c0_34] : memref<1x18x18x4xbf16, #tpu.memory_space<vmem>>, vector<1x16x16x4xbf16>
    %42 = vector.shape_cast %41 : vector<1x16x16x4xbf16> to vector<16x16x4xbf16>
    %43 = vector.shape_cast %42 : vector<16x16x4xbf16> to vector<256x4xbf16>
    %c1_35 = arith.constant 1 : index
    %c1_36 = arith.constant 1 : index
    %c0_37 = arith.constant 0 : index
    %c0_38 = arith.constant 0 : index
    %44 = vector.load %arg3[%c1_35, %c1_36, %c0_37, %c0_38] : memref<3x3x4x128xbf16, #tpu.memory_space<vmem>>, vector<1x1x4x128xbf16>
    %45 = vector.shape_cast %44 : vector<1x1x4x128xbf16> to vector<4x128xbf16>
    %cst_39 = arith.constant dense<0.000000e+00> : vector<256x128xf32>
    %46 = tpu.matmul %43, %45, %cst_39 {dimension_numbers = #tpu.dot_dimension_numbers<[1], [0], [0], [1], [0, 0, 1, 1], [], []>} : vector<256x4xbf16>, vector<4x128xbf16>, vector<256x128xf32> -> vector<256x128xf32>
    %47 = arith.addf %38, %46 : vector<256x128xf32>
    %c1_i32_40 = arith.constant 1 : i32
    %48 = arith.addi %1, %c1_i32_40 : i32
    %c0_41 = arith.constant 0 : index
    %49 = arith.index_cast %48 : i32 to index
    %c2_42 = arith.constant 2 : index
    %c0_43 = arith.constant 0 : index
    %50 = vector.load %arg2[%c0_41, %49, %c2_42, %c0_43] : memref<1x18x18x4xbf16, #tpu.memory_space<vmem>>, vector<1x16x16x4xbf16>
    %51 = vector.shape_cast %50 : vector<1x16x16x4xbf16> to vector<16x16x4xbf16>
    %52 = vector.shape_cast %51 : vector<16x16x4xbf16> to vector<256x4xbf16>
    %c1_44 = arith.constant 1 : index
    %c2_45 = arith.constant 2 : index
    %c0_46 = arith.constant 0 : index
    %c0_47 = arith.constant 0 : index
    %53 = vector.load %arg3[%c1_44, %c2_45, %c0_46, %c0_47] : memref<3x3x4x128xbf16, #tpu.memory_space<vmem>>, vector<1x1x4x128xbf16>
    %54 = vector.shape_cast %53 : vector<1x1x4x128xbf16> to vector<4x128xbf16>
    %cst_48 = arith.constant dense<0.000000e+00> : vector<256x128xf32>
    %55 = tpu.matmul %52, %54, %cst_48 {dimension_numbers = #tpu.dot_dimension_numbers<[1], [0], [0], [1], [0, 0, 1, 1], [], []>} : vector<256x4xbf16>, vector<4x128xbf16>, vector<256x128xf32> -> vector<256x128xf32>
    %56 = arith.addf %47, %55 : vector<256x128xf32>
    %c2_i32 = arith.constant 2 : i32
    %57 = arith.addi %1, %c2_i32 : i32
    %c0_49 = arith.constant 0 : index
    %58 = arith.index_cast %57 : i32 to index
    %c0_50 = arith.constant 0 : index
    %c0_51 = arith.constant 0 : index
    %59 = vector.load %arg2[%c0_49, %58, %c0_50, %c0_51] : memref<1x18x18x4xbf16, #tpu.memory_space<vmem>>, vector<1x16x16x4xbf16>
    %60 = vector.shape_cast %59 : vector<1x16x16x4xbf16> to vector<16x16x4xbf16>
    %61 = vector.shape_cast %60 : vector<16x16x4xbf16> to vector<256x4xbf16>
    %c2_52 = arith.constant 2 : index
    %c0_53 = arith.constant 0 : index
    %c0_54 = arith.constant 0 : index
    %c0_55 = arith.constant 0 : index
    %62 = vector.load %arg3[%c2_52, %c0_53, %c0_54, %c0_55] : memref<3x3x4x128xbf16, #tpu.memory_space<vmem>>, vector<1x1x4x128xbf16>
    %63 = vector.shape_cast %62 : vector<1x1x4x128xbf16> to vector<4x128xbf16>
    %cst_56 = arith.constant dense<0.000000e+00> : vector<256x128xf32>
    %64 = tpu.matmul %61, %63, %cst_56 {dimension_numbers = #tpu.dot_dimension_numbers<[1], [0], [0], [1], [0, 0, 1, 1], [], []>} : vector<256x4xbf16>, vector<4x128xbf16>, vector<256x128xf32> -> vector<256x128xf32>
    %65 = arith.addf %56, %64 : vector<256x128xf32>
    %c2_i32_57 = arith.constant 2 : i32
    %66 = arith.addi %1, %c2_i32_57 : i32
    %c0_58 = arith.constant 0 : index
    %67 = arith.index_cast %66 : i32 to index
    %c1_59 = arith.constant 1 : index
    %c0_60 = arith.constant 0 : index
    %68 = vector.load %arg2[%c0_58, %67, %c1_59, %c0_60] : memref<1x18x18x4xbf16, #tpu.memory_space<vmem>>, vector<1x16x16x4xbf16>
    %69 = vector.shape_cast %68 : vector<1x16x16x4xbf16> to vector<16x16x4xbf16>
    %70 = vector.shape_cast %69 : vector<16x16x4xbf16> to vector<256x4xbf16>
    %c2_61 = arith.constant 2 : index
    %c1_62 = arith.constant 1 : index
    %c0_63 = arith.constant 0 : index
    %c0_64 = arith.constant 0 : index
    %71 = vector.load %arg3[%c2_61, %c1_62, %c0_63, %c0_64] : memref<3x3x4x128xbf16, #tpu.memory_space<vmem>>, vector<1x1x4x128xbf16>
    %72 = vector.shape_cast %71 : vector<1x1x4x128xbf16> to vector<4x128xbf16>
    %cst_65 = arith.constant dense<0.000000e+00> : vector<256x128xf32>
    %73 = tpu.matmul %70, %72, %cst_65 {dimension_numbers = #tpu.dot_dimension_numbers<[1], [0], [0], [1], [0, 0, 1, 1], [], []>} : vector<256x4xbf16>, vector<4x128xbf16>, vector<256x128xf32> -> vector<256x128xf32>
    %74 = arith.addf %65, %73 : vector<256x128xf32>
    %c2_i32_66 = arith.constant 2 : i32
    %75 = arith.addi %1, %c2_i32_66 : i32
    %c0_67 = arith.constant 0 : index
    %76 = arith.index_cast %75 : i32 to index
    %c2_68 = arith.constant 2 : index
    %c0_69 = arith.constant 0 : index
    %77 = vector.load %arg2[%c0_67, %76, %c2_68, %c0_69] : memref<1x18x18x4xbf16, #tpu.memory_space<vmem>>, vector<1x16x16x4xbf16>
    %78 = vector.shape_cast %77 : vector<1x16x16x4xbf16> to vector<16x16x4xbf16>
    %79 = vector.shape_cast %78 : vector<16x16x4xbf16> to vector<256x4xbf16>
    %c2_70 = arith.constant 2 : index
    %c2_71 = arith.constant 2 : index
    %c0_72 = arith.constant 0 : index
    %c0_73 = arith.constant 0 : index
    %80 = vector.load %arg3[%c2_70, %c2_71, %c0_72, %c0_73] : memref<3x3x4x128xbf16, #tpu.memory_space<vmem>>, vector<1x1x4x128xbf16>
    %81 = vector.shape_cast %80 : vector<1x1x4x128xbf16> to vector<4x128xbf16>
    %cst_74 = arith.constant dense<0.000000e+00> : vector<256x128xf32>
    %82 = tpu.matmul %79, %81, %cst_74 {dimension_numbers = #tpu.dot_dimension_numbers<[1], [0], [0], [1], [0, 0, 1, 1], [], []>} : vector<256x4xbf16>, vector<4x128xbf16>, vector<256x128xf32> -> vector<256x128xf32>
    %83 = arith.addf %74, %82 : vector<256x128xf32>
    %cst_75 = arith.constant dense<0.000000e+00> : vector<128xf32>
    %84 = vector.multi_reduction <add>, %83, %cst_75 [0] : vector<256x128xf32> to vector<128xf32>
    %85 = vector.shape_cast %84 : vector<128xf32> to vector<1x1x1x128xf32>
    %c0_76 = arith.constant 0 : index
    %c0_77 = arith.constant 0 : index
    %c0_78 = arith.constant 0 : index
    %c0_79 = arith.constant 0 : index
    %86 = vector.load %arg4[%c0_76, %c0_77, %c0_78, %c0_79] : memref<1x1x1x128xf32, #tpu.memory_space<vmem>>, vector<1x1x1x128xf32>
    tpu.vector_store %arg4[%c0_76, %c0_77, %c0_78, %c0_79], %85 {strides = array<i32>} : memref<1x1x1x128xf32, #tpu.memory_space<vmem>>, vector<1x1x1x128xf32>,
    %87 = arith.mulf %83, %83 : vector<256x128xf32>
    %cst_80 = arith.constant dense<0.000000e+00> : vector<128xf32>
    %88 = vector.multi_reduction <add>, %87, %cst_80 [0] : vector<256x128xf32> to vector<128xf32>
    %89 = vector.shape_cast %88 : vector<128xf32> to vector<1x1x1x128xf32>
    %c0_81 = arith.constant 0 : index
    %c0_82 = arith.constant 0 : index
    %c0_83 = arith.constant 0 : index
    %c0_84 = arith.constant 0 : index
    %90 = vector.load %arg5[%c0_81, %c0_82, %c0_83, %c0_84] : memref<1x1x1x128xf32, #tpu.memory_space<vmem>>, vector<1x1x1x128xf32>
    tpu.vector_store %arg5[%c0_81, %c0_82, %c0_83, %c0_84], %89 {strides = array<i32>} : memref<1x1x1x128xf32, #tpu.memory_space<vmem>>, vector<1x1x1x128xf32>,
    return
  }
  func.func @transform_0(%arg0: i32, %arg1: i32) -> (i32, i32, i32, i32) {
    %c0_i32 = arith.constant 0 : i32
    %c0_i32_0 = arith.constant 0 : i32
    %c0_i32_1 = arith.constant 0 : i32
    %c0_i32_2 = arith.constant 0 : i32
    return %arg0, %c0_i32, %c0_i32_0, %c0_i32_1 : i32, i32, i32, i32
  }
  func.func @transform_1(%arg0: i32, %arg1: i32) -> (i32, i32, i32, i32) {
    %c0_i32 = arith.constant 0 : i32
    %c0_i32_0 = arith.constant 0 : i32
    %c0_i32_1 = arith.constant 0 : i32
    %c0_i32_2 = arith.constant 0 : i32
    %c0_i32_3 = arith.constant 0 : i32
    return %c0_i32, %c0_i32_0, %c0_i32_1, %c0_i32_2 : i32, i32, i32, i32
  }
  func.func @transform_2(%arg0: i32, %arg1: i32) -> (i32, i32, i32, i32) {
    %c0_i32 = arith.constant 0 : i32
    %c0_i32_0 = arith.constant 0 : i32
    %c0_i32_1 = arith.constant 0 : i32
    return %arg0, %arg1, %c0_i32, %c0_i32_0 : i32, i32, i32, i32
  }
  func.func @transform_3(%arg0: i32, %arg1: i32) -> (i32, i32, i32, i32) {
    %c0_i32 = arith.constant 0 : i32
    %c0_i32_0 = arith.constant 0 : i32
    %c0_i32_1 = arith.constant 0 : i32
    return %arg0, %arg1, %c0_i32, %c0_i32_0 : i32, i32, i32, i32
  }
}

module attributes {stable_mosaic.version = 11 : i64} {
  func.func @conv_bn_lrelu_kernel(%arg0: i32, %arg1: i32, %arg2: memref<1x18x18x4xbf16, #tpu.memory_space<vmem>>, %arg3: memref<3x3x4x128xbf16, #tpu.memory_space<vmem>>, %arg4: memref<1x128xf32, #tpu.memory_space<vmem>>, %arg5: memref<1x128xf32, #tpu.memory_space<vmem>>, %arg6: memref<1x16x16x128xf32, #tpu.memory_space<vmem>>) attributes {dimension_semantics = [#tpu.dimension_semantics<parallel>, #tpu.dimension_semantics<parallel>], iteration_bounds = array<i64: 2, 1>, scalar_prefetch = 0 : i64, scratch_operands = 0 : i64, tpu.core_type = #tpu.core_type<tc>, window_params = [{transform_indices = @transform_0, window_bounds = array<i64: 1, 18, 18, 4>}, {pipeline_mode = #tpu.pipeline_mode<synchronous>, transform_indices = @transform_1, window_bounds = array<i64: 3, 3, 4, 128>}, {pipeline_mode = #tpu.pipeline_mode<synchronous>, transform_indices = @transform_2, window_bounds = array<i64: 1, 128>}, {pipeline_mode = #tpu.pipeline_mode<synchronous>, transform_indices = @transform_3, window_bounds = array<i64: 1, 128>}, {transform_indices = @transform_4, window_bounds = array<i64: 1, 16, 16, 128>}]} {
    %c16_i32 = arith.constant 16 : i32
    %0 = arith.muli %arg1, %c16_i32 : i32
    %1 = tpu.assume_multiple %0, 16 : i32
    %cst = arith.constant 0.000000e+00 : f32
    %2 = vector.broadcast %cst : f32 to vector<256x128xf32>
    %c0_i32 = arith.constant 0 : i32
    %3 = arith.addi %1, %c0_i32 : i32
    %c0 = arith.constant 0 : index
    %4 = arith.index_cast %3 : i32 to index
    %c0_0 = arith.constant 0 : index
    %c0_1 = arith.constant 0 : index
    %5 = vector.load %arg2[%c0, %4, %c0_0, %c0_1] : memref<1x18x18x4xbf16, #tpu.memory_space<vmem>>, vector<1x16x16x4xbf16>
    %6 = vector.shape_cast %5 : vector<1x16x16x4xbf16> to vector<16x16x4xbf16>
    %7 = vector.shape_cast %6 : vector<16x16x4xbf16> to vector<256x4xbf16>
    %c0_2 = arith.constant 0 : index
    %c0_3 = arith.constant 0 : index
    %c0_4 = arith.constant 0 : index
    %c0_5 = arith.constant 0 : index
    %8 = vector.load %arg3[%c0_2, %c0_3, %c0_4, %c0_5] : memref<3x3x4x128xbf16, #tpu.memory_space<vmem>>, vector<1x1x4x128xbf16>
    %9 = vector.shape_cast %8 : vector<1x1x4x128xbf16> to vector<4x128xbf16>
    %cst_6 = arith.constant dense<0.000000e+00> : vector<256x128xf32>
    %10 = tpu.matmul %7, %9, %cst_6 {dimension_numbers = #tpu.dot_dimension_numbers<[1], [0], [0], [1], [0, 0, 1, 1], [], []>} : vector<256x4xbf16>, vector<4x128xbf16>, vector<256x128xf32> -> vector<256x128xf32>
    %11 = arith.addf %2, %10 : vector<256x128xf32>
    %c0_i32_7 = arith.constant 0 : i32
    %12 = arith.addi %1, %c0_i32_7 : i32
    %c0_8 = arith.constant 0 : index
    %13 = arith.index_cast %12 : i32 to index
    %c1 = arith.constant 1 : index
    %c0_9 = arith.constant 0 : index
    %14 = vector.load %arg2[%c0_8, %13, %c1, %c0_9] : memref<1x18x18x4xbf16, #tpu.memory_space<vmem>>, vector<1x16x16x4xbf16>
    %15 = vector.shape_cast %14 : vector<1x16x16x4xbf16> to vector<16x16x4xbf16>
    %16 = vector.shape_cast %15 : vector<16x16x4xbf16> to vector<256x4xbf16>
    %c0_10 = arith.constant 0 : index
    %c1_11 = arith.constant 1 : index
    %c0_12 = arith.constant 0 : index
    %c0_13 = arith.constant 0 : index
    %17 = vector.load %arg3[%c0_10, %c1_11, %c0_12, %c0_13] : memref<3x3x4x128xbf16, #tpu.memory_space<vmem>>, vector<1x1x4x128xbf16>
    %18 = vector.shape_cast %17 : vector<1x1x4x128xbf16> to vector<4x128xbf16>
    %cst_14 = arith.constant dense<0.000000e+00> : vector<256x128xf32>
    %19 = tpu.matmul %16, %18, %cst_14 {dimension_numbers = #tpu.dot_dimension_numbers<[1], [0], [0], [1], [0, 0, 1, 1], [], []>} : vector<256x4xbf16>, vector<4x128xbf16>, vector<256x128xf32> -> vector<256x128xf32>
    %20 = arith.addf %11, %19 : vector<256x128xf32>
    %c0_i32_15 = arith.constant 0 : i32
    %21 = arith.addi %1, %c0_i32_15 : i32
    %c0_16 = arith.constant 0 : index
    %22 = arith.index_cast %21 : i32 to index
    %c2 = arith.constant 2 : index
    %c0_17 = arith.constant 0 : index
    %23 = vector.load %arg2[%c0_16, %22, %c2, %c0_17] : memref<1x18x18x4xbf16, #tpu.memory_space<vmem>>, vector<1x16x16x4xbf16>
    %24 = vector.shape_cast %23 : vector<1x16x16x4xbf16> to vector<16x16x4xbf16>
    %25 = vector.shape_cast %24 : vector<16x16x4xbf16> to vector<256x4xbf16>
    %c0_18 = arith.constant 0 : index
    %c2_19 = arith.constant 2 : index
    %c0_20 = arith.constant 0 : index
    %c0_21 = arith.constant 0 : index
    %26 = vector.load %arg3[%c0_18, %c2_19, %c0_20, %c0_21] : memref<3x3x4x128xbf16, #tpu.memory_space<vmem>>, vector<1x1x4x128xbf16>
    %27 = vector.shape_cast %26 : vector<1x1x4x128xbf16> to vector<4x128xbf16>
    %cst_22 = arith.constant dense<0.000000e+00> : vector<256x128xf32>
    %28 = tpu.matmul %25, %27, %cst_22 {dimension_numbers = #tpu.dot_dimension_numbers<[1], [0], [0], [1], [0, 0, 1, 1], [], []>} : vector<256x4xbf16>, vector<4x128xbf16>, vector<256x128xf32> -> vector<256x128xf32>
    %29 = arith.addf %20, %28 : vector<256x128xf32>
    %c1_i32 = arith.constant 1 : i32
    %30 = arith.addi %1, %c1_i32 : i32
    %c0_23 = arith.constant 0 : index
    %31 = arith.index_cast %30 : i32 to index
    %c0_24 = arith.constant 0 : index
    %c0_25 = arith.constant 0 : index
    %32 = vector.load %arg2[%c0_23, %31, %c0_24, %c0_25] : memref<1x18x18x4xbf16, #tpu.memory_space<vmem>>, vector<1x16x16x4xbf16>
    %33 = vector.shape_cast %32 : vector<1x16x16x4xbf16> to vector<16x16x4xbf16>
    %34 = vector.shape_cast %33 : vector<16x16x4xbf16> to vector<256x4xbf16>
    %c1_26 = arith.constant 1 : index
    %c0_27 = arith.constant 0 : index
    %c0_28 = arith.constant 0 : index
    %c0_29 = arith.constant 0 : index
    %35 = vector.load %arg3[%c1_26, %c0_27, %c0_28, %c0_29] : memref<3x3x4x128xbf16, #tpu.memory_space<vmem>>, vector<1x1x4x128xbf16>
    %36 = vector.shape_cast %35 : vector<1x1x4x128xbf16> to vector<4x128xbf16>
    %cst_30 = arith.constant dense<0.000000e+00> : vector<256x128xf32>
    %37 = tpu.matmul %34, %36, %cst_30 {dimension_numbers = #tpu.dot_dimension_numbers<[1], [0], [0], [1], [0, 0, 1, 1], [], []>} : vector<256x4xbf16>, vector<4x128xbf16>, vector<256x128xf32> -> vector<256x128xf32>
    %38 = arith.addf %29, %37 : vector<256x128xf32>
    %c1_i32_31 = arith.constant 1 : i32
    %39 = arith.addi %1, %c1_i32_31 : i32
    %c0_32 = arith.constant 0 : index
    %40 = arith.index_cast %39 : i32 to index
    %c1_33 = arith.constant 1 : index
    %c0_34 = arith.constant 0 : index
    %41 = vector.load %arg2[%c0_32, %40, %c1_33, %c0_34] : memref<1x18x18x4xbf16, #tpu.memory_space<vmem>>, vector<1x16x16x4xbf16>
    %42 = vector.shape_cast %41 : vector<1x16x16x4xbf16> to vector<16x16x4xbf16>
    %43 = vector.shape_cast %42 : vector<16x16x4xbf16> to vector<256x4xbf16>
    %c1_35 = arith.constant 1 : index
    %c1_36 = arith.constant 1 : index
    %c0_37 = arith.constant 0 : index
    %c0_38 = arith.constant 0 : index
    %44 = vector.load %arg3[%c1_35, %c1_36, %c0_37, %c0_38] : memref<3x3x4x128xbf16, #tpu.memory_space<vmem>>, vector<1x1x4x128xbf16>
    %45 = vector.shape_cast %44 : vector<1x1x4x128xbf16> to vector<4x128xbf16>
    %cst_39 = arith.constant dense<0.000000e+00> : vector<256x128xf32>
    %46 = tpu.matmul %43, %45, %cst_39 {dimension_numbers = #tpu.dot_dimension_numbers<[1], [0], [0], [1], [0, 0, 1, 1], [], []>} : vector<256x4xbf16>, vector<4x128xbf16>, vector<256x128xf32> -> vector<256x128xf32>
    %47 = arith.addf %38, %46 : vector<256x128xf32>
    %c1_i32_40 = arith.constant 1 : i32
    %48 = arith.addi %1, %c1_i32_40 : i32
    %c0_41 = arith.constant 0 : index
    %49 = arith.index_cast %48 : i32 to index
    %c2_42 = arith.constant 2 : index
    %c0_43 = arith.constant 0 : index
    %50 = vector.load %arg2[%c0_41, %49, %c2_42, %c0_43] : memref<1x18x18x4xbf16, #tpu.memory_space<vmem>>, vector<1x16x16x4xbf16>
    %51 = vector.shape_cast %50 : vector<1x16x16x4xbf16> to vector<16x16x4xbf16>
    %52 = vector.shape_cast %51 : vector<16x16x4xbf16> to vector<256x4xbf16>
    %c1_44 = arith.constant 1 : index
    %c2_45 = arith.constant 2 : index
    %c0_46 = arith.constant 0 : index
    %c0_47 = arith.constant 0 : index
    %53 = vector.load %arg3[%c1_44, %c2_45, %c0_46, %c0_47] : memref<3x3x4x128xbf16, #tpu.memory_space<vmem>>, vector<1x1x4x128xbf16>
    %54 = vector.shape_cast %53 : vector<1x1x4x128xbf16> to vector<4x128xbf16>
    %cst_48 = arith.constant dense<0.000000e+00> : vector<256x128xf32>
    %55 = tpu.matmul %52, %54, %cst_48 {dimension_numbers = #tpu.dot_dimension_numbers<[1], [0], [0], [1], [0, 0, 1, 1], [], []>} : vector<256x4xbf16>, vector<4x128xbf16>, vector<256x128xf32> -> vector<256x128xf32>
    %56 = arith.addf %47, %55 : vector<256x128xf32>
    %c2_i32 = arith.constant 2 : i32
    %57 = arith.addi %1, %c2_i32 : i32
    %c0_49 = arith.constant 0 : index
    %58 = arith.index_cast %57 : i32 to index
    %c0_50 = arith.constant 0 : index
    %c0_51 = arith.constant 0 : index
    %59 = vector.load %arg2[%c0_49, %58, %c0_50, %c0_51] : memref<1x18x18x4xbf16, #tpu.memory_space<vmem>>, vector<1x16x16x4xbf16>
    %60 = vector.shape_cast %59 : vector<1x16x16x4xbf16> to vector<16x16x4xbf16>
    %61 = vector.shape_cast %60 : vector<16x16x4xbf16> to vector<256x4xbf16>
    %c2_52 = arith.constant 2 : index
    %c0_53 = arith.constant 0 : index
    %c0_54 = arith.constant 0 : index
    %c0_55 = arith.constant 0 : index
    %62 = vector.load %arg3[%c2_52, %c0_53, %c0_54, %c0_55] : memref<3x3x4x128xbf16, #tpu.memory_space<vmem>>, vector<1x1x4x128xbf16>
    %63 = vector.shape_cast %62 : vector<1x1x4x128xbf16> to vector<4x128xbf16>
    %cst_56 = arith.constant dense<0.000000e+00> : vector<256x128xf32>
    %64 = tpu.matmul %61, %63, %cst_56 {dimension_numbers = #tpu.dot_dimension_numbers<[1], [0], [0], [1], [0, 0, 1, 1], [], []>} : vector<256x4xbf16>, vector<4x128xbf16>, vector<256x128xf32> -> vector<256x128xf32>
    %65 = arith.addf %56, %64 : vector<256x128xf32>
    %c2_i32_57 = arith.constant 2 : i32
    %66 = arith.addi %1, %c2_i32_57 : i32
    %c0_58 = arith.constant 0 : index
    %67 = arith.index_cast %66 : i32 to index
    %c1_59 = arith.constant 1 : index
    %c0_60 = arith.constant 0 : index
    %68 = vector.load %arg2[%c0_58, %67, %c1_59, %c0_60] : memref<1x18x18x4xbf16, #tpu.memory_space<vmem>>, vector<1x16x16x4xbf16>
    %69 = vector.shape_cast %68 : vector<1x16x16x4xbf16> to vector<16x16x4xbf16>
    %70 = vector.shape_cast %69 : vector<16x16x4xbf16> to vector<256x4xbf16>
    %c2_61 = arith.constant 2 : index
    %c1_62 = arith.constant 1 : index
    %c0_63 = arith.constant 0 : index
    %c0_64 = arith.constant 0 : index
    %71 = vector.load %arg3[%c2_61, %c1_62, %c0_63, %c0_64] : memref<3x3x4x128xbf16, #tpu.memory_space<vmem>>, vector<1x1x4x128xbf16>
    %72 = vector.shape_cast %71 : vector<1x1x4x128xbf16> to vector<4x128xbf16>
    %cst_65 = arith.constant dense<0.000000e+00> : vector<256x128xf32>
    %73 = tpu.matmul %70, %72, %cst_65 {dimension_numbers = #tpu.dot_dimension_numbers<[1], [0], [0], [1], [0, 0, 1, 1], [], []>} : vector<256x4xbf16>, vector<4x128xbf16>, vector<256x128xf32> -> vector<256x128xf32>
    %74 = arith.addf %65, %73 : vector<256x128xf32>
    %c2_i32_66 = arith.constant 2 : i32
    %75 = arith.addi %1, %c2_i32_66 : i32
    %c0_67 = arith.constant 0 : index
    %76 = arith.index_cast %75 : i32 to index
    %c2_68 = arith.constant 2 : index
    %c0_69 = arith.constant 0 : index
    %77 = vector.load %arg2[%c0_67, %76, %c2_68, %c0_69] : memref<1x18x18x4xbf16, #tpu.memory_space<vmem>>, vector<1x16x16x4xbf16>
    %78 = vector.shape_cast %77 : vector<1x16x16x4xbf16> to vector<16x16x4xbf16>
    %79 = vector.shape_cast %78 : vector<16x16x4xbf16> to vector<256x4xbf16>
    %c2_70 = arith.constant 2 : index
    %c2_71 = arith.constant 2 : index
    %c0_72 = arith.constant 0 : index
    %c0_73 = arith.constant 0 : index
    %80 = vector.load %arg3[%c2_70, %c2_71, %c0_72, %c0_73] : memref<3x3x4x128xbf16, #tpu.memory_space<vmem>>, vector<1x1x4x128xbf16>
    %81 = vector.shape_cast %80 : vector<1x1x4x128xbf16> to vector<4x128xbf16>
    %cst_74 = arith.constant dense<0.000000e+00> : vector<256x128xf32>
    %82 = tpu.matmul %79, %81, %cst_74 {dimension_numbers = #tpu.dot_dimension_numbers<[1], [0], [0], [1], [0, 0, 1, 1], [], []>} : vector<256x4xbf16>, vector<4x128xbf16>, vector<256x128xf32> -> vector<256x128xf32>
    %83 = arith.addf %74, %82 : vector<256x128xf32>
    %c0_75 = arith.constant 0 : index
    %c0_76 = arith.constant 0 : index
    %84 = vector.load %arg4[%c0_75, %c0_76] : memref<1x128xf32, #tpu.memory_space<vmem>>, vector<1x128xf32>
    %85 = vector.broadcast %84 : vector<1x128xf32> to vector<256x128xf32>
    %86 = arith.mulf %83, %85 : vector<256x128xf32>
    %c0_77 = arith.constant 0 : index
    %c0_78 = arith.constant 0 : index
    %87 = vector.load %arg5[%c0_77, %c0_78] : memref<1x128xf32, #tpu.memory_space<vmem>>, vector<1x128xf32>
    %88 = vector.broadcast %87 : vector<1x128xf32> to vector<256x128xf32>
    %89 = arith.addf %86, %88 : vector<256x128xf32>
    %cst_79 = arith.constant 1.000000e-01 : f32
    %90 = vector.broadcast %cst_79 : f32 to vector<256x128xf32>
    %91 = arith.mulf %90, %89 : vector<256x128xf32>
    %92 = arith.maximumf %89, %91 : vector<256x128xf32>
    %93 = vector.shape_cast %92 : vector<256x128xf32> to vector<1x16x16x128xf32>
    %c0_80 = arith.constant 0 : index
    %c0_81 = arith.constant 0 : index
    %c0_82 = arith.constant 0 : index
    %c0_83 = arith.constant 0 : index
    %94 = vector.load %arg6[%c0_80, %c0_81, %c0_82, %c0_83] : memref<1x16x16x128xf32, #tpu.memory_space<vmem>>, vector<1x16x16x128xf32>
    tpu.vector_store %arg6[%c0_80, %c0_81, %c0_82, %c0_83], %93 {strides = array<i32>} : memref<1x16x16x128xf32, #tpu.memory_space<vmem>>, vector<1x16x16x128xf32>,
    return
  }
  func.func @transform_0(%arg0: i32, %arg1: i32) -> (i32, i32, i32, i32) {
    %c0_i32 = arith.constant 0 : i32
    %c0_i32_0 = arith.constant 0 : i32
    %c0_i32_1 = arith.constant 0 : i32
    %c0_i32_2 = arith.constant 0 : i32
    return %arg0, %c0_i32, %c0_i32_0, %c0_i32_1 : i32, i32, i32, i32
  }
  func.func @transform_1(%arg0: i32, %arg1: i32) -> (i32, i32, i32, i32) {
    %c0_i32 = arith.constant 0 : i32
    %c0_i32_0 = arith.constant 0 : i32
    %c0_i32_1 = arith.constant 0 : i32
    %c0_i32_2 = arith.constant 0 : i32
    %c0_i32_3 = arith.constant 0 : i32
    return %c0_i32, %c0_i32_0, %c0_i32_1, %c0_i32_2 : i32, i32, i32, i32
  }
  func.func @transform_2(%arg0: i32, %arg1: i32) -> (i32, i32) {
    %c0_i32 = arith.constant 0 : i32
    %c0_i32_0 = arith.constant 0 : i32
    %c0_i32_1 = arith.constant 0 : i32
    return %c0_i32, %c0_i32_0 : i32, i32
  }
  func.func @transform_3(%arg0: i32, %arg1: i32) -> (i32, i32) {
    %c0_i32 = arith.constant 0 : i32
    %c0_i32_0 = arith.constant 0 : i32
    %c0_i32_1 = arith.constant 0 : i32
    return %c0_i32, %c0_i32_0 : i32, i32
  }
  func.func @transform_4(%arg0: i32, %arg1: i32) -> (i32, i32, i32, i32) {
    %c0_i32 = arith.constant 0 : i32
    %c0_i32_0 = arith.constant 0 : i32
    %c0_i32_1 = arith.constant 0 : i32
    return %arg0, %arg1, %c0_i32, %c0_i32_0 : i32, i32, i32, i32
  }
}

</mosaic_0001>

<bundles_post_ra>
// kernel: cnn_block_forward.3
= control target key start
LH: loop header
LB: loop body
LE: loop exit
PB: predicated region body
PF: predicated region fallthrough
CT: control target
= control target key end

     0   :  { %s6208_s15 = smov 0   ;;  %s6210_s16 = smov 0   ;;  %s8906_s0 = inlined_call_operand.vmem [shape: bf16[2,18,18,4], index: 0, kind: input, shape index: {}]   ;;  %s8907_s1 = inlined_call_operand.vmem [shape: bf16[3,3,4,128], index: 1, kind: input, shape index: {}]   ;;  %s8908_s2 = inlined_call_operand.vmem [shape: f32[1,128], index: 2, kind: input, shape index: {}]   ;;  %s8909_s3 = inlined_call_operand.vmem [shape: f32[1,128], index: 3, kind: input, shape index: {}]   ;;  %s8910_s4 = inlined_call_operand.vmem [shape: f32[2,16,16,128], index: 4, kind: output, shape index: {}]  }
   0x1   :  { %s6212_s17 = smov 0  }
   0x2 LB: > { %s26_s18 = sadd.s32 1, %s6177_s16  ;;  %p5068_p0 = scmp.ge.s32.totalorder %s6181_s17, 1  ;;  %s6181_s17 = sphi %s6212_s17, %s14_s17   ;;  %s6177_s16 = sphi %s6210_s16, %s9188_s16   ;;  %s6173_s15 = sphi %s6208_s15, %s9187_s15  }
   0x3   : > { %p28_p1 = scmp.ge.s32.totalorder %s26_s18, 2  ;;  %p176_p2 = scmp.lt.s32.totalorder %s6181_s17, 3 }
   0x5   : > { %s9190_s18 = smov (%p28_p1, %s26_s18), 0  ;;  %p177_p3 = pnand %p5068_p0, %p176_p2 }
   0x7   : > { %180 = sbr.rel (%p177_p3) target bundleno = 561 (0x231), region = 36 }
   0xc   : > { %v5072_v0 = vld [vmem:[%s8907_s1 + $0x2] sm:$0x3]  ;;  %vm763_vm0 = vcmask 1041408   ;;  %p207_p4 = scmp.lt.s32.totalorder %s6173_s15, 1  ;;  %v260_v2 = vld [vmem:[%s8907_s1] sm:$0x3] }
   0xd   : > { %6075 = vmatprep.subr.msk.bf16.mxu1 %vm763_vm0, %v5072_v0  ;;  %6074 = vmatprep.subr.msk.bf16.mxu0 %vm763_vm0, %v5072_v0  ;;  %v765_v1 = vsel %vm763_vm0, %v5072_v0, 0  ;;  %v5153_v3 = vld [vmem:[%s8907_s1 + $0x4] sm:$0x3]  ;;  %vm277_vm1 = vsmask.f32 3328  ;;  %v6249_v4 = vsel %vm763_vm0, %v260_v2, 0 }
   0xe   : > { %6073 = vmatpush3.bf16.msra.mxu1 %v765_v1  ;;  %5767 = vmatpush3.bf16.msra.mxu0 %v765_v1  ;;  %s9192_s15 = smov (!%p207_p4, %s6173_s15), 1  ;;  %vm278_vm2 = vsmask.f32 7440  ;;  %vm714_vm3 = vcmask 31744   ;;  %v6275_v16 = vsel %vm763_vm0, %v5153_v3, 0  ;;  %vm1268_vm5 = vcmask 1042432  }
   0xf   : > { %6076 = vmatprep.subr.msk.bf16.mxu1 %vm763_vm0, %v260_v2  ;;  %6077 = vmatprep.subr.msk.bf16.mxu0 %vm763_vm0, %v5153_v3  ;;  %s6084_s25 = smul.u32 216, %s9192_s15  ;;  %vm6290_vm4 = vmor %vm277_vm1, %vm278_vm2  ;;  %vm1269_vm6 = vcmask 1046532   ;;  %s5612_s23 = sshll.u32 %s9192_s15, 8 }
  0x10   : > { %vm6576_vm7 = vmor %vm1268_vm5, %vm1269_vm6 }
  0x11   : > { %s6246_s28 = scalar_lea.vmem %s8906_s0, %s6084_s25  ;;  %s8733_s25 = scalar_lea.vmem %s8910_s4, %s5612_s23 }
  0x12   : > { %v6252_v5 = vld [vmem:[%s6246_s28] sm:$0xf]  ;;  %v6255_v6 = vld [vmem:[%s6246_s28 + $0x4] sm:$0xf]  ;;  %v6258_v7 = vld [vmem:[%s6246_s28 + $0x8] sm:$0x1] }
  0x13   : > { %v281_v8 = vshrl.u32 %v6252_v5, 16  ;;  %v284_v9 = vshll.u32 %v6252_v5, 16  ;;  %v290_v10 = vshll.u32 %v6255_v6, 16  ;;  %v294_v11 = vshrl.u32 %v6255_v6, 16  ;;  %v6265_v12 = vld [vmem:[%s6246_s28 + $0x60] sm:$0xf] }
  0x14   : > { %v300_v13 = vshll.u32 %v6258_v7, 16  ;;  %v6269_v14 = vld [vmem:[%s6246_s28 + $0x64] sm:$0xf]  ;;  %v6272_v15 = vld [vmem:[%s6246_s28 + $0x68] sm:$0x1]  ;;  %v473_v22 = vshrl.u32 %v6265_v12, 16 }
  0x15   : > { %v283_v17 = vrot.slane %v281_v8, 4  ;;  %v286_v18 = vrot.slane %v284_v9, 5  ;;  %v292_v19 = vrot.slane %v290_v10, 5  ;;  %v296_v20 = vrot.slane %v294_v11, 4  ;;  %v6283_v29 = vld [vmem:[%s6246_s28 + $0xc] sm:$0xf] }
  0x16   : > { %v302_v21 = vrot.slane %v300_v13, 5  ;;  %v476_v23 = vshll.u32 %v6265_v12, 16  ;;  %v482_v24 = vshll.u32 %v6269_v14, 16  ;;  %v486_v27 = vshrl.u32 %v6269_v14, 16  ;;  %v6286_v30 = vld [vmem:[%s6246_s28 + $0x10] sm:$0xf] }
  0x17   : > { %v287_v25 = vor.u32 %v286_v18, %v283_v17  ;;  %v297_v26 = vor.u32 %v296_v20, %v292_v19  ;;  %v492_v28 = vshll.u32 %v6272_v15, 16  ;;  %v475_v33 = vrot.slane %v473_v22, 4  ;;  %v6296_v41 = vld [vmem:[%s6246_s28 + $0x14] sm:$0x1]  ;;  %v6307_v53 = vld [vmem:[%s6246_s28 + $0x6c] sm:$0xf] }
  0x18   : > { %v478_v34 = vrot.slane %v476_v23, 5  ;;  %v484_v35 = vrot.slane %v482_v24, 5  ;;  %v488_v38 = vrot.slane %v486_v27, 4  ;;  %v305_v42 = vshrl.u32 %v6283_v29, 16  ;;  %v6311_v58 = vld [vmem:[%s6246_s28 + $0x70] sm:$0xf] }
  0x19   : > { %v288_v36 = vrot.slane %v287_v25, 4  ;;  %v298_v37 = vrot.slane %v297_v26, 4  ;;  %v494_v39 = vrot.slane %v492_v28, 5  ;;  %v308_v43 = vshll.u32 %v6283_v29, 16  ;;  %v6319_v63 = vld [vmem:[%s6246_s28 + $0x74] sm:$0x1] }
  0x1a   : > { %v479_v40 = vor.u32 %v478_v34, %v475_v33  ;;  %v314_v44 = vshll.u32 %v6286_v30, 16  ;;  %v489_v47 = vor.u32 %v488_v38, %v484_v35  ;;  %v318_v48 = vshrl.u32 %v6286_v30, 16  ;;  %v6325_v8 = vld [vmem:[%s6246_s28 + $0x18] sm:$0xf]  ;;  %v6338_v25 = vld [vmem:[%s6246_s28 + $0x20] sm:$0x1] }
  0x1b   : > { %v293_v45 = vsel %vm6290_vm4, %v288_v36, %v292_v19  ;;  %v303_v46 = vsel %vm6290_vm4, %v298_v37, %v302_v21  ;;  %v307_v51 = vrot.slane %v305_v42, 4  ;;  %v310_v52 = vrot.slane %v308_v43, 5  ;;  %v6332_v21 = vld [vmem:[%s6246_s28 + $0x1c] sm:$0xf] }
  0x1c   : > { %v5073_v49 = vcombine.low %v293_v45, %v303_v46  ;;  %v480_v50 = vrot.slane %v479_v40, 4  ;;  %v490_v54 = vrot.slane %v489_v47, 4  ;;  %v316_v55 = vrot.slane %v314_v44, 5  ;;  %v6351_v40 = vld [vmem:[%s8907_s1 + $0x8] sm:$0x3] }
  0x1d   : > { %v320_v56 = vrot.slane %v318_v48, 4  ;;  %v324_v57 = vshll.u32 %v6296_v41, 16  ;;  %v311_v60 = vor.u32 %v310_v52, %v307_v51  ;;  %v497_v3 = vshrl.u32 %v6307_v53, 16  ;;  %v6356_v46 = vld [vmem:[%s6246_s28 + $0x7c] sm:$0xf] }
  0x1e   : > { %5768 = vmatprep.mubr.msk.bf16.mxu0 %vm714_vm3, %v5073_v49  ;;  %v485_v59 = vsel %vm6290_vm4, %v480_v50, %v484_v35  ;;  %v495_v0 = vsel %vm6290_vm4, %v490_v54, %v494_v39  ;;  %v500_v11 = vshll.u32 %v6307_v53, 16  ;;  %v506_v13 = vshll.u32 %v6311_v58, 16  ;;  %v6345_v35 = vld [vmem:[%s6246_s28 + $0x78] sm:$0xf] }
  0x1f   : > { %v321_v1 = vor.u32 %v320_v56, %v316_v55  ;;  %v326_v2 = vrot.slane %v324_v57, 5  ;;  %v5081_v9 = vcombine.low %v485_v59, %v495_v0  ;;  %v312_v10 = vrot.slane %v311_v60, 4  ;;  %v6363_v56 = vld [vmem:[%s6246_s28 + $0x80] sm:$0x1] }
  0x20   : > { %v499_v18 = vrot.slane %v497_v3, 4  ;;  %v510_v19 = vshrl.u32 %v6311_v58, 16  ;;  %v516_v20 = vshll.u32 %v6319_v63, 16  ;;  %v502_v23 = vrot.slane %v500_v11, 5  ;;  %8946 = vst [vmem:[#allocation2_spill] sm:$0xff] %v6363_v56 }
  0x21   : > { %v322_v17 = vrot.slane %v321_v1, 4  ;;  %5784 = vmatprep.mubr.msk.bf16.mxu1 %vm714_vm3, %v5081_v9  ;;  %v317_v22 = vsel %vm6290_vm4, %v312_v10, %v316_v55  ;;  %v508_v24 = vrot.slane %v506_v13, 5  ;;  %v329_v26 = vshrl.u32 %v6325_v8, 16  ;;  %v6369_v1 = vld [vmem:[%s6246_s28 + $0x24] sm:$0xf] }
  0x22   : > { %v512_v28 = vrot.slane %v510_v19, 4  ;;  %v518_v33 = vrot.slane %v516_v20, 5  ;;  %v332_v34 = vshll.u32 %v6325_v8, 16  ;;  %v503_v37 = vor.u32 %v502_v23, %v499_v18  ;;  %v6377_v10 = vld [vmem:[%s6246_s28 + $0x28] sm:$0xf] }
  0x23   : > { %v327_v27 = vsel %vm6290_vm4, %v322_v17, %v326_v2  ;;  %v331_v38 = vrot.slane %v329_v26, 4  ;;  %v338_v39 = vshll.u32 %v6332_v21, 16  ;;  %v342_v44 = vshrl.u32 %v6332_v21, 16  ;;  %v6383_v19 = vld [vmem:[%s8907_s1 + $0x6] sm:$0x3] }
  0x24   : > { %v5074_v36 = vcombine.low %v317_v22, %v327_v27  ;;  %v513_v42 = vor.u32 %v512_v28, %v508_v24  ;;  %v334_v43 = vrot.slane %v332_v34, 5  ;;  %v348_v45 = vshll.u32 %v6338_v25, 16 }
  0x25   : > { %v504_v47 = vrot.slane %v503_v37, 4  ;;  %v340_v48 = vrot.slane %v338_v39, 5  ;;  %v521_v49 = vshrl.u32 %v6345_v35, 16  ;;  %v524_v50 = vshll.u32 %v6345_v35, 16 }
  0x26   : > { %5769 = vmatmul.mubr.msk.bf16.vlgmr.msra.gmra.mxu0 %vm714_vm3, %v5074_v36  ;;  %v514_v51 = vrot.slane %v513_v42, 4  ;;  %v335_v52 = vor.u32 %v334_v43, %v331_v38  ;;  %v344_v54 = vrot.slane %v342_v44, 4  ;;  %v350_v55 = vrot.slane %v348_v45, 5  ;;  %v6395_v36 = vld [vmem:[%s6246_s28 + $0x84] sm:$0xf] }
  0x27   : > { %5835 = vmatpush3.bf16.msra.mxu0 %v6275_v16  ;;  %v509_v57 = vsel %vm6290_vm4, %v504_v47, %v508_v24  ;;  %v523_v59 = vrot.slane %v521_v49, 4  ;;  %v526_v60 = vrot.slane %v524_v50, 5  ;;  %v530_v0 = vshll.u32 %v6356_v46, 16  ;;  %v6388_v24 = vld [vmem:[%s6246_s28 + $0x2c] sm:$0x1] }
  0x28   : > { %6079 = vmatprep.subr.msk.bf16.mxu0 %vm763_vm0, %v6351_v40  ;;  %v519_v16 = vsel %vm6290_vm4, %v514_v51, %v518_v33  ;;  %v336_v2 = vrot.slane %v335_v52, 4  ;;  %v345_v3 = vor.u32 %v344_v54, %v340_v48  ;;  %v534_v9 = vshrl.u32 %v6356_v46, 16  ;;  %v6402_v43 = vld [vmem:[%s6246_s28 + $0x88] sm:$0xf]  ;;  %v6410_v51 = vld [vmem:[%s6246_s28 + $0x8c] sm:$0x1] }
  0x29   : > { %v5082_v11 = vcombine.low %v509_v57, %v519_v16  ;;  %v527_v13 = vor.u32 %v526_v60, %v523_v59  ;;  %v532_v17 = vrot.slane %v530_v0, 5  ;;  %v540_v18 = vshll.u32 %v6363_v56, 16  ;;  %8947 = vst [vmem:[#allocation3_spill] sm:$0xff] %v6410_v51  ;;  %v6418_v60 = vld [vmem:[%s6246_s28 + $0x30] sm:$0xf] }
  0x2a   : > { %v341_v20 = vsel %vm6290_vm4, %v336_v2, %v340_v48  ;;  %v346_v22 = vrot.slane %v345_v3, 4  ;;  %v536_v23 = vrot.slane %v534_v9, 4  ;;  %v353_v26 = vshrl.u32 %v6369_v1, 16  ;;  %v6423_v9 = vld [vmem:[%s6246_s28 + $0x34] sm:$0xf] }
  0x2b   : > { %5785 = vmatmul.mubr.msk.bf16.vlgmr.msra.gmra.mxu1 %vm714_vm3, %v5082_v11  ;;  %v528_v27 = vrot.slane %v527_v13, 4  ;;  %v542_v28 = vrot.slane %v540_v18, 5  ;;  %v356_v33 = vshll.u32 %v6369_v1, 16  ;;  %v362_v34 = vshll.u32 %v6377_v10, 16 }
  0x2c   : > { %5801 = vmatpush3.bf16.msra.mxu1 %v6249_v4  ;;  %v351_v37 = vsel %vm6290_vm4, %v346_v22, %v350_v55  ;;  %v537_v38 = vor.u32 %v536_v23, %v532_v17  ;;  %v355_v39 = vrot.slane %v353_v26, 4  ;;  %v366_v42 = vshrl.u32 %v6377_v10, 16 }
  0x2d   : > { %v5075_v44 = vcombine.low %v341_v20, %v351_v37  ;;  %v533_v45 = vsel %vm6290_vm4, %v528_v27, %v532_v17  ;;  %v358_v47 = vrot.slane %v356_v33, 5  ;;  %v364_v48 = vrot.slane %v362_v34, 5  ;;  %6078 = vmatprep.subr.msk.bf16.mxu1 %vm763_vm0, %v6383_v19  ;;  %v6431_v33 = vld [vmem:[%s6246_s28 + $0x38] sm:$0x1] }
  0x2e   : > { %v538_v4 = vrot.slane %v537_v38, 4  ;;  %v368_v49 = vrot.slane %v366_v42, 4  ;;  %v372_v50 = vshll.u32 %v6388_v24, 16  ;;  %v545_v52 = vshrl.u32 %v6395_v36, 16  ;;  %v6436_v38 = vld [vmem:[%s6246_s28 + $0x90] sm:$0xf] }
  0x2f   : > { %5772 = vmatprep.mubr.msk.bf16.mxu0 %vm714_vm3, %v5075_v44  ;;  %v359_v54 = vor.u32 %v358_v47, %v355_v39  ;;  %v548_v55 = vshll.u32 %v6395_v36, 16  ;;  %v554_v57 = vshll.u32 %v6402_v43, 16  ;;  %v558_v59 = vshrl.u32 %v6402_v43, 16  ;;  %8948 = vst [vmem:[#allocation4_spill] sm:$0xff] %v6436_v38  ;;  %v6441_v47 = vld [vmem:[%s6246_s28 + $0x94] sm:$0xf] }
  0x30   : > { %v543_v0 = vsel %vm6290_vm4, %v538_v4, %v542_v28  ;;  %v369_v16 = vor.u32 %v368_v49, %v364_v48  ;;  %v374_v2 = vrot.slane %v372_v50, 5  ;;  %v547_v3 = vrot.slane %v545_v52, 4  ;;  %8949 = vst [vmem:[#allocation5_spill] sm:$0xff] %v6441_v47 }
  0x31   : > { %v5083_v11 = vcombine.low %v533_v45, %v543_v0  ;;  %v360_v13 = vrot.slane %v359_v54, 4  ;;  %v550_v17 = vrot.slane %v548_v55, 5  ;;  %v556_v18 = vrot.slane %v554_v57, 5 }
  0x32   : > { %v370_v20 = vrot.slane %v369_v16, 4  ;;  %v560_v22 = vrot.slane %v558_v59, 4  ;;  %v564_v23 = vshll.u32 %v6410_v51, 16  ;;  %v377_v26 = vshrl.u32 %v6418_v60, 16  ;;  %v6450_v16 = vld [vmem:[%s6246_s28 + $0x98] sm:$0x1] }
  0x33   : > { %5788 = vmatprep.mubr.msk.bf16.mxu1 %vm714_vm3, %v5083_v11  ;;  %v365_v27 = vsel %vm6290_vm4, %v360_v13, %v364_v48  ;;  %v551_v28 = vor.u32 %v550_v17, %v547_v3  ;;  %v380_v34 = vshll.u32 %v6418_v60, 16  ;;  %v386_v37 = vshll.u32 %v6423_v9, 16  ;;  %8950 = vst [vmem:[#allocation6_spill] sm:$0xff] %v6450_v16  ;;  %v6455_v11 = vld [vmem:[%s6246_s28 + $0x3c] sm:$0xf] }
  0x34   : > { %v375_v39 = vsel %vm6290_vm4, %v370_v20, %v374_v2  ;;  %v561_v42 = vor.u32 %v560_v22, %v556_v18  ;;  %v566_v44 = vrot.slane %v564_v23, 5  ;;  %v379_v45 = vrot.slane %v377_v26, 4  ;;  %v6460_v23 = vld [vmem:[%s6246_s28 + $0x40] sm:$0xf]  ;;  %v1221_v51 = vld [vmem:[%s6246_s28 + $0xc] sm:$0xe] }
  0x35   : > { %v5076_v48 = vcombine.low %v365_v27, %v375_v39  ;;  %v552_v4 = vrot.slane %v551_v28, 4  ;;  %v382_v49 = vrot.slane %v380_v34, 5  ;;  %v388_v50 = vrot.slane %v386_v37, 5 }
  0x36   : > { %v562_v52 = vrot.slane %v561_v42, 4  ;;  %v390_v54 = vshrl.u32 %v6423_v9, 16  ;;  %v396_v55 = vshll.u32 %v6431_v33, 16  ;;  %v569_v57 = vshrl.u32 %v6436_v38, 16 }
  0x37   : > { %5773 = vmatmul.mubr.msk.bf16.gmra.mxu0 %vm714_vm3, %v5076_v48  ;;  %v557_v59 = vsel %vm6290_vm4, %v552_v4, %v556_v18  ;;  %v383_v0 = vor.u32 %v382_v49, %v379_v45  ;;  %v572_v2 = vshll.u32 %v6436_v38, 16  ;;  %v578_v3 = vshll.u32 %v6441_v47, 16  ;;  %v6469_v48 = vld [vmem:[%s6246_s28 + $0x44] sm:$0x1] }
  0x38   : > { %v567_v13 = vsel %vm6290_vm4, %v562_v52, %v566_v44  ;;  %v392_v17 = vrot.slane %v390_v54, 4  ;;  %v398_v20 = vrot.slane %v396_v55, 5  ;;  %v571_v22 = vrot.slane %v569_v57, 4  ;;  %v6474_v52 = vld [vmem:[%s6246_s28 + $0x9c] sm:$0xf] }
  0x39   : > { %v5084_v18 = vcombine.low %v557_v59, %v567_v13  ;;  %v384_v26 = vrot.slane %v383_v0, 4  ;;  %v574_v27 = vrot.slane %v572_v2, 5  ;;  %v580_v28 = vrot.slane %v578_v3, 5  ;;  %8951 = vst [vmem:[#allocation7_spill] sm:$0xff] %v6474_v52  ;;  %v6478_v13 = vld [vmem:[%s6246_s28 + $0xa0] sm:$0xf] }
  0x3a   : > { %v393_v34 = vor.u32 %v392_v17, %v388_v50  ;;  %v582_v37 = vshrl.u32 %v6441_v47, 16  ;;  %v588_v39 = vshll.u32 %v6450_v16, 16  ;;  %v401_v42 = vshrl.u32 %v6455_v11, 16  ;;  %8952 = vst [vmem:[#allocation8_spill] sm:$0xff] %v6478_v13 }
  0x3b   : > { %5789 = vmatmul.mubr.msk.bf16.gmra.mxu1 %vm714_vm3, %v5084_v18  ;;  %v389_v44 = vsel %vm6290_vm4, %v384_v26, %v388_v50  ;;  %v575_v45 = vor.u32 %v574_v27, %v571_v22  ;;  %v404_v4 = vshll.u32 %v6455_v11, 16  ;;  %v410_v49 = vshll.u32 %v6460_v23, 16  ;;  %v6484_v26 = vld [vmem:[%s6246_s28 + $0xa4] sm:$0x1] }
  0x3c   : > { %v394_v54 = vrot.slane %v393_v34, 4  ;;  %v584_v55 = vrot.slane %v582_v37, 4  ;;  %v590_v57 = vrot.slane %v588_v39, 5  ;;  %v403_v59 = vrot.slane %v401_v42, 4  ;;  %8953 = vst [vmem:[#allocation9_spill] sm:$0xff] %v6484_v26 }
  0x3d   : > { %v576_v0 = vrot.slane %v575_v45, 4  ;;  %v406_v2 = vrot.slane %v404_v4, 5  ;;  %v412_v3 = vrot.slane %v410_v49, 5  ;;  %v414_v50 = vshrl.u32 %v6460_v23, 16  ;;  %v6488_v34 = vld [vmem:[%s6246_s28 + $0x48] sm:$0xf] }
  0x3e   : > { %v399_v17 = vsel %vm6290_vm4, %v394_v54, %v398_v20  ;;  %v585_v22 = vor.u32 %v584_v55, %v580_v28  ;;  %v420_v18 = vshll.u32 %v6469_v48, 16  ;;  %v593_v27 = vshrl.u32 %v6474_v52, 16 }
  0x3f   : > { %v5077_v37 = vcombine.low %v389_v44, %v399_v17  ;;  %v581_v39 = vsel %vm6290_vm4, %v576_v0, %v580_v28  ;;  %v407_v42 = vor.u32 %v406_v2, %v403_v59  ;;  %v416_v45 = vrot.slane %v414_v50, 4  ;;  %v6497_v17 = vld [vmem:[%s6246_s28 + $0x4c] sm:$0xf]  ;;  %v6503_v2 = vld [vmem:[%s6246_s28 + $0x50] sm:$0x1] }
  0x40   : > { %v586_v4 = vrot.slane %v585_v22, 4  ;;  %v422_v49 = vrot.slane %v420_v18, 5  ;;  %v595_v20 = vrot.slane %v593_v27, 4  ;;  %v596_v54 = vshll.u32 %v6474_v52, 16 }
  0x41   : > { %5776 = vmatprep.mubr.msk.bf16.mxu0 %vm714_vm3, %v5077_v37  ;;  %v408_v55 = vrot.slane %v407_v42, 4  ;;  %v417_v62 = vor.u32 %v416_v45, %v412_v3  ;;  %v602_v32 = vshll.u32 %v6478_v13, 16  ;;  %v606_v44 = vshrl.u32 %v6478_v13, 16  ;;  %v6509_v42 = vld [vmem:[%s6246_s28 + $0xa8] sm:$0xf] }
  0x42   : > { %v591_v28 = vsel %vm6290_vm4, %v586_v4, %v590_v57  ;;  %v598_v59 = vrot.slane %v596_v54, 5  ;;  %v612_v0 = vshll.u32 %v6484_v26, 16  ;;  %v425_v50 = vshrl.u32 %v6488_v34, 16  ;;  %8954 = vst [vmem:[#allocation10_spill] sm:$0xff] %v6509_v42 }
  0x43   : > { %v5085_v22 = vcombine.low %v581_v39, %v591_v28  ;;  %v413_v18 = vsel %vm6290_vm4, %v408_v55, %v412_v3  ;;  %v418_v27 = vrot.slane %v417_v62, 4  ;;  %v604_v37 = vrot.slane %v602_v32, 5 }
  0x44   : > { %v599_v45 = vor.u32 %v598_v59, %v595_v20  ;;  %v608_v61 = vrot.slane %v606_v44, 4  ;;  %v614_v57 = vrot.slane %v612_v0, 5  ;;  %v427_v4 = vrot.slane %v425_v50, 4  ;;  %v6519_v44 = vld [vmem:[%s6246_s28 + $0xac] sm:$0xf] }
  0x45   : > { %5792 = vmatprep.mubr.msk.bf16.mxu1 %vm714_vm3, %v5085_v22  ;;  %v423_v54 = vsel %vm6290_vm4, %v418_v27, %v422_v49  ;;  %v428_v39 = vshll.u32 %v6488_v34, 16  ;;  %v434_v28 = vshll.u32 %v6497_v17, 16  ;;  %v438_v62 = vshrl.u32 %v6497_v17, 16  ;;  %8955 = vst [vmem:[#allocation11_spill] sm:$0xff] %v6519_v44  ;;  %v6522_v22 = vld [vmem:[%s6246_s28 + $0xb0] sm:$0x1] }
  0x46   : > { %v5078_v3 = vcombine.low %v413_v18, %v423_v54  ;;  %v600_v32 = vrot.slane %v599_v45, 4  ;;  %v609_v55 = vor.u32 %v608_v61, %v604_v37  ;;  %v444_v20 = vshll.u32 %v6503_v2, 16  ;;  %8956 = vst [vmem:[#allocation12_spill] sm:$0xff] %v6522_v22 }
  0x47   : > { %v430_v59 = vrot.slane %v428_v39, 5  ;;  %v436_v0 = vrot.slane %v434_v28, 5  ;;  %v440_v50 = vrot.slane %v438_v62, 4  ;;  %v617_v49 = vshrl.u32 %v6509_v42, 16  ;;  %v6531_v62 = vld [vmem:[%s6246_s28 + $0x54] sm:$0xf] }
  0x48   : > { %5777 = vmatmul.mubr.msk.bf16.gmra.mxu0 %vm714_vm3, %v5078_v3  ;;  %v605_v18 = vsel %vm6290_vm4, %v600_v32, %v604_v37  ;;  %v610_v27 = vrot.slane %v609_v55, 4  ;;  %v446_v61 = vrot.slane %v444_v20, 5  ;;  %v620_v45 = vshll.u32 %v6509_v42, 16  ;;  %v6538_v55 = vld [vmem:[%s6246_s28 + $0x58] sm:$0xf] }
  0x49   : > { %v431_v54 = vor.u32 %v430_v59, %v427_v4  ;;  %v441_v56 = vor.u32 %v440_v50, %v436_v0  ;;  %v619_v39 = vrot.slane %v617_v49, 4  ;;  %v626_v28 = vshll.u32 %v6519_v44, 16  ;;  %v6541_v49 = vld [vmem:[%s6246_s28 + $0x5c] sm:$0x1] }
  0x4a   : > { %v615_v3 = vsel %vm6290_vm4, %v610_v27, %v614_v57  ;;  %v622_v26 = vrot.slane %v620_v45, 5  ;;  %v630_v37 = vshrl.u32 %v6519_v44, 16  ;;  %v636_v32 = vshll.u32 %v6522_v22, 16  ;;  %v1220_v22 = vld [vmem:[%s6246_s28] sm:$0xe] }
  0x4b   : > { %v5086_v4 = vcombine.low %v605_v18, %v615_v3  ;;  %v432_v20 = vrot.slane %v431_v54, 4  ;;  %v442_v59 = vrot.slane %v441_v56, 4  ;;  %v628_v50 = vrot.slane %v626_v28, 5  ;;  %v6552_v54 = vld [vmem:[%s6246_s28 + $0xb4] sm:$0xf] }
  0x4c   : > { %v623_v42 = vor.u32 %v622_v26, %v619_v39  ;;  %v632_v52 = vrot.slane %v630_v37, 4  ;;  %v638_v13 = vrot.slane %v636_v32, 5  ;;  %v449_v57 = vshrl.u32 %v6531_v62, 16  ;;  %8957 = vst [vmem:[#allocation13_spill] sm:$0xff] %v6552_v54  ;;  %v6555_v37 = vld [vmem:[%s6246_s28 + $0xb8] sm:$0xf] }
  0x4d   : > { %5793 = vmatmul.mubr.msk.bf16.gmra.mxu1 %vm714_vm3, %v5086_v4  ;;  %v437_v27 = vsel %vm6290_vm4, %v432_v20, %v436_v0  ;;  %v447_v18 = vsel %vm6290_vm4, %v442_v59, %v446_v61  ;;  %v452_v56 = vshll.u32 %v6531_v62, 16  ;;  %v458_v45 = vshll.u32 %v6538_v55, 16  ;;  %v6560_v61 = vld [vmem:[%s6246_s28 + $0xbc] sm:$0x1] }
  0x4e   : > { %v5079_v26 = vcombine.low %v437_v27, %v447_v18  ;;  %v624_v39 = vrot.slane %v623_v42, 4  ;;  %v633_v28 = vor.u32 %v632_v52, %v628_v50  ;;  %v451_v3 = vrot.slane %v449_v57, 4 }
  0x4f   : > { %v454_v32 = vrot.slane %v452_v56, 5  ;;  %v460_v4 = vrot.slane %v458_v45, 5  ;;  %v462_v0 = vshrl.u32 %v6538_v55, 16  ;;  %v468_v20 = vshll.u32 %v6541_v49, 16 }
  0x50   : > { %5780 = vmatprep.mubr.msk.bf16.mxu0 %vm714_vm3, %v5079_v26  ;;  %v629_v59 = vsel %vm6290_vm4, %v624_v39, %v628_v50  ;;  %v634_v27 = vrot.slane %v633_v28, 4  ;;  %v641_v52 = vshrl.u32 %v6552_v54, 16  ;;  %v644_v42 = vshll.u32 %v6552_v54, 16 }
  0x51   : > { %v455_v57 = vor.u32 %v454_v32, %v451_v3  ;;  %v464_v18 = vrot.slane %v462_v0, 4  ;;  %v470_v56 = vrot.slane %v468_v20, 5  ;;  %v650_v45 = vshll.u32 %v6555_v37, 16 }
  0x52   : > { %v639_v44 = vsel %vm6290_vm4, %v634_v27, %v638_v13  ;;  %v643_v16 = vrot.slane %v641_v52, 4  ;;  %v646_v26 = vrot.slane %v644_v42, 5  ;;  %v654_v38 = vshrl.u32 %v6555_v37, 16 }
  0x53   : > { %v5087_v50 = vcombine.low %v629_v59, %v639_v44  ;;  %v456_v39 = vrot.slane %v455_v57, 4  ;;  %v465_v28 = vor.u32 %v464_v18, %v460_v4  ;;  %v652_v47 = vrot.slane %v650_v45, 5  ;;  %v1222_v57 = vld [vmem:[%s6246_s28 + $0x18] sm:$0xe] }
  0x54   : > { %v647_v54 = vor.u32 %v646_v26, %v643_v16  ;;  %v656_v3 = vrot.slane %v654_v38, 4  ;;  %v660_v32 = vshll.u32 %v6560_v61, 16  ;;  %v5137_v13 = vrot.slane %v1220_v22, 9 }
  0x55   : > { %5796 = vmatprep.mubr.msk.bf16.mxu1 %vm714_vm3, %v5087_v50  ;;  %v461_v44 = vsel %vm6290_vm4, %v456_v39, %v460_v4  ;;  %v466_v20 = vrot.slane %v465_v28, 4  ;;  %v1273_v59 = vrot.slane %v6255_v6, 5  ;;  %v5106_v38 = vcombine.low %v6283_v29, %v6286_v30 }
  0x56   : > { %v648_v16 = vrot.slane %v647_v54, 4  ;;  %v657_v27 = vor.u32 %v656_v3, %v652_v47  ;;  %v662_v52 = vrot.slane %v660_v32, 5  ;;  %v5138_v42 = vrot.slane %v1221_v51, 9 }
  0x57   : > { %v471_v18 = vsel %vm6290_vm4, %v466_v20, %v470_v56  ;;  %v1274_v22 = vsel %vm6576_vm7, %v5137_v13, %v1273_v59  ;;  %v1275_v45 = vrot.slane %v1273_v59, 4  ;;  %v8960_v4 = vrot.slane %v6286_v30, 5 }
  0x58   : > { %v5080_v50 = vcombine.low %v461_v44, %v471_v18  ;;  %v653_v54 = vsel %vm6290_vm4, %v648_v16, %v652_v47  ;;  %v658_v39 = vrot.slane %v657_v27, 4  ;;  %v5105_v51 = vcombine.low %v6252_v5, %v6255_v6  ;;  %v1223_v27 = vld [vmem:[%s6246_s28 + $0x24] sm:$0xe] }
  0x59   : > { %v1282_v26 = vrot.slane %v8960_v4, 4  ;;  %v8961_v28 = vrot.slane %v6258_v7, 5  ;;  %v8962_v3 = vmov %v8960_v4  ;;  %v5107_v13 = vcombine.low %v6325_v8, %v6332_v21  ;;  %v1225_v4 = vld [vmem:[%s6246_s28 + $0x3c] sm:$0xe] }
  0x5a   : > { %v1281_v32 = vsel %vm6576_vm7, %v5138_v42, %v8962_v3  ;;  %v5139_v44 = vrot.slane %v1222_v57, 9  ;;  %5781 = vmatmul.mubr.msk.bf16.gmra.mxu0 %vm714_vm3, %v5080_v50  ;;  %v663_v47 = vsel %vm6290_vm4, %v658_v39, %v662_v52  ;;  %v8963_v6 = vrot.slane %v6296_v41, 5  ;;  %v1224_v42 = vld [vmem:[%s6246_s28 + $0x30] sm:$0xe]  ;;  %v1226_v39 = vld [vmem:[%s6246_s28 + $0x48] sm:$0xe] }
  0x5b   : > { %v1277_v56 = vsel %vm6576_vm7, %v1275_v45, %v8961_v28  ;;  %v1287_v20 = vrot.slane %v6332_v21, 5  ;;  %v5088_v59 = vcombine.low %v653_v54, %v663_v47  ;;  %v1290_v16 = vrot.slane %v6338_v25, 5  ;;  %v1227_v47 = vld [vmem:[%s6246_s28 + $0x54] sm:$0xe]  ;;  %v6871_v21 = vld [vmem:[%s6246_s28 + $0x2c] sm:$0x1] }
  0x5c   : > { %v5154_v5 = vcombine.low %v1274_v22, %v1277_v56  ;;  %v1284_v7 = vsel %vm6576_vm7, %v1282_v26, %v8963_v6  ;;  %v1844_v52 = vsel %vm763_vm0, %v6383_v19, 0  ;;  %v1294_v18 = vrot.slane %v6377_v10, 5 }
  0x5d   : > { %v1288_v41 = vsel %vm6576_vm7, %v5139_v44, %v1287_v20  ;;  %v1289_v57 = vrot.slane %v1287_v20, 4  ;;  %5797 = vmatmul.mubr.msk.bf16.gmra.mxu1 %vm714_vm3, %v5088_v59  ;;  %v5155_v22 = vcombine.low %v1281_v32, %v1284_v7  ;;  %v2570_v25 = vsel %vm763_vm0, %v6351_v40, 0 }
  0x5e   : > { %5836 = vmatprep.mubr.msk.bf16.mxu0 %vm714_vm3, %v5154_v5  ;;  %v1301_v45 = vrot.slane %v6423_v9, 5  ;;  %5802 = vmatprep.mubr.msk.bf16.mxu1 %vm714_vm3, %v5105_v51  ;;  %v5140_v26 = vrot.slane %v1223_v27, 9  ;;  %v1297_v50 = vrot.slane %v6388_v24, 5  ;;  %v5141_v54 = vrot.slane %v1224_v42, 9  ;;  %v6643_v24 = vld [vmem:[%s8907_s1 + $0xc] sm:$0x3] }
  0x5f   : > { %v1291_v19 = vsel %vm6576_vm7, %v1289_v57, %v1290_v16  ;;  %v1296_v56 = vrot.slane %v1294_v18, 4  ;;  %v1304_v32 = vrot.slane %v6431_v33, 5  ;;  %v5142_v44 = vrot.slane %v1225_v4, 9 }
  0x60   : > { %v5156_v28 = vcombine.low %v1288_v41, %v1291_v19  ;;  %v1303_v3 = vrot.slane %v1301_v45, 4  ;;  %v1308_v40 = vrot.slane %v6460_v23, 5  ;;  %v1332_v5 = vrot.slane %v6272_v15, 5 }
  0x61   : > { %v1311_v51 = vrot.slane %v6469_v48, 5  ;;  %v5143_v6 = vrot.slane %v1226_v39, 9  ;;  %v1315_v7 = vrot.slane %v6497_v17, 5  ;;  %v5108_v33 = vcombine.low %v6369_v1, %v6377_v10  ;;  %v1228_v1 = vld [vmem:[%s6246_s28 + $0x60] sm:$0xe] }
  0x62   : > { %5837 = vmatmul.mubr.msk.bf16.vlgmr.msra.gmra.mxu0 %vm714_vm3, %v5155_v22  ;;  %v1295_v20 = vsel %vm6576_vm7, %v5140_v26, %v1294_v18  ;;  %v1310_v59 = vrot.slane %v1308_v40, 4  ;;  %v1318_v16 = vrot.slane %v6503_v2, 5  ;;  %v1298_v48 = vsel %vm6576_vm7, %v1296_v56, %v1297_v50  ;;  %v6671_v22 = vld [vmem:[%s8907_s1 + $0xa] sm:$0x3]  ;;  %v6696_v50 = vld [vmem:[%s6246_s28 + $0x6c] sm:$0xe] }
  0x63   : > { %5903 = vmatpush3.bf16.msra.mxu0 %v2570_v25  ;;  %5840 = vmatprep.mubr.msk.bf16.mxu0 %vm714_vm3, %v5156_v28  ;;  %v1302_v27 = vsel %vm6576_vm7, %v5141_v54, %v1301_v45  ;;  %v1305_v42 = vsel %vm6576_vm7, %v1303_v3, %v1304_v32  ;;  %v1317_v41 = vrot.slane %v1315_v7, 4  ;;  %v6661_v10 = vsel %vm6576_vm7, %v5142_v44, %v1308_v40  ;;  %v1231_v39 = vld [vmem:[%s6246_s28 + $0x84] sm:$0xe]  ;;  %v6725_v44 = vld [vmem:[%s6246_s28 + $0x78] sm:$0xe] }
  0x64   : > { %v6665_v2 = vsel %vm6576_vm7, %v5143_v6, %v1315_v7  ;;  %v5144_v57 = vrot.slane %v1227_v47, 9  ;;  %v1322_v18 = vrot.slane %v6538_v55, 5  ;;  %6081 = vmatprep.subr.msk.bf16.mxu0 %vm763_vm0, %v6643_v24  ;;  %v6681_v25 = vsel %vm6576_vm7, %v1310_v59, %v1311_v51  ;;  %v1232_v40 = vld [vmem:[%s6246_s28 + $0x90] sm:$0xe] }
  0x65   : > { %5803 = vmatmul.mubr.msk.bf16.vlgmr.msra.gmra.mxu1 %vm714_vm3, %v5106_v38  ;;  %v6685_v45 = vsel %vm6576_vm7, %v1317_v41, %v1318_v16  ;;  %v1325_v4 = vrot.slane %v6541_v49, 5  ;;  %v1329_v19 = vrot.slane %v6269_v14, 5  ;;  %v5157_v29 = vcombine.low %v1295_v20, %v1298_v48  ;;  %v8964_v48 = vld [vmem:[#allocation3_spill] sm:$0xff] }
  0x66   : > { %5869 = vmatpush3.bf16.msra.mxu1 %v1844_v52  ;;  %5806 = vmatprep.mubr.msk.bf16.mxu1 %vm714_vm3, %v5107_v13  ;;  %v5109_v30 = vcombine.low %v6418_v60, %v6423_v9  ;;  %v1324_v38 = vrot.slane %v1322_v18, 4  ;;  %v5145_v26 = vrot.slane %v1228_v1, 9  ;;  %v5158_v49 = vcombine.low %v1302_v27, %v1305_v42  ;;  %v1233_v42 = vld [vmem:[%s6246_s28 + $0x9c] sm:$0xe] }
  0x67   : > { %v5110_v52 = vcombine.low %v6455_v11, %v6460_v23  ;;  %v5111_v8 = vcombine.low %v6488_v34, %v6497_v17  ;;  %6080 = vmatprep.subr.msk.bf16.mxu1 %vm763_vm0, %v6671_v22  ;;  %v5159_v60 = vcombine.low %v6661_v10, %v6681_v25  ;;  %v5160_v9 = vcombine.low %v6665_v2, %v6685_v45  ;;  %v8965_v10 = vld [vmem:[#allocation5_spill] sm:$0xff]  ;;  %v8966_v2 = vld [vmem:[#allocation4_spill] sm:$0xff] }
  0x68   : > { %v1331_v54 = vrot.slane %v1329_v19, 4  ;;  %v6715_v28 = vsel %vm6576_vm7, %v5144_v57, %v1322_v18  ;;  %v6719_v56 = vsel %vm6576_vm7, %v1324_v38, %v1325_v4  ;;  %v5146_v32 = vrot.slane %v6696_v50, 9  ;;  %v1234_v18 = vld [vmem:[%s6246_s28 + $0xa8] sm:$0xe]  ;;  %v8968_v38 = vld [vmem:[#allocation8_spill] sm:$0xff] }
  0x69   : > { %v6731_v47 = vsel %vm6576_vm7, %v5145_v26, %v1329_v19  ;;  %v1336_v51 = vrot.slane %v6311_v58, 5  ;;  %v1339_v6 = vrot.slane %v6319_v63, 5  ;;  %v5148_v59 = vrot.slane %v1231_v39, 9  ;;  %v8967_v19 = vld [vmem:[#allocation6_spill] sm:$0xff]  ;;  %v8969_v26 = vld [vmem:[#allocation7_spill] sm:$0xff] }
  0x6a   : > { %5841 = vmatmul.mubr.msk.bf16.gmra.mxu0 %vm714_vm3, %v5157_v29  ;;  %v1350_v16 = vrot.slane %v6402_v43, 5  ;;  %v1353_v27 = vrot.slane %v8964_v48, 5  ;;  %v5161_v41 = vcombine.low %v6715_v28, %v6719_v56  ;;  %v6749_v63 = vsel %vm6576_vm7, %v1331_v54, %v1332_v5  ;;  %v8971_v48 = vld [vmem:[#allocation11_spill] sm:$0xff] }
  0x6b   : > { %5844 = vmatprep.mubr.msk.bf16.mxu0 %vm714_vm3, %v5158_v49  ;;  %v5147_v1 = vrot.slane %v6725_v44, 9  ;;  %v5149_v4 = vrot.slane %v1232_v40, 9  ;;  %v1357_v15 = vrot.slane %v8965_v10, 5  ;;  %v1338_v5 = vrot.slane %v1336_v51, 4  ;;  %v5251_v57 = vld [vmem:[%s6246_s28 + $0xc] sm:$0xf] }
  0x6c   : > { %v6758_v25 = vsel %vm6576_vm7, %v5148_v59, %v1350_v16  ;;  %v1352_v45 = vrot.slane %v1350_v16, 4  ;;  %v1360_v29 = vrot.slane %v8967_v19, 5  ;;  %v5150_v49 = vrot.slane %v1233_v42, 9  ;;  %v8970_v59 = vld [vmem:[#allocation9_spill] sm:$0xff]  ;;  %v8972_v42 = vld [vmem:[#allocation10_spill] sm:$0xff] }
  0x6d   : > { %5807 = vmatmul.mubr.msk.bf16.gmra.mxu1 %vm714_vm3, %v5108_v33  ;;  %v1343_v33 = vrot.slane %v6356_v46, 5  ;;  %v6772_v39 = vsel %vm6576_vm7, %v5149_v4, %v1357_v15  ;;  %v1359_v44 = vrot.slane %v1357_v15, 4  ;;  %v1364_v40 = vrot.slane %v8968_v38, 5  ;;  %v8973_v15 = vld [vmem:[#allocation12_spill] sm:$0xff] }
  0x6e   : > { %5810 = vmatprep.mubr.msk.bf16.mxu1 %vm714_vm3, %v5109_v30  ;;  %v6768_v54 = vsel %vm6576_vm7, %v1352_v45, %v1353_v27  ;;  %v1367_v16 = vrot.slane %v8970_v59, 5  ;;  %v5151_v45 = vrot.slane %v1234_v18, 9  ;;  %v1371_v4 = vrot.slane %v8971_v48, 5 }
  0x6f   : > { %v6782_v27 = vsel %vm6576_vm7, %v1359_v44, %v1360_v29  ;;  %v1374_v50 = vrot.slane %v8973_v15, 5  ;;  %v6792_v19 = vsel %vm6576_vm7, %v5150_v49, %v1364_v40  ;;  %v1366_v7 = vrot.slane %v1364_v40, 4  ;;  %v8974_v29 = vld [vmem:[#allocation13_spill] sm:$0xff]  ;;  %v8975_v15 = vld [vmem:[#allocation2_spill] sm:$0xff]  ;;  %v6807_v49 = vld [vmem:[%s6246_s28 + $0x10] sm:$0xf] }
  0x70   : > { %v6799_v18 = vsel %vm6576_vm7, %v5146_v32, %v1336_v51  ;;  %v6804_v59 = vsel %vm6576_vm7, %v5151_v45, %v1371_v4  ;;  %v1373_v30 = vrot.slane %v1371_v4, 4  ;;  %v5254_v40 = vld [vmem:[%s6246_s28 + $0x18] sm:$0xf]  ;;  %v1345_v20 = vrot.slane %v1343_v33, 4 }
  0x71   : > { %v2088_v44 = vshrl.u32 %v5251_v57, 16  ;;  %v2091_v32 = vshll.u32 %v5251_v57, 16  ;;  %v5162_v51 = vcombine.low %v6731_v47, %v6749_v63  ;;  %v6822_v45 = vsel %vm6576_vm7, %v1338_v5, %v1339_v6  ;;  %v1235_v57 = vld [vmem:[%s6246_s28 + $0xb4] sm:$0xe]  ;;  %v6843_v47 = vld [vmem:[%s6246_s28 + $0x14] sm:$0x1] }
  0x72   : > { %5845 = vmatmul.mubr.msk.bf16.gmra.mxu0 %vm714_vm3, %v5159_v60  ;;  %v1346_v60 = vrot.slane %v8975_v15, 5  ;;  %v6837_v11 = vsel %vm6576_vm7, %v5147_v1, %v1343_v33  ;;  %v2097_v6 = vshll.u32 %v6807_v49, 16  ;;  %v5255_v63 = vld [vmem:[%s6246_s28 + $0x1c] sm:$0xf]  ;;  %v2101_v17 = vshrl.u32 %v6807_v49, 16 }
  0x73   : > { %5848 = vmatprep.mubr.msk.bf16.mxu0 %vm714_vm3, %v5160_v9  ;;  %v6812_v9 = vsel %vm6576_vm7, %v1366_v7, %v1367_v16  ;;  %v6828_v7 = vsel %vm6576_vm7, %v1373_v30, %v1374_v50  ;;  %v2090_v5 = vrot.slane %v2088_v44, 4  ;;  %v2093_v34 = vrot.slane %v2091_v32, 5  ;;  %v5257_v15 = vld [vmem:[%s6246_s28 + $0x24] sm:$0xf]  ;;  %v6856_v44 = vld [vmem:[%s6246_s28 + $0x28] sm:$0xf] }
  0x74   : > { %v2112_v50 = vshrl.u32 %v5254_v40, 16  ;;  %v1347_v1 = vsel %vm6576_vm7, %v1345_v20, %v1346_v60  ;;  %v5152_v33 = vrot.slane %v1235_v57, 9  ;;  %v6851_v30 = vrot.slane %v2097_v6, 5 }
  0x75   : > { %5811 = vmatmul.mubr.msk.bf16.gmra.mxu1 %vm714_vm3, %v5110_v52  ;;  %v1378_v52 = vrot.slane %v6555_v37, 5  ;;  %v2115_v16 = vshll.u32 %v5254_v40, 16  ;;  %v1381_v23 = vrot.slane %v6560_v61, 5  ;;  %v2103_v4 = vrot.slane %v2101_v17, 4 }
  0x76   : > { %5814 = vmatprep.mubr.msk.bf16.mxu1 %vm714_vm3, %v5111_v8  ;;  %v5256_v8 = vld [vmem:[%s6246_s28 + $0x20] sm:$0x1]  ;;  %v2114_v3 = vrot.slane %v2112_v50, 4  ;;  %v2121_v13 = vshll.u32 %v5255_v63, 16  ;;  %v2107_v20 = vshll.u32 %v6843_v47, 16  ;;  %v2125_v57 = vshrl.u32 %v5255_v63, 16 }
  0x77   : > { %v1380_v32 = vrot.slane %v1378_v52, 4  ;;  %v2117_v60 = vrot.slane %v2115_v16, 5  ;;  %v5163_v61 = vcombine.low %v6799_v18, %v6822_v45  ;;  %v5164_v40 = vcombine.low %v6837_v11, %v1347_v1 }
  0x78   : > { %v2094_v6 = vor.u32 %v2093_v34, %v2090_v5  ;;  %v6867_v17 = vrot.slane %v2121_v13, 5  ;;  %v2104_v28 = vor.u32 %v2103_v4, %v6851_v30  ;;  %v2131_v50 = vshll.u32 %v5256_v8, 16  ;;  %v6894_v5 = vld [vmem:[%s6246_s28 + $0x34] sm:$0xf] }
  0x79   : > { %v2118_v56 = vor.u32 %v2117_v60, %v2114_v3  ;;  %v6879_v18 = vsel %vm6576_vm7, %v5152_v33, %v1378_v52  ;;  %v2136_v13 = vshrl.u32 %v5257_v15, 16  ;;  %v2139_v45 = vshll.u32 %v5257_v15, 16  ;;  %v5260_v52 = vld [vmem:[%s6246_s28 + $0x30] sm:$0xf] }
  0x7a   : > { %5849 = vmatmul.mubr.msk.bf16.gmra.mxu0 %vm714_vm3, %v5161_v41  ;;  %v2127_v41 = vrot.slane %v2125_v57, 4  ;;  %v2145_v11 = vshll.u32 %v6856_v44, 16  ;;  %v8977_v3 = vcombine.low %v6265_v12, %v6269_v14  ;;  %v6888_v4 = vsel %vm6576_vm7, %v1380_v32, %v1381_v23 }
  0x7b   : > { %5852 = vmatprep.mubr.msk.bf16.mxu0 %vm714_vm3, %v5162_v51  ;;  %v8976_v51 = vcombine.low %v6531_v62, %v6538_v55  ;;  %v2109_v62 = vrot.slane %v2107_v20, 5  ;;  %v2149_v63 = vshrl.u32 %v6856_v44, 16  ;;  %v2095_v34 = vrot.slane %v2094_v6, 4 }
  0x7c   : > { %v2128_v55 = vor.u32 %v2127_v41, %v6867_v17  ;;  %v2138_v8 = vrot.slane %v2136_v13, 4  ;;  %v2141_v1 = vrot.slane %v2139_v45, 5  ;;  %v6896_v33 = vrot.slane %v2145_v11, 5  ;;  %v6902_v41 = vld [vmem:[%s6246_s28 + $0x38] sm:$0x1] }
  0x7d   : > { %5815 = vmatmul.mubr.msk.bf16.gmra.mxu1 %vm714_vm3, %v8976_v51  ;;  %v2105_v12 = vrot.slane %v2104_v28, 4  ;;  %v2119_v14 = vrot.slane %v2118_v56, 4  ;;  %v2133_v16 = vrot.slane %v2131_v50, 5  ;;  %v2151_v23 = vrot.slane %v2149_v63, 4  ;;  %v5263_v13 = vld [vmem:[%s6246_s28 + $0x3c] sm:$0xf] }
  0x7e   : > { %5818 = vmatprep.mubr.msk.bf16.mxu1 %vm714_vm3, %v8977_v3  ;;  %v2129_v15 = vrot.slane %v2128_v55, 4  ;;  %v2155_v32 = vshll.u32 %v6871_v21, 16  ;;  %v2160_v20 = vshrl.u32 %v5260_v52, 16  ;;  %v2163_v60 = vshll.u32 %v5260_v52, 16 }
  0x7f   : > { %v2142_v57 = vor.u32 %v2141_v1, %v2138_v8  ;;  %v2152_v6 = vor.u32 %v2151_v23, %v6896_v33  ;;  %v2169_v28 = vshll.u32 %v6894_v5, 16  ;;  %v2173_v56 = vshrl.u32 %v6894_v5, 16  ;;  %v5266_v8 = vld [vmem:[%s6246_s28 + $0x48] sm:$0xf]  ;;  %v6929_v1 = vld [vmem:[%s6246_s28 + $0x4c] sm:$0xf] }
  0x80   : > { %v2162_v50 = vrot.slane %v2160_v20, 4  ;;  %v2165_v51 = vrot.slane %v2163_v60, 5  ;;  %v8978_v3 = vcombine.low %v6307_v53, %v6311_v58  ;;  %v5169_v55 = vcombine.low %v6879_v18, %v6888_v4 }
  0x81   : > { %v6908_v45 = vrot.slane %v2169_v28, 5  ;;  %v2175_v11 = vrot.slane %v2173_v56, 4  ;;  %v2110_v63 = vsel %vm6290_vm4, %v2105_v12, %v2109_v62  ;;  %v2124_v52 = vsel %vm6290_vm4, %v2119_v14, %v6867_v17 }
  0x82   : > { %5853 = vmatmul.mubr.msk.bf16.gmra.mxu0 %vm714_vm3, %v5163_v61  ;;  %v6911_v61 = vld [vmem:[%s6246_s28 + $0x40] sm:$0xf]  ;;  %v8979_v53 = vcombine.low %v6345_v35, %v6356_v46  ;;  %v2134_v58 = vsel %vm6290_vm4, %v2129_v15, %v2133_v16  ;;  %v2143_v23 = vrot.slane %v2142_v57, 4  ;;  %v2166_v20 = vor.u32 %v2165_v51, %v2162_v50  ;;  %v6963_v50 = vld [vmem:[%s6246_s28 + $0x44] sm:$0x1] }
  0x83   : > { %5856 = vmatprep.mubr.msk.bf16.mxu0 %vm714_vm3, %v5164_v40  ;;  %v2100_v40 = vsel %vm6290_vm4, %v2095_v34, %v6851_v30  ;;  %v2153_v30 = vrot.slane %v2152_v6, 4  ;;  %v2157_v34 = vrot.slane %v2155_v32, 5  ;;  %v2179_v62 = vshll.u32 %v6902_v41, 16  ;;  %v5269_v51 = vld [vmem:[%s6246_s28 + $0x54] sm:$0xf] }
  0x84   : > { %v2184_v12 = vshrl.u32 %v5263_v13, 16  ;;  %v2187_v17 = vshll.u32 %v5263_v13, 16  ;;  %v6940_v14 = vsel %vm763_vm0, %v6671_v22, 0  ;;  %v2176_v35 = vor.u32 %v2175_v11, %v6908_v45 }
  0x85   : > { %5819 = vmatmul.mubr.msk.bf16.gmra.mxu1 %vm714_vm3, %v8978_v3  ;;  %v2193_v46 = vshll.u32 %v6911_v61, 16  ;;  %v2197_v16 = vshrl.u32 %v6911_v61, 16  ;;  %v6945_v15 = vcombine.low %v2100_v40, %v2110_v63  ;;  %v6949_v32 = vsel %vm763_vm0, %v6643_v24, 0  ;;  %v6972_v40 = vld [vmem:[%s6246_s28 + $0x58] sm:$0xf] }
  0x86   : > { %5822 = vmatprep.mubr.msk.bf16.mxu1 %vm714_vm3, %v8979_v53  ;;  %v2208_v60 = vshrl.u32 %v5266_v8, 16  ;;  %v2211_v57 = vshll.u32 %v5266_v8, 16  ;;  %v8980_v6 = vcombine.low %v6758_v25, %v6768_v54  ;;  %v6955_v22 = vcombine.low %v2124_v52, %v2134_v58  ;;  %v6977_v8 = vld [vmem:[%s6246_s28 + $0x50] sm:$0x1] }
  0x87   : > { %v2148_v28 = vsel %vm6290_vm4, %v2143_v23, %v6896_v33  ;;  %v2158_v56 = vsel %vm6290_vm4, %v2153_v30, %v2157_v34  ;;  %v2217_v24 = vshll.u32 %v6929_v1, 16  ;;  %v8981_v25 = vcombine.low %v6772_v39, %v6782_v27  ;;  %v5272_v34 = vld [vmem:[%s6246_s28 + $0x60] sm:$0xf] }
  0x88   : > { %v2167_v54 = vrot.slane %v2166_v20, 4  ;;  %v2181_v13 = vrot.slane %v2179_v62, 5  ;;  %v2186_v11 = vrot.slane %v2184_v12, 4  ;;  %v2189_v3 = vrot.slane %v2187_v17, 5 }
  0x89   : > { %v2177_v33 = vrot.slane %v2176_v35, 4  ;;  %v6974_v63 = vrot.slane %v2193_v46, 5  ;;  %v2199_v52 = vrot.slane %v2197_v16, 4  ;;  %v2221_v53 = vshrl.u32 %v6929_v1, 16  ;;  %v6994_v35 = vld [vmem:[%s6246_s28 + $0x5c] sm:$0x1] }
  0x8a   : > { %5857 = vmatmul.mubr.msk.bf16.gmra.mxu0 %vm714_vm3, %v8980_v6  ;;  %v8982_v39 = vcombine.low %v6395_v36, %v6402_v43  ;;  %v2210_v27 = vrot.slane %v2208_v60, 4  ;;  %v2213_v58 = vrot.slane %v2211_v57, 5  ;;  %v2232_v23 = vshrl.u32 %v5269_v51, 16 }
  0x8b   : > { %5860 = vmatprep.mubr.msk.bf16.mxu0 %vm714_vm3, %v8981_v25  ;;  %v2235_v30 = vshll.u32 %v5269_v51, 16  ;;  %v8983_v20 = vcombine.low %v8966_v2, %v8965_v10  ;;  %v6989_v62 = vcombine.low %v2148_v28, %v2158_v56  ;;  %v6991_v12 = vrot.slane %v2217_v24, 5  ;;  %v7007_v28 = vld [vmem:[%s6246_s28 + $0x64] sm:$0xf] }
  0x8c   : > { %v2223_v17 = vrot.slane %v2221_v53, 4  ;;  %v2241_v36 = vshll.u32 %v6972_v40, 16  ;;  %v2203_v43 = vshll.u32 %v6963_v50, 16  ;;  %v2234_v46 = vrot.slane %v2232_v23, 4 }
  0x8d   : > { %5823 = vmatmul.mubr.msk.bf16.gmra.mxu1 %vm714_vm3, %v8982_v39  ;;  %v2237_v16 = vrot.slane %v2235_v30, 5  ;;  %v2245_v60 = vshrl.u32 %v6972_v40, 16  ;;  %v2172_v10 = vsel %vm6290_vm4, %v2167_v54, %v6908_v45  ;;  %v2182_v2 = vsel %vm6290_vm4, %v2177_v33, %v2181_v13  ;;  %v7029_v30 = vld [vmem:[%s6246_s28 + $0x68] sm:$0x1] }
  0x8e   : > { %5826 = vmatprep.mubr.msk.bf16.mxu1 %vm714_vm3, %v8983_v20  ;;  %v2190_v57 = vor.u32 %v2189_v3, %v2186_v11  ;;  %v7004_v6 = vrot.slane %v2241_v36, 5  ;;  %v2200_v56 = vor.u32 %v2199_v52, %v6974_v63  ;;  %v2214_v24 = vor.u32 %v2213_v58, %v2210_v27  ;;  %v5275_v3 = vld [vmem:[%s6246_s28 + $0x6c] sm:$0xf]  ;;  %v7026_v27 = vld [vmem:[%s6246_s28 + $0x70] sm:$0xf] }
  0x8f   : > { %v2227_v51 = vshll.u32 %v6977_v8, 16  ;;  %v2247_v25 = vrot.slane %v2245_v60, 4  ;;  %v8984_v53 = vcombine.low %v6792_v19, %v6812_v9  ;;  %v2224_v45 = vor.u32 %v2223_v17, %v6991_v12 }
  0x90   : > { %v2238_v54 = vor.u32 %v2237_v16, %v2234_v46  ;;  %v2256_v13 = vshrl.u32 %v5272_v34, 16  ;;  %v2259_v11 = vshll.u32 %v5272_v34, 16  ;;  %v8985_v33 = vcombine.low %v6804_v59, %v6828_v7  ;;  %v5278_v16 = vld [vmem:[%s6246_s28 + $0x78] sm:$0xf] }
  0x91   : > { %v2248_v52 = vor.u32 %v2247_v25, %v7004_v6  ;;  %v2251_v39 = vshll.u32 %v6994_v35, 16  ;;  %v2265_v19 = vshll.u32 %v7007_v28, 16  ;;  %v2269_v9 = vshrl.u32 %v7007_v28, 16 }
  0x92   : > { %5861 = vmatmul.mubr.msk.bf16.gmra.mxu0 %vm714_vm3, %v8984_v53  ;;  %v2191_v58 = vrot.slane %v2190_v57, 4  ;;  %v2205_v23 = vrot.slane %v2203_v43, 5  ;;  %v2258_v34 = vrot.slane %v2256_v13, 4  ;;  %v2261_v20 = vrot.slane %v2259_v11, 5 }
  0x93   : > { %5864 = vmatprep.mubr.msk.bf16.mxu0 %vm714_vm3, %v8985_v33  ;;  %v8986_v59 = vcombine.low %v8969_v26, %v8968_v38  ;;  %v7035_v7 = vcombine.low %v2172_v10, %v2182_v2  ;;  %v2201_v17 = vrot.slane %v2200_v56, 4  ;;  %v2215_v36 = vrot.slane %v2214_v24, 4  ;;  %v7045_v2 = vld [vmem:[%s6246_s28 + $0x7c] sm:$0xf] }
  0x94   : > { %v7037_v46 = vrot.slane %v2265_v19, 5  ;;  %v8987_v43 = vcombine.low %v8972_v42, %v8971_v48  ;;  %v2225_v60 = vrot.slane %v2224_v45, 4  ;;  %v2229_v57 = vrot.slane %v2227_v51, 5  ;;  %8988 = vst [vmem:[#allocation3_spill] sm:$0xff] %v7045_v2  ;;  %v5281_v19 = vld [vmem:[%s6246_s28 + $0x84] sm:$0xf] }
  0x95   : > { %5827 = vmatmul.mubr.msk.bf16.gmra.mxu1 %vm714_vm3, %v8986_v59  ;;  %v2239_v25 = vrot.slane %v2238_v54, 4  ;;  %v2271_v38 = vrot.slane %v2269_v9, 4  ;;  %v2249_v26 = vrot.slane %v2248_v52, 4  ;;  %v2253_v53 = vrot.slane %v2251_v39, 5 }
  0x96   : > { %5830 = vmatprep.mubr.msk.bf16.mxu1 %vm714_vm3, %v8987_v43  ;;  %v2262_v13 = vor.u32 %v2261_v20, %v2258_v34  ;;  %v2280_v10 = vshrl.u32 %v5275_v3, 16  ;;  %v2196_v56 = vsel %vm6290_vm4, %v2191_v58, %v6974_v63  ;;  %v2283_v24 = vshll.u32 %v5275_v3, 16  ;;  %v6125_v63 = vld [vmem:[%s6246_s28 + $0xc] sm:$0xff]   ;;  %v7079_v34 = vld [vmem:[%s6246_s28 + $0x88] sm:$0xf] }
  0x97   : > { %v2289_v48 = vshll.u32 %v7026_v27, 16  ;;  %v2293_v42 = vshrl.u32 %v7026_v27, 16  ;;  %v2206_v51 = vsel %vm6290_vm4, %v2201_v17, %v2205_v23  ;;  %v2220_v45 = vsel %vm6290_vm4, %v2215_v36, %v6991_v12  ;;  %8989 = vst [vmem:[#allocation5_spill] sm:$0xff] %v7079_v34  ;;  %v7088_v36 = vld [vmem:[%s6246_s28 + $0x74] sm:$0x1] }
  0x98   : > { %v2272_v54 = vor.u32 %v2271_v38, %v7037_v46  ;;  %v2275_v11 = vshll.u32 %v7029_v30, 16  ;;  %v2230_v3 = vsel %vm6290_vm4, %v2225_v60, %v2229_v57  ;;  %v2244_v33 = vsel %vm6290_vm4, %v2239_v25, %v7004_v6  ;;  %8991 = vst [vmem:[#allocation4_spill] sm:$0xff] %v7088_v36  ;;  %v7098_v38 = vld [vmem:[%s6246_s28 + $0x80] sm:$0x1] }
  0x99   : > { %v2304_v52 = vshrl.u32 %v5278_v16, 16  ;;  %v2307_v12 = vshll.u32 %v5278_v16, 16  ;;  %v2254_v18 = vsel %vm6290_vm4, %v2249_v26, %v2253_v53  ;;  %v2263_v4 = vrot.slane %v2262_v13, 4  ;;  %8992 = vst [vmem:[#allocation6_spill] sm:$0xff] %v7098_v38  ;;  %v7101_v26 = vld [vmem:[%s6246_s28 + $0x8c] sm:$0x1] }
  0x9a   : > { %5865 = vmatmul.mubr.msk.bf16.gmra.mxu0 %vm714_vm3, %v5169_v55  ;;  %v2282_v55 = vrot.slane %v2280_v10, 4  ;;  %v2313_v39 = vshll.u32 %v7045_v2, 16  ;;  %v2285_v9 = vrot.slane %v2283_v24, 5  ;;  %v7075_v58 = vrot.slane %v2289_v48, 5  ;;  %8993 = vst [vmem:[#allocation8_spill] sm:$0xff] %v7101_v26  ;;  %v6126_v10 = vld [vmem:[%s6246_s28 + $0x18] sm:$0xff]  }
  0x9b   : > { %5904 = vmatprep.mubr.msk.bf16.mxu0 %vm714_vm3, %v6945_v15  ;;  %v2295_v23 = vrot.slane %v2293_v42, 4  ;;  %v2317_v6 = vshrl.u32 %v7045_v2, 16  ;;  %v8990_v15 = vcombine.low %v8974_v29, %v6555_v37  ;;  %v7085_v20 = vcombine.low %v2196_v56, %v2206_v51  ;;  %v5284_v51 = vld [vmem:[%s6246_s28 + $0x90] sm:$0xf] }
  0x9c   : > { %v2273_v59 = vrot.slane %v2272_v54, 4  ;;  %v2277_v17 = vrot.slane %v2275_v11, 5  ;;  %v2306_v16 = vrot.slane %v2304_v52, 4  ;;  %v2309_v43 = vrot.slane %v2307_v12, 5 }
  0x9d   : > { %5831 = vmatmul.mubr.msk.bf16.gmra.mxu1 %vm714_vm3, %v8990_v15  ;;  %v7091_v60 = vrot.slane %v2313_v39, 5  ;;  %v2319_v57 = vrot.slane %v2317_v6, 4  ;;  %v2328_v25 = vshrl.u32 %v5281_v19, 16  ;;  %v7093_v37 = vcombine.low %v2220_v45, %v2230_v3  ;;  %v7112_v45 = vld [vmem:[%s6246_s28 + $0x94] sm:$0xf] }
  0x9e   : > { %5870 = vmatprep.mubr.msk.bf16.mxu1 %vm714_vm3, %v6125_v63  ;;  %v7095_v29 = vcombine.low %v2244_v33, %v2254_v18  ;;  %v2331_v53 = vshll.u32 %v5281_v19, 16  ;;  %v2337_v13 = vshll.u32 %v7079_v34, 16  ;;  %v2268_v56 = vsel %vm6290_vm4, %v2263_v4, %v7037_v46  ;;  %8994 = vst [vmem:[#allocation7_spill] sm:$0xff] %v7112_v45  ;;  %v7120_v33 = vld [vmem:[%s8907_s1 + $0x10] sm:$0x3]  ;;  %v6127_v46 = vld [vmem:[%s6246_s28 + $0x24] sm:$0xff]  }
  0x9f   : > { %v2286_v24 = vor.u32 %v2285_v9, %v2282_v55  ;;  %v2296_v48 = vor.u32 %v2295_v23, %v7075_v58  ;;  %v2299_v42 = vshll.u32 %v7088_v36, 16  ;;  %v2330_v54 = vrot.slane %v2328_v25, 4  ;;  %8995 = vst [vmem:[#allocation9_spill] sm:$0xff] %v7120_v33 }
  0xa0   : > { %v2333_v11 = vrot.slane %v2331_v53, 5  ;;  %v7114_v63 = vrot.slane %v2337_v13, 5  ;;  %v2341_v3 = vshrl.u32 %v7079_v34, 16  ;;  %v2278_v52 = vsel %vm6290_vm4, %v2273_v59, %v2277_v17 }
  0xa1   : > { %v2310_v12 = vor.u32 %v2309_v43, %v2306_v16  ;;  %v2320_v18 = vor.u32 %v2319_v57, %v7091_v60  ;;  %v2323_v4 = vshll.u32 %v7098_v38, 16  ;;  %v2352_v19 = vshrl.u32 %v5284_v51, 16  ;;  %v7154_v57 = vld [vmem:[%s6246_s28 + $0xa0] sm:$0xf] }
  0xa2   : > { %5905 = vmatmul.mubr.msk.bf16.vlgmr.msra.gmra.mxu0 %vm714_vm3, %v6955_v22  ;;  %v2334_v55 = vor.u32 %v2333_v11, %v2330_v54  ;;  %v2343_v39 = vrot.slane %v2341_v3, 4  ;;  %v2355_v9 = vshll.u32 %v5284_v51, 16  ;;  %v5287_v22 = vld [vmem:[%s6246_s28 + $0x9c] sm:$0xf]  ;;  %v7133_v23 = vrot.slane %v2286_v24, 4  ;;  %8997 = vst [vmem:[#allocation10_spill] sm:$0xff] %v7154_v57 }
  0xa3   : > { %5971 = vmatpush3.bf16.msra.mxu0 %v6949_v32  ;;  %5908 = vmatprep.mubr.msk.bf16.mxu0 %vm714_vm3, %v6989_v62  ;;  %v7135_v6 = vrot.slane %v2299_v42, 5  ;;  %v2347_v15 = vshll.u32 %v7101_v26, 16  ;;  %v2361_v59 = vshll.u32 %v7112_v45, 16  ;;  %v7142_v32 = vld [vmem:[%s8907_s1 + $0xe] sm:$0x3]  ;;  %v7147_v62 = vcombine.low %v2268_v56, %v2278_v52 }
  0xa4   : > { %8996 = vst [vmem:[#allocation11_spill] sm:$0xff] %v7142_v32  ;;  %6083 = vmatprep.subr.msk.bf16.mxu0 %vm763_vm0, %v7120_v33  ;;  %v7149_v17 = vrot.slane %v2296_v48, 4  ;;  %v2344_v16 = vor.u32 %v2343_v39, %v7114_v63  ;;  %v2365_v43 = vshrl.u32 %v7112_v45, 16  ;;  %v7158_v25 = vrot.slane %v2310_v12, 4  ;;  %v7167_v56 = vld [vmem:[%s6246_s28 + $0x98] sm:$0x1] }
  0xa5   : > { %5871 = vmatmul.mubr.msk.bf16.vlgmr.msra.gmra.mxu1 %vm714_vm3, %v6126_v10  ;;  %v7160_v53 = vrot.slane %v2320_v18, 4  ;;  %v7162_v13 = vrot.slane %v2323_v4, 5  ;;  %v7164_v10 = vrot.slane %v2334_v55, 4  ;;  %8998 = vst [vmem:[#allocation12_spill] sm:$0xff] %v7167_v56  ;;  %v2354_v24 = vrot.slane %v2352_v19, 4  ;;  %v6129_v19 = vld [vmem:[%s6246_s28 + $0x3c] sm:$0xff]  }
  0xa6   : > { %5937 = vmatpush3.bf16.msra.mxu1 %v6940_v14  ;;  %5874 = vmatprep.mubr.msk.bf16.mxu1 %vm714_vm3, %v6127_v46  ;;  %v2357_v48 = vrot.slane %v2355_v9, 5  ;;  %v2376_v42 = vshrl.u32 %v5287_v22, 16  ;;  %v2379_v51 = vshll.u32 %v5287_v22, 16  ;;  %v6128_v14 = vld [vmem:[%s6246_s28 + $0x30] sm:$0xff]   ;;  %v7176_v11 = vrot.slane %v2347_v15, 5 }
  0xa7   : > { %6082 = vmatprep.subr.msk.bf16.mxu1 %vm763_vm0, %v7142_v32  ;;  %v7178_v3 = vrot.slane %v2361_v59, 5  ;;  %v2385_v46 = vshll.u32 %v7154_v57, 16  ;;  %v5290_v52 = vld [vmem:[%s6246_s28 + $0xa8] sm:$0xf]  ;;  %v7182_v12 = vrot.slane %v2344_v16, 4  ;;  %v2367_v18 = vrot.slane %v2365_v43, 4 }
  0xa8   : > { %v2371_v4 = vshll.u32 %v7167_v56, 16  ;;  %v2389_v55 = vshrl.u32 %v7154_v57, 16  ;;  %v7187_v39 = vld [vmem:[%s6246_s28 + $0xac] sm:$0xf]  ;;  %v2358_v59 = vor.u32 %v2357_v48, %v2354_v24  ;;  %v7211_v16 = vld [vmem:[%s6246_s28 + $0xa4] sm:$0x1] }
  0xa9   : > { %8999 = vst [vmem:[#allocation13_spill] sm:$0xff] %v7187_v39  ;;  %9000 = vst [vmem:[#allocation2_spill] sm:$0xff] %v7211_v16  ;;  %v2378_v43 = vrot.slane %v2376_v42, 4  ;;  %v2381_v22 = vrot.slane %v2379_v51, 5  ;;  %v2400_v54 = vshrl.u32 %v5290_v52, 16  ;;  %v7213_v9 = vrot.slane %v2385_v46, 5 }
  0xaa   : > { %5909 = vmatmul.mubr.msk.bf16.gmra.mxu0 %vm714_vm3, %v7035_v7  ;;  %v2391_v32 = vrot.slane %v2389_v55, 4  ;;  %v2403_v15 = vshll.u32 %v5290_v52, 16  ;;  %v2409_v33 = vshll.u32 %v7187_v39, 16  ;;  %v5293_v57 = vld [vmem:[%s6246_s28 + $0xb4] sm:$0xf]  ;;  %v2368_v24 = vor.u32 %v2367_v18, %v7178_v3 }
  0xab   : > { %5912 = vmatprep.mubr.msk.bf16.mxu0 %vm714_vm3, %v7085_v20  ;;  %v2350_v20 = vsel %vm6290_vm4, %v7182_v12, %v7176_v11  ;;  %v7223_v48 = vrot.slane %v2371_v4, 5  ;;  %v7226_v42 = vld [vmem:[%s6246_s28 + $0xb0] sm:$0x1]  ;;  %v2402_v51 = vrot.slane %v2400_v54, 4  ;;  %v7229_v46 = vld [vmem:[%s6246_s28 + $0xb8] sm:$0xf]  ;;  %v2382_v18 = vor.u32 %v2381_v22, %v2378_v43 }
  0xac   : > { %9001 = vst [vmem:[#allocation14_spill] sm:$0xff] %v7226_v42  ;;  %9002 = vst [vmem:[#allocation15_spill] sm:$0xff] %v7229_v46  ;;  %v2405_v52 = vrot.slane %v2403_v15, 5  ;;  %v7233_v55 = vrot.slane %v2409_v33, 5  ;;  %v2413_v11 = vshrl.u32 %v7187_v39, 16  ;;  %v7236_v12 = vrot.slane %v2358_v59, 4 }
  0xad   : > { %5875 = vmatmul.mubr.msk.bf16.gmra.mxu1 %vm714_vm3, %v6128_v14  ;;  %v2395_v14 = vshll.u32 %v7211_v16, 16  ;;  %v7239_v4 = vld [vmem:[%s6246_s28 + $0xbc] sm:$0x1]  ;;  %v2424_v54 = vshrl.u32 %v5293_v57, 16  ;;  %v2427_v7 = vshll.u32 %v5293_v57, 16  ;;  %v2392_v56 = vor.u32 %v2391_v32, %v7213_v9  ;;  %v6130_v16 = vld [vmem:[%s6246_s28 + $0x48] sm:$0xff]  }
  0xae   : > { %5878 = vmatprep.mubr.msk.bf16.mxu1 %vm714_vm3, %v6129_v19  ;;  %v2415_v45 = vrot.slane %v2413_v11, 4  ;;  %v2419_v19 = vshll.u32 %v7226_v42, 16  ;;  %v2433_v15 = vshll.u32 %v7229_v46, 16  ;;  %v5296_v33 = vld [vmem:[%s6246_s28 + $0xc0] sm:$0xf]  ;;  %v2406_v26 = vor.u32 %v2405_v52, %v2402_v51  ;;  %v6131_v57 = vld [vmem:[%s6246_s28 + $0x54] sm:$0xff]  }
  0xaf   : > { %v2426_v39 = vrot.slane %v2424_v54, 4  ;;  %v2429_v34 = vrot.slane %v2427_v7, 5  ;;  %v2437_v59 = vshrl.u32 %v7229_v46, 16  ;;  %v7248_v22 = vld [vmem:[%s6246_s28 + $0xc4] sm:$0xf]  ;;  %v2369_v43 = vrot.slane %v2368_v24, 4 }
  0xb0   : > { %v2397_v32 = vrot.slane %v2395_v14, 5  ;;  %v2416_v11 = vor.u32 %v2415_v45, %v7233_v55  ;;  %v2435_v42 = vrot.slane %v2433_v15, 5  ;;  %v2443_v7 = vshll.u32 %v7239_v4, 16  ;;  %v7260_v45 = vld [vmem:[%s6246_s28 + $0xc8] sm:$0x1] }
  0xb1   : > { %v2430_v51 = vor.u32 %v2429_v34, %v2426_v39  ;;  %v2439_v52 = vrot.slane %v2437_v59, 4  ;;  %v2448_v54 = vshrl.u32 %v5296_v33, 16  ;;  %v2383_v46 = vrot.slane %v2382_v18, 4 }
  0xb2   : > { %5913 = vmatmul.mubr.msk.bf16.gmra.mxu0 %vm714_vm3, %v7093_v37  ;;  %v2393_v38 = vrot.slane %v2392_v56, 4  ;;  %v2451_v2 = vshll.u32 %v5296_v33, 16  ;;  %v2457_v37 = vshll.u32 %v7248_v22, 16  ;;  %v2407_v24 = vrot.slane %v2406_v26, 4 }
  0xb3   : > { %5916 = vmatprep.mubr.msk.bf16.mxu0 %vm714_vm3, %v7095_v29  ;;  %v2421_v14 = vrot.slane %v2419_v19, 5  ;;  %v2440_v36 = vor.u32 %v2439_v52, %v2435_v42  ;;  %v2450_v15 = vrot.slane %v2448_v54, 4  ;;  %v2417_v34 = vrot.slane %v2416_v11, 4 }
  0xb4   : > { %v2453_v29 = vrot.slane %v2451_v2, 5  ;;  %v7263_v39 = vrot.slane %v2457_v37, 5  ;;  %v2461_v56 = vshrl.u32 %v7248_v22, 16  ;;  %v9003_v26 = vsel %vm6290_vm4, %v7149_v17, %v7135_v6 }
  0xb5   : > { %5879 = vmatmul.mubr.msk.bf16.gmra.mxu1 %vm714_vm3, %v6130_v16  ;;  %v9004_v16 = vsel %vm6290_vm4, %v7133_v23, %v7075_v58  ;;  %v2431_v19 = vrot.slane %v2430_v51, 4  ;;  %v2441_v33 = vrot.slane %v2440_v36, 4  ;;  %v2445_v2 = vrot.slane %v2443_v7, 5  ;;  %v6132_v23 = vld [vmem:[%s6246_s28 + $0x60] sm:$0xff]  }
  0xb6   : > { %5882 = vmatprep.mubr.msk.bf16.mxu1 %vm714_vm3, %v6131_v57  ;;  %v5308_v18 = vcombine.low %v9004_v16, %v9003_v26  ;;  %v9005_v59 = vsel %vm6290_vm4, %v7160_v53, %v7162_v13  ;;  %v9006_v6 = vsel %vm6290_vm4, %v7158_v25, %v7091_v60  ;;  %v2454_v57 = vor.u32 %v2453_v29, %v2450_v15  ;;  %v5334_v13 = vld [vmem:[%s6246_s28 + $0x24] sm:$0xe]  ;;  %v5337_v26 = vld [vmem:[%s6246_s28 + $0x48] sm:$0xe] }
  0xb7   : > { %v5309_v17 = vcombine.low %v9006_v6, %v9005_v59  ;;  %v2463_v11 = vrot.slane %v2461_v56, 4  ;;  %v2467_v58 = vshll.u32 %v7260_v45, 16  ;;  %v9007_v36 = vsel %vm6290_vm4, %v7164_v10, %v7114_v63  ;;  %v6133_v63 = vld [vmem:[%s6246_s28 + $0x6c] sm:$0xff]   ;;  %v5338_v6 = vld [vmem:[%s6246_s28 + $0x54] sm:$0xe] }
  0xb8   : > { %v5310_v51 = vcombine.low %v9007_v36, %v2350_v20  ;;  %v2364_v53 = vsel %vm6290_vm4, %v7236_v12, %v7178_v3  ;;  %v2374_v60 = vsel %vm6290_vm4, %v2369_v43, %v7223_v48  ;;  %v2388_v25 = vsel %vm6290_vm4, %v2383_v46, %v7213_v9  ;;  %v7316_v12 = vld [vmem:[%s6246_s28 + $0xc] sm:$0xe] }
  0xb9   : > { %v2398_v10 = vsel %vm6290_vm4, %v2393_v38, %v2397_v32  ;;  %v2412_v3 = vsel %vm6290_vm4, %v2407_v24, %v7233_v55  ;;  %v2422_v20 = vsel %vm6290_vm4, %v2417_v34, %v2421_v14  ;;  %v2464_v48 = vor.u32 %v2463_v11, %v7263_v39  ;;  %v5335_v55 = vld [vmem:[%s6246_s28 + $0x30] sm:$0xe]  ;;  %v5336_v14 = vld [vmem:[%s6246_s28 + $0x3c] sm:$0xe] }
  0xba   : > { %5917 = vmatmul.mubr.msk.bf16.gmra.mxu0 %vm714_vm3, %v7147_v62  ;;  %v2436_v62 = vsel %vm6290_vm4, %v2431_v19, %v2435_v42  ;;  %v2446_v38 = vsel %vm6290_vm4, %v2441_v33, %v2445_v2  ;;  %v7323_v9 = vrot.slane %v2454_v57, 4  ;;  %v2831_v46 = vrot.slane %v6807_v49, 5  ;;  %v6134_v57 = vld [vmem:[%s6246_s28 + $0x78] sm:$0xff]  }
  0xbb   : > { %5920 = vmatprep.mubr.msk.bf16.mxu0 %vm714_vm3, %v5308_v18  ;;  %v7327_v43 = vcombine.low %v2364_v53, %v2374_v60  ;;  %v7329_v32 = vrot.slane %v2464_v48, 4  ;;  %v7331_v52 = vrot.slane %v2467_v58, 5  ;;  %v5350_v7 = vrot.slane %v5334_v13, 9  ;;  %v6135_v53 = vld [vmem:[%s6246_s28 + $0x84] sm:$0xff]   ;;  %v5339_v13 = vld [vmem:[%s6246_s28 + $0x60] sm:$0xe] }
  0xbc   : > { %v7334_v54 = vcombine.low %v2388_v25, %v2398_v10  ;;  %v7336_v42 = vcombine.low %v2412_v3, %v2422_v20  ;;  %v5348_v37 = vrot.slane %v7316_v12, 9  ;;  %v2845_v24 = vrot.slane %v6856_v44, 5  ;;  %v6141_v49 = vld [vmem:[%s6246_s28 + $0x18] sm:$0xff]  }
  0xbd   : > { %5883 = vmatmul.mubr.msk.bf16.gmra.mxu1 %vm714_vm3, %v6132_v23  ;;  %v7342_v15 = vcombine.low %v2436_v62, %v2446_v38  ;;  %v2834_v34 = vrot.slane %v6843_v47, 5  ;;  %v2848_v29 = vrot.slane %v6871_v21, 5  ;;  %v5351_v56 = vrot.slane %v5335_v55, 9  ;;  %v5341_v55 = vld [vmem:[%s6246_s28 + $0x78] sm:$0xe] }
  0xbe   : > { %5886 = vmatprep.mubr.msk.bf16.mxu1 %vm714_vm3, %v6133_v63  ;;  %v2460_v16 = vsel %vm6290_vm4, %v7323_v9, %v7263_v39  ;;  %v7353_v44 = vrot.slane %v2831_v46, 4  ;;  %v7357_v18 = vsel %vm6576_vm7, %v5350_v7, %v2845_v24  ;;  %v2847_v19 = vrot.slane %v2845_v24, 4 }
  0xbf   : > { %v2470_v21 = vsel %vm6290_vm4, %v7329_v32, %v7331_v52  ;;  %v2852_v33 = vrot.slane %v6894_v5, 5  ;;  %v2855_v2 = vrot.slane %v6902_v41, 5  ;;  %v5352_v59 = vrot.slane %v5336_v14, 9  ;;  %v6140_v52 = vld [vmem:[%s6246_s28 + $0xc0] sm:$0xff]  }
  0xc0   : > { %v7369_v11 = vsel %vm6576_vm7, %v2847_v19, %v2848_v29  ;;  %v2859_v58 = vrot.slane %v6911_v61, 5  ;;  %v2862_v23 = vrot.slane %v6963_v50, 5  ;;  %v5353_v36 = vrot.slane %v5337_v26, 9  ;;  %v5342_v19 = vld [vmem:[%s6246_s28 + $0x84] sm:$0xe] }
  0xc1   : > { %v5367_v5 = vcombine.low %v7357_v18, %v7369_v11  ;;  %v7379_v41 = vsel %vm6576_vm7, %v5351_v56, %v2852_v33  ;;  %v2854_v60 = vrot.slane %v2852_v33, 4  ;;  %v2866_v25 = vrot.slane %v6929_v1, 5 }
  0xc2   : > { %5921 = vmatmul.mubr.msk.bf16.gmra.mxu0 %vm714_vm3, %v5309_v17  ;;  %v7386_v61 = vsel %vm6576_vm7, %v5352_v59, %v2859_v58  ;;  %v2861_v50 = vrot.slane %v2859_v58, 4  ;;  %v2869_v17 = vrot.slane %v6977_v8, 5  ;;  %v5354_v63 = vrot.slane %v5338_v6, 9  ;;  %v9008_v59 = vld [vmem:[#allocation4_spill] sm:$0xff] }
  0xc3   : > { %5924 = vmatprep.mubr.msk.bf16.mxu0 %vm714_vm3, %v5310_v51  ;;  %v7391_v10 = vsel %vm6576_vm7, %v2854_v60, %v2855_v2  ;;  %v7395_v3 = vsel %vm6576_vm7, %v5353_v36, %v2866_v25  ;;  %v2868_v1 = vrot.slane %v2866_v25, 4  ;;  %v2873_v20 = vrot.slane %v6972_v40, 5  ;;  %v5340_v51 = vld [vmem:[%s6246_s28 + $0x6c] sm:$0xe]  ;;  %v6136_v58 = vld [vmem:[%s6246_s28 + $0x90] sm:$0xff]  }
  0xc4   : > { %v5368_v48 = vcombine.low %v7379_v41, %v7391_v10  ;;  %v7404_v8 = vsel %vm6576_vm7, %v2861_v50, %v2862_v23  ;;  %v2876_v62 = vrot.slane %v6994_v35, 5  ;;  %v5355_v38 = vrot.slane %v5339_v13, 9  ;;  %v9009_v36 = vld [vmem:[#allocation3_spill] sm:$0xff]  ;;  %v5343_v60 = vld [vmem:[%s6246_s28 + $0x90] sm:$0xe]  ;;  %v9010_v50 = vld [vmem:[#allocation6_spill] sm:$0xff] }
  0xc5   : > { %5887 = vmatmul.mubr.msk.bf16.gmra.mxu1 %vm714_vm3, %v6134_v57  ;;  %v5369_v40 = vcombine.low %v7386_v61, %v7404_v8  ;;  %v7413_v7 = vsel %vm6576_vm7, %v2868_v1, %v2869_v17  ;;  %v7417_v24 = vsel %vm6576_vm7, %v5354_v63, %v2873_v20  ;;  %v2875_v14 = vrot.slane %v2873_v20, 4 }
  0xc6   : > { %5890 = vmatprep.mubr.msk.bf16.mxu1 %vm714_vm3, %v6135_v53  ;;  %v5370_v35 = vcombine.low %v7395_v3, %v7413_v7  ;;  %v2880_v29 = vrot.slane %v7007_v28, 5  ;;  %v2883_v56 = vrot.slane %v7029_v30, 5  ;;  %v5356_v26 = vrot.slane %v5340_v51, 9  ;;  %v9011_v51 = vld [vmem:[#allocation5_spill] sm:$0xff]  ;;  %v5474_v3 = vld [vmem:[%s6246_s28 + $0x48] sm:$0xf] }
  0xc7   : > { %v7426_v33 = vsel %vm6576_vm7, %v2875_v14, %v2876_v62  ;;  %v2887_v2 = vrot.slane %v7026_v27, 5  ;;  %v2890_v6 = vrot.slane %v9008_v59, 5  ;;  %v5357_v57 = vrot.slane %v5341_v55, 9  ;;  %v6137_v27 = vld [vmem:[%s6246_s28 + $0x9c] sm:$0xff]   ;;  %v9019_v55 = vld [vmem:[#allocation15_spill] sm:$0xff] }
  0xc8   : > { %v5371_v23 = vcombine.low %v7417_v24, %v7426_v33  ;;  %v7435_v28 = vsel %vm6576_vm7, %v5355_v38, %v2880_v29  ;;  %v2882_v30 = vrot.slane %v2880_v29, 4  ;;  %v2894_v53 = vrot.slane %v9009_v36, 5  ;;  %v5344_v38 = vld [vmem:[%s6246_s28 + $0x9c] sm:$0xe]  ;;  %v9014_v36 = vld [vmem:[#allocation12_spill] sm:$0xff] }
  0xc9   : > { %v7444_v25 = vsel %vm6576_vm7, %v5356_v26, %v2887_v2  ;;  %v2889_v13 = vrot.slane %v2887_v2, 4  ;;  %v2897_v17 = vrot.slane %v9010_v50, 5  ;;  %v5358_v63 = vrot.slane %v5342_v19, 9  ;;  %v5345_v26 = vld [vmem:[%s6246_s28 + $0xa8] sm:$0xe] }
  0xca   : > { %5925 = vmatmul.mubr.msk.bf16.gmra.mxu0 %vm714_vm3, %v7327_v43  ;;  %v7451_v1 = vsel %vm6576_vm7, %v2882_v30, %v2883_v56  ;;  %v7455_v43 = vsel %vm6576_vm7, %v5357_v57, %v2894_v53  ;;  %v2896_v20 = vrot.slane %v2894_v53, 4  ;;  %v2901_v62 = vrot.slane %v9011_v51, 5  ;;  %v5347_v57 = vld [vmem:[%s6246_s28 + $0xc0] sm:$0xe]  ;;  %v6138_v19 = vld [vmem:[%s6246_s28 + $0xa8] sm:$0xff]  }
  0xcb   : > { %5928 = vmatprep.mubr.msk.bf16.mxu0 %vm714_vm3, %v7334_v54  ;;  %v7463_v14 = vsel %vm6576_vm7, %v2889_v13, %v2890_v6  ;;  %v9012_v54 = vld [vmem:[#allocation8_spill] sm:$0xff]  ;;  %v5359_v56 = vrot.slane %v5343_v60, 9  ;;  %v2911_v53 = vrot.slane %v9014_v36, 5  ;;  %v5360_v60 = vrot.slane %v5344_v38, 9  ;;  %v9017_v38 = vld [vmem:[#allocation13_spill] sm:$0xff] }
  0xcc   : > { %v2904_v29 = vrot.slane %v9012_v54, 5  ;;  %v7472_v2 = vsel %vm6576_vm7, %v2896_v20, %v2897_v17  ;;  %v7476_v59 = vsel %vm6576_vm7, %v5358_v63, %v2901_v62  ;;  %v2903_v6 = vrot.slane %v2901_v62, 4  ;;  %v5346_v13 = vld [vmem:[%s6246_s28 + $0xb4] sm:$0xe]  ;;  %v9015_v17 = vld [vmem:[#allocation10_spill] sm:$0xff] }
  0xcd   : > { %5891 = vmatmul.mubr.msk.bf16.gmra.mxu1 %vm714_vm3, %v6136_v58  ;;  %v9013_v58 = vld [vmem:[#allocation7_spill] sm:$0xff]  ;;  %v2915_v63 = vrot.slane %v9015_v17, 5  ;;  %v9016_v20 = vld [vmem:[#allocation2_spill] sm:$0xff]  ;;  %v5361_v62 = vrot.slane %v5345_v26, 9  ;;  %v2922_v36 = vrot.slane %v9017_v38, 5  ;;  %v5362_v26 = vrot.slane %v5346_v13, 9 }
  0xce   : > { %5894 = vmatprep.mubr.msk.bf16.mxu1 %vm714_vm3, %v6137_v27  ;;  %v2908_v30 = vrot.slane %v9013_v58, 5  ;;  %v7486_v50 = vsel %vm6576_vm7, %v2903_v6, %v2904_v29  ;;  %v2918_v51 = vrot.slane %v9016_v20, 5  ;;  %v9018_v17 = vld [vmem:[#allocation14_spill] sm:$0xff]  ;;  %v6139_v27 = vld [vmem:[%s6246_s28 + $0xb4] sm:$0xff]   ;;  %v2835_v39 = vsel %vm6576_vm7, %v7353_v44, %v2834_v34  ;;  %v7703_v7 = vld [vmem:[%s6246_s28 + $0x4c] sm:$0xf] }
  0xcf   : > { %v7501_v29 = vsel %vm6576_vm7, %v5360_v60, %v2915_v63  ;;  %v2917_v6 = vrot.slane %v2915_v63, 4  ;;  %v2925_v20 = vrot.slane %v9018_v17, 5  ;;  %v2924_v38 = vrot.slane %v2922_v36, 4  ;;  %v6158_v44 = vld [vmem:[%s6246_s28 + $0x20] sm:$0x1] }
  0xd0   : > { %v7494_v54 = vsel %vm6576_vm7, %v5359_v56, %v2908_v30  ;;  %v2910_v58 = vrot.slane %v2908_v30, 4  ;;  %v7513_v30 = vsel %vm6576_vm7, %v5361_v62, %v2922_v36  ;;  %v2929_v60 = vrot.slane %v9019_v55, 5 }
  0xd1   : > { %v5363_v63 = vrot.slane %v5347_v57, 9  ;;  %v7529_v55 = vsel %vm6576_vm7, %v2924_v38, %v2925_v20  ;;  %v2936_v57 = vrot.slane %v7248_v22, 5  ;;  %v2832_v22 = vsel %vm6576_vm7, %v5348_v37, %v2831_v46  ;;  %v6143_v38 = vld [vmem:[%s6246_s28 + $0x30] sm:$0xff]  }
  0xd2   : > { %5929 = vmatmul.mubr.msk.bf16.gmra.mxu0 %vm714_vm3, %v7336_v42  ;;  %v7509_v56 = vsel %vm6576_vm7, %v2910_v58, %v2911_v53  ;;  %v7522_v42 = vsel %vm6576_vm7, %v2917_v6, %v2918_v51  ;;  %v2932_v53 = vrot.slane %v7239_v4, 5  ;;  %v2931_v58 = vrot.slane %v2929_v60, 4 }
  0xd3   : > { %5932 = vmatprep.mubr.msk.bf16.mxu0 %vm714_vm3, %v7342_v15  ;;  %v7533_v15 = vsel %vm6576_vm7, %v5362_v26, %v2929_v60  ;;  %v2939_v51 = vrot.slane %v7260_v45, 5  ;;  %v5333_v45 = vld [vmem:[%s6246_s28 + $0x18] sm:$0xe]  ;;  %v7573_v9 = vsel %vm6576_vm7, %v5363_v63, %v2936_v57  ;;  %v2938_v46 = vrot.slane %v2936_v57, 4  ;;  %v6142_v26 = vld [vmem:[%s6246_s28 + $0x24] sm:$0xff]  }
  0xd4   : > { %v7561_v32 = vsel %vm6576_vm7, %v2931_v58, %v2932_v53  ;;  %v5349_v37 = vrot.slane %v5333_v45, 9  ;;  %v5365_v34 = vcombine.low %v2832_v22, %v2835_v39  ;;  %v9020_v60 = vld [vmem:[#allocation9_spill] sm:$0xff] }
  0xd5   : > { %5895 = vmatmul.mubr.msk.bf16.gmra.mxu1 %vm714_vm3, %v6138_v19  ;;  %v5315_v19 = vcombine.low %v2460_v16, %v2470_v21  ;;  %v7578_v47 = vsel %vm6576_vm7, %v2938_v46, %v2939_v51  ;;  %v2841_v21 = vrot.slane %v6158_v44, 5  ;;  %v4598_v53 = vsel %vm763_vm0, %v9020_v60, 0  ;;  %v5462_v63 = vld [vmem:[%s6246_s28 + $0x18] sm:$0xf]  ;;  %v5463_v57 = vld [vmem:[%s6246_s28 + $0x1c] sm:$0xf] }
  0xd6   : > { %5898 = vmatprep.mubr.msk.bf16.mxu1 %vm714_vm3, %v6139_v27  ;;  %v6157_v27 = vld [vmem:[%s6246_s28 + $0x1c] sm:$0xf]  ;;  %v5465_v51 = vld [vmem:[%s6246_s28 + $0x24] sm:$0xf]  ;;  %v3646_v45 = vshrl.u32 %v5462_v63, 16  ;;  %v3655_v39 = vshll.u32 %v5463_v57, 16 }
  0xd7   : > { %v2838_v36 = vrot.slane %v6157_v27, 5  ;;  %v3649_v27 = vshll.u32 %v5462_v63, 16  ;;  %v3670_v46 = vshrl.u32 %v5465_v51, 16  ;;  %v6145_v44 = vld [vmem:[%s6246_s28 + $0x48] sm:$0xff]   ;;  %v5543_v60 = vld [vmem:[%s6246_s28 + $0x18] sm:$0xe] }
  0xd8   : > { %v7619_v63 = vld [vmem:[%s6246_s28 + $0x2c] sm:$0x1] }
  0xd9   : > { %v2840_v16 = vrot.slane %v2838_v36, 4  ;;  %v2839_v17 = vsel %vm6576_vm7, %v5349_v37, %v2838_v36  ;;  %v7603_v36 = vld [vmem:[%s6246_s28 + $0x28] sm:$0xf]  ;;  %v6144_v37 = vld [vmem:[%s6246_s28 + $0x3c] sm:$0xff]   ;;  %v3672_v18 = vrot.slane %v3670_v46, 4 }
  0xda   : > { %5933 = vmatmul.mubr.msk.bf16.gmra.mxu0 %vm714_vm3, %v5315_v19  ;;  %v9021_v19 = vld [vmem:[#allocation11_spill] sm:$0xff] }
  0xdb   : > { %5972 = vmatprep.mubr.msk.bf16.mxu0 %vm714_vm3, %v6141_v49  ;;  %v2842_v20 = vsel %vm6576_vm7, %v2840_v16, %v2841_v21  ;;  %v4128_v22 = vsel %vm763_vm0, %v9021_v19, 0  ;;  %v3659_v49 = vshrl.u32 %v5463_v57, 16  ;;  %v3683_v16 = vshrl.u32 %v7603_v36, 16  ;;  %v5464_v21 = vld [vmem:[%s6246_s28 + $0x20] sm:$0x1] }
  0xdc   : > { %v5366_v58 = vcombine.low %v2839_v17, %v2842_v20  ;;  %v3648_v17 = vrot.slane %v3646_v45, 4  ;;  %v3651_v20 = vrot.slane %v3649_v27, 5  ;;  %v5468_v19 = vld [vmem:[%s6246_s28 + $0x30] sm:$0xf]  ;;  %v3665_v45 = vshll.u32 %v5464_v21, 16 }
  0xdd   : > { %5899 = vmatmul.mubr.msk.bf16.gmra.mxu1 %vm714_vm3, %v6140_v52  ;;  %v3673_v52 = vshll.u32 %v5465_v51, 16  ;;  %v3685_v51 = vrot.slane %v3683_v16, 4  ;;  %v5559_v27 = vrot.slane %v5543_v60, 9  ;;  %v4392_v46 = vrot.slane %v5464_v21, 5  ;;  %v5544_v16 = vld [vmem:[%s6246_s28 + $0x24] sm:$0xe] }
  0xde   : > { %5938 = vmatprep.mubr.msk.bf16.mxu1 %vm714_vm3, %v5365_v34  ;;  %v3679_v34 = vshll.u32 %v7603_v36, 16  ;;  %v6146_v21 = vld [vmem:[%s6246_s28 + $0x54] sm:$0xff]   ;;  %v3697_v10 = vshll.u32 %v5468_v19, 16  ;;  %v6147_v60 = vld [vmem:[%s6246_s28 + $0x60] sm:$0xff]  }
  0xdf   : > { %v3675_v11 = vrot.slane %v3673_v52, 5  ;;  %v3689_v52 = vshll.u32 %v7619_v63, 16 }
  0xe2   : > { %5973 = vmatmul.mubr.msk.bf16.vlgmr.msra.gmra.mxu0 %vm714_vm3, %v6142_v26  ;;  %v7615_v26 = vrot.slane %v3655_v39, 5 }
  0xe3   : > { %6039 = vmatpush3.bf16.msra.mxu0 %v4598_v53  ;;  %5976 = vmatprep.mubr.msk.bf16.mxu0 %vm714_vm3, %v6143_v38  ;;  %v3661_v38 = vrot.slane %v3659_v49, 4  ;;  %v4389_v53 = vrot.slane %v5463_v57, 5  ;;  %v7629_v57 = vld [vmem:[%s6246_s28 + $0x34] sm:$0xf] }
  0xe5   : > { %5939 = vmatmul.mubr.msk.bf16.vlgmr.msra.gmra.mxu1 %vm714_vm3, %v5366_v58  ;;  %v7624_v58 = vrot.slane %v3679_v34, 5  ;;  %v3662_v39 = vor.u32 %v3661_v38, %v7615_v26  ;;  %v4391_v49 = vrot.slane %v4389_v53, 4  ;;  %v3676_v34 = vor.u32 %v3675_v11, %v3672_v18 }
  0xe6   : > { %6005 = vmatpush3.bf16.msra.mxu1 %v4128_v22  ;;  %5942 = vmatprep.mubr.msk.bf16.mxu1 %vm714_vm3, %v5367_v5  ;;  %v7622_v5 = vpop.f32.mrf.mxu0  ;;  %v3652_v22 = vor.u32 %v3651_v20, %v3648_v17  ;;  %v3694_v17 = vshrl.u32 %v5468_v19, 16  ;;  %v3707_v38 = vshrl.u32 %v7629_v57, 16  ;;  %v7654_v61 = vsel %vm6576_vm7, %v5559_v27, %v4389_v53  ;;  %v5471_v19 = vld [vmem:[%s6246_s28 + $0x3c] sm:$0xf] }
  0xe7   : > { %v3686_v41 = vor.u32 %v3685_v51, %v7624_v58  ;;  %v3663_v8 = vrot.slane %v3662_v39, 4  ;;  %v3691_v11 = vrot.slane %v3689_v52, 5  ;;  %v5560_v51 = vrot.slane %v5544_v16, 9  ;;  %v7668_v39 = vld [vmem:[%s6246_s28 + $0x38] sm:$0x1] }
  0xe8   : > { %v7646_v20 = vpop.f32.mrf.mxu0  ;;  %v3653_v18 = vrot.slane %v3652_v22, 4  ;;  %v3677_v12 = vrot.slane %v3676_v34, 4  ;;  %v4399_v22 = vrot.slane %v7619_v63, 5  ;;  %v3709_v52 = vrot.slane %v3707_v38, 4 }
  0xe9   : > { %v3687_v27 = vrot.slane %v3686_v41, 4  ;;  %v3718_v34 = vshrl.u32 %v5471_v19, 16  ;;  %v3721_v16 = vshll.u32 %v5471_v19, 16  ;;  %v7681_v41 = vld [vmem:[%s6246_s28 + $0x40] sm:$0xf] }
  0xea   : > { %5977 = vmatmul.mubr.msk.bf16.gmra.mxu0 %vm714_vm3, %v6144_v37  ;;  %v7665_v53 = vpop.f32.mrf.mxu0  ;;  %v3658_v63 = vsel %vm6290_vm4, %v3653_v18, %v7615_v26  ;;  %v3682_v26 = vsel %vm6290_vm4, %v3677_v12, %v7624_v58  ;;  %v5545_v18 = vld [vmem:[%s6246_s28 + $0x30] sm:$0xe]  ;;  %v3727_v24 = vshll.u32 %v7681_v41, 16  ;;  %v3731_v33 = vshrl.u32 %v7681_v41, 16 }
  0xeb   : > { %5980 = vmatprep.mubr.msk.bf16.mxu0 %vm714_vm3, %v6145_v44  ;;  %v7637_v37 = vpop.f32.mrf.mxu1  ;;  %v4396_v44 = vrot.slane %v7603_v36, 5  ;;  %v3667_v36 = vrot.slane %v3665_v45, 5  ;;  %v3696_v45 = vrot.slane %v3694_v17, 4  ;;  %v3692_v58 = vsel %vm6290_vm4, %v3687_v27, %v3691_v11 }
  0xec   : > { %9022 = vst [vmem:[#allocation4_spill] sm:$0xff] %v7637_v37  ;;  %v7710_v12 = vpop.f32.mrf.mxu0  ;;  %v3723_v19 = vrot.slane %v3721_v16, 5  ;;  %v3755_v11 = vshrl.u32 %v7703_v7, 16 }
  0xed   : > { %5943 = vmatmul.mubr.msk.bf16.gmra.mxu1 %vm714_vm3, %v5368_v48  ;;  %v3703_v48 = vshll.u32 %v7629_v57, 16  ;;  %v7661_v6 = vpop.f32.mrf.mxu1  ;;  %v4398_v4 = vrot.slane %v4396_v44, 4  ;;  %v3668_v17 = vsel %vm6290_vm4, %v3663_v8, %v3667_v36  ;;  %v4403_v36 = vrot.slane %v7629_v57, 5  ;;  %v6149_v8 = vld [vmem:[%s6246_s28 + $0x78] sm:$0xff]  }
  0xee   : > { %5946 = vmatprep.mubr.msk.bf16.mxu1 %vm714_vm3, %v5369_v40  ;;  %v7658_v40 = vsel %vm6576_vm7, %v4391_v49, %v4392_v46  ;;  %9023 = vst [vmem:[#allocation3_spill] sm:$0xff] %v7661_v6  ;;  %v3699_v49 = vrot.slane %v3697_v10, 5  ;;  %v7724_v27 = vcombine.low %v3658_v63, %v3668_v17  ;;  %v7726_v57 = vcombine.low %v3682_v26, %v3692_v58  ;;  %v7740_v17 = vld [vmem:[%s6246_s28 + $0x58] sm:$0xf]  ;;  %v7746_v58 = vld [vmem:[%s6246_s28 + $0x44] sm:$0x1] }
  0xef   : > { %v7670_v46 = vrot.slane %v3703_v48, 5  ;;  %v7687_v10 = vpop.f32.mrf.mxu1  ;;  %v7694_v48 = vsel %vm6576_vm7, %v5560_v51, %v4396_v44  ;;  %v7698_v38 = vsel %vm6576_vm7, %v4398_v4, %v4399_v22  ;;  %v3720_v51 = vrot.slane %v3718_v34, 4  ;;  %v5477_v34 = vld [vmem:[%s6246_s28 + $0x54] sm:$0xf] }
  0xf0   : > { %9024 = vst [vmem:[#allocation6_spill] sm:$0xff] %v7687_v10  ;;  %v3700_v44 = vor.u32 %v3699_v49, %v3696_v45  ;;  %v3745_v22 = vshll.u32 %v5474_v3, 16  ;;  %v4405_v13 = vrot.slane %v4403_v36, 4  ;;  %v4406_v63 = vrot.slane %v7668_v39, 5  ;;  %v5546_v49 = vld [vmem:[%s6246_s28 + $0x3c] sm:$0xe] }
  0xf1   : > { %v3710_v4 = vor.u32 %v3709_v52, %v7670_v46  ;;  %v7722_v45 = vpop.f32.mrf.mxu1  ;;  %v5561_v52 = vrot.slane %v5545_v18, 9  ;;  %v3724_v18 = vor.u32 %v3723_v19, %v3720_v51  ;;  %v9027_v6 = vcombine.low %v7435_v28, %v7451_v1 }
  0xf2   : > { %5981 = vmatmul.mubr.msk.bf16.gmra.mxu0 %vm714_vm3, %v6146_v21  ;;  %v3751_v21 = vshll.u32 %v7703_v7, 16  ;;  %9025 = vst [vmem:[#allocation5_spill] sm:$0xff] %v7722_v45  ;;  %v3747_v45 = vrot.slane %v3745_v22, 5  ;;  %v3766_v51 = vshrl.u32 %v5477_v34, 16  ;;  %v3769_v19 = vshll.u32 %v5477_v34, 16 }
  0xf3   : > { %5984 = vmatprep.mubr.msk.bf16.mxu0 %vm714_vm3, %v6147_v60  ;;  %v3713_v60 = vshll.u32 %v7668_v39, 16  ;;  %v7743_v26 = vrot.slane %v3710_v4, 4  ;;  %v3757_v39 = vrot.slane %v3755_v11, 4  ;;  %v7781_v22 = vsel %vm6576_vm7, %v4405_v13, %v4406_v63 }
  0xf4   : > { %v7751_v10 = vrot.slane %v3751_v21, 5  ;;  %v9029_v21 = vcombine.low %v7444_v25, %v7463_v14  ;;  %v4410_v25 = vrot.slane %v7681_v41, 5  ;;  %v6151_v14 = vld [vmem:[%s6246_s28 + $0x90] sm:$0xff]   ;;  %v5562_v1 = vrot.slane %v5546_v49, 9  ;;  %v5480_v41 = vld [vmem:[%s6246_s28 + $0x60] sm:$0xf] }
  0xf5   : > { %5947 = vmatmul.mubr.msk.bf16.gmra.mxu1 %vm714_vm3, %v5370_v35  ;;  %v6148_v35 = vld [vmem:[%s6246_s28 + $0x6c] sm:$0xff]   ;;  %v7736_v62 = vrot.slane %v3713_v60, 5  ;;  %v3768_v37 = vrot.slane %v3766_v51, 4 }
  0xf6   : > { %5950 = vmatprep.mubr.msk.bf16.mxu1 %vm714_vm3, %v5371_v23  ;;  %v3742_v23 = vshrl.u32 %v5474_v3, 16  ;;  %v7734_v3 = vrot.slane %v3700_v44, 4  ;;  %v3733_v44 = vrot.slane %v3731_v33, 4  ;;  %v3779_v33 = vshrl.u32 %v7740_v17, 16 }
  0xf7   : > { %v7732_v16 = vpop.f32.mrf.mxu0  ;;  %v3758_v13 = vor.u32 %v3757_v39, %v7751_v10  ;;  %v4417_v39 = vrot.slane %v7703_v7, 5  ;;  %v9033_v7 = vcombine.low %v7455_v43, %v7472_v2  ;;  %v9035_v43 = vcombine.low %v7476_v59, %v7486_v50  ;;  %v6152_v2 = vld [vmem:[%s6246_s28 + $0x9c] sm:$0xff]  }
  0xf8   : > { %9026 = vst [vmem:[#allocation8_spill] sm:$0xff] %v7732_v16  ;;  %v3744_v60 = vrot.slane %v3742_v23, 4  ;;  %v6150_v23 = vld [vmem:[%s6246_s28 + $0x84] sm:$0xff]   ;;  %v7808_v16 = vld [vmem:[%s6246_s28 + $0x5c] sm:$0x1]  ;;  %v4424_v59 = vrot.slane %v7740_v17, 5 }
  0xf9   : > { %v7769_v28 = vpop.f32.mrf.mxu0 }
  0xfa   : > { %5985 = vmatmul.mubr.msk.bf16.gmra.mxu0 %vm714_vm3, %v6148_v35  ;;  %v7748_v35 = vrot.slane %v3727_v24, 5  ;;  %v3775_v24 = vshll.u32 %v7740_v17, 16  ;;  %9030 = vst [vmem:[#allocation12_spill] sm:$0xff] %v7769_v28  ;;  %v3771_v28 = vrot.slane %v3769_v19, 5 }
  0xfb   : > { %5988 = vmatprep.mubr.msk.bf16.mxu0 %vm714_vm3, %v6149_v8  ;;  %v7757_v4 = vpop.f32.mrf.mxu1  ;;  %v7760_v8 = vld [vmem:[%s6246_s28 + $0x50] sm:$0x1]  ;;  %v7801_v49 = vpop.f32.mrf.mxu0 }
  0xfc   : > { %9028 = vst [vmem:[#allocation7_spill] sm:$0xff] %v7757_v4  ;;  %v3734_v34 = vor.u32 %v3733_v44, %v7748_v35  ;;  %v7791_v4 = vrot.slane %v3724_v18, 4  ;;  %v7798_v11 = vrot.slane %v3775_v24, 5  ;;  %v3781_v44 = vrot.slane %v3779_v33, 4  ;;  %9032 = vst [vmem:[#allocation2_spill] sm:$0xff] %v7801_v49 }
  0xfd   : > { %5951 = vmatmul.mubr.msk.bf16.gmra.mxu1 %vm714_vm3, %v9027_v6  ;;  %v7777_v6 = vsel %vm6576_vm7, %v5561_v52, %v4403_v36  ;;  %v3748_v36 = vor.u32 %v3747_v45, %v3744_v60  ;;  %v3761_v52 = vshll.u32 %v7760_v8, 16  ;;  %v7796_v63 = vpop.f32.mrf.mxu1  ;;  %v4412_v18 = vrot.slane %v4410_v25, 4  ;;  %v5547_v24 = vld [vmem:[%s6246_s28 + $0x48] sm:$0xe] }
  0xfe   : > { %5954 = vmatprep.mubr.msk.bf16.mxu1 %vm714_vm3, %v9029_v21  ;;  %v3737_v21 = vshll.u32 %v7746_v58, 16  ;;  %9031 = vst [vmem:[#allocation10_spill] sm:$0xff] %v7796_v63  ;;  %v4413_v60 = vrot.slane %v7746_v58, 5  ;;  %v3735_v51 = vrot.slane %v3734_v34, 4  ;;  %v3790_v33 = vshrl.u32 %v5480_v41, 16 }
  0xff   : > { %v7814_v63 = vsel %vm6576_vm7, %v5562_v1, %v4410_v25  ;;  %v3749_v45 = vrot.slane %v3748_v36, 4  ;;  %v3759_v49 = vrot.slane %v3758_v13, 4  ;;  %v3763_v58 = vrot.slane %v3761_v52, 5  ;;  %v7829_v36 = vld [vmem:[%s6246_s28 + $0x64] sm:$0xf]  ;;  %v7836_v13 = vpop.f32.mrf.mxu0 }
 0x100   : > { %v3739_v19 = vrot.slane %v3737_v21, 5  ;;  %v3730_v34 = vsel %vm6290_vm4, %v7791_v4, %v7748_v35  ;;  %v3772_v21 = vor.u32 %v3771_v28, %v3768_v37  ;;  %v3782_v1 = vor.u32 %v3781_v44, %v7798_v11  ;;  %9036 = vst [vmem:[#allocation14_spill] sm:$0xff] %v7836_v13  ;;  %v5548_v28 = vld [vmem:[%s6246_s28 + $0x54] sm:$0xe]  ;;  %v6156_v13 = vld [vmem:[%s6246_s28 + $0xcc] sm:$0xff]  }
 0x101   : > { %v3785_v25 = vshll.u32 %v7808_v16, 16  ;;  %v7840_v52 = vsel %vm6576_vm7, %v4412_v18, %v4413_v60  ;;  %v5563_v35 = vrot.slane %v5547_v24, 9  ;;  %v4419_v37 = vrot.slane %v4417_v39, 4 }
 0x102   : > { %5989 = vmatmul.mubr.msk.bf16.gmra.mxu0 %vm714_vm3, %v6150_v23  ;;  %v3793_v23 = vshll.u32 %v5480_v41, 16  ;;  %v4420_v4 = vrot.slane %v7760_v8, 5  ;;  %v6153_v41 = vld [vmem:[%s6246_s28 + $0xa8] sm:$0xff]   ;;  %v3740_v44 = vsel %vm6290_vm4, %v3735_v51, %v3739_v19  ;;  %v3792_v50 = vrot.slane %v3790_v33, 4 }
 0x103   : > { %5992 = vmatprep.mubr.msk.bf16.mxu0 %vm714_vm3, %v6151_v14  ;;  %v7820_v14 = vpop.f32.mrf.mxu1  ;;  %v3764_v18 = vsel %vm6290_vm4, %v3759_v49, %v3763_v58  ;;  %v3799_v60 = vshll.u32 %v7829_v36, 16  ;;  %v3803_v8 = vshrl.u32 %v7829_v36, 16  ;;  %v3783_v51 = vrot.slane %v3782_v1, 4  ;;  %v7858_v33 = vld [vmem:[%s6246_s28 + $0x68] sm:$0x1] }
 0x104   : > { %9034 = vst [vmem:[#allocation13_spill] sm:$0xff] %v7820_v14  ;;  %v3773_v14 = vrot.slane %v3772_v21, 4  ;;  %v3787_v17 = vrot.slane %v3785_v25, 5  ;;  %v5564_v19 = vrot.slane %v5548_v28, 9  ;;  %v9039_v49 = vsel %vm6290_vm4, %v7743_v26, %v7736_v62  ;;  %v5483_v25 = vld [vmem:[%s6246_s28 + $0x6c] sm:$0xf] }
 0x105   : > { %5955 = vmatmul.mubr.msk.bf16.gmra.mxu1 %vm714_vm3, %v9033_v7  ;;  %v3795_v7 = vrot.slane %v3793_v23, 5  ;;  %v7855_v24 = vpop.f32.mrf.mxu1  ;;  %v7879_v21 = vsel %vm6576_vm7, %v5563_v35, %v4417_v39  ;;  %v7883_v1 = vsel %vm6576_vm7, %v4419_v37, %v4420_v4  ;;  %v7886_v62 = vcombine.low %v3730_v34, %v3740_v44  ;;  %v5549_v4 = vld [vmem:[%s6246_s28 + $0x60] sm:$0xe]  ;;  %v5489_v44 = vld [vmem:[%s6246_s28 + $0x84] sm:$0xf] }
 0x106   : > { %5958 = vmatprep.mubr.msk.bf16.mxu1 %vm714_vm3, %v9035_v43  ;;  %v3754_v43 = vsel %vm6290_vm4, %v3749_v45, %v7751_v10  ;;  %9037 = vst [vmem:[#allocation15_spill] sm:$0xff] %v7855_v24  ;;  %v9040_v45 = vsel %vm6290_vm4, %v7734_v3, %v7670_v46  ;;  %v4426_v46 = vrot.slane %v4424_v59, 4  ;;  %v4427_v3 = vrot.slane %v7808_v16, 5 }
 0x107   : > { %v7873_v23 = vcombine.low %v9040_v45, %v9039_v49  ;;  %9041 = vst [vmem:[#allocation11_spill] sm:$0xff] %v7886_v62  ;;  %v3796_v26 = vor.u32 %v3795_v7, %v3792_v50  ;;  %v7893_v28 = vcombine.low %v3754_v43, %v3764_v18  ;;  %v7895_v39 = vrot.slane %v3799_v60, 5 }
 0x108   : > { %v7861_v10 = vpop.f32.mrf.mxu0  ;;  %v7897_v35 = vrot.slane %v3803_v8, 4  ;;  %v3809_v37 = vshll.u32 %v7858_v33, 16  ;;  %v9043_v34 = vcombine.low %v7494_v54, %v7509_v56  ;;  %v3778_v50 = vsel %vm6290_vm4, %v3773_v14, %v7798_v11  ;;  %v5486_v54 = vld [vmem:[%s6246_s28 + $0x78] sm:$0xf] }
 0x109   : > { %9038 = vst [vmem:[#allocation9_spill] sm:$0xff] %v7861_v10  ;;  %9042 = vst [vmem:[#allocation16_spill] sm:$0xff] %v7893_v28  ;;  %v3788_v7 = vsel %vm6290_vm4, %v3783_v51, %v3787_v17  ;;  %v7917_v43 = vsel %vm6576_vm7, %v5564_v19, %v4424_v59  ;;  %v9045_v56 = vcombine.low %v7501_v29, %v7522_v42  ;;  %v3814_v60 = vshrl.u32 %v5483_v25, 16  ;;  %v7929_v51 = vld [vmem:[%s6246_s28 + $0x7c] sm:$0xf]  ;;  %v6155_v59 = vld [vmem:[%s6246_s28 + $0xc0] sm:$0xff]  }
 0x10a   : > { %5993 = vmatmul.mubr.msk.bf16.gmra.mxu0 %vm714_vm3, %v6152_v2  ;;  %v7891_v2 = vld [vmem:[%s6246_s28 + $0x70] sm:$0xf]  ;;  %v7924_v18 = vpop.f32.mrf.mxu0  ;;  %v3817_v8 = vshll.u32 %v5483_v25, 16  ;;  %v7934_v17 = vsel %vm6576_vm7, %v4426_v46, %v4427_v3  ;;  %v7936_v29 = vrot.slane %v3796_v26, 4  ;;  %v5565_v42 = vrot.slane %v5549_v4, 9 }
 0x10b   : > { %5996 = vmatprep.mubr.msk.bf16.mxu0 %vm714_vm3, %v6153_v41  ;;  %v6154_v41 = vld [vmem:[%s6246_s28 + $0xb4] sm:$0xff]   ;;  %9046 = vst [vmem:[#allocation18_spill] sm:$0xff] %v7924_v18  ;;  %v3823_v11 = vshll.u32 %v7891_v2, 16  ;;  %v3827_v14 = vshrl.u32 %v7891_v2, 16  ;;  %v4431_v19 = vrot.slane %v7829_v36, 5  ;;  %v7939_v49 = vcombine.low %v3778_v50, %v3788_v7 }
 0x10c   : > { %v3806_v45 = vor.u32 %v7897_v35, %v7895_v39  ;;  %v7943_v25 = vrot.slane %v3809_v37, 5  ;;  %v3838_v46 = vshrl.u32 %v5486_v54, 16  ;;  %v3841_v3 = vshll.u32 %v5486_v54, 16  ;;  %v7955_v4 = vld [vmem:[%s6246_s28 + $0x88] sm:$0xf]  ;;  %v7958_v35 = vpop.f32.mrf.mxu0 }
 0x10d   : > { %5959 = vmatmul.mubr.msk.bf16.gmra.mxu1 %vm714_vm3, %v9043_v34  ;;  %v7905_v16 = vpop.f32.mrf.mxu1  ;;  %9047 = vst [vmem:[#allocation19_spill] sm:$0xff] %v7939_v49  ;;  %v4434_v34 = vrot.slane %v7858_v33, 5  ;;  %v3847_v36 = vshll.u32 %v7929_v51, 16  ;;  %v3851_v26 = vshrl.u32 %v7929_v51, 16  ;;  %9049 = vst [vmem:[#allocation21_spill] sm:$0xff] %v7958_v35  ;;  %v3816_v33 = vrot.slane %v3814_v60, 4 }
 0x10e   : > { %9044 = vst [vmem:[#allocation17_spill] sm:$0xff] %v7905_v16  ;;  %5962 = vmatprep.mubr.msk.bf16.mxu1 %vm714_vm3, %v9045_v56  ;;  %v7947_v56 = vld [vmem:[%s6246_s28 + $0x74] sm:$0x1]  ;;  %v3819_v37 = vrot.slane %v3817_v8, 5  ;;  %v7960_v50 = vrot.slane %v3823_v11, 5  ;;  %v3829_v7 = vrot.slane %v3827_v14, 4  ;;  %v9050_v54 = vcombine.low %v7513_v30, %v7529_v55  ;;  %v7988_v49 = vpop.f32.mrf.mxu0 }
 0x10f   : > { %v7950_v58 = vpop.f32.mrf.mxu1  ;;  %v4433_v16 = vrot.slane %v4431_v19, 4  ;;  %v7973_v60 = vld [vmem:[%s6246_s28 + $0x80] sm:$0x1]  ;;  %v7976_v8 = vld [vmem:[%s6246_s28 + $0x6c] sm:$0xe]  ;;  %v3862_v11 = vshrl.u32 %v5489_v44, 16 }
 0x110   : > { %9048 = vst [vmem:[#allocation20_spill] sm:$0xff] %v7950_v58  ;;  %v7969_v58 = vsel %vm6576_vm7, %v5565_v42, %v4431_v19  ;;  %v3865_v14 = vshll.u32 %v5489_v44, 16  ;;  %v3875_v24 = vshrl.u32 %v7955_v4, 16  ;;  %v3840_v19 = vrot.slane %v3838_v46, 4  ;;  %9052 = vst [vmem:[#allocation23_spill] sm:$0xff] %v7988_v49 }
 0x111   : > { %v7984_v42 = vpop.f32.mrf.mxu1  ;;  %v3843_v35 = vrot.slane %v3841_v3, 5  ;;  %v7986_v18 = vrot.slane %v3847_v36, 5  ;;  %v3853_v10 = vrot.slane %v3851_v26, 4  ;;  %v9053_v44 = vcombine.low %v7533_v15, %v7561_v32  ;;  %v8007_v32 = vld [vmem:[%s6246_s28 + $0x8c] sm:$0x1] }
 0x112   : > { %5997 = vmatmul.mubr.msk.bf16.gmra.mxu0 %vm714_vm3, %v6154_v41  ;;  %v3833_v41 = vshll.u32 %v7947_v56, 16  ;;  %9051 = vst [vmem:[#allocation22_spill] sm:$0xff] %v7984_v42  ;;  %v3820_v30 = vor.u32 %v3819_v37, %v3816_v33  ;;  %v3830_v55 = vor.u32 %v3829_v7, %v7960_v50  ;;  %v3857_v46 = vshll.u32 %v7973_v60, 16  ;;  %v5551_v33 = vld [vmem:[%s6246_s28 + $0x78] sm:$0xe] }
 0x113   : > { %6000 = vmatprep.mubr.msk.bf16.mxu0 %vm714_vm3, %v6155_v59  ;;  %v3871_v59 = vshll.u32 %v7955_v4, 16  ;;  %v7998_v3 = vrot.slane %v3806_v45, 4  ;;  %v8002_v36 = vsel %vm6576_vm7, %v4433_v16, %v4434_v34  ;;  %v5566_v26 = vrot.slane %v7976_v8, 9  ;;  %v8012_v42 = vpop.f32.mrf.mxu1  ;;  %v5492_v8 = vld [vmem:[%s6246_s28 + $0x90] sm:$0xf] }
 0x114   : > { %v4445_v15 = vrot.slane %v7929_v51, 5  ;;  %v3864_v37 = vrot.slane %v3862_v11, 4  ;;  %v3867_v7 = vrot.slane %v3865_v14, 5  ;;  %9054 = vst [vmem:[#allocation24_spill] sm:$0xff] %v8012_v42  ;;  %v3835_v45 = vrot.slane %v3833_v41, 5 }
 0x115   : > { %5963 = vmatmul.mubr.msk.bf16.gmra.mxu1 %vm714_vm3, %v9050_v54  ;;  %v4438_v54 = vrot.slane %v7891_v2, 5  ;;  %v8010_v2 = vrot.slane %v3871_v59, 5  ;;  %v4441_v49 = vrot.slane %v7947_v56, 5  ;;  %v3844_v16 = vor.u32 %v3843_v35, %v3840_v19  ;;  %v8021_v59 = vld [vmem:[%s6246_s28 + $0x94] sm:$0xf] }
 0x116   : > { %5966 = vmatprep.mubr.msk.bf16.mxu1 %vm714_vm3, %v9053_v44  ;;  %v3877_v44 = vrot.slane %v3875_v24, 4  ;;  %v3854_v34 = vor.u32 %v3853_v10, %v7986_v18  ;;  %v3821_v51 = vrot.slane %v3820_v30, 4  ;;  %v3831_v11 = vrot.slane %v3830_v55, 4 }
 0x117   : > { %v4440_v62 = vrot.slane %v4438_v54, 4  ;;  %v3859_v14 = vrot.slane %v3857_v46, 5  ;;  %v9055_v24 = vcombine.low %v7654_v61, %v7658_v40  ;;  %v5567_v56 = vrot.slane %v5551_v33, 9 }
 0x118   : > { %v4447_v35 = vrot.slane %v4445_v15, 4  ;;  %v4448_v10 = vrot.slane %v7973_v60, 5  ;;  %v3881_v41 = vshll.u32 %v8007_v32, 16  ;;  %v3878_v30 = vor.u32 %v3877_v44, %v8010_v2 }
 0x119   : > { %v3886_v55 = vshrl.u32 %v5492_v8, 16  ;;  %v3889_v46 = vshll.u32 %v5492_v8, 16  ;;  %v9057_v61 = vcombine.low %v7573_v9, %v7578_v47  ;;  %v3845_v40 = vrot.slane %v3844_v16, 4 }
 0x11a   : > { %v8017_v28 = vpop.f32.mrf.mxu0  ;;  %6001 = vmatmul.mubr.msk.bf16.gmra.mxu0 %vm714_vm3, %v6156_v13  ;;  %v3868_v13 = vor.u32 %v3867_v7, %v3864_v37  ;;  %v3855_v33 = vrot.slane %v3854_v34, 4  ;;  %v3895_v60 = vshll.u32 %v8021_v59, 16  ;;  %v3812_v37 = vsel %vm6290_vm4, %v7998_v3, %v7943_v25 }
 0x11b   : > { %6040 = vmatprep.mubr.msk.bf16.mxu0 %vm714_vm3, %v9055_v24  ;;  %v3899_v24 = vshrl.u32 %v8021_v59, 16  ;;  %v3826_v9 = vsel %vm6290_vm4, %v3821_v51, %v7960_v50  ;;  %v8053_v47 = vsel %vm6576_vm7, %v5566_v26, %v4438_v54  ;;  %v8057_v7 = vsel %vm6576_vm7, %v4440_v62, %v4441_v49  ;;  %v5552_v54 = vld [vmem:[%s6246_s28 + $0x84] sm:$0xe]  ;;  %v9096_v31 = vld [vmem:[#allocation24_spill] sm:$0xff] }
 0x11c   : > { %v8029_v19 = vpop.f32.mrf.mxu0  ;;  %v8065_v25 = vsel %vm6576_vm7, %v5567_v56, %v4445_v15  ;;  %v8069_v50 = vsel %vm6576_vm7, %v4447_v35, %v4448_v10  ;;  %v3883_v3 = vrot.slane %v3881_v41, 5  ;;  %v3869_v62 = vrot.slane %v3868_v13, 4  ;;  %v8093_v13 = vld [vmem:[%s6246_s28 + $0x98] sm:$0x1] }
 0x11d   : > { %9056 = vst [vmem:[#allocation25_spill] sm:$0xff] %v8029_v19  ;;  %v8032_v42 = vpop.f32.mrf.mxu1  ;;  %5967 = vmatmul.mubr.msk.bf16.gmra.mxu1 %vm714_vm3, %v9057_v61  ;;  %v3879_v49 = vrot.slane %v3878_v30, 4  ;;  %v3888_v16 = vrot.slane %v3886_v55, 4  ;;  %v3891_v34 = vrot.slane %v3889_v46, 5  ;;  %v3850_v15 = vsel %vm6290_vm4, %v3845_v40, %v7986_v18  ;;  %v5495_v30 = vld [vmem:[%s6246_s28 + $0x9c] sm:$0xf] }
 0x11e   : > { %v8040_v19 = vpop.f32.mrf.mxu0  ;;  %6006 = vmatprep.mubr.msk.bf16.mxu1 %vm714_vm3, %v7724_v27  ;;  %v3836_v27 = vsel %vm6290_vm4, %v3831_v11, %v3835_v45  ;;  %v3860_v45 = vsel %vm6290_vm4, %v3855_v33, %v3859_v14  ;;  %v8081_v51 = vrot.slane %v3895_v60, 5  ;;  %v3901_v11 = vrot.slane %v3899_v24, 4  ;;  %v8124_v24 = vld [vmem:[%s6246_s28 + $0xa0] sm:$0xf] }
 0x11f   : > { %v8059_v44 = vpop.f32.mrf.mxu1  ;;  %v9058_v35 = vcombine.low %v7694_v48, %v7698_v38  ;;  %v5581_v10 = vcombine.low %v7917_v43, %v7934_v17  ;;  %v5582_v41 = vcombine.low %v7969_v58, %v8002_v36  ;;  %v5568_v18 = vrot.slane %v5552_v54, 9 }
 0x120   : > { %v8072_v26 = vpop.f32.mrf.mxu0  ;;  %v4452_v14 = vrot.slane %v7955_v4, 5  ;;  %v9059_v48 = vcombine.low %v7777_v6, %v7781_v22  ;;  %v9060_v38 = vsel %vm6290_vm4, %v7936_v29, %v7895_v39  ;;  %v8109_v61 = vcombine.low %v3826_v9, %v3836_v27  ;;  %v5553_v29 = vld [vmem:[%s6246_s28 + $0x90] sm:$0xe]  ;;  %v9067_v4 = vld [vmem:[#allocation2_spill] sm:$0xff] }
 0x121   : > { %v8074_v8 = vpop.f32.mrf.mxu1  ;;  %v8107_v46 = vcombine.low %v9060_v38, %v3812_v37  ;;  %v8115_v60 = vcombine.low %v3850_v15, %v3860_v45  ;;  %v3874_v6 = vsel %vm6290_vm4, %v3869_v62, %v8010_v2  ;;  %v3884_v22 = vsel %vm6290_vm4, %v3879_v49, %v3883_v3 }
 0x122   : > { %v5838_v56 = vpop.f32.mrf.mxu0  ;;  %6041 = vmatmul.mubr.msk.bf16.vlgmr.msra.gmra.mxu0 %vm714_vm3, %v9058_v35  ;;  %v3892_v39 = vor.u32 %v3891_v34, %v3888_v16  ;;  %v3902_v9 = vor.u32 %v3901_v11, %v8081_v51  ;;  %v3905_v27 = vshll.u32 %v8093_v13, 16  ;;  %v3910_v54 = vshrl.u32 %v5495_v30, 16 }
 0x123   : > { %v8096_v55 = vpop.f32.mrf.mxu1  ;;  %6044 = vmatprep.mubr.msk.bf16.mxu0 %vm714_vm3, %v9059_v48  ;;  %v3913_v15 = vshll.u32 %v5495_v30, 16  ;;  %v8135_v3 = vsel %vm6576_vm7, %v5568_v18, %v4452_v14  ;;  %v4454_v62 = vrot.slane %v4452_v14, 4  ;;  %v4455_v49 = vrot.slane %v8007_v32, 5 }
 0x124   : > { %v1518_v33 = vpop.f32.mrf.mxu0  ;;  %v5569_v16 = vrot.slane %v5553_v29, 9  ;;  %v4459_v34 = vrot.slane %v8021_v59, 5  ;;  %v3919_v11 = vshll.u32 %v8124_v24, 16  ;;  %v3923_v35 = vshrl.u32 %v8124_v24, 16 }
 0x125   : > { %v5804_v37 = vpop.f32.mrf.mxu1  ;;  %6007 = vmatmul.mubr.msk.bf16.vlgmr.msra.gmra.mxu1 %vm714_vm3, %v7726_v57  ;;  %v8144_v48 = vcombine.low %v3874_v6, %v3884_v22  ;;  %v8146_v18 = vrot.slane %v3892_v39, 4  ;;  %v3903_v32 = vrot.slane %v3902_v9, 4  ;;  %v3907_v38 = vrot.slane %v3905_v27, 5  ;;  %v5498_v22 = vld [vmem:[%s6246_s28 + $0xa8] sm:$0xf] }
 0x126   : > { %v1102_v45 = vadd.f32 %v5804_v37, %v7622_v5  ;;  %v5839_v2 = vpop.f32.mrf.mxu0  ;;  %6010 = vmatprep.mubr.msk.bf16.mxu1 %vm714_vm3, %v7873_v23  ;;  %v3912_v29 = vrot.slane %v3910_v54, 4  ;;  %v3915_v59 = vrot.slane %v3913_v15, 5  ;;  %v4462_v6 = vrot.slane %v8093_v13, 5  ;;  %v8172_v27 = vld [vmem:[%s6246_s28 + $0xac] sm:$0xf] }
 0x127   : > { %v1093_v57 = vpop.f32.mrf.mxu1  ;;  %v3925_v9 = vrot.slane %v3923_v35, 4  ;;  %v9064_v35 = vld [vmem:[#allocation8_spill] sm:$0xff] }
 0x128   : > { %v8141_v5 = vadd.f32 %v5838_v56, %v1102_v45  ;;  %v1094_v23 = vadd.f32 %v1093_v57, %v7646_v20  ;;  %v1521_v30 = vpop.f32.mrf.mxu0  ;;  %v9061_v45 = vcombine.low %v7814_v63, %v7840_v52  ;;  %v8157_v20 = vsel %vm6576_vm7, %v4454_v62, %v4455_v49  ;;  %v5554_v62 = vld [vmem:[%s6246_s28 + $0x9c] sm:$0xe] }
 0x129   : > { %v5805_v14 = vpop.f32.mrf.mxu1  ;;  %v4461_v63 = vrot.slane %v4459_v34, 4  ;;  %v8169_v52 = vrot.slane %v3919_v11, 5  ;;  %v4466_v49 = vrot.slane %v8124_v24, 5  ;;  %v3943_v24 = vshll.u32 %v8172_v27, 16 }
 0x12a   : > { %v8148_v37 = vadd.f32 %v1518_v33, %v1094_v23  ;;  %v1105_v40 = vadd.f32 %v5805_v14, %v7665_v53  ;;  %v5842_v56 = vpop.f32.mrf.mxu0  ;;  %6045 = vmatmul.mubr.msk.bf16.gmra.mxu0 %vm714_vm3, %v9061_v45  ;;  %v9062_v33 = vcombine.low %v7879_v21, %v7883_v1  ;;  %v8167_v53 = vsel %vm6576_vm7, %v5569_v16, %v4459_v34  ;;  %v5497_v1 = vld [vmem:[%s6246_s28 + $0xa4] sm:$0x1]  ;;  %v9063_v16 = vld [vmem:[#allocation11_spill] sm:$0xff] }
 0x12b   : > { %v1096_v39 = vpop.f32.mrf.mxu1  ;;  %v3898_v21 = vsel %vm6290_vm4, %v8146_v18, %v8081_v51  ;;  %v3934_v34 = vshrl.u32 %v5498_v22, 16  ;;  %v9065_v51 = vld [vmem:[#allocation16_spill] sm:$0xff]  ;;  %v3947_v18 = vshrl.u32 %v8172_v27, 16 }
 0x12c   : > { %6048 = vmatprep.mubr.msk.bf16.mxu0 %vm714_vm3, %v9062_v33  ;;  %v8174_v54 = vadd.f32 %v5839_v2, %v1105_v40  ;;  %v1097_v13 = vadd.f32 %v1096_v39, %v7710_v12  ;;  %v1534_v15 = vpop.f32.mrf.mxu0  ;;  %v3908_v40 = vsel %vm6290_vm4, %v3903_v32, %v3907_v38  ;;  %v3916_v2 = vor.u32 %v3915_v59, %v3912_v29  ;;  %v9066_v59 = vld [vmem:[#allocation12_spill] sm:$0xff] }
 0x12d   : > { %v5808_v57 = vpop.f32.mrf.mxu1  ;;  %6011 = vmatmul.mubr.msk.bf16.gmra.mxu1 %vm714_vm3, %v9063_v16  ;;  %v3937_v12 = vshll.u32 %v5498_v22, 16  ;;  %v8197_v39 = vsel %vm6576_vm7, %v4461_v63, %v4462_v6  ;;  %v3926_v32 = vor.u32 %v3925_v9, %v8169_v52  ;;  %v3929_v38 = vshll.u32 %v5497_v1, 16 }
 0x12e   : > { %v8188_v11 = vadd.f32 %v1521_v30, %v1097_v13  ;;  %v1118_v23 = vadd.f32 %v5808_v57, %v9064_v35  ;;  %v5843_v14 = vpop.f32.mrf.mxu0  ;;  %6014 = vmatprep.mubr.msk.bf16.mxu1 %vm714_vm3, %v9065_v51  ;;  %v5570_v30 = vrot.slane %v5554_v62, 9  ;;  %v4468_v13 = vrot.slane %v4466_v49, 4 }
 0x12f   : > { %v1109_v45 = vpop.f32.mrf.mxu1  ;;  %v4469_v57 = vrot.slane %v5497_v1, 5  ;;  %v8205_v51 = vrot.slane %v3916_v2, 4  ;;  %v3936_v6 = vrot.slane %v3934_v34, 4  ;;  %v3939_v63 = vrot.slane %v3937_v12, 5  ;;  %v8215_v1 = vld [vmem:[%s6246_s28 + $0xb0] sm:$0x1] }
 0x130   : > { %v8200_v29 = vadd.f32 %v5842_v56, %v1118_v23  ;;  %v1110_v22 = vadd.f32 %v1109_v45, %v9066_v59  ;;  %v1537_v33 = vpop.f32.mrf.mxu0  ;;  %v8217_v23 = vrot.slane %v3943_v24, 5  ;;  %v3949_v2 = vrot.slane %v3947_v18, 4  ;;  %v9068_v12 = vld [vmem:[#allocation14_spill] sm:$0xff] }
 0x131   : > { %v5809_v16 = vpop.f32.mrf.mxu1  ;;  %v8227_v43 = vrot.slane %v3926_v32, 4  ;;  %v8229_v17 = vrot.slane %v3929_v38, 5  ;;  %v8237_v58 = vsel %vm6576_vm7, %v5570_v30, %v4466_v49  ;;  %v8241_v36 = vsel %vm6576_vm7, %v4468_v13, %v4469_v57  ;;  %v8253_v30 = vld [vmem:[%s6246_s28 + $0xb8] sm:$0xf] }
 0x132   : > { %v8207_v9 = vadd.f32 %v1534_v15, %v1110_v22  ;;  %v1121_v62 = vadd.f32 %v5809_v16, %v9067_v4  ;;  %v5846_v56 = vpop.f32.mrf.mxu0  ;;  %6049 = vmatmul.mubr.msk.bf16.gmra.mxu0 %vm714_vm3, %v5581_v10  ;;  %v8223_v15 = vcombine.low %v3898_v21, %v3908_v40  ;;  %v5555_v10 = vld [vmem:[%s6246_s28 + $0xa8] sm:$0xe]  ;;  %v3940_v32 = vor.u32 %v3939_v63, %v3936_v6  ;;  %v9070_v22 = vld [vmem:[#allocation9_spill] sm:$0xff] }
 0x133   : > { %v1112_v45 = vpop.f32.mrf.mxu1  ;;  %6052 = vmatprep.mubr.msk.bf16.mxu0 %vm714_vm3, %v5582_v41  ;;  %v5501_v41 = vld [vmem:[%s6246_s28 + $0xb4] sm:$0xf]  ;;  %v9069_v40 = vld [vmem:[#allocation19_spill] sm:$0xff]  ;;  %v3953_v38 = vshll.u32 %v8215_v1, 16  ;;  %v4473_v49 = vrot.slane %v8172_v27, 5  ;;  %v3950_v16 = vor.u32 %v3949_v2, %v8217_v23  ;;  %v3932_v27 = vsel %vm6290_vm4, %v8227_v43, %v8229_v17 }
 0x134   : > { %v8232_v34 = vadd.f32 %v5843_v14, %v1121_v62  ;;  %v1113_v24 = vadd.f32 %v1112_v45, %v9068_v12  ;;  %v1550_v18 = vpop.f32.mrf.mxu0  ;;  %v5571_v62 = vrot.slane %v5555_v10, 9  ;;  %v3958_v6 = vshrl.u32 %v5501_v41, 16 }
 0x135   : > { %v5812_v21 = vpop.f32.mrf.mxu1  ;;  %6015 = vmatmul.mubr.msk.bf16.gmra.mxu1 %vm714_vm3, %v9069_v40  ;;  %v3961_v63 = vshll.u32 %v5501_v41, 16  ;;  %v3967_v2 = vshll.u32 %v8253_v30, 16  ;;  %v3971_v10 = vshrl.u32 %v8253_v30, 16  ;;  %v5504_v40 = vld [vmem:[%s6246_s28 + $0xc0] sm:$0xf]  ;;  %v3941_v4 = vrot.slane %v3940_v32, 4 }
 0x136   : > { %v8255_v59 = vadd.f32 %v1537_v33, %v1113_v24  ;;  %v1134_v13 = vadd.f32 %v5812_v21, %v9070_v22  ;;  %v5847_v57 = vpop.f32.mrf.mxu0  ;;  %6018 = vmatprep.mubr.msk.bf16.mxu1 %vm714_vm3, %v8107_v46  ;;  %v9072_v24 = vld [vmem:[#allocation18_spill] sm:$0xff]  ;;  %v3955_v43 = vrot.slane %v3953_v38, 5  ;;  %v4475_v17 = vrot.slane %v4473_v49, 4 }
 0x137   : > { %v1125_v45 = vpop.f32.mrf.mxu1  ;;  %v4476_v33 = vrot.slane %v8215_v1, 5  ;;  %v8283_v14 = vsel %vm6576_vm7, %v5571_v62, %v4473_v49  ;;  %v8286_v32 = vld [vmem:[%s6246_s28 + $0xc4] sm:$0xf]  ;;  %v9076_v1 = vcombine.low %v8065_v25, %v8069_v50  ;;  %v8298_v62 = vrot.slane %v3967_v2, 5 }
 0x138   : > { %v8267_v12 = vadd.f32 %v5846_v56, %v1134_v13  ;;  %v1126_v21 = vadd.f32 %v1125_v45, %v9072_v24  ;;  %v1553_v46 = vpop.f32.mrf.mxu0  ;;  %v9074_v56 = vld [vmem:[#allocation21_spill] sm:$0xff]  ;;  %v9075_v45 = vcombine.low %v8053_v47, %v8057_v7  ;;  %v3951_v24 = vrot.slane %v3950_v16, 4  ;;  %v9077_v16 = vld [vmem:[#allocation23_spill] sm:$0xff] }
 0x139   : > { %v5813_v22 = vpop.f32.mrf.mxu1  ;;  %v3982_v47 = vshrl.u32 %v5504_v40, 16  ;;  %v3985_v7 = vshll.u32 %v5504_v40, 16  ;;  %v3946_v25 = vsel %vm6290_vm4, %v3941_v4, %v8217_v23  ;;  %v8307_v50 = vsel %vm6576_vm7, %v4475_v17, %v4476_v33  ;;  %v5556_v40 = vld [vmem:[%s6246_s28 + $0xb4] sm:$0xe] }
 0x13a   : > { %9071 = vst [vmem:[#allocation11_spill] sm:$0xff] %v8267_v12  ;;  %v8274_v35 = vadd.f32 %v1550_v18, %v1126_v21  ;;  %v1137_v41 = vadd.f32 %v5813_v22, %v9074_v56  ;;  %v5850_v13 = vpop.f32.mrf.mxu0  ;;  %6053 = vmatmul.mubr.msk.bf16.gmra.mxu0 %vm714_vm3, %v9075_v45  ;;  %v8293_v18 = vld [vmem:[%s6246_s28 + $0xbc] sm:$0x1]  ;;  %v3960_v21 = vrot.slane %v3958_v6, 4  ;;  %v3963_v22 = vrot.slane %v3961_v63, 5 }
 0x13b   : > { %v1128_v38 = vpop.f32.mrf.mxu1  ;;  %6056 = vmatprep.mubr.msk.bf16.mxu0 %vm714_vm3, %v9076_v1  ;;  %v3995_v6 = vshrl.u32 %v8286_v32, 16  ;;  %v3977_v23 = vshll.u32 %v8293_v18, 16  ;;  %v4480_v17 = vrot.slane %v8253_v30, 5  ;;  %v9078_v1 = vld [vmem:[#allocation25_spill] sm:$0xff] }
 0x13c   : > { %9073 = vst [vmem:[#allocation8_spill] sm:$0xff] %v8274_v35  ;;  %v8295_v56 = vadd.f32 %v5847_v57, %v1137_v41  ;;  %v1129_v45 = vadd.f32 %v1128_v38, %v9077_v16  ;;  %v1566_v49 = vpop.f32.mrf.mxu0  ;;  %v3973_v35 = vrot.slane %v3971_v10, 4  ;;  %v3991_v57 = vshll.u32 %v8286_v32, 16 }
 0x13d   : > { %v5816_v12 = vpop.f32.mrf.mxu1  ;;  %6019 = vmatmul.mubr.msk.bf16.gmra.mxu1 %vm714_vm3, %v8109_v61  ;;  %v3956_v61 = vsel %vm6290_vm4, %v3951_v24, %v3955_v43  ;;  %v3964_v33 = vor.u32 %v3963_v22, %v3960_v21  ;;  %v3984_v41 = vrot.slane %v3982_v47, 4  ;;  %v3987_v38 = vrot.slane %v3985_v7, 5 }
 0x13e   : > { %v8311_v63 = vadd.f32 %v1553_v46, %v1129_v45  ;;  %v1150_v2 = vadd.f32 %v5816_v12, %v8017_v28  ;;  %v5851_v10 = vpop.f32.mrf.mxu0  ;;  %6022 = vmatprep.mubr.msk.bf16.mxu1 %vm714_vm3, %v8115_v60  ;;  %v9079_v60 = vsel %vm6290_vm4, %v8205_v51, %v8169_v52  ;;  %v3974_v24 = vor.u32 %v3973_v35, %v8298_v62 }
 0x13f   : > { %v1141_v4 = vpop.f32.mrf.mxu1  ;;  %v8329_v43 = vcombine.low %v9079_v60, %v3932_v27  ;;  %v8332_v30 = vcombine.low %v3946_v25, %v3956_v61  ;;  %v8336_v22 = vrot.slane %v3991_v57, 5  ;;  %v3997_v47 = vrot.slane %v3995_v6, 4  ;;  %v5506_v27 = vld [vmem:[%s6246_s28 + $0xc8] sm:$0x1] }
 0x140   : > { %v8321_v46 = vadd.f32 %v5850_v13, %v1150_v2  ;;  %v1142_v28 = vadd.f32 %v1141_v4, %v9078_v1  ;;  %v1569_v12 = vpop.f32.mrf.mxu0  ;;  %v5588_v13 = vcombine.low %v8283_v14, %v8307_v50  ;;  %v9080_v52 = vcombine.low %v8135_v3, %v8157_v20  ;;  %v5507_v14 = vld [vmem:[%s6246_s28 + $0xcc] sm:$0xf]  ;;  %v8357_v20 = vld [vmem:[%s6246_s28 + $0xd0] sm:$0xf]  ;;  %v5557_v4 = vld [vmem:[%s6246_s28 + $0xc0] sm:$0xe] }
 0x141   : > { %v5817_v21 = vpop.f32.mrf.mxu1  ;;  %v8345_v35 = vrot.slane %v3977_v23, 5  ;;  %v5572_v51 = vrot.slane %v5556_v40, 9  ;;  %v9081_v50 = vcombine.low %v8167_v53, %v8197_v39  ;;  %v4483_v57 = vrot.slane %v8293_v18, 5 }
 0x142   : > { %v8338_v7 = vadd.f32 %v1566_v49, %v1142_v28  ;;  %v1153_v16 = vadd.f32 %v5817_v21, %v8040_v19  ;;  %v5854_v45 = vpop.f32.mrf.mxu0  ;;  %6057 = vmatmul.mubr.msk.bf16.gmra.mxu0 %vm714_vm3, %v9080_v52  ;;  %v8353_v49 = vrot.slane %v3964_v33, 4  ;;  %v4482_v19 = vrot.slane %v4480_v17, 4 }
 0x143   : > { %v1144_v25 = vpop.f32.mrf.mxu1  ;;  %6060 = vmatprep.mubr.msk.bf16.mxu0 %vm714_vm3, %v9081_v50  ;;  %v3988_v3 = vor.u32 %v3987_v38, %v3984_v41  ;;  %v8362_v23 = vrot.slane %v3974_v24, 4  ;;  %v4487_v53 = vrot.slane %v8286_v32, 5  ;;  %v3998_v33 = vor.u32 %v3997_v47, %v8336_v22 }
 0x144   : > { %v8359_v6 = vadd.f32 %v5851_v10, %v1153_v16  ;;  %v1145_v2 = vadd.f32 %v1144_v25, %v8072_v26  ;;  %v1582_v61 = vpop.f32.mrf.mxu0  ;;  %v4001_v18 = vshll.u32 %v5506_v27, 16  ;;  %v4006_v40 = vshrl.u32 %v5507_v14, 16  ;;  %v9084_v10 = vld [vmem:[#allocation4_spill] sm:$0xff]  ;;  %v9085_v16 = vld [vmem:[#allocation3_spill] sm:$0xff] }
 0x145   : > { %v5820_v39 = vpop.f32.mrf.mxu1  ;;  %6023 = vmatmul.mubr.msk.bf16.gmra.mxu1 %vm714_vm3, %v8144_v48  ;;  %v4009_v41 = vshll.u32 %v5507_v14, 16  ;;  %v4015_v28 = vshll.u32 %v8357_v20, 16  ;;  %v4019_v32 = vshrl.u32 %v8357_v20, 16  ;;  %v4481_v48 = vsel %vm6576_vm7, %v5572_v51, %v4480_v17  ;;  %v9086_v17 = vld [vmem:[#allocation6_spill] sm:$0xff] }
 0x146   : > { %9082 = vst [vmem:[#allocation16_spill] sm:$0xff] %v8359_v6  ;;  %v8369_v38 = vadd.f32 %v1569_v12, %v1145_v2  ;;  %v1166_v1 = vadd.f32 %v5820_v39, %v9084_v10  ;;  %v5855_v26 = vpop.f32.mrf.mxu0  ;;  %6026 = vmatprep.mubr.msk.bf16.mxu1 %vm714_vm3, %v8223_v15  ;;  %v4484_v24 = vsel %vm6576_vm7, %v4482_v19, %v4483_v57  ;;  %v3989_v21 = vrot.slane %v3988_v3, 4 }
 0x147   : > { %v1157_v60 = vpop.f32.mrf.mxu1  ;;  %v5573_v12 = vrot.slane %v5557_v4, 9  ;;  %v4489_v25 = vrot.slane %v4487_v53, 4  ;;  %v4490_v15 = vrot.slane %v5506_v27, 5  ;;  %v3999_v2 = vrot.slane %v3998_v33, 4  ;;  %v5509_v33 = vld [vmem:[%s6246_s28 + $0xd4] sm:$0x1] }
 0x148   : > { %9083 = vst [vmem:[#allocation12_spill] sm:$0xff] %v8369_v38  ;;  %v8380_v47 = vadd.f32 %v5854_v45, %v1166_v1  ;;  %v1158_v52 = vadd.f32 %v1157_v60, %v9085_v16  ;;  %v1585_v14 = vpop.f32.mrf.mxu0  ;;  %v4003_v39 = vrot.slane %v4001_v18, 5  ;;  %v4008_v10 = vrot.slane %v4006_v40, 4  ;;  %v9088_v18 = vld [vmem:[#allocation5_spill] sm:$0xff] }
 0x149   : > { %v5821_v50 = vpop.f32.mrf.mxu1  ;;  %v4011_v38 = vrot.slane %v4009_v41, 5  ;;  %v9087_v45 = vcombine.low %v8237_v58, %v8241_v36  ;;  %v8390_v57 = vrot.slane %v4015_v28, 5  ;;  %v4021_v27 = vrot.slane %v4019_v32, 4 }
 0x14a   : > { %v8383_v6 = vadd.f32 %v1582_v61, %v1158_v52  ;;  %v1169_v51 = vadd.f32 %v5821_v50, %v9086_v17  ;;  %v5858_v19 = vpop.f32.mrf.mxu0  ;;  %v3970_v61 = vsel %vm6290_vm4, %v8353_v49, %v8298_v62  ;;  %v3980_v4 = vsel %vm6290_vm4, %v8362_v23, %v8345_v35  ;;  %v5558_v62 = vld [vmem:[%s6246_s28 + $0xcc] sm:$0xe] }
 0x14b   : > { %6061 = vmatmul.mubr.msk.bf16.gmra.mxu0 %vm714_vm3, %v9087_v45  ;;  %v1160_v3 = vpop.f32.mrf.mxu1  ;;  %v4494_v58 = vrot.slane %v8357_v20, 5  ;;  %v4491_v1 = vsel %vm6576_vm7, %v4489_v25, %v4490_v15  ;;  %v5589_v35 = vcombine.low %v4481_v48, %v4484_v24  ;;  %v3994_v20 = vsel %vm6290_vm4, %v3989_v21, %v8336_v22  ;;  %v9090_v25 = vld [vmem:[#allocation10_spill] sm:$0xff] }
 0x14c   : > { %6064 = vmatprep.mubr.msk.bf16.mxu0 %vm714_vm3, %v5588_v13  ;;  %v8403_v36 = vadd.f32 %v5855_v26, %v1169_v51  ;;  %v1161_v40 = vadd.f32 %v1160_v3, %v9088_v18  ;;  %v1598_v41 = vpop.f32.mrf.mxu0  ;;  %v4488_v13 = vsel %vm6576_vm7, %v5573_v12, %v4487_v53  ;;  %v4004_v23 = vsel %vm6290_vm4, %v3999_v2, %v4003_v39  ;;  %v9089_v53 = vld [vmem:[#allocation7_spill] sm:$0xff] }
 0x14d   : > { %v5824_v49 = vpop.f32.mrf.mxu1  ;;  %6027 = vmatmul.mubr.msk.bf16.gmra.mxu1 %vm714_vm3, %v8329_v43  ;;  %v4012_v26 = vor.u32 %v4011_v38, %v4008_v10  ;;  %v4022_v12 = vor.u32 %v4021_v27, %v8390_v57  ;;  %v4025_v43 = vshll.u32 %v5509_v33, 16  ;;  %v5590_v24 = vcombine.low %v4488_v13, %v4491_v1 }
 0x14e   : > { %v8418_v28 = vadd.f32 %v1585_v14, %v1161_v40  ;;  %v1182_v32 = vadd.f32 %v5824_v49, %v9089_v53  ;;  %v5859_v60 = vpop.f32.mrf.mxu0  ;;  %6030 = vmatprep.mubr.msk.bf16.mxu1 %vm714_vm3, %v8332_v30  ;;  %v5574_v16 = vrot.slane %v5558_v62, 9  ;;  %v4496_v52 = vrot.slane %v4494_v58, 4  ;;  %v9091_v30 = vld [vmem:[#allocation13_spill] sm:$0xff] }
 0x14f   : > { %v1173_v48 = vpop.f32.mrf.mxu1  ;;  %v4497_v22 = vrot.slane %v5509_v33, 5  ;;  %v5524_v50 = vcombine.low %v3970_v61, %v3980_v4  ;;  %v5525_v2 = vcombine.low %v3994_v20, %v4004_v23  ;;  %v4013_v39 = vrot.slane %v4012_v26, 4  ;;  %v9092_v33 = vld [vmem:[#allocation15_spill] sm:$0xff]  ;;  %v9093_v62 = vld [vmem:[#allocation17_spill] sm:$0xff]  ;;  %v9094_v26 = vld [vmem:[#allocation20_spill] sm:$0xff] }
 0x150   : > { %v8424_v21 = vadd.f32 %v5858_v19, %v1182_v32  ;;  %v1174_v38 = vadd.f32 %v1173_v48, %v9090_v25  ;;  %v1601_v14 = vpop.f32.mrf.mxu0  ;;  %v4023_v45 = vrot.slane %v4022_v12, 4  ;;  %v4027_v27 = vrot.slane %v4025_v43, 5  ;;  %v9095_v43 = vld [vmem:[#allocation22_spill] sm:$0xff] }
 0x151   : > { %v5825_v15 = vpop.f32.mrf.mxu1  ;;  %v4495_v19 = vsel %vm6576_vm7, %v5574_v16, %v4494_v58  ;;  %v4498_v61 = vsel %vm6576_vm7, %v4496_v52, %v4497_v22  ;;  %v4018_v13 = vsel %vm6290_vm4, %v4013_v39, %v8390_v57 }
 0x152   : > { %v8427_v10 = vadd.f32 %v1598_v41, %v1174_v38  ;;  %v1185_v17 = vadd.f32 %v5825_v15, %v9091_v30  ;;  %v5862_v51 = vpop.f32.mrf.mxu0  ;;  %v4028_v0 = vsel %vm6290_vm4, %v4023_v45, %v4027_v27 }
 0x153   : > { %6065 = vmatmul.mubr.msk.bf16.gmra.mxu0 %vm714_vm3, %v5589_v35  ;;  %v1176_v3 = vpop.f32.mrf.mxu1  ;;  %v5591_v35 = vcombine.low %v4495_v19, %v4498_v61  ;;  %v5526_v12 = vcombine.low %v4018_v13, %v4028_v0 }
 0x154   : > { %6068 = vmatprep.mubr.msk.bf16.mxu0 %vm714_vm3, %v5590_v24  ;;  %v8436_v4 = vadd.f32 %v5859_v60, %v1185_v17  ;;  %v1177_v18 = vadd.f32 %v1176_v3, %v9092_v33  ;;  %v1614_v40 = vpop.f32.mrf.mxu0 }
 0x155   : > { %v5828_v41 = vpop.f32.mrf.mxu1  ;;  %6031 = vmatmul.mubr.msk.bf16.gmra.mxu1 %vm714_vm3, %v5524_v50 }
 0x156   : > { %v8443_v1 = vadd.f32 %v1601_v14, %v1177_v18  ;;  %v1198_v49 = vadd.f32 %v5828_v41, %v9093_v62  ;;  %v5863_v58 = vpop.f32.mrf.mxu0  ;;  %6034 = vmatprep.mubr.msk.bf16.mxu1 %vm714_vm3, %v5525_v2 }
 0x157   : > { %v1189_v20 = vpop.f32.mrf.mxu1 }
 0x158   : > { %v8449_v23 = vadd.f32 %v5862_v51, %v1198_v49  ;;  %v1190_v53 = vadd.f32 %v1189_v20, %v9094_v26  ;;  %v1617_v32 = vpop.f32.mrf.mxu0 }
 0x159   : > { %v5829_v60 = vpop.f32.mrf.mxu1 }
 0x15a   : > { %v8452_v57 = vadd.f32 %v1614_v40, %v1190_v53  ;;  %v1201_v48 = vadd.f32 %v5829_v60, %v9095_v43  ;;  %v5866_v24 = vpop.f32.mrf.mxu0 }
 0x15b   : > { %6069 = vmatmul.mubr.msk.bf16.gmra.mxu0 %vm714_vm3, %v5591_v35  ;;  %v1192_v16 = vpop.f32.mrf.mxu1 }
 0x15c   : > { %v8456_v52 = vadd.f32 %v5863_v58, %v1201_v48  ;;  %v1193_v22 = vadd.f32 %v1192_v16, %v9096_v31  ;;  %v1630_v25 = vpop.f32.mrf.mxu0 }
 0x15d   : > { %v5832_v38 = vpop.f32.mrf.mxu1  ;;  %6035 = vmatmul.mubr.msk.bf16.gmra.mxu1 %vm714_vm3, %v5526_v12 }
 0x15e   : > { %v8460_v14 = vadd.f32 %v1617_v32, %v1193_v22  ;;  %v1214_v15 = vadd.f32 %v5832_v38, %v8032_v42  ;;  %v5867_v50 = vpop.f32.mrf.mxu0 }
 0x15f   : > { %v1205_v2 = vpop.f32.mrf.mxu1 }
 0x160   : > { %v8463_v39 = vadd.f32 %v5866_v24, %v1214_v15  ;;  %v1206_v30 = vadd.f32 %v1205_v2, %v8059_v44  ;;  %v1633_v17 = vpop.f32.mrf.mxu0 }
 0x161   : > { %v5833_v51 = vpop.f32.mrf.mxu1 }
 0x162   : > { %v8466_v45 = vadd.f32 %v1630_v25, %v1206_v30  ;;  %v1217_v27 = vadd.f32 %v5833_v51, %v8074_v8  ;;  %v5906_v3 = vpop.f32.mrf.mxu0  ;;  %v9097_v30 = vld [vmem:[#allocation11_spill] sm:$0xff] }
 0x163   : > { %v1208_v19 = vpop.f32.mrf.mxu1 }
 0x164   : > { %v8469_v61 = vadd.f32 %v5867_v50, %v1217_v27  ;;  %v1209_v33 = vadd.f32 %v1208_v19, %v8096_v55  ;;  %v2606_v18 = vpop.f32.mrf.mxu0 }
 0x165   : > { %v5872_v42 = vpop.f32.mrf.mxu1 }
 0x166   : > { %v8472_v40 = vadd.f32 %v1633_v17, %v1209_v33  ;;  %v2009_v41 = vadd.f32 %v5872_v42, %v8141_v5  ;;  %v5907_v13 = vpop.f32.mrf.mxu0 }
 0x167   : > { %v1880_v44 = vpop.f32.mrf.mxu1 }
 0x168   : > { %v8475_v62 = vadd.f32 %v5906_v3, %v2009_v41  ;;  %v2007_v49 = vadd.f32 %v1880_v44, %v8148_v37  ;;  %v2609_v58 = vpop.f32.mrf.mxu0  ;;  %v9098_v3 = vld [vmem:[#allocation8_spill] sm:$0xff] }
 0x169   : > { %v5873_v8 = vpop.f32.mrf.mxu1 }
 0x16a   : > { %v8478_v0 = vadd.f32 %v2606_v18, %v2007_v49  ;;  %v2010_v35 = vadd.f32 %v5873_v8, %v8174_v54  ;;  %v5910_v20 = vpop.f32.mrf.mxu0 }
 0x16b   : > { %v1883_v55 = vpop.f32.mrf.mxu1 }
 0x16c   : > { %v8481_v26 = vadd.f32 %v5907_v13, %v2010_v35  ;;  %v2008_v53 = vadd.f32 %v1883_v55, %v8188_v11  ;;  %v2622_v32 = vpop.f32.mrf.mxu0 }
 0x16d   : > { %v5876_v5 = vpop.f32.mrf.mxu1 }
 0x16e   : > { %v8484_v60 = vadd.f32 %v2609_v58, %v2008_v53  ;;  %v2013_v12 = vadd.f32 %v5876_v5, %v8200_v29  ;;  %v5911_v43 = vpop.f32.mrf.mxu0 }
 0x16f   : > { %v1896_v37 = vpop.f32.mrf.mxu1 }
 0x170   : > { %v8487_v48 = vadd.f32 %v5910_v20, %v2013_v12  ;;  %v2011_v24 = vadd.f32 %v1896_v37, %v8207_v9  ;;  %v2625_v16 = vpop.f32.mrf.mxu0 }
 0x171   : > { %v5877_v54 = vpop.f32.mrf.mxu1 }
 0x172   : > { %v8490_v31 = vadd.f32 %v2622_v32, %v2011_v24  ;;  %v2014_v22 = vadd.f32 %v5877_v54, %v8232_v34  ;;  %v5914_v25 = vpop.f32.mrf.mxu0  ;;  %v9100_v54 = vld [vmem:[#allocation12_spill] sm:$0xff] }
 0x173   : > { %v1899_v11 = vpop.f32.mrf.mxu1 }
 0x174   : > { %v8493_v38 = vadd.f32 %v5911_v43, %v2014_v22  ;;  %v2012_v15 = vadd.f32 %v1899_v11, %v8255_v59  ;;  %v2638_v50 = vpop.f32.mrf.mxu0  ;;  %v9099_v43 = vld [vmem:[#allocation16_spill] sm:$0xff] }
 0x175   : > { %v5880_v29 = vpop.f32.mrf.mxu1 }
 0x176   : > { %v8496_v2 = vadd.f32 %v2625_v16, %v2012_v15  ;;  %v2017_v17 = vadd.f32 %v5880_v29, %v9097_v30  ;;  %v5915_v51 = vpop.f32.mrf.mxu0 }
 0x177   : > { %v1912_v9 = vpop.f32.mrf.mxu1 }
 0x178   : > { %v8499_v27 = vadd.f32 %v5914_v25, %v2017_v17  ;;  %v2015_v19 = vadd.f32 %v1912_v9, %v9098_v3  ;;  %v2641_v33 = vpop.f32.mrf.mxu0 }
 0x179   : > { %v5881_v34 = vpop.f32.mrf.mxu1 }
 0x17a   : > { %v8502_v18 = vadd.f32 %v2638_v50, %v2015_v19  ;;  %v2018_v42 = vadd.f32 %v5881_v34, %v8295_v56  ;;  %v5918_v41 = vpop.f32.mrf.mxu0 }
 0x17b   : > { %v1915_v59 = vpop.f32.mrf.mxu1 }
 0x17c   : > { %v8505_v13 = vadd.f32 %v5915_v51, %v2018_v42  ;;  %v2016_v44 = vadd.f32 %v1915_v59, %v8311_v63  ;;  %v2654_v49 = vpop.f32.mrf.mxu0 }
 0x17d   : > { %v5884_v58 = vpop.f32.mrf.mxu1 }
 0x17e   : > { %v8508_v8 = vadd.f32 %v2641_v33, %v2016_v44  ;;  %v2021_v35 = vadd.f32 %v5884_v58, %v8321_v46  ;;  %v5919_v20 = vpop.f32.mrf.mxu0 }
 0x17f   : > { %v1928_v55 = vpop.f32.mrf.mxu1 }
 0x180   : > { %v8511_v53 = vadd.f32 %v5918_v41, %v2021_v35  ;;  %v2019_v32 = vadd.f32 %v1928_v55, %v8338_v7  ;;  %v2657_v5 = vpop.f32.mrf.mxu0 }
 0x181   : > { %v5885_v56 = vpop.f32.mrf.mxu1 }
 0x182   : > { %v8514_v12 = vadd.f32 %v2654_v49, %v2019_v32  ;;  %v2022_v37 = vadd.f32 %v5885_v56, %v9099_v43  ;;  %v5922_v24 = vpop.f32.mrf.mxu0 }
 0x183   : > { %v1931_v63 = vpop.f32.mrf.mxu1 }
 0x184   : > { %v8517_v16 = vadd.f32 %v5919_v20, %v2022_v37  ;;  %v2020_v22 = vadd.f32 %v1931_v63, %v9100_v54  ;;  %v2670_v25 = vpop.f32.mrf.mxu0 }
 0x185   : > { %v5888_v46 = vpop.f32.mrf.mxu1 }
 0x186   : > { %v8520_v11 = vadd.f32 %v2657_v5, %v2020_v22  ;;  %v2025_v15 = vadd.f32 %v5888_v46, %v8380_v47  ;;  %v5923_v50 = vpop.f32.mrf.mxu0 }
 0x187   : > { %v1944_v7 = vpop.f32.mrf.mxu1 }
 0x188   : > { %v8523_v29 = vadd.f32 %v5922_v24, %v2025_v15  ;;  %v2023_v30 = vadd.f32 %v1944_v7, %v8383_v6  ;;  %v2673_v17 = vpop.f32.mrf.mxu0 }
 0x189   : > { %v5889_v51 = vpop.f32.mrf.mxu1 }
 0x18a   : > { %v8526_v9 = vadd.f32 %v2670_v25, %v2023_v30  ;;  %v2026_v3 = vadd.f32 %v5889_v51, %v8403_v36  ;;  %v5926_v19 = vpop.f32.mrf.mxu0 }
 0x18b   : > { %v1947_v33 = vpop.f32.mrf.mxu1 }
 0x18c   : > { %v8529_v34 = vadd.f32 %v5923_v50, %v2026_v3  ;;  %v2024_v42 = vadd.f32 %v1947_v33, %v8418_v28  ;;  %v2686_v41 = vpop.f32.mrf.mxu0 }
 0x18d   : > { %v5892_v47 = vpop.f32.mrf.mxu1 }
 0x18e   : > { %9101 = vst [vmem:[#allocation2_spill] sm:$0xff] %v8529_v34  ;;  %v8532_v59 = vadd.f32 %v2673_v17, %v2024_v42  ;;  %v2029_v44 = vadd.f32 %v5892_v47, %v8424_v21  ;;  %v5927_v49 = vpop.f32.mrf.mxu0 }
 0x18f   : > { %v1960_v6 = vpop.f32.mrf.mxu1 }
 0x190   : > { %9102 = vst [vmem:[#allocation14_spill] sm:$0xff] %v8532_v59  ;;  %v8535_v58 = vadd.f32 %v5926_v19, %v2029_v44  ;;  %v2027_v35 = vadd.f32 %v1960_v6, %v8427_v10  ;;  %v2689_v20 = vpop.f32.mrf.mxu0 }
 0x191   : > { %v5893_v36 = vpop.f32.mrf.mxu1 }
 0x192   : > { %9103 = vst [vmem:[#allocation19_spill] sm:$0xff] %v8535_v58  ;;  %v8538_v55 = vadd.f32 %v2686_v41, %v2027_v35  ;;  %v2030_v32 = vadd.f32 %v5893_v36, %v8436_v4  ;;  %v5930_v5 = vpop.f32.mrf.mxu0 }
 0x193   : > { %v1963_v28 = vpop.f32.mrf.mxu1 }
 0x194   : > { %9104 = vst [vmem:[#allocation9_spill] sm:$0xff] %v8538_v55  ;;  %v8541_v56 = vadd.f32 %v5927_v49, %v2030_v32  ;;  %v2028_v43 = vadd.f32 %v1963_v28, %v8443_v1  ;;  %v2702_v37 = vpop.f32.mrf.mxu0 }
 0x195   : > { %v5896_v21 = vpop.f32.mrf.mxu1 }
 0x196   : > { %9105 = vst [vmem:[#allocation18_spill] sm:$0xff] %v8541_v56  ;;  %v8544_v24 = vadd.f32 %v2689_v20, %v2028_v43  ;;  %v2033_v63 = vadd.f32 %v5896_v21, %v8449_v23  ;;  %v5931_v54 = vpop.f32.mrf.mxu0 }
 0x197   : > { %v1976_v10 = vpop.f32.mrf.mxu1 }
 0x198   : > { %9106 = vst [vmem:[#allocation21_spill] sm:$0xff] %v8544_v24  ;;  %v8547_v22 = vadd.f32 %v5930_v5, %v2033_v63  ;;  %v2031_v25 = vadd.f32 %v1976_v10, %v8452_v57  ;;  %v2705_v46 = vpop.f32.mrf.mxu0 }
 0x199   : > { %v5897_v4 = vpop.f32.mrf.mxu1 }
 0x19a   : > { %9107 = vst [vmem:[#allocation23_spill] sm:$0xff] %v8547_v22  ;;  %v8550_v15 = vadd.f32 %v2702_v37, %v2031_v25  ;;  %v2034_v50 = vadd.f32 %v5897_v4, %v8456_v52  ;;  %v5934_v7 = vpop.f32.mrf.mxu0 }
 0x19b   : > { %v1979_v1 = vpop.f32.mrf.mxu1 }
 0x19c   : > { %9108 = vst [vmem:[#allocation25_spill] sm:$0xff] %v8550_v15  ;;  %v8553_v30 = vadd.f32 %v5931_v54, %v2034_v50  ;;  %v2032_v17 = vadd.f32 %v1979_v1, %v8460_v14  ;;  %v2718_v51 = vpop.f32.mrf.mxu0 }
 0x19d   : > { %v5900_v23 = vpop.f32.mrf.mxu1 }
 0x19e   : > { %9109 = vst [vmem:[#allocation4_spill] sm:$0xff] %v8553_v30  ;;  %v8556_v3 = vadd.f32 %v2705_v46, %v2032_v17  ;;  %v2037_v19 = vadd.f32 %v5900_v23, %v8463_v39  ;;  %v5935_v33 = vpop.f32.mrf.mxu0 }
 0x19f   : > { %v1992_v57 = vpop.f32.mrf.mxu1 }
 0x1a0   : > { %9110 = vst [vmem:[#allocation3_spill] sm:$0xff] %v8556_v3  ;;  %v8559_v42 = vadd.f32 %v5934_v7, %v2037_v19  ;;  %v2035_v41 = vadd.f32 %v1992_v57, %v8466_v45  ;;  %v2721_v47 = vpop.f32.mrf.mxu0 }
 0x1a1   : > { %v5901_v52 = vpop.f32.mrf.mxu1 }
 0x1a2   : > { %9111 = vst [vmem:[#allocation6_spill] sm:$0xff] %v8559_v42  ;;  %v8562_v44 = vadd.f32 %v2718_v51, %v2035_v41  ;;  %v2038_v49 = vadd.f32 %v5901_v52, %v8469_v61  ;;  %v8565_v6 = vpop.f32.mrf.mxu0 }
 0x1a3   : > { %v1995_v14 = vpop.f32.mrf.mxu1 }
 0x1a4   : > { %9112 = vst [vmem:[#allocation5_spill] sm:$0xff] %v8562_v44  ;;  %v8567_v35 = vadd.f32 %v5935_v33, %v2038_v49  ;;  %v2036_v20 = vadd.f32 %v1995_v14, %v8472_v40  ;;  %v8570_v39 = vpop.f32.mrf.mxu0 }
 0x1a5   : > { %v5940_v36 = vpop.f32.mrf.mxu1 }
 0x1a6   : > { %9113 = vst [vmem:[#allocation7_spill] sm:$0xff] %v8567_v35  ;;  %v8572_v32 = vadd.f32 %v2721_v47, %v2036_v20  ;;  %v8574_v5 = vpop.f32.mrf.mxu0 }
 0x1a7   : > { %v3076_v45 = vpop.f32.mrf.mxu1 }
 0x1a8   : > { %9114 = vst [vmem:[#allocation10_spill] sm:$0xff] %v8572_v32  ;;  %v8576_v28 = vpop.f32.mrf.mxu0 }
 0x1a9   : > { %v5941_v43 = vpop.f32.mrf.mxu1 }
 0x1aa   : > { %v8578_v37 = vpop.f32.mrf.mxu0 }
 0x1ab   : > { %v8580_v61 = vpop.f32.mrf.mxu1 }
 0x1ac   : > { %v8582_v21 = vpop.f32.mrf.mxu0 }
 0x1ad   : > { %v8584_v63 = vpop.f32.mrf.mxu1 }
 0x1ae   : > { %v8586_v40 = vpop.f32.mrf.mxu0 }
 0x1af   : > { %v8588_v54 = vpop.f32.mrf.mxu1 }
 0x1b0   : > { %v8590_v10 = vpop.f32.mrf.mxu0 }
 0x1b1   : > { %v8592_v25 = vpop.f32.mrf.mxu1 }
 0x1b2   : > { %v8594_v46 = vpop.f32.mrf.mxu0 }
 0x1b3   : > { %v8596_v4 = vpop.f32.mrf.mxu1 }
 0x1b4   : > { %v8598_v50 = vpop.f32.mrf.mxu0 }
 0x1b5   : > { %v8600_v7 = vpop.f32.mrf.mxu1 }
 0x1b6   : > { %v8602_v1 = vpop.f32.mrf.mxu0 }
 0x1b7   : > { %v8604_v17 = vpop.f32.mrf.mxu1 }
 0x1b8   : > { %v8606_v51 = vpop.f32.mrf.mxu0 }
 0x1b9   : > { %v8608_v23 = vpop.f32.mrf.mxu1 }
 0x1ba   : > { %v8610_v19 = vpop.f32.mrf.mxu0 }
 0x1bb   : > { %v8612_v33 = vpop.f32.mrf.mxu1 }
 0x1bc   : > { %v8614_v57 = vpop.f32.mrf.mxu0 }
 0x1bd   : > { %v8616_v41 = vpop.f32.mrf.mxu1 }
 0x1be   : > { %v8618_v47 = vpop.f32.mrf.mxu0 }
 0x1bf   : > { %v8620_v52 = vpop.f32.mrf.mxu1 }
 0x1c0   : > { %v8622_v49 = vpop.f32.mrf.mxu0 }
 0x1c1   : > { %v8624_v14 = vpop.f32.mrf.mxu1 }
 0x1c2   : > { %v8626_v20 = vpop.f32.mrf.mxu0 }
 0x1c3   : > { %9115 = vst [vmem:[#allocation13_spill] sm:$0xff] %v8626_v20  ;;  %v8628_v32 = vpop.f32.mrf.mxu1 }
 0x1c4   : > { %v8630_v35 = vpop.f32.mrf.mxu0 }
 0x1c5   : > { %9116 = vst [vmem:[#allocation15_spill] sm:$0xff] %v8630_v35  ;;  %v8632_v44 = vpop.f32.mrf.mxu1 }
 0x1c6   : > { %v8634_v42 = vpop.f32.mrf.mxu0 }
 0x1c7   : > { %9117 = vst [vmem:[#allocation17_spill] sm:$0xff] %v8634_v42  ;;  %v8636_v3 = vpop.f32.mrf.mxu1 }
 0x1c8   : > { %v8638_v30 = vpop.f32.mrf.mxu0 }
 0x1c9   : > { %9118 = vst [vmem:[#allocation20_spill] sm:$0xff] %v8638_v30  ;;  %v8640_v15 = vpop.f32.mrf.mxu1 }
 0x1ca   : > { %9119 = vst [vmem:[#allocation22_spill] sm:$0xff] %v8640_v15  ;;  %v8642_v22 = vpop.f32.mrf.mxu0 }
 0x1cb   : > { %9120 = vst [vmem:[#allocation24_spill] sm:$0xff] %v8642_v22  ;;  %v8644_v24 = vpop.f32.mrf.mxu1 }
 0x1cc   : > { %9121 = vst [vmem:[#allocation11_spill] sm:$0xff] %v8644_v24  ;;  %v8646_v56 = vpop.f32.mrf.mxu0 }
 0x1cd   : > { %9122 = vst [vmem:[#allocation8_spill] sm:$0xff] %v8646_v56  ;;  %v8648_v55 = vpop.f32.mrf.mxu1 }
 0x1ce   : > { %9123 = vst [vmem:[#allocation16_spill] sm:$0xff] %v8648_v55  ;;  %v8650_v58 = vpop.f32.mrf.mxu0 }
 0x1cf   : > { %9124 = vst [vmem:[#allocation12_spill] sm:$0xff] %v8650_v58  ;;  %v8652_v59 = vpop.f32.mrf.mxu1 }
 0x1d0   : > { %9125 = vst [vmem:[#allocation26_spill] sm:$0xff] %v8652_v59  ;;  %v8654_v35 = vpop.f32.mrf.mxu0 }
 0x1d1   : > { %9126 = vst [vmem:[#allocation27_spill] sm:$0xff] %v8654_v35  ;;  %v8656_v42 = vpop.f32.mrf.mxu1 }
 0x1d2   : > { %9127 = vst [vmem:[#allocation28_spill] sm:$0xff] %v8656_v42  ;;  %v8658_v34 = vpop.f32.mrf.mxu0 }
 0x1d3   : > { %9128 = vst [vmem:[#allocation29_spill] sm:$0xff] %v8658_v34  ;;  %v8660_v30 = vpop.f32.mrf.mxu1 }
 0x1d4   : > { %9129 = vst [vmem:[#allocation30_spill] sm:$0xff] %v8660_v30  ;;  %v8662_v15 = vpop.f32.mrf.mxu0 }
 0x1d5   : > { %9130 = vst [vmem:[#allocation31_spill] sm:$0xff] %v8662_v15  ;;  %v8664_v22 = vpop.f32.mrf.mxu1 }
 0x1d6   : > { %9131 = vst [vmem:[#allocation32_spill] sm:$0xff] %v8664_v22  ;;  %v8666_v24 = vpop.f32.mrf.mxu0 }
 0x1d7   : > { %9132 = vst [vmem:[#allocation33_spill] sm:$0xff] %v8666_v24  ;;  %v8668_v56 = vpop.f32.mrf.mxu1  ;;  %v3205_v24 = vadd.f32 %v5940_v36, %v8475_v62  ;;  %v3204_v62 = vadd.f32 %v8580_v61, %v8484_v60  ;;  %v8710_v60 = vld [vmem:[%s8909_s3] ss:$0 sm:$0xff] }
 0x1d8   : > { %9133 = vst [vmem:[#allocation34_spill] sm:$0xff] %v8668_v56  ;;  %v8670_v55 = vpop.f32.mrf.mxu0 }
 0x1d9   : > { %9134 = vst [vmem:[#allocation35_spill] sm:$0xff] %v8670_v55  ;;  %v8672_v58 = vpop.f32.mrf.mxu1  ;;  %v3203_v55 = vadd.f32 %v3076_v45, %v8478_v0  ;;  %v8702_v0 = vld [vmem:[%s8908_s2] ss:$0 sm:$0xff] }
 0x1da   : > { %9135 = vst [vmem:[#allocation36_spill] sm:$0xff] %v8672_v58  ;;  %v8674_v59 = vpop.f32.mrf.mxu0 }
 0x1db   : > { %9136 = vst [vmem:[#allocation37_spill] sm:$0xff] %v8674_v59  ;;  %v8676_v35 = vpop.f32.mrf.mxu1 }
 0x1dc   : > { %9137 = vst [vmem:[#allocation38_spill] sm:$0xff] %v8676_v35  ;;  %v8678_v42 = vpop.f32.mrf.mxu0  ;;  %v3567_v35 = vadd.f32 %v8565_v6, %v3205_v24 }
 0x1dd   : > { %9138 = vst [vmem:[#allocation39_spill] sm:$0xff] %v8678_v42  ;;  %v8680_v34 = vpop.f32.mrf.mxu1  ;;  %v3206_v42 = vadd.f32 %v5941_v43, %v8481_v26 }
 0x1de   : > { %9139 = vst [vmem:[#allocation40_spill] sm:$0xff] %v8680_v34  ;;  %v8682_v30 = vpop.f32.mrf.mxu0 }
 0x1df   : > { %9140 = vst [vmem:[#allocation41_spill] sm:$0xff] %v8682_v30  ;;  %v8684_v15 = vpop.f32.mrf.mxu1  ;;  %v3565_v30 = vadd.f32 %v8570_v39, %v3203_v55  ;;  %v3568_v24 = vadd.f32 %v8574_v5, %v3206_v42  ;;  %v3209_v55 = vadd.f32 %v8584_v63, %v8487_v48  ;;  %v3566_v39 = vadd.f32 %v8576_v28, %v3204_v62 }
 0x1e0   : > { %v8687_v22 = vpop.f32.mrf.mxu0 }
 0x1e1   : > { %9141 = vst [vmem:[#allocation42_spill] sm:$0xff] %v8687_v22  ;;  %v8689_v56 = vpop.f32.mrf.mxu1  ;;  %v3571_v62 = vadd.f32 %v8578_v37, %v3209_v55 }
 0x1e2   : > { %9142 = vst [vmem:[#allocation43_spill] sm:$0xff] %v8689_v56  ;;  %v6042_v58 = vpop.f32.mrf.mxu0 }
 0x1e3   : > { %v8692_v59 = vpop.f32.mrf.mxu1 }
 0x1e4   : > { %9143 = vst [vmem:[#allocation44_spill] sm:$0xff] %v8692_v59  ;;  %v4634_v34 = vpop.f32.mrf.mxu0 }
 0x1e5   : > { %v6008_v20 = vpop.f32.mrf.mxu1 }
 0x1e6   : > { %v4293_v36 = vadd.f32 %v6008_v20, %v3567_v35  ;;  %v6043_v22 = vpop.f32.mrf.mxu0 }
 0x1e7   : > { %v4164_v45 = vpop.f32.mrf.mxu1 }
 0x1e8   : > { %v4763_v6 = vadd.f32 %v6042_v58, %v4293_v36  ;;  %v4291_v26 = vadd.f32 %v4164_v45, %v3565_v30  ;;  %v4637_v43 = vpop.f32.mrf.mxu0  ;;  %v3207_v58 = vadd.f32 %v8588_v54, %v8490_v31  ;;  %v3210_v30 = vadd.f32 %v8592_v25, %v8493_v38 }
 0x1e9   : > { %v6009_v35 = vpop.f32.mrf.mxu1 }
 0x1ea   : > { %v4802_v61 = vmul.f32 %v8702_v0, %v4763_v6  ;;  %v4761_v20 = vadd.f32 %v4634_v34, %v4291_v26  ;;  %v4294_v59 = vadd.f32 %v6009_v35, %v3568_v24  ;;  %v6046_v56 = vpop.f32.mrf.mxu0  ;;  %v3208_v34 = vadd.f32 %v8596_v4, %v8496_v2 }
 0x1eb   : > { %v4167_v48 = vpop.f32.mrf.mxu1  ;;  %v3569_v6 = vadd.f32 %v8582_v21, %v3207_v58  ;;  %v3572_v26 = vadd.f32 %v8586_v40, %v3210_v30 }
 0x1ec   : > { %v4841_v42 = vadd.f32 %v8710_v60, %v4802_v61  ;;  %v4800_v5 = vmul.f32 %v8702_v0, %v4761_v20  ;;  %v4764_v63 = vadd.f32 %v6043_v22, %v4294_v59  ;;  %v4292_v36 = vadd.f32 %v4167_v48, %v3566_v39  ;;  %v4650_v28 = vpop.f32.mrf.mxu0 }
 0x1ed   : > { %v6012_v45 = vpop.f32.mrf.mxu1  ;;  %v3213_v59 = vadd.f32 %v8600_v7, %v8499_v27  ;;  %v3570_v40 = vadd.f32 %v8590_v10, %v3208_v34  ;;  %v3211_v27 = vadd.f32 %v8604_v17, %v8502_v18  ;;  %v3214_v10 = vadd.f32 %v8608_v23, %v8505_v13 }
 0x1ee   : > { %v4873_v24 = vmul.f32 0.1, %v4841_v42  ;;  %v4839_v31 = vadd.f32 %v8710_v60, %v4800_v5  ;;  %v4803_v38 = vmul.f32 %v8702_v0, %v4764_v63  ;;  %v4762_v54 = vadd.f32 %v4637_v43, %v4292_v36  ;;  %v6047_v25 = vpop.f32.mrf.mxu0 }
 0x1ef   : > { %v4297_v2 = vadd.f32 %v6012_v45, %v3571_v62  ;;  %v4180_v22 = vpop.f32.mrf.mxu1  ;;  %v3573_v45 = vadd.f32 %v8598_v50, %v3211_v27  ;;  %v3217_v50 = vadd.f32 %v8616_v41, %v8511_v53 }
 0x1f0   : > { %v4905_v37 = vmax.f32 %v4841_v42, %v4873_v24  ;;  %v4871_v4 = vmul.f32 0.1, %v4839_v31  ;;  %v4842_v43 = vadd.f32 %v8710_v60, %v4803_v38  ;;  %v4801_v55 = vmul.f32 %v8702_v0, %v4762_v54  ;;  %v4653_v21 = vpop.f32.mrf.mxu0 }
 0x1f1   : > { %v4767_v7 = vadd.f32 %v6046_v56, %v4297_v2  ;;  %v4295_v35 = vadd.f32 %v4180_v22, %v3569_v6  ;;  %v6013_v39 = vpop.f32.mrf.mxu1  ;;  %v3575_v42 = vadd.f32 %v8594_v46, %v3213_v59  ;;  %v3212_v46 = vadd.f32 %v8612_v33, %v8508_v8 }
 0x1f2   : > { %4937 = vst [vmem:[%s8733_s25 + $0x10] sm:$0xff] %v4905_v37  ;;  %v4903_v61 = vmax.f32 %v4839_v31, %v4871_v4  ;;  %v4874_v20 = vmul.f32 0.1, %v4842_v43  ;;  %v4840_v58 = vadd.f32 %v8710_v60, %v4801_v55  ;;  %v4298_v30 = vadd.f32 %v6013_v39, %v3572_v26  ;;  %v6050_v48 = vpop.f32.mrf.mxu0 }
 0x1f3   : > { %v4806_v5 = vmul.f32 %v8702_v0, %v4767_v7  ;;  %v4765_v63 = vadd.f32 %v4650_v28, %v4295_v35  ;;  %v4183_v18 = vpop.f32.mrf.mxu1  ;;  %v3576_v6 = vadd.f32 %v8602_v1, %v3214_v10  ;;  %v3215_v1 = vadd.f32 %v8620_v52, %v8514_v12 }
 0x1f4   : > { %4935 = vst [vmem:[%s8733_s25] sm:$0xff] %v4903_v61  ;;  %v4906_v56 = vmax.f32 %v4842_v43, %v4874_v20  ;;  %v4872_v17 = vmul.f32 0.1, %v4840_v58  ;;  %v4768_v36 = vadd.f32 %v6047_v25, %v4298_v30  ;;  %v4296_v62 = vadd.f32 %v4183_v18, %v3570_v40  ;;  %v4666_v34 = vpop.f32.mrf.mxu0 }
 0x1f5   : > { %v4845_v24 = vadd.f32 %v8710_v60, %v4806_v5  ;;  %v4804_v13 = vmul.f32 %v8702_v0, %v4765_v63  ;;  %v6016_v23 = vpop.f32.mrf.mxu1  ;;  %v3574_v43 = vadd.f32 %v8606_v51, %v3212_v46  ;;  %v3579_v39 = vadd.f32 %v8610_v19, %v3217_v50 }
 0x1f6   : > { %4938 = vst [vmem:[%s8733_s25 + $0x18] sm:$0xff] %v4906_v56  ;;  %v4904_v28 = vmax.f32 %v4840_v58, %v4872_v17  ;;  %v4807_v31 = vmul.f32 %v8702_v0, %v4768_v36  ;;  %v4766_v38 = vadd.f32 %v4653_v21, %v4296_v62  ;;  %v4301_v54 = vadd.f32 %v6016_v23, %v3575_v42  ;;  %v6051_v25 = vpop.f32.mrf.mxu0 }
 0x1f7   : > { %v4877_v26 = vmul.f32 0.1, %v4845_v24  ;;  %v4843_v8 = vadd.f32 %v8710_v60, %v4804_v13  ;;  %v4196_v33 = vpop.f32.mrf.mxu1  ;;  %v3218_v61 = vadd.f32 %v8624_v14, %v8517_v16  ;;  %v3577_v10 = vadd.f32 %v8614_v57, %v3215_v1 }
 0x1f8   : > { %4936 = vst [vmem:[%s8733_s25 + $0x8] sm:$0xff] %v4904_v28  ;;  %v4846_v59 = vadd.f32 %v8710_v60, %v4807_v31  ;;  %v4805_v2 = vmul.f32 %v8702_v0, %v4766_v38  ;;  %v4771_v22 = vadd.f32 %v6050_v48, %v4301_v54  ;;  %v4299_v37 = vadd.f32 %v4196_v33, %v3573_v45  ;;  %v4669_v4 = vpop.f32.mrf.mxu0  ;;  %v9145_v33 = vld [vmem:[#allocation2_spill] sm:$0xff] }
 0x1f9   : > { %v4909_v55 = vmax.f32 %v4845_v24, %v4877_v26  ;;  %v4875_v53 = vmul.f32 0.1, %v4843_v8  ;;  %v6017_v41 = vpop.f32.mrf.mxu1  ;;  %v3216_v19 = vadd.f32 %v8628_v32, %v8520_v11  ;;  %v3580_v62 = vadd.f32 %v8618_v47, %v3218_v61  ;;  %v9144_v26 = vld [vmem:[#allocation13_spill] sm:$0xff] }
 0x1fa   : > { %v4878_v21 = vmul.f32 0.1, %v4846_v59  ;;  %v4844_v40 = vadd.f32 %v8710_v60, %v4805_v2  ;;  %v4810_v27 = vmul.f32 %v8702_v0, %v4771_v22  ;;  %v4769_v7 = vadd.f32 %v4666_v34, %v4299_v37  ;;  %v6054_v35 = vpop.f32.mrf.mxu0 }
 0x1fb   : > { %4941 = vst [vmem:[%s8733_s25 + $0x30] sm:$0xff] %v4909_v55  ;;  %v4907_v51 = vmax.f32 %v4843_v8, %v4875_v53  ;;  %v4302_v12 = vadd.f32 %v6017_v41, %v3576_v6  ;;  %v4199_v52 = vpop.f32.mrf.mxu1  ;;  %v3221_v57 = vadd.f32 %v8632_v44, %v8523_v29  ;;  %v3578_v28 = vadd.f32 %v8622_v49, %v3216_v19  ;;  %v9146_v49 = vld [vmem:[#allocation22_spill] sm:$0xff]  ;;  %v9147_v55 = vld [vmem:[#allocation15_spill] sm:$0xff] }
 0x1fc   : > { %v4910_v20 = vmax.f32 %v4846_v59, %v4878_v21  ;;  %v4876_v58 = vmul.f32 0.1, %v4844_v40  ;;  %v4849_v30 = vadd.f32 %v8710_v60, %v4810_v27  ;;  %v4808_v48 = vmul.f32 %v8702_v0, %v4769_v7  ;;  %v4682_v42 = vpop.f32.mrf.mxu0  ;;  %v9148_v41 = vld [vmem:[#allocation14_spill] sm:$0xff]  ;;  %v9149_v21 = vld [vmem:[#allocation11_spill] sm:$0xff] }
 0x1fd   : > { %4939 = vst [vmem:[%s8733_s25 + $0x20] sm:$0xff] %v4907_v51  ;;  %v4772_v16 = vadd.f32 %v6051_v25, %v4302_v12  ;;  %v4300_v14 = vadd.f32 %v4199_v52, %v3574_v43  ;;  %v6020_v5 = vpop.f32.mrf.mxu1  ;;  %v3219_v47 = vadd.f32 %v8636_v3, %v8526_v9  ;;  %v3583_v8 = vadd.f32 %v9144_v26, %v3221_v57  ;;  %v9155_v57 = vld [vmem:[#allocation26_spill] sm:$0xff] }
 0x1fe   : > { %4942 = vst [vmem:[%s8733_s25 + $0x38] sm:$0xff] %v4910_v20  ;;  %v4908_v63 = vmax.f32 %v4844_v40, %v4876_v58  ;;  %v4881_v18 = vmul.f32 0.1, %v4849_v30  ;;  %v4847_v56 = vadd.f32 %v8710_v60, %v4808_v48  ;;  %v4305_v17 = vadd.f32 %v6020_v5, %v3579_v39  ;;  %v6055_v36 = vpop.f32.mrf.mxu0  ;;  %v9150_v20 = vld [vmem:[#allocation17_spill] sm:$0xff]  ;;  %v9152_v48 = vld [vmem:[#allocation16_spill] sm:$0xff] }
 0x1ff   : > { %v4811_v11 = vmul.f32 %v8702_v0, %v4772_v16  ;;  %v4770_v32 = vadd.f32 %v4669_v4, %v4300_v14  ;;  %v4212_v34 = vpop.f32.mrf.mxu1  ;;  %v3222_v59 = vadd.f32 %v9146_v49, %v9145_v33  ;;  %v3581_v53 = vadd.f32 %v9147_v55, %v3219_v47  ;;  %v9156_v47 = vld [vmem:[#allocation24_spill] sm:$0xff] }
 0x200   : > { %4940 = vst [vmem:[%s8733_s25 + $0x28] sm:$0xff] %v4908_v63  ;;  %v4913_v45 = vmax.f32 %v4849_v30, %v4881_v18  ;;  %v4879_v46 = vmul.f32 0.1, %v4847_v56  ;;  %v4775_v24 = vadd.f32 %v6054_v35, %v4305_v17  ;;  %v4303_v13 = vadd.f32 %v4212_v34, %v3577_v10  ;;  %v4685_v23 = vpop.f32.mrf.mxu0  ;;  %v9151_v30 = vld [vmem:[#allocation19_spill] sm:$0xff]  ;;  %v9153_v17 = vld [vmem:[#allocation20_spill] sm:$0xff] }
 0x201   : > { %v4850_v31 = vadd.f32 %v8710_v60, %v4811_v11  ;;  %v4809_v29 = vmul.f32 %v8702_v0, %v4770_v32  ;;  %v6021_v44 = vpop.f32.mrf.mxu1  ;;  %v3220_v40 = vadd.f32 %v9149_v21, %v9148_v41  ;;  %v3584_v58 = vadd.f32 %v9150_v20, %v3222_v59  ;;  %v9159_v59 = vld [vmem:[#allocation8_spill] sm:$0xff] }
 0x202   : > { %4945 = vst [vmem:[%s8733_s25 + $0x50] sm:$0xff] %v4913_v45  ;;  %v4911_v38 = vmax.f32 %v4847_v56, %v4879_v46  ;;  %v4814_v54 = vmul.f32 %v8702_v0, %v4775_v24  ;;  %v4773_v25 = vadd.f32 %v4682_v42, %v4303_v13  ;;  %v4306_v6 = vadd.f32 %v6021_v44, %v3580_v62  ;;  %v6058_v50 = vpop.f32.mrf.mxu0  ;;  %v9154_v62 = vld [vmem:[#allocation9_spill] sm:$0xff]  ;;  %v9158_v44 = vld [vmem:[#allocation28_spill] sm:$0xff] }
 0x203   : > { %v4882_v2 = vmul.f32 0.1, %v4850_v31  ;;  %v4848_v9 = vadd.f32 %v8710_v60, %v4809_v29  ;;  %v4215_v3 = vpop.f32.mrf.mxu1  ;;  %v3225_v42 = vadd.f32 %v9152_v48, %v9151_v30  ;;  %v3223_v11 = vadd.f32 %v9155_v57, %v9154_v62  ;;  %v9157_v29 = vld [vmem:[#allocation18_spill] sm:$0xff] }
 0x204   : > { %4943 = vst [vmem:[%s8733_s25 + $0x40] sm:$0xff] %v4911_v38  ;;  %v4853_v22 = vadd.f32 %v8710_v60, %v4814_v54  ;;  %v4812_v37 = vmul.f32 %v8702_v0, %v4773_v25  ;;  %v4776_v4 = vadd.f32 %v6055_v36, %v4306_v6  ;;  %v4304_v43 = vadd.f32 %v4215_v3, %v3578_v28  ;;  %v4698_v1 = vpop.f32.mrf.mxu0  ;;  %v9161_v3 = vld [vmem:[#allocation30_spill] sm:$0xff] }
 0x205   : > { %v4914_v27 = vmax.f32 %v4850_v31, %v4882_v2  ;;  %v4880_v7 = vmul.f32 0.1, %v4848_v9  ;;  %v6024_v35 = vpop.f32.mrf.mxu1  ;;  %v3582_v36 = vadd.f32 %v9153_v17, %v3220_v40  ;;  %v3587_v31 = vadd.f32 %v9156_v47, %v3225_v42  ;;  %v9162_v40 = vld [vmem:[#allocation12_spill] sm:$0xff]  ;;  %v9165_v42 = vld [vmem:[#allocation27_spill] sm:$0xff] }
 0x206   : > { %v4885_v39 = vmul.f32 0.1, %v4853_v22  ;;  %v4851_v61 = vadd.f32 %v8710_v60, %v4812_v37  ;;  %v4815_v51 = vmul.f32 %v8702_v0, %v4776_v4  ;;  %v4774_v12 = vadd.f32 %v4685_v23, %v4304_v43  ;;  %v6059_v52 = vpop.f32.mrf.mxu0 }
 0x207   : > { %4946 = vst [vmem:[%s8733_s25 + $0x58] sm:$0xff] %v4914_v27  ;;  %v4912_v10 = vmax.f32 %v4848_v9, %v4880_v7  ;;  %v4309_v19 = vadd.f32 %v6024_v35, %v3583_v8  ;;  %v4228_v16 = vpop.f32.mrf.mxu1  ;;  %v3226_v38 = vadd.f32 %v9158_v44, %v9157_v29  ;;  %v3585_v2 = vadd.f32 %v9159_v59, %v3223_v11  ;;  %v9160_v9 = vld [vmem:[#allocation21_spill] sm:$0xff]  ;;  %v9163_v7 = vld [vmem:[#allocation23_spill] sm:$0xff]  ;;  %v9164_v35 = vld [vmem:[#allocation32_spill] sm:$0xff] }
 0x208   : > { %v4917_v14 = vmax.f32 %v4853_v22, %v4885_v39  ;;  %v4883_v5 = vmul.f32 0.1, %v4851_v61  ;;  %v4854_v63 = vadd.f32 %v8710_v60, %v4815_v51  ;;  %v4813_v18 = vmul.f32 %v8702_v0, %v4774_v12  ;;  %v4701_v56 = vpop.f32.mrf.mxu0  ;;  %v9168_v11 = vld [vmem:[#allocation29_spill] sm:$0xff] }
 0x209   : > { %4944 = vst [vmem:[%s8733_s25 + $0x48] sm:$0xff] %v4912_v10  ;;  %v4779_v32 = vadd.f32 %v6058_v50, %v4309_v19  ;;  %v4307_v34 = vadd.f32 %v4228_v16, %v3581_v53  ;;  %v6025_v45 = vpop.f32.mrf.mxu1  ;;  %v3224_v22 = vadd.f32 %v9161_v3, %v9160_v9  ;;  %v3588_v27 = vadd.f32 %v9162_v40, %v3226_v38  ;;  %v9166_v19 = vld [vmem:[#allocation25_spill] sm:$0xff]  ;;  %v9167_v16 = vld [vmem:[#allocation34_spill] sm:$0xff]  ;;  %v9171_v38 = vld [vmem:[#allocation31_spill] sm:$0xff] }
 0x20a   : > { %4949 = vst [vmem:[%s8733_s25 + $0x70] sm:$0xff] %v4917_v14  ;;  %v4915_v46 = vmax.f32 %v4851_v61, %v4883_v5  ;;  %v4886_v24 = vmul.f32 0.1, %v4854_v63  ;;  %v4852_v13 = vadd.f32 %v8710_v60, %v4813_v18  ;;  %v4310_v23 = vadd.f32 %v6025_v45, %v3584_v58  ;;  %v9170_v45 = vld [vmem:[#allocation36_spill] sm:$0xff] }
 0x20b   : > { %v6062_v28 = vpop.f32.mrf.mxu0  ;;  %v4818_v54 = vmul.f32 %v8702_v0, %v4779_v32  ;;  %v4777_v25 = vadd.f32 %v4698_v1, %v4307_v34  ;;  %v4231_v6 = vpop.f32.mrf.mxu1  ;;  %v3229_v39 = vadd.f32 %v9164_v35, %v9163_v7  ;;  %v3586_v10 = vadd.f32 %v9165_v42, %v3224_v22  ;;  %v9169_v34 = vld [vmem:[#allocation4_spill] sm:$0xff]  ;;  %v9174_v22 = vld [vmem:[#allocation33_spill] sm:$0xff]  ;;  %v9176_v35 = vld [vmem:[#allocation6_spill] sm:$0xff] }
 0x20c   : > { %4947 = vst [vmem:[%s8733_s25 + $0x60] sm:$0xff] %v4915_v46  ;;  %v4918_v50 = vmax.f32 %v4854_v63, %v4886_v24  ;;  %v4884_v26 = vmul.f32 0.1, %v4852_v13  ;;  %v4780_v8 = vadd.f32 %v6059_v52, %v4310_v23  ;;  %v4308_v33 = vadd.f32 %v4231_v6, %v3582_v36  ;;  %v9173_v6 = vld [vmem:[#allocation38_spill] sm:$0xff] }
 0x20d   : > { %v4714_v49 = vpop.f32.mrf.mxu0  ;;  %v4857_v37 = vadd.f32 %v8710_v60, %v4818_v54  ;;  %v4816_v4 = vmul.f32 %v8702_v0, %v4777_v25  ;;  %v6028_v43 = vpop.f32.mrf.mxu1  ;;  %v3227_v14 = vadd.f32 %v9167_v16, %v9166_v19  ;;  %v3591_v32 = vadd.f32 %v9168_v11, %v3229_v39  ;;  %v9172_v25 = vld [vmem:[#allocation3_spill] sm:$0xff]  ;;  %v9177_v39 = vld [vmem:[#allocation40_spill] sm:$0xff]  ;;  %v9181_v11 = vld [vmem:[#allocation37_spill] sm:$0xff] }
 0x20e   : > { %4950 = vst [vmem:[%s8733_s25 + $0x78] sm:$0xff] %v4918_v50  ;;  %v4916_v1 = vmax.f32 %v4852_v13, %v4884_v26  ;;  %v4819_v55 = vmul.f32 %v8702_v0, %v4780_v8  ;;  %v4778_v53 = vadd.f32 %v4701_v56, %v4308_v33  ;;  %v4313_v41 = vadd.f32 %v6028_v43, %v3587_v31  ;;  %v9179_v16 = vld [vmem:[#allocation7_spill] sm:$0xff] }
 0x20f   : > { %v6063_v21 = vpop.f32.mrf.mxu0  ;;  %v4889_v61 = vmul.f32 0.1, %v4857_v37  ;;  %v4855_v51 = vadd.f32 %v8710_v60, %v4816_v4  ;;  %v4244_v12 = vpop.f32.mrf.mxu1  ;;  %v3230_v46 = vadd.f32 %v9170_v45, %v9169_v34  ;;  %v3589_v54 = vadd.f32 %v9171_v38, %v3227_v14  ;;  %v9180_v14 = vld [vmem:[#allocation43_spill] sm:$0xff]  ;;  %v9182_v34 = vld [vmem:[#allocation10_spill] sm:$0xff]  ;;  %v9183_v45 = vld [vmem:[#allocation44_spill] sm:$0xff] }
 0x210   : > { %4948 = vst [vmem:[%s8733_s25 + $0x68] sm:$0xff] %v4916_v1  ;;  %v4858_v52 = vadd.f32 %v8710_v60, %v4819_v55  ;;  %v4817_v20 = vmul.f32 %v8702_v0, %v4778_v53  ;;  %v4783_v58 = vadd.f32 %v6062_v28, %v4313_v41  ;;  %v4311_v30 = vadd.f32 %v4244_v12, %v3585_v2 }
 0x211   : > { %v4717_v48 = vpop.f32.mrf.mxu0  ;;  %v4921_v5 = vmax.f32 %v4857_v37, %v4889_v61  ;;  %v4887_v63 = vmul.f32 0.1, %v4855_v51  ;;  %v6029_v18 = vpop.f32.mrf.mxu1  ;;  %v3228_v50 = vadd.f32 %v9173_v6, %v9172_v25  ;;  %v3592_v37 = vadd.f32 %v9174_v22, %v3230_v46 }
 0x212   : > { %v4890_v56 = vmul.f32 0.1, %v4858_v52  ;;  %v4856_v17 = vadd.f32 %v8710_v60, %v4817_v20  ;;  %v4822_v36 = vmul.f32 %v8702_v0, %v4783_v58  ;;  %v4781_v62 = vadd.f32 %v4714_v49, %v4311_v30 }
 0x213   : > { %v6066_v57 = vpop.f32.mrf.mxu0  ;;  %4953 = vst [vmem:[%s8733_s25 + $0x90] sm:$0xff] %v4921_v5  ;;  %v4919_v24 = vmax.f32 %v4855_v51, %v4887_v63  ;;  %v4314_v13 = vadd.f32 %v6029_v18, %v3588_v27  ;;  %v4247_v23 = vpop.f32.mrf.mxu1  ;;  %v9175_v27 = vld [vmem:[#allocation35_spill] sm:$0xff]  ;;  %v3233_v61 = vadd.f32 %v9177_v39, %v9176_v35  ;;  %v3234_v5 = vadd.f32 %v9180_v14, %v9179_v16 }
 0x214   : > { %v4922_v28 = vmax.f32 %v4858_v52, %v4890_v56  ;;  %v4888_v47 = vmul.f32 0.1, %v4856_v17  ;;  %v4861_v31 = vadd.f32 %v8710_v60, %v4822_v36  ;;  %v4820_v29 = vmul.f32 %v8702_v0, %v4781_v62 }
 0x215   : > { %v4730_v44 = vpop.f32.mrf.mxu0  ;;  %4951 = vst [vmem:[%s8733_s25 + $0x80] sm:$0xff] %v4919_v24  ;;  %v4784_v26 = vadd.f32 %v6063_v21, %v4314_v13  ;;  %v4312_v8 = vadd.f32 %v4247_v23, %v3586_v10  ;;  %v6032_v33 = vpop.f32.mrf.mxu1  ;;  %v3590_v7 = vadd.f32 %v9175_v27, %v3228_v50  ;;  %v9178_v10 = vld [vmem:[#allocation5_spill] sm:$0xff] }
 0x216   : > { %4954 = vst [vmem:[%s8733_s25 + $0x98] sm:$0xff] %v4922_v28  ;;  %v4920_v49 = vmax.f32 %v4856_v17, %v4888_v47  ;;  %v4893_v59 = vmul.f32 0.1, %v4861_v31  ;;  %v4859_v2 = vadd.f32 %v8710_v60, %v4820_v29  ;;  %v4317_v9 = vadd.f32 %v6032_v33, %v3591_v32 }
 0x217   : > { %v6067_v3 = vpop.f32.mrf.mxu0  ;;  %v4823_v4 = vmul.f32 %v8702_v0, %v4784_v26  ;;  %v4782_v43 = vadd.f32 %v4717_v48, %v4312_v8  ;;  %v4260_v1 = vpop.f32.mrf.mxu1  ;;  %v3231_v19 = vadd.f32 %v8684_v15, %v9178_v10  ;;  %v3595_v32 = vadd.f32 %v9181_v11, %v3233_v61 }
 0x218   : > { %4952 = vst [vmem:[%s8733_s25 + $0x88] sm:$0xff] %v4920_v49  ;;  %v4925_v55 = vmax.f32 %v4861_v31, %v4893_v59  ;;  %v4891_v53 = vmul.f32 0.1, %v4859_v2  ;;  %v4787_v41 = vadd.f32 %v6066_v57, %v4317_v9  ;;  %v4315_v21 = vadd.f32 %v4260_v1, %v3589_v54  ;;  %v9185_v54 = vld [vmem:[#allocation41_spill] sm:$0xff] }
 0x219   : > { %v4733_v40 = vpop.f32.mrf.mxu0  ;;  %v4862_v51 = vadd.f32 %v8710_v60, %v4823_v4  ;;  %v4821_v12 = vmul.f32 %v8702_v0, %v4782_v43  ;;  %v6033_v52 = vpop.f32.mrf.mxu1  ;;  %v3232_v15 = vadd.f32 %v9183_v45, %v9182_v34  ;;  %v3596_v25 = vadd.f32 %v9185_v54, %v3234_v5 }
 0x21a   : > { %4957 = vst [vmem:[%s8733_s25 + $0xb0] sm:$0xff] %v4925_v55  ;;  %v4923_v20 = vmax.f32 %v4859_v2, %v4891_v53  ;;  %v4826_v58 = vmul.f32 %v8702_v0, %v4787_v41  ;;  %v4785_v30 = vadd.f32 %v4730_v44, %v4315_v21  ;;  %v4318_v48 = vadd.f32 %v6033_v52, %v3592_v37  ;;  %v9184_v44 = vld [vmem:[#allocation39_spill] sm:$0xff]  ;;  %v9186_v2 = vld [vmem:[#allocation42_spill] sm:$0xff] }
 0x21b   : > { %v6070_v42 = vpop.f32.mrf.mxu0  ;;  %v4894_v63 = vmul.f32 0.1, %v4862_v51  ;;  %v4860_v18 = vadd.f32 %v8710_v60, %v4821_v12  ;;  %v4263_v56 = vpop.f32.mrf.mxu1  ;;  %v3593_v38 = vadd.f32 %v9184_v44, %v3231_v19  ;;  %v3594_v9 = vadd.f32 %v9186_v2, %v3232_v15 }
 0x21c   : > { %4955 = vst [vmem:[%s8733_s25 + $0xa0] sm:$0xff] %v4923_v20  ;;  %v4865_v17 = vadd.f32 %v8710_v60, %v4826_v58  ;;  %v4824_v36 = vmul.f32 %v8702_v0, %v4785_v30  ;;  %v4788_v62 = vadd.f32 %v6067_v3, %v4318_v48  ;;  %v4316_v57 = vadd.f32 %v4263_v56, %v3590_v7 }
 0x21d   : > { %v4926_v46 = vmax.f32 %v4862_v51, %v4894_v63  ;;  %v4892_v24 = vmul.f32 0.1, %v4860_v18  ;;  %v6036_v13 = vpop.f32.mrf.mxu1  ;;  %v4746_v23 = vpop.f32.mrf.mxu0 }
 0x21e   : > { %v4897_v28 = vmul.f32 0.1, %v4865_v17  ;;  %v4863_v47 = vadd.f32 %v8710_v60, %v4824_v36  ;;  %v4827_v31 = vmul.f32 %v8702_v0, %v4788_v62  ;;  %v4786_v29 = vadd.f32 %v4733_v40, %v4316_v57 }
 0x21f   : > { %4958 = vst [vmem:[%s8733_s25 + $0xb8] sm:$0xff] %v4926_v46  ;;  %v4924_v6 = vmax.f32 %v4860_v18, %v4892_v24  ;;  %v4321_v50 = vadd.f32 %v6036_v13, %v3595_v32  ;;  %v4276_v26 = vpop.f32.mrf.mxu1  ;;  %v6071_v4 = vpop.f32.mrf.mxu0 }
 0x220   : > { %v4929_v8 = vmax.f32 %v4865_v17, %v4897_v28  ;;  %v4895_v33 = vmul.f32 0.1, %v4863_v47  ;;  %v4866_v49 = vadd.f32 %v8710_v60, %v4827_v31  ;;  %v4825_v59 = vmul.f32 %v8702_v0, %v4786_v29 }
 0x221   : > { %4956 = vst [vmem:[%s8733_s25 + $0xa8] sm:$0xff] %v4924_v6  ;;  %v4791_v3 = vadd.f32 %v6070_v42, %v4321_v50  ;;  %v4319_v22 = vadd.f32 %v4276_v26, %v3593_v38  ;;  %v6037_v37 = vpop.f32.mrf.mxu1  ;;  %v4749_v12 = vpop.f32.mrf.mxu0 }
 0x222   : > { %4961 = vst [vmem:[%s8733_s25 + $0xd0] sm:$0xff] %v4929_v8  ;;  %v4927_v43 = vmax.f32 %v4863_v47, %v4895_v33  ;;  %v4898_v1 = vmul.f32 0.1, %v4866_v49  ;;  %v4864_v55 = vadd.f32 %v8710_v60, %v4825_v59  ;;  %v4322_v53 = vadd.f32 %v6037_v37, %v3596_v25 }
 0x223   : > { %v4830_v41 = vmul.f32 %v8702_v0, %v4791_v3  ;;  %v4789_v21 = vadd.f32 %v4746_v23, %v4319_v22  ;;  %v4279_v40 = vpop.f32.mrf.mxu1 }
 0x224   : > { %4959 = vst [vmem:[%s8733_s25 + $0xc0] sm:$0xff] %v4927_v43  ;;  %v4930_v27 = vmax.f32 %v4866_v49, %v4898_v1  ;;  %v4896_v7 = vmul.f32 0.1, %v4864_v55  ;;  %v4792_v35 = vadd.f32 %v6071_v4, %v4322_v53  ;;  %v4320_v39 = vadd.f32 %v4279_v40, %v3594_v9 }
 0x225   : > { %v4869_v61 = vadd.f32 %v8710_v60, %v4830_v41  ;;  %v4828_v51 = vmul.f32 %v8702_v0, %v4789_v21 }
 0x226   : > { %4962 = vst [vmem:[%s8733_s25 + $0xd8] sm:$0xff] %v4930_v27  ;;  %v4928_v52 = vmax.f32 %v4864_v55, %v4896_v7  ;;  %v4831_v20 = vmul.f32 %v8702_v0, %v4792_v35  ;;  %v4790_v58 = vadd.f32 %v4749_v12, %v4320_v39 }
 0x227   : > { %v4901_v30 = vmul.f32 0.1, %v4869_v61  ;;  %v4867_v48 = vadd.f32 %v8710_v60, %v4828_v51 }
 0x228   : > { %4960 = vst [vmem:[%s8733_s25 + $0xc8] sm:$0xff] %v4928_v52  ;;  %v4870_v42 = vadd.f32 %v8710_v60, %v4831_v20  ;;  %v4829_v10 = vmul.f32 %v8702_v0, %v4790_v58 }
 0x229   : > { %v4933_v19 = vmax.f32 %v4869_v61, %v4901_v30  ;;  %v4899_v16 = vmul.f32 0.1, %v4867_v48 }
 0x22a   : > { %v4902_v14 = vmul.f32 0.1, %v4870_v42  ;;  %v4868_v5 = vadd.f32 %v8710_v60, %v4829_v10 }
 0x22b   : > { %4965 = vst [vmem:[%s8733_s25 + $0xf0] sm:$0xff] %v4933_v19  ;;  %v4931_v63 = vmax.f32 %v4867_v48, %v4899_v16 }
 0x22c   : > { %v4934_v18 = vmax.f32 %v4870_v42, %v4902_v14  ;;  %v4900_v56 = vmul.f32 0.1, %v4868_v5 }
 0x22d   : > { %4963 = vst [vmem:[%s8733_s25 + $0xe0] sm:$0xff] %v4931_v63 }
 0x22e   : > { %4966 = vst [vmem:[%s8733_s25 + $0xf8] sm:$0xff] %v4934_v18  ;;  %v4932_v17 = vmax.f32 %v4868_v5, %v4900_v56 }
 0x230   : > { %4964 = vst [vmem:[%s8733_s25 + $0xe8] sm:$0xff] %v4932_v17 }
 0x231 PF: > { %s14_s17 = sadd.s32 1, %s6181_s17   ;;  %s9187_s15 = smov %s6177_s16 }
 0x232   : > { %p11_p5 = scmp.ge.s32.totalorder %s14_s17, 4   ;;  %s9188_s16 = smov %s9190_s18 }
 0x234   :  { %13 = sbr.rel (!%p11_p5) target bundleno = 2 (0x2), region = 77 }

// kernel: cnn_block_forward.2
= control target key start
LH: loop header
LB: loop body
LE: loop exit
PB: predicated region body
PF: predicated region fallthrough
CT: control target
= control target key end

     0   :  { %s6126_s12 = smov 0   ;;  %s6128_s13 = smov 0   ;;  %s8678_s0 = inlined_call_operand.vmem [shape: bf16[2,18,18,4], index: 0, kind: input, shape index: {}]   ;;  %s8679_s1 = inlined_call_operand.vmem [shape: bf16[3,3,4,128], index: 1, kind: input, shape index: {}]   ;;  %s8680_s2 = inlined_call_operand.vmem [shape: f32[2,1,1,128], index: 2, kind: output, shape index: {0}]   ;;  %s8681_s3 = inlined_call_operand.vmem [shape: f32[2,1,1,128], index: 3, kind: output, shape index: {1}]  }
   0x1   :  { %s6130_s14 = smov 0  }
   0x2 LB: > { %s26_s15 = sadd.s32 1, %s6100_s13  ;;  %p4996_p0 = scmp.ge.s32.totalorder %s6104_s14, 1  ;;  %s6104_s14 = sphi %s6130_s14, %s14_s14   ;;  %s6100_s13 = sphi %s6128_s13, %s8909_s13   ;;  %s6096_s12 = sphi %s6126_s12, %s8908_s12  }
   0x3   : > { %p28_p1 = scmp.ge.s32.totalorder %s26_s15, 2  ;;  %p156_p2 = scmp.lt.s32.totalorder %s6104_s14, 3 }
   0x5   : > { %s8911_s15 = smov (%p28_p1, %s26_s15), 0  ;;  %p157_p3 = pnand %p4996_p0, %p156_p2 }
   0x7   : > { %160 = sbr.rel (%p157_p3) target bundleno = 573 (0x23d), region = 28 }
   0xc   : > { %v4998_v0 = vld [vmem:[%s8679_s1 + $0x2] sm:$0x3]  ;;  %vm744_vm0 = vcmask 1041408   ;;  %p187_p4 = scmp.lt.s32.totalorder %s6096_s12, 1  ;;  %v241_v2 = vld [vmem:[%s8679_s1] sm:$0x3] }
   0xd   : > { %5998 = vmatprep.subr.msk.bf16.mxu1 %vm744_vm0, %v4998_v0  ;;  %5997 = vmatprep.subr.msk.bf16.mxu0 %vm744_vm0, %v4998_v0  ;;  %v746_v1 = vsel %vm744_vm0, %v4998_v0, 0  ;;  %v5079_v3 = vld [vmem:[%s8679_s1 + $0x4] sm:$0x3]  ;;  %vm258_vm1 = vsmask.f32 3328  ;;  %v6167_v4 = vsel %vm744_vm0, %v241_v2, 0 }
   0xe   : > { %5996 = vmatpush3.bf16.msra.mxu1 %v746_v1  ;;  %5690 = vmatpush3.bf16.msra.mxu0 %v746_v1  ;;  %s8913_s12 = smov (!%p187_p4, %s6096_s12), 1  ;;  %vm259_vm2 = vsmask.f32 7440  ;;  %vm695_vm3 = vcmask 31744   ;;  %v6193_v16 = vsel %vm744_vm0, %v5079_v3, 0  ;;  %vm1249_vm5 = vcmask 1042432  }
   0xf   : > { %5999 = vmatprep.subr.msk.bf16.mxu1 %vm744_vm0, %v241_v2  ;;  %6000 = vmatprep.subr.msk.bf16.mxu0 %vm744_vm0, %v5079_v3  ;;  %s6007_s22 = smul.u32 216, %s8913_s12  ;;  %vm6208_vm4 = vmor %vm258_vm1, %vm259_vm2  ;;  %vm1250_vm6 = vcmask 1046532   ;;  %s197_s17 = scalar_lea.vmem %s8680_s2, %s8913_s12 }
  0x10   : > { %vm6494_vm7 = vmor %vm1249_vm5, %vm1250_vm6  ;;  %s203_s20 = scalar_lea.vmem %s8681_s3, %s8913_s12 }
  0x11   : > { %s6164_s25 = scalar_lea.vmem %s8678_s0, %s6007_s22 }
  0x12   : > { %v6170_v5 = vld [vmem:[%s6164_s25] sm:$0xf]  ;;  %v6173_v6 = vld [vmem:[%s6164_s25 + $0x4] sm:$0xf]  ;;  %v6176_v7 = vld [vmem:[%s6164_s25 + $0x8] sm:$0x1] }
  0x13   : > { %v262_v8 = vshrl.u32 %v6170_v5, 16  ;;  %v265_v9 = vshll.u32 %v6170_v5, 16  ;;  %v271_v10 = vshll.u32 %v6173_v6, 16  ;;  %v275_v11 = vshrl.u32 %v6173_v6, 16  ;;  %v6183_v12 = vld [vmem:[%s6164_s25 + $0x60] sm:$0xf] }
  0x14   : > { %v281_v13 = vshll.u32 %v6176_v7, 16  ;;  %v6187_v14 = vld [vmem:[%s6164_s25 + $0x64] sm:$0xf]  ;;  %v6190_v15 = vld [vmem:[%s6164_s25 + $0x68] sm:$0x1]  ;;  %v454_v22 = vshrl.u32 %v6183_v12, 16 }
  0x15   : > { %v264_v17 = vrot.slane %v262_v8, 4  ;;  %v267_v18 = vrot.slane %v265_v9, 5  ;;  %v273_v19 = vrot.slane %v271_v10, 5  ;;  %v277_v20 = vrot.slane %v275_v11, 4  ;;  %v6201_v29 = vld [vmem:[%s6164_s25 + $0xc] sm:$0xf] }
  0x16   : > { %v283_v21 = vrot.slane %v281_v13, 5  ;;  %v457_v23 = vshll.u32 %v6183_v12, 16  ;;  %v463_v24 = vshll.u32 %v6187_v14, 16  ;;  %v467_v27 = vshrl.u32 %v6187_v14, 16  ;;  %v6204_v30 = vld [vmem:[%s6164_s25 + $0x10] sm:$0xf] }
  0x17   : > { %v268_v25 = vor.u32 %v267_v18, %v264_v17  ;;  %v278_v26 = vor.u32 %v277_v20, %v273_v19  ;;  %v473_v28 = vshll.u32 %v6190_v15, 16  ;;  %v456_v33 = vrot.slane %v454_v22, 4  ;;  %v6214_v41 = vld [vmem:[%s6164_s25 + $0x14] sm:$0x1]  ;;  %v6225_v53 = vld [vmem:[%s6164_s25 + $0x6c] sm:$0xf] }
  0x18   : > { %v459_v34 = vrot.slane %v457_v23, 5  ;;  %v465_v35 = vrot.slane %v463_v24, 5  ;;  %v469_v38 = vrot.slane %v467_v27, 4  ;;  %v286_v42 = vshrl.u32 %v6201_v29, 16  ;;  %v6229_v58 = vld [vmem:[%s6164_s25 + $0x70] sm:$0xf] }
  0x19   : > { %v269_v36 = vrot.slane %v268_v25, 4  ;;  %v279_v37 = vrot.slane %v278_v26, 4  ;;  %v475_v39 = vrot.slane %v473_v28, 5  ;;  %v289_v43 = vshll.u32 %v6201_v29, 16  ;;  %v6237_v63 = vld [vmem:[%s6164_s25 + $0x74] sm:$0x1] }
  0x1a   : > { %v460_v40 = vor.u32 %v459_v34, %v456_v33  ;;  %v295_v44 = vshll.u32 %v6204_v30, 16  ;;  %v470_v47 = vor.u32 %v469_v38, %v465_v35  ;;  %v299_v48 = vshrl.u32 %v6204_v30, 16  ;;  %v6243_v8 = vld [vmem:[%s6164_s25 + $0x18] sm:$0xf]  ;;  %v6256_v25 = vld [vmem:[%s6164_s25 + $0x20] sm:$0x1] }
  0x1b   : > { %v274_v45 = vsel %vm6208_vm4, %v269_v36, %v273_v19  ;;  %v284_v46 = vsel %vm6208_vm4, %v279_v37, %v283_v21  ;;  %v288_v51 = vrot.slane %v286_v42, 4  ;;  %v291_v52 = vrot.slane %v289_v43, 5  ;;  %v6250_v21 = vld [vmem:[%s6164_s25 + $0x1c] sm:$0xf] }
  0x1c   : > { %v4999_v49 = vcombine.low %v274_v45, %v284_v46  ;;  %v461_v50 = vrot.slane %v460_v40, 4  ;;  %v471_v54 = vrot.slane %v470_v47, 4  ;;  %v297_v55 = vrot.slane %v295_v44, 5  ;;  %v6269_v40 = vld [vmem:[%s8679_s1 + $0x8] sm:$0x3] }
  0x1d   : > { %v301_v56 = vrot.slane %v299_v48, 4  ;;  %v305_v57 = vshll.u32 %v6214_v41, 16  ;;  %v292_v60 = vor.u32 %v291_v52, %v288_v51  ;;  %v478_v3 = vshrl.u32 %v6225_v53, 16  ;;  %v6274_v46 = vld [vmem:[%s6164_s25 + $0x7c] sm:$0xf] }
  0x1e   : > { %5691 = vmatprep.mubr.msk.bf16.mxu0 %vm695_vm3, %v4999_v49  ;;  %v466_v59 = vsel %vm6208_vm4, %v461_v50, %v465_v35  ;;  %v476_v0 = vsel %vm6208_vm4, %v471_v54, %v475_v39  ;;  %v481_v11 = vshll.u32 %v6225_v53, 16  ;;  %v487_v13 = vshll.u32 %v6229_v58, 16  ;;  %v6263_v35 = vld [vmem:[%s6164_s25 + $0x78] sm:$0xf] }
  0x1f   : > { %v302_v1 = vor.u32 %v301_v56, %v297_v55  ;;  %v307_v2 = vrot.slane %v305_v57, 5  ;;  %v5007_v9 = vcombine.low %v466_v59, %v476_v0  ;;  %v293_v10 = vrot.slane %v292_v60, 4  ;;  %v6281_v56 = vld [vmem:[%s6164_s25 + $0x80] sm:$0x1] }
  0x20   : > { %v480_v18 = vrot.slane %v478_v3, 4  ;;  %v491_v19 = vshrl.u32 %v6229_v58, 16  ;;  %v497_v20 = vshll.u32 %v6237_v63, 16  ;;  %v483_v23 = vrot.slane %v481_v11, 5  ;;  %8717 = vst [vmem:[#allocation2_spill] sm:$0xff] %v6281_v56 }
  0x21   : > { %v303_v17 = vrot.slane %v302_v1, 4  ;;  %5707 = vmatprep.mubr.msk.bf16.mxu1 %vm695_vm3, %v5007_v9  ;;  %v298_v22 = vsel %vm6208_vm4, %v293_v10, %v297_v55  ;;  %v489_v24 = vrot.slane %v487_v13, 5  ;;  %v310_v26 = vshrl.u32 %v6243_v8, 16  ;;  %v6287_v1 = vld [vmem:[%s6164_s25 + $0x24] sm:$0xf] }
  0x22   : > { %v493_v28 = vrot.slane %v491_v19, 4  ;;  %v499_v33 = vrot.slane %v497_v20, 5  ;;  %v313_v34 = vshll.u32 %v6243_v8, 16  ;;  %v484_v37 = vor.u32 %v483_v23, %v480_v18  ;;  %v6295_v10 = vld [vmem:[%s6164_s25 + $0x28] sm:$0xf] }
  0x23   : > { %v308_v27 = vsel %vm6208_vm4, %v303_v17, %v307_v2  ;;  %v312_v38 = vrot.slane %v310_v26, 4  ;;  %v319_v39 = vshll.u32 %v6250_v21, 16  ;;  %v323_v44 = vshrl.u32 %v6250_v21, 16  ;;  %v6301_v19 = vld [vmem:[%s8679_s1 + $0x6] sm:$0x3] }
  0x24   : > { %v5000_v36 = vcombine.low %v298_v22, %v308_v27  ;;  %v494_v42 = vor.u32 %v493_v28, %v489_v24  ;;  %v315_v43 = vrot.slane %v313_v34, 5  ;;  %v329_v45 = vshll.u32 %v6256_v25, 16 }
  0x25   : > { %v485_v47 = vrot.slane %v484_v37, 4  ;;  %v321_v48 = vrot.slane %v319_v39, 5  ;;  %v502_v49 = vshrl.u32 %v6263_v35, 16  ;;  %v505_v50 = vshll.u32 %v6263_v35, 16 }
  0x26   : > { %5692 = vmatmul.mubr.msk.bf16.vlgmr.msra.gmra.mxu0 %vm695_vm3, %v5000_v36  ;;  %v495_v51 = vrot.slane %v494_v42, 4  ;;  %v316_v52 = vor.u32 %v315_v43, %v312_v38  ;;  %v325_v54 = vrot.slane %v323_v44, 4  ;;  %v331_v55 = vrot.slane %v329_v45, 5  ;;  %v6313_v36 = vld [vmem:[%s6164_s25 + $0x84] sm:$0xf] }
  0x27   : > { %5758 = vmatpush3.bf16.msra.mxu0 %v6193_v16  ;;  %v490_v57 = vsel %vm6208_vm4, %v485_v47, %v489_v24  ;;  %v504_v59 = vrot.slane %v502_v49, 4  ;;  %v507_v60 = vrot.slane %v505_v50, 5  ;;  %v511_v0 = vshll.u32 %v6274_v46, 16  ;;  %v6306_v24 = vld [vmem:[%s6164_s25 + $0x2c] sm:$0x1] }
  0x28   : > { %6002 = vmatprep.subr.msk.bf16.mxu0 %vm744_vm0, %v6269_v40  ;;  %v500_v16 = vsel %vm6208_vm4, %v495_v51, %v499_v33  ;;  %v317_v2 = vrot.slane %v316_v52, 4  ;;  %v326_v3 = vor.u32 %v325_v54, %v321_v48  ;;  %v515_v9 = vshrl.u32 %v6274_v46, 16  ;;  %v6320_v43 = vld [vmem:[%s6164_s25 + $0x88] sm:$0xf]  ;;  %v6328_v51 = vld [vmem:[%s6164_s25 + $0x8c] sm:$0x1] }
  0x29   : > { %v5008_v11 = vcombine.low %v490_v57, %v500_v16  ;;  %v508_v13 = vor.u32 %v507_v60, %v504_v59  ;;  %v513_v17 = vrot.slane %v511_v0, 5  ;;  %v521_v18 = vshll.u32 %v6281_v56, 16  ;;  %8718 = vst [vmem:[#allocation3_spill] sm:$0xff] %v6328_v51  ;;  %v6336_v60 = vld [vmem:[%s6164_s25 + $0x30] sm:$0xf] }
  0x2a   : > { %v322_v20 = vsel %vm6208_vm4, %v317_v2, %v321_v48  ;;  %v327_v22 = vrot.slane %v326_v3, 4  ;;  %v517_v23 = vrot.slane %v515_v9, 4  ;;  %v334_v26 = vshrl.u32 %v6287_v1, 16  ;;  %v6341_v9 = vld [vmem:[%s6164_s25 + $0x34] sm:$0xf] }
  0x2b   : > { %5708 = vmatmul.mubr.msk.bf16.vlgmr.msra.gmra.mxu1 %vm695_vm3, %v5008_v11  ;;  %v509_v27 = vrot.slane %v508_v13, 4  ;;  %v523_v28 = vrot.slane %v521_v18, 5  ;;  %v337_v33 = vshll.u32 %v6287_v1, 16  ;;  %v343_v34 = vshll.u32 %v6295_v10, 16 }
  0x2c   : > { %5724 = vmatpush3.bf16.msra.mxu1 %v6167_v4  ;;  %v332_v37 = vsel %vm6208_vm4, %v327_v22, %v331_v55  ;;  %v518_v38 = vor.u32 %v517_v23, %v513_v17  ;;  %v336_v39 = vrot.slane %v334_v26, 4  ;;  %v347_v42 = vshrl.u32 %v6295_v10, 16 }
  0x2d   : > { %v5001_v44 = vcombine.low %v322_v20, %v332_v37  ;;  %v514_v45 = vsel %vm6208_vm4, %v509_v27, %v513_v17  ;;  %v339_v47 = vrot.slane %v337_v33, 5  ;;  %v345_v48 = vrot.slane %v343_v34, 5  ;;  %6001 = vmatprep.subr.msk.bf16.mxu1 %vm744_vm0, %v6301_v19  ;;  %v6349_v33 = vld [vmem:[%s6164_s25 + $0x38] sm:$0x1] }
  0x2e   : > { %v519_v4 = vrot.slane %v518_v38, 4  ;;  %v349_v49 = vrot.slane %v347_v42, 4  ;;  %v353_v50 = vshll.u32 %v6306_v24, 16  ;;  %v526_v52 = vshrl.u32 %v6313_v36, 16  ;;  %v6354_v38 = vld [vmem:[%s6164_s25 + $0x90] sm:$0xf] }
  0x2f   : > { %5695 = vmatprep.mubr.msk.bf16.mxu0 %vm695_vm3, %v5001_v44  ;;  %v340_v54 = vor.u32 %v339_v47, %v336_v39  ;;  %v529_v55 = vshll.u32 %v6313_v36, 16  ;;  %v535_v57 = vshll.u32 %v6320_v43, 16  ;;  %v539_v59 = vshrl.u32 %v6320_v43, 16  ;;  %8719 = vst [vmem:[#allocation4_spill] sm:$0xff] %v6354_v38  ;;  %v6359_v47 = vld [vmem:[%s6164_s25 + $0x94] sm:$0xf] }
  0x30   : > { %v524_v0 = vsel %vm6208_vm4, %v519_v4, %v523_v28  ;;  %v350_v16 = vor.u32 %v349_v49, %v345_v48  ;;  %v355_v2 = vrot.slane %v353_v50, 5  ;;  %v528_v3 = vrot.slane %v526_v52, 4  ;;  %8720 = vst [vmem:[#allocation5_spill] sm:$0xff] %v6359_v47 }
  0x31   : > { %v5009_v11 = vcombine.low %v514_v45, %v524_v0  ;;  %v341_v13 = vrot.slane %v340_v54, 4  ;;  %v531_v17 = vrot.slane %v529_v55, 5  ;;  %v537_v18 = vrot.slane %v535_v57, 5 }
  0x32   : > { %v351_v20 = vrot.slane %v350_v16, 4  ;;  %v541_v22 = vrot.slane %v539_v59, 4  ;;  %v545_v23 = vshll.u32 %v6328_v51, 16  ;;  %v358_v26 = vshrl.u32 %v6336_v60, 16  ;;  %v6368_v16 = vld [vmem:[%s6164_s25 + $0x98] sm:$0x1] }
  0x33   : > { %5711 = vmatprep.mubr.msk.bf16.mxu1 %vm695_vm3, %v5009_v11  ;;  %v346_v27 = vsel %vm6208_vm4, %v341_v13, %v345_v48  ;;  %v532_v28 = vor.u32 %v531_v17, %v528_v3  ;;  %v361_v34 = vshll.u32 %v6336_v60, 16  ;;  %v367_v37 = vshll.u32 %v6341_v9, 16  ;;  %8721 = vst [vmem:[#allocation6_spill] sm:$0xff] %v6368_v16  ;;  %v6373_v11 = vld [vmem:[%s6164_s25 + $0x3c] sm:$0xf] }
  0x34   : > { %v356_v39 = vsel %vm6208_vm4, %v351_v20, %v355_v2  ;;  %v542_v42 = vor.u32 %v541_v22, %v537_v18  ;;  %v547_v44 = vrot.slane %v545_v23, 5  ;;  %v360_v45 = vrot.slane %v358_v26, 4  ;;  %v6378_v23 = vld [vmem:[%s6164_s25 + $0x40] sm:$0xf]  ;;  %v1202_v51 = vld [vmem:[%s6164_s25 + $0xc] sm:$0xe] }
  0x35   : > { %v5002_v48 = vcombine.low %v346_v27, %v356_v39  ;;  %v533_v4 = vrot.slane %v532_v28, 4  ;;  %v363_v49 = vrot.slane %v361_v34, 5  ;;  %v369_v50 = vrot.slane %v367_v37, 5 }
  0x36   : > { %v543_v52 = vrot.slane %v542_v42, 4  ;;  %v371_v54 = vshrl.u32 %v6341_v9, 16  ;;  %v377_v55 = vshll.u32 %v6349_v33, 16  ;;  %v550_v57 = vshrl.u32 %v6354_v38, 16 }
  0x37   : > { %5696 = vmatmul.mubr.msk.bf16.gmra.mxu0 %vm695_vm3, %v5002_v48  ;;  %v538_v59 = vsel %vm6208_vm4, %v533_v4, %v537_v18  ;;  %v364_v0 = vor.u32 %v363_v49, %v360_v45  ;;  %v553_v2 = vshll.u32 %v6354_v38, 16  ;;  %v559_v3 = vshll.u32 %v6359_v47, 16  ;;  %v6387_v48 = vld [vmem:[%s6164_s25 + $0x44] sm:$0x1] }
  0x38   : > { %v548_v13 = vsel %vm6208_vm4, %v543_v52, %v547_v44  ;;  %v373_v17 = vrot.slane %v371_v54, 4  ;;  %v379_v20 = vrot.slane %v377_v55, 5  ;;  %v552_v22 = vrot.slane %v550_v57, 4  ;;  %v6392_v52 = vld [vmem:[%s6164_s25 + $0x9c] sm:$0xf] }
  0x39   : > { %v5010_v18 = vcombine.low %v538_v59, %v548_v13  ;;  %v365_v26 = vrot.slane %v364_v0, 4  ;;  %v555_v27 = vrot.slane %v553_v2, 5  ;;  %v561_v28 = vrot.slane %v559_v3, 5  ;;  %8722 = vst [vmem:[#allocation7_spill] sm:$0xff] %v6392_v52  ;;  %v6396_v13 = vld [vmem:[%s6164_s25 + $0xa0] sm:$0xf] }
  0x3a   : > { %v374_v34 = vor.u32 %v373_v17, %v369_v50  ;;  %v563_v37 = vshrl.u32 %v6359_v47, 16  ;;  %v569_v39 = vshll.u32 %v6368_v16, 16  ;;  %v382_v42 = vshrl.u32 %v6373_v11, 16  ;;  %8723 = vst [vmem:[#allocation8_spill] sm:$0xff] %v6396_v13 }
  0x3b   : > { %5712 = vmatmul.mubr.msk.bf16.gmra.mxu1 %vm695_vm3, %v5010_v18  ;;  %v370_v44 = vsel %vm6208_vm4, %v365_v26, %v369_v50  ;;  %v556_v45 = vor.u32 %v555_v27, %v552_v22  ;;  %v385_v4 = vshll.u32 %v6373_v11, 16  ;;  %v391_v49 = vshll.u32 %v6378_v23, 16  ;;  %v6402_v26 = vld [vmem:[%s6164_s25 + $0xa4] sm:$0x1] }
  0x3c   : > { %v375_v54 = vrot.slane %v374_v34, 4  ;;  %v565_v55 = vrot.slane %v563_v37, 4  ;;  %v571_v57 = vrot.slane %v569_v39, 5  ;;  %v384_v59 = vrot.slane %v382_v42, 4  ;;  %8724 = vst [vmem:[#allocation9_spill] sm:$0xff] %v6402_v26 }
  0x3d   : > { %v557_v0 = vrot.slane %v556_v45, 4  ;;  %v387_v2 = vrot.slane %v385_v4, 5  ;;  %v393_v3 = vrot.slane %v391_v49, 5  ;;  %v395_v50 = vshrl.u32 %v6378_v23, 16  ;;  %v6406_v34 = vld [vmem:[%s6164_s25 + $0x48] sm:$0xf] }
  0x3e   : > { %v380_v17 = vsel %vm6208_vm4, %v375_v54, %v379_v20  ;;  %v566_v22 = vor.u32 %v565_v55, %v561_v28  ;;  %v401_v18 = vshll.u32 %v6387_v48, 16  ;;  %v574_v27 = vshrl.u32 %v6392_v52, 16 }
  0x3f   : > { %v5003_v37 = vcombine.low %v370_v44, %v380_v17  ;;  %v562_v39 = vsel %vm6208_vm4, %v557_v0, %v561_v28  ;;  %v388_v42 = vor.u32 %v387_v2, %v384_v59  ;;  %v397_v45 = vrot.slane %v395_v50, 4  ;;  %v6415_v17 = vld [vmem:[%s6164_s25 + $0x4c] sm:$0xf]  ;;  %v6421_v2 = vld [vmem:[%s6164_s25 + $0x50] sm:$0x1] }
  0x40   : > { %v567_v4 = vrot.slane %v566_v22, 4  ;;  %v403_v49 = vrot.slane %v401_v18, 5  ;;  %v576_v20 = vrot.slane %v574_v27, 4  ;;  %v577_v54 = vshll.u32 %v6392_v52, 16 }
  0x41   : > { %5699 = vmatprep.mubr.msk.bf16.mxu0 %vm695_vm3, %v5003_v37  ;;  %v389_v55 = vrot.slane %v388_v42, 4  ;;  %v398_v62 = vor.u32 %v397_v45, %v393_v3  ;;  %v583_v32 = vshll.u32 %v6396_v13, 16  ;;  %v587_v44 = vshrl.u32 %v6396_v13, 16  ;;  %v6427_v42 = vld [vmem:[%s6164_s25 + $0xa8] sm:$0xf] }
  0x42   : > { %v572_v28 = vsel %vm6208_vm4, %v567_v4, %v571_v57  ;;  %v579_v59 = vrot.slane %v577_v54, 5  ;;  %v593_v0 = vshll.u32 %v6402_v26, 16  ;;  %v406_v50 = vshrl.u32 %v6406_v34, 16  ;;  %8725 = vst [vmem:[#allocation10_spill] sm:$0xff] %v6427_v42 }
  0x43   : > { %v5011_v22 = vcombine.low %v562_v39, %v572_v28  ;;  %v394_v18 = vsel %vm6208_vm4, %v389_v55, %v393_v3  ;;  %v399_v27 = vrot.slane %v398_v62, 4  ;;  %v585_v37 = vrot.slane %v583_v32, 5 }
  0x44   : > { %v580_v45 = vor.u32 %v579_v59, %v576_v20  ;;  %v589_v61 = vrot.slane %v587_v44, 4  ;;  %v595_v57 = vrot.slane %v593_v0, 5  ;;  %v408_v4 = vrot.slane %v406_v50, 4  ;;  %v6437_v44 = vld [vmem:[%s6164_s25 + $0xac] sm:$0xf] }
  0x45   : > { %5715 = vmatprep.mubr.msk.bf16.mxu1 %vm695_vm3, %v5011_v22  ;;  %v404_v54 = vsel %vm6208_vm4, %v399_v27, %v403_v49  ;;  %v409_v39 = vshll.u32 %v6406_v34, 16  ;;  %v415_v28 = vshll.u32 %v6415_v17, 16  ;;  %v419_v62 = vshrl.u32 %v6415_v17, 16  ;;  %8726 = vst [vmem:[#allocation11_spill] sm:$0xff] %v6437_v44  ;;  %v6440_v22 = vld [vmem:[%s6164_s25 + $0xb0] sm:$0x1] }
  0x46   : > { %v5004_v3 = vcombine.low %v394_v18, %v404_v54  ;;  %v581_v32 = vrot.slane %v580_v45, 4  ;;  %v590_v55 = vor.u32 %v589_v61, %v585_v37  ;;  %v425_v20 = vshll.u32 %v6421_v2, 16  ;;  %8727 = vst [vmem:[#allocation12_spill] sm:$0xff] %v6440_v22 }
  0x47   : > { %v411_v59 = vrot.slane %v409_v39, 5  ;;  %v417_v0 = vrot.slane %v415_v28, 5  ;;  %v421_v50 = vrot.slane %v419_v62, 4  ;;  %v598_v49 = vshrl.u32 %v6427_v42, 16  ;;  %v6449_v62 = vld [vmem:[%s6164_s25 + $0x54] sm:$0xf] }
  0x48   : > { %5700 = vmatmul.mubr.msk.bf16.gmra.mxu0 %vm695_vm3, %v5004_v3  ;;  %v586_v18 = vsel %vm6208_vm4, %v581_v32, %v585_v37  ;;  %v591_v27 = vrot.slane %v590_v55, 4  ;;  %v427_v61 = vrot.slane %v425_v20, 5  ;;  %v601_v45 = vshll.u32 %v6427_v42, 16  ;;  %v6456_v55 = vld [vmem:[%s6164_s25 + $0x58] sm:$0xf] }
  0x49   : > { %v412_v54 = vor.u32 %v411_v59, %v408_v4  ;;  %v422_v56 = vor.u32 %v421_v50, %v417_v0  ;;  %v600_v39 = vrot.slane %v598_v49, 4  ;;  %v607_v28 = vshll.u32 %v6437_v44, 16  ;;  %v6459_v49 = vld [vmem:[%s6164_s25 + $0x5c] sm:$0x1] }
  0x4a   : > { %v596_v3 = vsel %vm6208_vm4, %v591_v27, %v595_v57  ;;  %v603_v26 = vrot.slane %v601_v45, 5  ;;  %v611_v37 = vshrl.u32 %v6437_v44, 16  ;;  %v617_v32 = vshll.u32 %v6440_v22, 16  ;;  %v1201_v22 = vld [vmem:[%s6164_s25] sm:$0xe] }
  0x4b   : > { %v5012_v4 = vcombine.low %v586_v18, %v596_v3  ;;  %v413_v20 = vrot.slane %v412_v54, 4  ;;  %v423_v59 = vrot.slane %v422_v56, 4  ;;  %v609_v50 = vrot.slane %v607_v28, 5  ;;  %v6470_v54 = vld [vmem:[%s6164_s25 + $0xb4] sm:$0xf] }
  0x4c   : > { %v604_v42 = vor.u32 %v603_v26, %v600_v39  ;;  %v613_v52 = vrot.slane %v611_v37, 4  ;;  %v619_v13 = vrot.slane %v617_v32, 5  ;;  %v430_v57 = vshrl.u32 %v6449_v62, 16  ;;  %8728 = vst [vmem:[#allocation13_spill] sm:$0xff] %v6470_v54  ;;  %v6473_v37 = vld [vmem:[%s6164_s25 + $0xb8] sm:$0xf] }
  0x4d   : > { %5716 = vmatmul.mubr.msk.bf16.gmra.mxu1 %vm695_vm3, %v5012_v4  ;;  %v418_v27 = vsel %vm6208_vm4, %v413_v20, %v417_v0  ;;  %v428_v18 = vsel %vm6208_vm4, %v423_v59, %v427_v61  ;;  %v433_v56 = vshll.u32 %v6449_v62, 16  ;;  %v439_v45 = vshll.u32 %v6456_v55, 16  ;;  %v6478_v61 = vld [vmem:[%s6164_s25 + $0xbc] sm:$0x1] }
  0x4e   : > { %v5005_v26 = vcombine.low %v418_v27, %v428_v18  ;;  %v605_v39 = vrot.slane %v604_v42, 4  ;;  %v614_v28 = vor.u32 %v613_v52, %v609_v50  ;;  %v432_v3 = vrot.slane %v430_v57, 4 }
  0x4f   : > { %v435_v32 = vrot.slane %v433_v56, 5  ;;  %v441_v4 = vrot.slane %v439_v45, 5  ;;  %v443_v0 = vshrl.u32 %v6456_v55, 16  ;;  %v449_v20 = vshll.u32 %v6459_v49, 16 }
  0x50   : > { %5703 = vmatprep.mubr.msk.bf16.mxu0 %vm695_vm3, %v5005_v26  ;;  %v610_v59 = vsel %vm6208_vm4, %v605_v39, %v609_v50  ;;  %v615_v27 = vrot.slane %v614_v28, 4  ;;  %v622_v52 = vshrl.u32 %v6470_v54, 16  ;;  %v625_v42 = vshll.u32 %v6470_v54, 16 }
  0x51   : > { %v436_v57 = vor.u32 %v435_v32, %v432_v3  ;;  %v445_v18 = vrot.slane %v443_v0, 4  ;;  %v451_v56 = vrot.slane %v449_v20, 5  ;;  %v631_v45 = vshll.u32 %v6473_v37, 16 }
  0x52   : > { %v620_v44 = vsel %vm6208_vm4, %v615_v27, %v619_v13  ;;  %v624_v16 = vrot.slane %v622_v52, 4  ;;  %v627_v26 = vrot.slane %v625_v42, 5  ;;  %v635_v38 = vshrl.u32 %v6473_v37, 16 }
  0x53   : > { %v5013_v50 = vcombine.low %v610_v59, %v620_v44  ;;  %v437_v39 = vrot.slane %v436_v57, 4  ;;  %v446_v28 = vor.u32 %v445_v18, %v441_v4  ;;  %v633_v47 = vrot.slane %v631_v45, 5  ;;  %v1203_v57 = vld [vmem:[%s6164_s25 + $0x18] sm:$0xe] }
  0x54   : > { %v628_v54 = vor.u32 %v627_v26, %v624_v16  ;;  %v637_v3 = vrot.slane %v635_v38, 4  ;;  %v641_v32 = vshll.u32 %v6478_v61, 16  ;;  %v5063_v13 = vrot.slane %v1201_v22, 9 }
  0x55   : > { %5719 = vmatprep.mubr.msk.bf16.mxu1 %vm695_vm3, %v5013_v50  ;;  %v442_v44 = vsel %vm6208_vm4, %v437_v39, %v441_v4  ;;  %v447_v20 = vrot.slane %v446_v28, 4  ;;  %v1254_v59 = vrot.slane %v6173_v6, 5  ;;  %v5032_v38 = vcombine.low %v6201_v29, %v6204_v30 }
  0x56   : > { %v629_v16 = vrot.slane %v628_v54, 4  ;;  %v638_v27 = vor.u32 %v637_v3, %v633_v47  ;;  %v643_v52 = vrot.slane %v641_v32, 5  ;;  %v5064_v42 = vrot.slane %v1202_v51, 9 }
  0x57   : > { %v452_v18 = vsel %vm6208_vm4, %v447_v20, %v451_v56  ;;  %v1255_v22 = vsel %vm6494_vm7, %v5063_v13, %v1254_v59  ;;  %v1256_v45 = vrot.slane %v1254_v59, 4  ;;  %v8731_v4 = vrot.slane %v6204_v30, 5 }
  0x58   : > { %v5006_v50 = vcombine.low %v442_v44, %v452_v18  ;;  %v634_v54 = vsel %vm6208_vm4, %v629_v16, %v633_v47  ;;  %v639_v39 = vrot.slane %v638_v27, 4  ;;  %v5031_v51 = vcombine.low %v6170_v5, %v6173_v6  ;;  %v1204_v27 = vld [vmem:[%s6164_s25 + $0x24] sm:$0xe] }
  0x59   : > { %v1263_v26 = vrot.slane %v8731_v4, 4  ;;  %v8732_v28 = vrot.slane %v6176_v7, 5  ;;  %v8733_v3 = vmov %v8731_v4  ;;  %v5033_v13 = vcombine.low %v6243_v8, %v6250_v21  ;;  %v1206_v4 = vld [vmem:[%s6164_s25 + $0x3c] sm:$0xe] }
  0x5a   : > { %v1262_v32 = vsel %vm6494_vm7, %v5064_v42, %v8733_v3  ;;  %v5065_v44 = vrot.slane %v1203_v57, 9  ;;  %5704 = vmatmul.mubr.msk.bf16.gmra.mxu0 %vm695_vm3, %v5006_v50  ;;  %v644_v47 = vsel %vm6208_vm4, %v639_v39, %v643_v52  ;;  %v8734_v6 = vrot.slane %v6214_v41, 5  ;;  %v1205_v42 = vld [vmem:[%s6164_s25 + $0x30] sm:$0xe]  ;;  %v1207_v39 = vld [vmem:[%s6164_s25 + $0x48] sm:$0xe] }
  0x5b   : > { %v1258_v56 = vsel %vm6494_vm7, %v1256_v45, %v8732_v28  ;;  %v1268_v20 = vrot.slane %v6250_v21, 5  ;;  %v5014_v59 = vcombine.low %v634_v54, %v644_v47  ;;  %v1271_v16 = vrot.slane %v6256_v25, 5  ;;  %v1208_v47 = vld [vmem:[%s6164_s25 + $0x54] sm:$0xe]  ;;  %v6789_v21 = vld [vmem:[%s6164_s25 + $0x2c] sm:$0x1] }
  0x5c   : > { %v5080_v5 = vcombine.low %v1255_v22, %v1258_v56  ;;  %v1265_v7 = vsel %vm6494_vm7, %v1263_v26, %v8734_v6  ;;  %v1825_v52 = vsel %vm744_vm0, %v6301_v19, 0  ;;  %v1275_v18 = vrot.slane %v6295_v10, 5 }
  0x5d   : > { %v1269_v41 = vsel %vm6494_vm7, %v5065_v44, %v1268_v20  ;;  %v1270_v57 = vrot.slane %v1268_v20, 4  ;;  %5720 = vmatmul.mubr.msk.bf16.gmra.mxu1 %vm695_vm3, %v5014_v59  ;;  %v5081_v22 = vcombine.low %v1262_v32, %v1265_v7  ;;  %v2551_v25 = vsel %vm744_vm0, %v6269_v40, 0 }
  0x5e   : > { %5759 = vmatprep.mubr.msk.bf16.mxu0 %vm695_vm3, %v5080_v5  ;;  %v1282_v45 = vrot.slane %v6341_v9, 5  ;;  %5725 = vmatprep.mubr.msk.bf16.mxu1 %vm695_vm3, %v5031_v51  ;;  %v5066_v26 = vrot.slane %v1204_v27, 9  ;;  %v1278_v50 = vrot.slane %v6306_v24, 5  ;;  %v5067_v54 = vrot.slane %v1205_v42, 9  ;;  %v6561_v24 = vld [vmem:[%s8679_s1 + $0xc] sm:$0x3] }
  0x5f   : > { %v1272_v19 = vsel %vm6494_vm7, %v1270_v57, %v1271_v16  ;;  %v1277_v56 = vrot.slane %v1275_v18, 4  ;;  %v1285_v32 = vrot.slane %v6349_v33, 5  ;;  %v5068_v44 = vrot.slane %v1206_v4, 9 }
  0x60   : > { %v5082_v28 = vcombine.low %v1269_v41, %v1272_v19  ;;  %v1284_v3 = vrot.slane %v1282_v45, 4  ;;  %v1289_v40 = vrot.slane %v6378_v23, 5  ;;  %v1313_v5 = vrot.slane %v6190_v15, 5 }
  0x61   : > { %v1292_v51 = vrot.slane %v6387_v48, 5  ;;  %v5069_v6 = vrot.slane %v1207_v39, 9  ;;  %v1296_v7 = vrot.slane %v6415_v17, 5  ;;  %v5034_v33 = vcombine.low %v6287_v1, %v6295_v10  ;;  %v1209_v1 = vld [vmem:[%s6164_s25 + $0x60] sm:$0xe] }
  0x62   : > { %5760 = vmatmul.mubr.msk.bf16.vlgmr.msra.gmra.mxu0 %vm695_vm3, %v5081_v22  ;;  %v1276_v20 = vsel %vm6494_vm7, %v5066_v26, %v1275_v18  ;;  %v1291_v59 = vrot.slane %v1289_v40, 4  ;;  %v1299_v16 = vrot.slane %v6421_v2, 5  ;;  %v1279_v48 = vsel %vm6494_vm7, %v1277_v56, %v1278_v50  ;;  %v6589_v22 = vld [vmem:[%s8679_s1 + $0xa] sm:$0x3]  ;;  %v6614_v50 = vld [vmem:[%s6164_s25 + $0x6c] sm:$0xe] }
  0x63   : > { %5826 = vmatpush3.bf16.msra.mxu0 %v2551_v25  ;;  %5763 = vmatprep.mubr.msk.bf16.mxu0 %vm695_vm3, %v5082_v28  ;;  %v1283_v27 = vsel %vm6494_vm7, %v5067_v54, %v1282_v45  ;;  %v1286_v42 = vsel %vm6494_vm7, %v1284_v3, %v1285_v32  ;;  %v1298_v41 = vrot.slane %v1296_v7, 4  ;;  %v6579_v10 = vsel %vm6494_vm7, %v5068_v44, %v1289_v40  ;;  %v1212_v39 = vld [vmem:[%s6164_s25 + $0x84] sm:$0xe]  ;;  %v6643_v44 = vld [vmem:[%s6164_s25 + $0x78] sm:$0xe] }
  0x64   : > { %v6583_v2 = vsel %vm6494_vm7, %v5069_v6, %v1296_v7  ;;  %v5070_v57 = vrot.slane %v1208_v47, 9  ;;  %v1303_v18 = vrot.slane %v6456_v55, 5  ;;  %6004 = vmatprep.subr.msk.bf16.mxu0 %vm744_vm0, %v6561_v24  ;;  %v6599_v25 = vsel %vm6494_vm7, %v1291_v59, %v1292_v51  ;;  %v1213_v40 = vld [vmem:[%s6164_s25 + $0x90] sm:$0xe] }
  0x65   : > { %5726 = vmatmul.mubr.msk.bf16.vlgmr.msra.gmra.mxu1 %vm695_vm3, %v5032_v38  ;;  %v6603_v45 = vsel %vm6494_vm7, %v1298_v41, %v1299_v16  ;;  %v1306_v4 = vrot.slane %v6459_v49, 5  ;;  %v1310_v19 = vrot.slane %v6187_v14, 5  ;;  %v5083_v29 = vcombine.low %v1276_v20, %v1279_v48  ;;  %v8735_v48 = vld [vmem:[#allocation3_spill] sm:$0xff] }
  0x66   : > { %5792 = vmatpush3.bf16.msra.mxu1 %v1825_v52  ;;  %5729 = vmatprep.mubr.msk.bf16.mxu1 %vm695_vm3, %v5033_v13  ;;  %v5035_v30 = vcombine.low %v6336_v60, %v6341_v9  ;;  %v1305_v38 = vrot.slane %v1303_v18, 4  ;;  %v5071_v26 = vrot.slane %v1209_v1, 9  ;;  %v5084_v49 = vcombine.low %v1283_v27, %v1286_v42  ;;  %v1214_v42 = vld [vmem:[%s6164_s25 + $0x9c] sm:$0xe] }
  0x67   : > { %v5036_v52 = vcombine.low %v6373_v11, %v6378_v23  ;;  %v5037_v8 = vcombine.low %v6406_v34, %v6415_v17  ;;  %6003 = vmatprep.subr.msk.bf16.mxu1 %vm744_vm0, %v6589_v22  ;;  %v5085_v60 = vcombine.low %v6579_v10, %v6599_v25  ;;  %v5086_v9 = vcombine.low %v6583_v2, %v6603_v45  ;;  %v8736_v10 = vld [vmem:[#allocation5_spill] sm:$0xff]  ;;  %v8737_v2 = vld [vmem:[#allocation4_spill] sm:$0xff] }
  0x68   : > { %v1312_v54 = vrot.slane %v1310_v19, 4  ;;  %v6633_v28 = vsel %vm6494_vm7, %v5070_v57, %v1303_v18  ;;  %v6637_v56 = vsel %vm6494_vm7, %v1305_v38, %v1306_v4  ;;  %v5072_v32 = vrot.slane %v6614_v50, 9  ;;  %v1215_v18 = vld [vmem:[%s6164_s25 + $0xa8] sm:$0xe]  ;;  %v8739_v38 = vld [vmem:[#allocation8_spill] sm:$0xff] }
  0x69   : > { %v6649_v47 = vsel %vm6494_vm7, %v5071_v26, %v1310_v19  ;;  %v1317_v51 = vrot.slane %v6229_v58, 5  ;;  %v1320_v6 = vrot.slane %v6237_v63, 5  ;;  %v5074_v59 = vrot.slane %v1212_v39, 9  ;;  %v8738_v19 = vld [vmem:[#allocation6_spill] sm:$0xff]  ;;  %v8740_v26 = vld [vmem:[#allocation7_spill] sm:$0xff] }
  0x6a   : > { %5764 = vmatmul.mubr.msk.bf16.gmra.mxu0 %vm695_vm3, %v5083_v29  ;;  %v1331_v16 = vrot.slane %v6320_v43, 5  ;;  %v1334_v27 = vrot.slane %v8735_v48, 5  ;;  %v5087_v41 = vcombine.low %v6633_v28, %v6637_v56  ;;  %v6667_v63 = vsel %vm6494_vm7, %v1312_v54, %v1313_v5  ;;  %v8742_v48 = vld [vmem:[#allocation11_spill] sm:$0xff] }
  0x6b   : > { %5767 = vmatprep.mubr.msk.bf16.mxu0 %vm695_vm3, %v5084_v49  ;;  %v5073_v1 = vrot.slane %v6643_v44, 9  ;;  %v5075_v4 = vrot.slane %v1213_v40, 9  ;;  %v1338_v15 = vrot.slane %v8736_v10, 5  ;;  %v1319_v5 = vrot.slane %v1317_v51, 4  ;;  %v5177_v57 = vld [vmem:[%s6164_s25 + $0xc] sm:$0xf] }
  0x6c   : > { %v6676_v25 = vsel %vm6494_vm7, %v5074_v59, %v1331_v16  ;;  %v1333_v45 = vrot.slane %v1331_v16, 4  ;;  %v1341_v29 = vrot.slane %v8738_v19, 5  ;;  %v5076_v49 = vrot.slane %v1214_v42, 9  ;;  %v8741_v59 = vld [vmem:[#allocation9_spill] sm:$0xff]  ;;  %v8743_v42 = vld [vmem:[#allocation10_spill] sm:$0xff] }
  0x6d   : > { %5730 = vmatmul.mubr.msk.bf16.gmra.mxu1 %vm695_vm3, %v5034_v33  ;;  %v1324_v33 = vrot.slane %v6274_v46, 5  ;;  %v6690_v39 = vsel %vm6494_vm7, %v5075_v4, %v1338_v15  ;;  %v1340_v44 = vrot.slane %v1338_v15, 4  ;;  %v1345_v40 = vrot.slane %v8739_v38, 5  ;;  %v8744_v15 = vld [vmem:[#allocation12_spill] sm:$0xff] }
  0x6e   : > { %5733 = vmatprep.mubr.msk.bf16.mxu1 %vm695_vm3, %v5035_v30  ;;  %v6686_v54 = vsel %vm6494_vm7, %v1333_v45, %v1334_v27  ;;  %v1348_v16 = vrot.slane %v8741_v59, 5  ;;  %v5077_v45 = vrot.slane %v1215_v18, 9  ;;  %v1352_v4 = vrot.slane %v8742_v48, 5 }
  0x6f   : > { %v6700_v27 = vsel %vm6494_vm7, %v1340_v44, %v1341_v29  ;;  %v1355_v50 = vrot.slane %v8744_v15, 5  ;;  %v6710_v19 = vsel %vm6494_vm7, %v5076_v49, %v1345_v40  ;;  %v1347_v7 = vrot.slane %v1345_v40, 4  ;;  %v8745_v29 = vld [vmem:[#allocation13_spill] sm:$0xff]  ;;  %v8746_v15 = vld [vmem:[#allocation2_spill] sm:$0xff]  ;;  %v6725_v49 = vld [vmem:[%s6164_s25 + $0x10] sm:$0xf] }
  0x70   : > { %v6717_v18 = vsel %vm6494_vm7, %v5072_v32, %v1317_v51  ;;  %v6722_v59 = vsel %vm6494_vm7, %v5077_v45, %v1352_v4  ;;  %v1354_v30 = vrot.slane %v1352_v4, 4  ;;  %v5180_v40 = vld [vmem:[%s6164_s25 + $0x18] sm:$0xf]  ;;  %v1326_v20 = vrot.slane %v1324_v33, 4 }
  0x71   : > { %v2069_v44 = vshrl.u32 %v5177_v57, 16  ;;  %v2072_v32 = vshll.u32 %v5177_v57, 16  ;;  %v5088_v51 = vcombine.low %v6649_v47, %v6667_v63  ;;  %v6740_v45 = vsel %vm6494_vm7, %v1319_v5, %v1320_v6  ;;  %v1216_v57 = vld [vmem:[%s6164_s25 + $0xb4] sm:$0xe]  ;;  %v6761_v47 = vld [vmem:[%s6164_s25 + $0x14] sm:$0x1] }
  0x72   : > { %5768 = vmatmul.mubr.msk.bf16.gmra.mxu0 %vm695_vm3, %v5085_v60  ;;  %v1327_v60 = vrot.slane %v8746_v15, 5  ;;  %v6755_v11 = vsel %vm6494_vm7, %v5073_v1, %v1324_v33  ;;  %v2078_v6 = vshll.u32 %v6725_v49, 16  ;;  %v5181_v63 = vld [vmem:[%s6164_s25 + $0x1c] sm:$0xf]  ;;  %v2082_v17 = vshrl.u32 %v6725_v49, 16 }
  0x73   : > { %5771 = vmatprep.mubr.msk.bf16.mxu0 %vm695_vm3, %v5086_v9  ;;  %v6730_v9 = vsel %vm6494_vm7, %v1347_v7, %v1348_v16  ;;  %v6746_v7 = vsel %vm6494_vm7, %v1354_v30, %v1355_v50  ;;  %v2071_v5 = vrot.slane %v2069_v44, 4  ;;  %v2074_v34 = vrot.slane %v2072_v32, 5  ;;  %v5183_v15 = vld [vmem:[%s6164_s25 + $0x24] sm:$0xf]  ;;  %v6774_v44 = vld [vmem:[%s6164_s25 + $0x28] sm:$0xf] }
  0x74   : > { %v2093_v50 = vshrl.u32 %v5180_v40, 16  ;;  %v1328_v1 = vsel %vm6494_vm7, %v1326_v20, %v1327_v60  ;;  %v5078_v33 = vrot.slane %v1216_v57, 9  ;;  %v6769_v30 = vrot.slane %v2078_v6, 5 }
  0x75   : > { %5734 = vmatmul.mubr.msk.bf16.gmra.mxu1 %vm695_vm3, %v5036_v52  ;;  %v1359_v52 = vrot.slane %v6473_v37, 5  ;;  %v2096_v16 = vshll.u32 %v5180_v40, 16  ;;  %v1362_v23 = vrot.slane %v6478_v61, 5  ;;  %v2084_v4 = vrot.slane %v2082_v17, 4 }
  0x76   : > { %5737 = vmatprep.mubr.msk.bf16.mxu1 %vm695_vm3, %v5037_v8  ;;  %v5182_v8 = vld [vmem:[%s6164_s25 + $0x20] sm:$0x1]  ;;  %v2095_v3 = vrot.slane %v2093_v50, 4  ;;  %v2102_v13 = vshll.u32 %v5181_v63, 16  ;;  %v2088_v20 = vshll.u32 %v6761_v47, 16  ;;  %v2106_v57 = vshrl.u32 %v5181_v63, 16 }
  0x77   : > { %v1361_v32 = vrot.slane %v1359_v52, 4  ;;  %v2098_v60 = vrot.slane %v2096_v16, 5  ;;  %v5089_v61 = vcombine.low %v6717_v18, %v6740_v45  ;;  %v5090_v40 = vcombine.low %v6755_v11, %v1328_v1 }
  0x78   : > { %v2075_v6 = vor.u32 %v2074_v34, %v2071_v5  ;;  %v6785_v17 = vrot.slane %v2102_v13, 5  ;;  %v2085_v28 = vor.u32 %v2084_v4, %v6769_v30  ;;  %v2112_v50 = vshll.u32 %v5182_v8, 16  ;;  %v6812_v5 = vld [vmem:[%s6164_s25 + $0x34] sm:$0xf] }
  0x79   : > { %v2099_v56 = vor.u32 %v2098_v60, %v2095_v3  ;;  %v6797_v18 = vsel %vm6494_vm7, %v5078_v33, %v1359_v52  ;;  %v2117_v13 = vshrl.u32 %v5183_v15, 16  ;;  %v2120_v45 = vshll.u32 %v5183_v15, 16  ;;  %v5186_v52 = vld [vmem:[%s6164_s25 + $0x30] sm:$0xf] }
  0x7a   : > { %5772 = vmatmul.mubr.msk.bf16.gmra.mxu0 %vm695_vm3, %v5087_v41  ;;  %v2108_v41 = vrot.slane %v2106_v57, 4  ;;  %v2126_v11 = vshll.u32 %v6774_v44, 16  ;;  %v8748_v3 = vcombine.low %v6183_v12, %v6187_v14  ;;  %v6806_v4 = vsel %vm6494_vm7, %v1361_v32, %v1362_v23 }
  0x7b   : > { %5775 = vmatprep.mubr.msk.bf16.mxu0 %vm695_vm3, %v5088_v51  ;;  %v8747_v51 = vcombine.low %v6449_v62, %v6456_v55  ;;  %v2090_v62 = vrot.slane %v2088_v20, 5  ;;  %v2130_v63 = vshrl.u32 %v6774_v44, 16  ;;  %v2076_v34 = vrot.slane %v2075_v6, 4 }
  0x7c   : > { %v2109_v55 = vor.u32 %v2108_v41, %v6785_v17  ;;  %v2119_v8 = vrot.slane %v2117_v13, 4  ;;  %v2122_v1 = vrot.slane %v2120_v45, 5  ;;  %v6814_v33 = vrot.slane %v2126_v11, 5  ;;  %v6820_v41 = vld [vmem:[%s6164_s25 + $0x38] sm:$0x1] }
  0x7d   : > { %5738 = vmatmul.mubr.msk.bf16.gmra.mxu1 %vm695_vm3, %v8747_v51  ;;  %v2086_v12 = vrot.slane %v2085_v28, 4  ;;  %v2100_v14 = vrot.slane %v2099_v56, 4  ;;  %v2114_v16 = vrot.slane %v2112_v50, 5  ;;  %v2132_v23 = vrot.slane %v2130_v63, 4  ;;  %v5189_v13 = vld [vmem:[%s6164_s25 + $0x3c] sm:$0xf] }
  0x7e   : > { %5741 = vmatprep.mubr.msk.bf16.mxu1 %vm695_vm3, %v8748_v3  ;;  %v2110_v15 = vrot.slane %v2109_v55, 4  ;;  %v2136_v32 = vshll.u32 %v6789_v21, 16  ;;  %v2141_v20 = vshrl.u32 %v5186_v52, 16  ;;  %v2144_v60 = vshll.u32 %v5186_v52, 16 }
  0x7f   : > { %v2123_v57 = vor.u32 %v2122_v1, %v2119_v8  ;;  %v2133_v6 = vor.u32 %v2132_v23, %v6814_v33  ;;  %v2150_v28 = vshll.u32 %v6812_v5, 16  ;;  %v2154_v56 = vshrl.u32 %v6812_v5, 16  ;;  %v5192_v8 = vld [vmem:[%s6164_s25 + $0x48] sm:$0xf]  ;;  %v6847_v1 = vld [vmem:[%s6164_s25 + $0x4c] sm:$0xf] }
  0x80   : > { %v2143_v50 = vrot.slane %v2141_v20, 4  ;;  %v2146_v51 = vrot.slane %v2144_v60, 5  ;;  %v8749_v3 = vcombine.low %v6225_v53, %v6229_v58  ;;  %v5095_v55 = vcombine.low %v6797_v18, %v6806_v4 }
  0x81   : > { %v6826_v45 = vrot.slane %v2150_v28, 5  ;;  %v2156_v11 = vrot.slane %v2154_v56, 4  ;;  %v2091_v63 = vsel %vm6208_vm4, %v2086_v12, %v2090_v62  ;;  %v2105_v52 = vsel %vm6208_vm4, %v2100_v14, %v6785_v17 }
  0x82   : > { %5776 = vmatmul.mubr.msk.bf16.gmra.mxu0 %vm695_vm3, %v5089_v61  ;;  %v6829_v61 = vld [vmem:[%s6164_s25 + $0x40] sm:$0xf]  ;;  %v8750_v53 = vcombine.low %v6263_v35, %v6274_v46  ;;  %v2115_v58 = vsel %vm6208_vm4, %v2110_v15, %v2114_v16  ;;  %v2124_v23 = vrot.slane %v2123_v57, 4  ;;  %v2147_v20 = vor.u32 %v2146_v51, %v2143_v50  ;;  %v6881_v50 = vld [vmem:[%s6164_s25 + $0x44] sm:$0x1] }
  0x83   : > { %5779 = vmatprep.mubr.msk.bf16.mxu0 %vm695_vm3, %v5090_v40  ;;  %v2081_v40 = vsel %vm6208_vm4, %v2076_v34, %v6769_v30  ;;  %v2134_v30 = vrot.slane %v2133_v6, 4  ;;  %v2138_v34 = vrot.slane %v2136_v32, 5  ;;  %v2160_v62 = vshll.u32 %v6820_v41, 16  ;;  %v5195_v51 = vld [vmem:[%s6164_s25 + $0x54] sm:$0xf] }
  0x84   : > { %v2165_v12 = vshrl.u32 %v5189_v13, 16  ;;  %v2168_v17 = vshll.u32 %v5189_v13, 16  ;;  %v6858_v14 = vsel %vm744_vm0, %v6589_v22, 0  ;;  %v2157_v35 = vor.u32 %v2156_v11, %v6826_v45 }
  0x85   : > { %5742 = vmatmul.mubr.msk.bf16.gmra.mxu1 %vm695_vm3, %v8749_v3  ;;  %v2174_v46 = vshll.u32 %v6829_v61, 16  ;;  %v2178_v16 = vshrl.u32 %v6829_v61, 16  ;;  %v6863_v15 = vcombine.low %v2081_v40, %v2091_v63  ;;  %v6867_v32 = vsel %vm744_vm0, %v6561_v24, 0  ;;  %v6890_v40 = vld [vmem:[%s6164_s25 + $0x58] sm:$0xf] }
  0x86   : > { %5745 = vmatprep.mubr.msk.bf16.mxu1 %vm695_vm3, %v8750_v53  ;;  %v2189_v60 = vshrl.u32 %v5192_v8, 16  ;;  %v2192_v57 = vshll.u32 %v5192_v8, 16  ;;  %v8751_v6 = vcombine.low %v6676_v25, %v6686_v54  ;;  %v6873_v22 = vcombine.low %v2105_v52, %v2115_v58  ;;  %v6895_v8 = vld [vmem:[%s6164_s25 + $0x50] sm:$0x1] }
  0x87   : > { %v2129_v28 = vsel %vm6208_vm4, %v2124_v23, %v6814_v33  ;;  %v2139_v56 = vsel %vm6208_vm4, %v2134_v30, %v2138_v34  ;;  %v2198_v24 = vshll.u32 %v6847_v1, 16  ;;  %v8752_v25 = vcombine.low %v6690_v39, %v6700_v27  ;;  %v5198_v34 = vld [vmem:[%s6164_s25 + $0x60] sm:$0xf] }
  0x88   : > { %v2148_v54 = vrot.slane %v2147_v20, 4  ;;  %v2162_v13 = vrot.slane %v2160_v62, 5  ;;  %v2167_v11 = vrot.slane %v2165_v12, 4  ;;  %v2170_v3 = vrot.slane %v2168_v17, 5 }
  0x89   : > { %v2158_v33 = vrot.slane %v2157_v35, 4  ;;  %v6892_v63 = vrot.slane %v2174_v46, 5  ;;  %v2180_v52 = vrot.slane %v2178_v16, 4  ;;  %v2202_v53 = vshrl.u32 %v6847_v1, 16  ;;  %v6912_v35 = vld [vmem:[%s6164_s25 + $0x5c] sm:$0x1] }
  0x8a   : > { %5780 = vmatmul.mubr.msk.bf16.gmra.mxu0 %vm695_vm3, %v8751_v6  ;;  %v8753_v39 = vcombine.low %v6313_v36, %v6320_v43  ;;  %v2191_v27 = vrot.slane %v2189_v60, 4  ;;  %v2194_v58 = vrot.slane %v2192_v57, 5  ;;  %v2213_v23 = vshrl.u32 %v5195_v51, 16 }
  0x8b   : > { %5783 = vmatprep.mubr.msk.bf16.mxu0 %vm695_vm3, %v8752_v25  ;;  %v2216_v30 = vshll.u32 %v5195_v51, 16  ;;  %v8754_v20 = vcombine.low %v8737_v2, %v8736_v10  ;;  %v6907_v62 = vcombine.low %v2129_v28, %v2139_v56  ;;  %v6909_v12 = vrot.slane %v2198_v24, 5  ;;  %v6925_v28 = vld [vmem:[%s6164_s25 + $0x64] sm:$0xf] }
  0x8c   : > { %v2204_v17 = vrot.slane %v2202_v53, 4  ;;  %v2222_v36 = vshll.u32 %v6890_v40, 16  ;;  %v2184_v43 = vshll.u32 %v6881_v50, 16  ;;  %v2215_v46 = vrot.slane %v2213_v23, 4 }
  0x8d   : > { %5746 = vmatmul.mubr.msk.bf16.gmra.mxu1 %vm695_vm3, %v8753_v39  ;;  %v2218_v16 = vrot.slane %v2216_v30, 5  ;;  %v2226_v60 = vshrl.u32 %v6890_v40, 16  ;;  %v2153_v10 = vsel %vm6208_vm4, %v2148_v54, %v6826_v45  ;;  %v2163_v2 = vsel %vm6208_vm4, %v2158_v33, %v2162_v13  ;;  %v6947_v30 = vld [vmem:[%s6164_s25 + $0x68] sm:$0x1] }
  0x8e   : > { %5749 = vmatprep.mubr.msk.bf16.mxu1 %vm695_vm3, %v8754_v20  ;;  %v2171_v57 = vor.u32 %v2170_v3, %v2167_v11  ;;  %v6922_v6 = vrot.slane %v2222_v36, 5  ;;  %v2181_v56 = vor.u32 %v2180_v52, %v6892_v63  ;;  %v2195_v24 = vor.u32 %v2194_v58, %v2191_v27  ;;  %v5201_v3 = vld [vmem:[%s6164_s25 + $0x6c] sm:$0xf]  ;;  %v6944_v27 = vld [vmem:[%s6164_s25 + $0x70] sm:$0xf] }
  0x8f   : > { %v2208_v51 = vshll.u32 %v6895_v8, 16  ;;  %v2228_v25 = vrot.slane %v2226_v60, 4  ;;  %v8755_v53 = vcombine.low %v6710_v19, %v6730_v9  ;;  %v2205_v45 = vor.u32 %v2204_v17, %v6909_v12 }
  0x90   : > { %v2219_v54 = vor.u32 %v2218_v16, %v2215_v46  ;;  %v2237_v13 = vshrl.u32 %v5198_v34, 16  ;;  %v2240_v11 = vshll.u32 %v5198_v34, 16  ;;  %v8756_v33 = vcombine.low %v6722_v59, %v6746_v7  ;;  %v5204_v16 = vld [vmem:[%s6164_s25 + $0x78] sm:$0xf] }
  0x91   : > { %v2229_v52 = vor.u32 %v2228_v25, %v6922_v6  ;;  %v2232_v39 = vshll.u32 %v6912_v35, 16  ;;  %v2246_v19 = vshll.u32 %v6925_v28, 16  ;;  %v2250_v9 = vshrl.u32 %v6925_v28, 16 }
  0x92   : > { %5784 = vmatmul.mubr.msk.bf16.gmra.mxu0 %vm695_vm3, %v8755_v53  ;;  %v2172_v58 = vrot.slane %v2171_v57, 4  ;;  %v2186_v23 = vrot.slane %v2184_v43, 5  ;;  %v2239_v34 = vrot.slane %v2237_v13, 4  ;;  %v2242_v20 = vrot.slane %v2240_v11, 5 }
  0x93   : > { %5787 = vmatprep.mubr.msk.bf16.mxu0 %vm695_vm3, %v8756_v33  ;;  %v8757_v59 = vcombine.low %v8740_v26, %v8739_v38  ;;  %v6953_v7 = vcombine.low %v2153_v10, %v2163_v2  ;;  %v2182_v17 = vrot.slane %v2181_v56, 4  ;;  %v2196_v36 = vrot.slane %v2195_v24, 4  ;;  %v6963_v2 = vld [vmem:[%s6164_s25 + $0x7c] sm:$0xf] }
  0x94   : > { %v6955_v46 = vrot.slane %v2246_v19, 5  ;;  %v8758_v43 = vcombine.low %v8743_v42, %v8742_v48  ;;  %v2206_v60 = vrot.slane %v2205_v45, 4  ;;  %v2210_v57 = vrot.slane %v2208_v51, 5  ;;  %8759 = vst [vmem:[#allocation3_spill] sm:$0xff] %v6963_v2  ;;  %v5207_v19 = vld [vmem:[%s6164_s25 + $0x84] sm:$0xf] }
  0x95   : > { %5750 = vmatmul.mubr.msk.bf16.gmra.mxu1 %vm695_vm3, %v8757_v59  ;;  %v2220_v25 = vrot.slane %v2219_v54, 4  ;;  %v2252_v38 = vrot.slane %v2250_v9, 4  ;;  %v2230_v26 = vrot.slane %v2229_v52, 4  ;;  %v2234_v53 = vrot.slane %v2232_v39, 5 }
  0x96   : > { %5753 = vmatprep.mubr.msk.bf16.mxu1 %vm695_vm3, %v8758_v43  ;;  %v2243_v13 = vor.u32 %v2242_v20, %v2239_v34  ;;  %v2261_v10 = vshrl.u32 %v5201_v3, 16  ;;  %v2177_v56 = vsel %vm6208_vm4, %v2172_v58, %v6892_v63  ;;  %v2264_v24 = vshll.u32 %v5201_v3, 16  ;;  %v6048_v63 = vld [vmem:[%s6164_s25 + $0xc] sm:$0xff]   ;;  %v6997_v34 = vld [vmem:[%s6164_s25 + $0x88] sm:$0xf] }
  0x97   : > { %v2270_v48 = vshll.u32 %v6944_v27, 16  ;;  %v2274_v42 = vshrl.u32 %v6944_v27, 16  ;;  %v2187_v51 = vsel %vm6208_vm4, %v2182_v17, %v2186_v23  ;;  %v2201_v45 = vsel %vm6208_vm4, %v2196_v36, %v6909_v12  ;;  %8760 = vst [vmem:[#allocation5_spill] sm:$0xff] %v6997_v34  ;;  %v7006_v36 = vld [vmem:[%s6164_s25 + $0x74] sm:$0x1] }
  0x98   : > { %v2253_v54 = vor.u32 %v2252_v38, %v6955_v46  ;;  %v2256_v11 = vshll.u32 %v6947_v30, 16  ;;  %v2211_v3 = vsel %vm6208_vm4, %v2206_v60, %v2210_v57  ;;  %v2225_v33 = vsel %vm6208_vm4, %v2220_v25, %v6922_v6  ;;  %8762 = vst [vmem:[#allocation4_spill] sm:$0xff] %v7006_v36  ;;  %v7016_v38 = vld [vmem:[%s6164_s25 + $0x80] sm:$0x1] }
  0x99   : > { %v2285_v52 = vshrl.u32 %v5204_v16, 16  ;;  %v2288_v12 = vshll.u32 %v5204_v16, 16  ;;  %v2235_v18 = vsel %vm6208_vm4, %v2230_v26, %v2234_v53  ;;  %v2244_v4 = vrot.slane %v2243_v13, 4  ;;  %8763 = vst [vmem:[#allocation6_spill] sm:$0xff] %v7016_v38  ;;  %v7019_v26 = vld [vmem:[%s6164_s25 + $0x8c] sm:$0x1] }
  0x9a   : > { %5788 = vmatmul.mubr.msk.bf16.gmra.mxu0 %vm695_vm3, %v5095_v55  ;;  %v2263_v55 = vrot.slane %v2261_v10, 4  ;;  %v2294_v39 = vshll.u32 %v6963_v2, 16  ;;  %v2266_v9 = vrot.slane %v2264_v24, 5  ;;  %v6993_v58 = vrot.slane %v2270_v48, 5  ;;  %8764 = vst [vmem:[#allocation8_spill] sm:$0xff] %v7019_v26  ;;  %v6049_v10 = vld [vmem:[%s6164_s25 + $0x18] sm:$0xff]  }
  0x9b   : > { %5827 = vmatprep.mubr.msk.bf16.mxu0 %vm695_vm3, %v6863_v15  ;;  %v2276_v23 = vrot.slane %v2274_v42, 4  ;;  %v2298_v6 = vshrl.u32 %v6963_v2, 16  ;;  %v8761_v15 = vcombine.low %v8745_v29, %v6473_v37  ;;  %v7003_v20 = vcombine.low %v2177_v56, %v2187_v51  ;;  %v5210_v51 = vld [vmem:[%s6164_s25 + $0x90] sm:$0xf] }
  0x9c   : > { %v2254_v59 = vrot.slane %v2253_v54, 4  ;;  %v2258_v17 = vrot.slane %v2256_v11, 5  ;;  %v2287_v16 = vrot.slane %v2285_v52, 4  ;;  %v2290_v43 = vrot.slane %v2288_v12, 5 }
  0x9d   : > { %5754 = vmatmul.mubr.msk.bf16.gmra.mxu1 %vm695_vm3, %v8761_v15  ;;  %v7009_v60 = vrot.slane %v2294_v39, 5  ;;  %v2300_v57 = vrot.slane %v2298_v6, 4  ;;  %v2309_v25 = vshrl.u32 %v5207_v19, 16  ;;  %v7011_v37 = vcombine.low %v2201_v45, %v2211_v3  ;;  %v7030_v45 = vld [vmem:[%s6164_s25 + $0x94] sm:$0xf] }
  0x9e   : > { %5793 = vmatprep.mubr.msk.bf16.mxu1 %vm695_vm3, %v6048_v63  ;;  %v7013_v29 = vcombine.low %v2225_v33, %v2235_v18  ;;  %v2312_v53 = vshll.u32 %v5207_v19, 16  ;;  %v2318_v13 = vshll.u32 %v6997_v34, 16  ;;  %v2249_v56 = vsel %vm6208_vm4, %v2244_v4, %v6955_v46  ;;  %8765 = vst [vmem:[#allocation7_spill] sm:$0xff] %v7030_v45  ;;  %v7038_v33 = vld [vmem:[%s8679_s1 + $0x10] sm:$0x3]  ;;  %v6050_v46 = vld [vmem:[%s6164_s25 + $0x24] sm:$0xff]  }
  0x9f   : > { %v2267_v24 = vor.u32 %v2266_v9, %v2263_v55  ;;  %v2277_v48 = vor.u32 %v2276_v23, %v6993_v58  ;;  %v2280_v42 = vshll.u32 %v7006_v36, 16  ;;  %v2311_v54 = vrot.slane %v2309_v25, 4  ;;  %8766 = vst [vmem:[#allocation9_spill] sm:$0xff] %v7038_v33 }
  0xa0   : > { %v2314_v11 = vrot.slane %v2312_v53, 5  ;;  %v7032_v63 = vrot.slane %v2318_v13, 5  ;;  %v2322_v3 = vshrl.u32 %v6997_v34, 16  ;;  %v2259_v52 = vsel %vm6208_vm4, %v2254_v59, %v2258_v17 }
  0xa1   : > { %v2291_v12 = vor.u32 %v2290_v43, %v2287_v16  ;;  %v2301_v18 = vor.u32 %v2300_v57, %v7009_v60  ;;  %v2304_v4 = vshll.u32 %v7016_v38, 16  ;;  %v2333_v19 = vshrl.u32 %v5210_v51, 16  ;;  %v7072_v57 = vld [vmem:[%s6164_s25 + $0xa0] sm:$0xf] }
  0xa2   : > { %5828 = vmatmul.mubr.msk.bf16.vlgmr.msra.gmra.mxu0 %vm695_vm3, %v6873_v22  ;;  %v2315_v55 = vor.u32 %v2314_v11, %v2311_v54  ;;  %v2324_v39 = vrot.slane %v2322_v3, 4  ;;  %v2336_v9 = vshll.u32 %v5210_v51, 16  ;;  %v5213_v22 = vld [vmem:[%s6164_s25 + $0x9c] sm:$0xf]  ;;  %v7051_v23 = vrot.slane %v2267_v24, 4  ;;  %8768 = vst [vmem:[#allocation10_spill] sm:$0xff] %v7072_v57 }
  0xa3   : > { %5894 = vmatpush3.bf16.msra.mxu0 %v6867_v32  ;;  %5831 = vmatprep.mubr.msk.bf16.mxu0 %vm695_vm3, %v6907_v62  ;;  %v7053_v6 = vrot.slane %v2280_v42, 5  ;;  %v2328_v15 = vshll.u32 %v7019_v26, 16  ;;  %v2342_v59 = vshll.u32 %v7030_v45, 16  ;;  %v7060_v32 = vld [vmem:[%s8679_s1 + $0xe] sm:$0x3]  ;;  %v7065_v62 = vcombine.low %v2249_v56, %v2259_v52 }
  0xa4   : > { %8767 = vst [vmem:[#allocation11_spill] sm:$0xff] %v7060_v32  ;;  %6006 = vmatprep.subr.msk.bf16.mxu0 %vm744_vm0, %v7038_v33  ;;  %v7067_v17 = vrot.slane %v2277_v48, 4  ;;  %v2325_v16 = vor.u32 %v2324_v39, %v7032_v63  ;;  %v2346_v43 = vshrl.u32 %v7030_v45, 16  ;;  %v7076_v25 = vrot.slane %v2291_v12, 4  ;;  %v7085_v56 = vld [vmem:[%s6164_s25 + $0x98] sm:$0x1] }
  0xa5   : > { %5794 = vmatmul.mubr.msk.bf16.vlgmr.msra.gmra.mxu1 %vm695_vm3, %v6049_v10  ;;  %v7078_v53 = vrot.slane %v2301_v18, 4  ;;  %v7080_v13 = vrot.slane %v2304_v4, 5  ;;  %v7082_v10 = vrot.slane %v2315_v55, 4  ;;  %8769 = vst [vmem:[#allocation12_spill] sm:$0xff] %v7085_v56  ;;  %v2335_v24 = vrot.slane %v2333_v19, 4  ;;  %v6052_v19 = vld [vmem:[%s6164_s25 + $0x3c] sm:$0xff]  }
  0xa6   : > { %5860 = vmatpush3.bf16.msra.mxu1 %v6858_v14  ;;  %5797 = vmatprep.mubr.msk.bf16.mxu1 %vm695_vm3, %v6050_v46  ;;  %v2338_v48 = vrot.slane %v2336_v9, 5  ;;  %v2357_v42 = vshrl.u32 %v5213_v22, 16  ;;  %v2360_v51 = vshll.u32 %v5213_v22, 16  ;;  %v6051_v14 = vld [vmem:[%s6164_s25 + $0x30] sm:$0xff]   ;;  %v7094_v11 = vrot.slane %v2328_v15, 5 }
  0xa7   : > { %6005 = vmatprep.subr.msk.bf16.mxu1 %vm744_vm0, %v7060_v32  ;;  %v7096_v3 = vrot.slane %v2342_v59, 5  ;;  %v2366_v46 = vshll.u32 %v7072_v57, 16  ;;  %v5216_v52 = vld [vmem:[%s6164_s25 + $0xa8] sm:$0xf]  ;;  %v7100_v12 = vrot.slane %v2325_v16, 4  ;;  %v2348_v18 = vrot.slane %v2346_v43, 4 }
  0xa8   : > { %v2352_v4 = vshll.u32 %v7085_v56, 16  ;;  %v2370_v55 = vshrl.u32 %v7072_v57, 16  ;;  %v7105_v39 = vld [vmem:[%s6164_s25 + $0xac] sm:$0xf]  ;;  %v2339_v59 = vor.u32 %v2338_v48, %v2335_v24  ;;  %v7129_v16 = vld [vmem:[%s6164_s25 + $0xa4] sm:$0x1] }
  0xa9   : > { %8770 = vst [vmem:[#allocation13_spill] sm:$0xff] %v7105_v39  ;;  %8771 = vst [vmem:[#allocation2_spill] sm:$0xff] %v7129_v16  ;;  %v2359_v43 = vrot.slane %v2357_v42, 4  ;;  %v2362_v22 = vrot.slane %v2360_v51, 5  ;;  %v2381_v54 = vshrl.u32 %v5216_v52, 16  ;;  %v7131_v9 = vrot.slane %v2366_v46, 5 }
  0xaa   : > { %5832 = vmatmul.mubr.msk.bf16.gmra.mxu0 %vm695_vm3, %v6953_v7  ;;  %v2372_v32 = vrot.slane %v2370_v55, 4  ;;  %v2384_v15 = vshll.u32 %v5216_v52, 16  ;;  %v2390_v33 = vshll.u32 %v7105_v39, 16  ;;  %v5219_v57 = vld [vmem:[%s6164_s25 + $0xb4] sm:$0xf]  ;;  %v2349_v24 = vor.u32 %v2348_v18, %v7096_v3 }
  0xab   : > { %5835 = vmatprep.mubr.msk.bf16.mxu0 %vm695_vm3, %v7003_v20  ;;  %v2331_v20 = vsel %vm6208_vm4, %v7100_v12, %v7094_v11  ;;  %v7141_v48 = vrot.slane %v2352_v4, 5  ;;  %v7144_v42 = vld [vmem:[%s6164_s25 + $0xb0] sm:$0x1]  ;;  %v2383_v51 = vrot.slane %v2381_v54, 4  ;;  %v7147_v46 = vld [vmem:[%s6164_s25 + $0xb8] sm:$0xf]  ;;  %v2363_v18 = vor.u32 %v2362_v22, %v2359_v43 }
  0xac   : > { %8772 = vst [vmem:[#allocation14_spill] sm:$0xff] %v7144_v42  ;;  %8773 = vst [vmem:[#allocation15_spill] sm:$0xff] %v7147_v46  ;;  %v2386_v52 = vrot.slane %v2384_v15, 5  ;;  %v7151_v55 = vrot.slane %v2390_v33, 5  ;;  %v2394_v11 = vshrl.u32 %v7105_v39, 16  ;;  %v7154_v12 = vrot.slane %v2339_v59, 4 }
  0xad   : > { %5798 = vmatmul.mubr.msk.bf16.gmra.mxu1 %vm695_vm3, %v6051_v14  ;;  %v2376_v14 = vshll.u32 %v7129_v16, 16  ;;  %v7157_v4 = vld [vmem:[%s6164_s25 + $0xbc] sm:$0x1]  ;;  %v2405_v54 = vshrl.u32 %v5219_v57, 16  ;;  %v2408_v7 = vshll.u32 %v5219_v57, 16  ;;  %v2373_v56 = vor.u32 %v2372_v32, %v7131_v9  ;;  %v6053_v16 = vld [vmem:[%s6164_s25 + $0x48] sm:$0xff]  }
  0xae   : > { %5801 = vmatprep.mubr.msk.bf16.mxu1 %vm695_vm3, %v6052_v19  ;;  %v2396_v45 = vrot.slane %v2394_v11, 4  ;;  %v2400_v19 = vshll.u32 %v7144_v42, 16  ;;  %v2414_v15 = vshll.u32 %v7147_v46, 16  ;;  %v5222_v33 = vld [vmem:[%s6164_s25 + $0xc0] sm:$0xf]  ;;  %v2387_v26 = vor.u32 %v2386_v52, %v2383_v51  ;;  %v6054_v57 = vld [vmem:[%s6164_s25 + $0x54] sm:$0xff]  }
  0xaf   : > { %v2407_v39 = vrot.slane %v2405_v54, 4  ;;  %v2410_v34 = vrot.slane %v2408_v7, 5  ;;  %v2418_v59 = vshrl.u32 %v7147_v46, 16  ;;  %v7166_v22 = vld [vmem:[%s6164_s25 + $0xc4] sm:$0xf]  ;;  %v2350_v43 = vrot.slane %v2349_v24, 4 }
  0xb0   : > { %v2378_v32 = vrot.slane %v2376_v14, 5  ;;  %v2397_v11 = vor.u32 %v2396_v45, %v7151_v55  ;;  %v2416_v42 = vrot.slane %v2414_v15, 5  ;;  %v2424_v7 = vshll.u32 %v7157_v4, 16  ;;  %v7178_v45 = vld [vmem:[%s6164_s25 + $0xc8] sm:$0x1] }
  0xb1   : > { %v2411_v51 = vor.u32 %v2410_v34, %v2407_v39  ;;  %v2420_v52 = vrot.slane %v2418_v59, 4  ;;  %v2429_v54 = vshrl.u32 %v5222_v33, 16  ;;  %v2364_v46 = vrot.slane %v2363_v18, 4 }
  0xb2   : > { %5836 = vmatmul.mubr.msk.bf16.gmra.mxu0 %vm695_vm3, %v7011_v37  ;;  %v2374_v38 = vrot.slane %v2373_v56, 4  ;;  %v2432_v2 = vshll.u32 %v5222_v33, 16  ;;  %v2438_v37 = vshll.u32 %v7166_v22, 16  ;;  %v2388_v24 = vrot.slane %v2387_v26, 4 }
  0xb3   : > { %5839 = vmatprep.mubr.msk.bf16.mxu0 %vm695_vm3, %v7013_v29  ;;  %v2402_v14 = vrot.slane %v2400_v19, 5  ;;  %v2421_v36 = vor.u32 %v2420_v52, %v2416_v42  ;;  %v2431_v15 = vrot.slane %v2429_v54, 4  ;;  %v2398_v34 = vrot.slane %v2397_v11, 4 }
  0xb4   : > { %v2434_v29 = vrot.slane %v2432_v2, 5  ;;  %v7181_v39 = vrot.slane %v2438_v37, 5  ;;  %v2442_v56 = vshrl.u32 %v7166_v22, 16  ;;  %v8774_v26 = vsel %vm6208_vm4, %v7067_v17, %v7053_v6 }
  0xb5   : > { %5802 = vmatmul.mubr.msk.bf16.gmra.mxu1 %vm695_vm3, %v6053_v16  ;;  %v8775_v16 = vsel %vm6208_vm4, %v7051_v23, %v6993_v58  ;;  %v2412_v19 = vrot.slane %v2411_v51, 4  ;;  %v2422_v33 = vrot.slane %v2421_v36, 4  ;;  %v2426_v2 = vrot.slane %v2424_v7, 5  ;;  %v6055_v23 = vld [vmem:[%s6164_s25 + $0x60] sm:$0xff]  }
  0xb6   : > { %5805 = vmatprep.mubr.msk.bf16.mxu1 %vm695_vm3, %v6054_v57  ;;  %v5234_v18 = vcombine.low %v8775_v16, %v8774_v26  ;;  %v8776_v59 = vsel %vm6208_vm4, %v7078_v53, %v7080_v13  ;;  %v8777_v6 = vsel %vm6208_vm4, %v7076_v25, %v7009_v60  ;;  %v2435_v57 = vor.u32 %v2434_v29, %v2431_v15  ;;  %v5260_v13 = vld [vmem:[%s6164_s25 + $0x24] sm:$0xe]  ;;  %v5263_v26 = vld [vmem:[%s6164_s25 + $0x48] sm:$0xe] }
  0xb7   : > { %v5235_v17 = vcombine.low %v8777_v6, %v8776_v59  ;;  %v2444_v11 = vrot.slane %v2442_v56, 4  ;;  %v2448_v58 = vshll.u32 %v7178_v45, 16  ;;  %v8778_v36 = vsel %vm6208_vm4, %v7082_v10, %v7032_v63  ;;  %v6056_v63 = vld [vmem:[%s6164_s25 + $0x6c] sm:$0xff]   ;;  %v5264_v6 = vld [vmem:[%s6164_s25 + $0x54] sm:$0xe] }
  0xb8   : > { %v5236_v51 = vcombine.low %v8778_v36, %v2331_v20  ;;  %v2345_v53 = vsel %vm6208_vm4, %v7154_v12, %v7096_v3  ;;  %v2355_v60 = vsel %vm6208_vm4, %v2350_v43, %v7141_v48  ;;  %v2369_v25 = vsel %vm6208_vm4, %v2364_v46, %v7131_v9  ;;  %v7234_v12 = vld [vmem:[%s6164_s25 + $0xc] sm:$0xe] }
  0xb9   : > { %v2379_v10 = vsel %vm6208_vm4, %v2374_v38, %v2378_v32  ;;  %v2393_v3 = vsel %vm6208_vm4, %v2388_v24, %v7151_v55  ;;  %v2403_v20 = vsel %vm6208_vm4, %v2398_v34, %v2402_v14  ;;  %v2445_v48 = vor.u32 %v2444_v11, %v7181_v39  ;;  %v5261_v55 = vld [vmem:[%s6164_s25 + $0x30] sm:$0xe]  ;;  %v5262_v14 = vld [vmem:[%s6164_s25 + $0x3c] sm:$0xe] }
  0xba   : > { %5840 = vmatmul.mubr.msk.bf16.gmra.mxu0 %vm695_vm3, %v7065_v62  ;;  %v2417_v62 = vsel %vm6208_vm4, %v2412_v19, %v2416_v42  ;;  %v2427_v38 = vsel %vm6208_vm4, %v2422_v33, %v2426_v2  ;;  %v7241_v9 = vrot.slane %v2435_v57, 4  ;;  %v2812_v46 = vrot.slane %v6725_v49, 5  ;;  %v6057_v57 = vld [vmem:[%s6164_s25 + $0x78] sm:$0xff]  }
  0xbb   : > { %5843 = vmatprep.mubr.msk.bf16.mxu0 %vm695_vm3, %v5234_v18  ;;  %v7245_v43 = vcombine.low %v2345_v53, %v2355_v60  ;;  %v7247_v32 = vrot.slane %v2445_v48, 4  ;;  %v7249_v52 = vrot.slane %v2448_v58, 5  ;;  %v5276_v7 = vrot.slane %v5260_v13, 9  ;;  %v6058_v53 = vld [vmem:[%s6164_s25 + $0x84] sm:$0xff]   ;;  %v5265_v13 = vld [vmem:[%s6164_s25 + $0x60] sm:$0xe] }
  0xbc   : > { %v7252_v54 = vcombine.low %v2369_v25, %v2379_v10  ;;  %v7254_v42 = vcombine.low %v2393_v3, %v2403_v20  ;;  %v5274_v37 = vrot.slane %v7234_v12, 9  ;;  %v2826_v24 = vrot.slane %v6774_v44, 5  ;;  %v6064_v49 = vld [vmem:[%s6164_s25 + $0x18] sm:$0xff]  }
  0xbd   : > { %5806 = vmatmul.mubr.msk.bf16.gmra.mxu1 %vm695_vm3, %v6055_v23  ;;  %v7260_v15 = vcombine.low %v2417_v62, %v2427_v38  ;;  %v2815_v34 = vrot.slane %v6761_v47, 5  ;;  %v2829_v29 = vrot.slane %v6789_v21, 5  ;;  %v5277_v56 = vrot.slane %v5261_v55, 9  ;;  %v5267_v55 = vld [vmem:[%s6164_s25 + $0x78] sm:$0xe] }
  0xbe   : > { %5809 = vmatprep.mubr.msk.bf16.mxu1 %vm695_vm3, %v6056_v63  ;;  %v2441_v16 = vsel %vm6208_vm4, %v7241_v9, %v7181_v39  ;;  %v7271_v44 = vrot.slane %v2812_v46, 4  ;;  %v7275_v18 = vsel %vm6494_vm7, %v5276_v7, %v2826_v24  ;;  %v2828_v19 = vrot.slane %v2826_v24, 4 }
  0xbf   : > { %v2451_v21 = vsel %vm6208_vm4, %v7247_v32, %v7249_v52  ;;  %v2833_v33 = vrot.slane %v6812_v5, 5  ;;  %v2836_v2 = vrot.slane %v6820_v41, 5  ;;  %v5278_v59 = vrot.slane %v5262_v14, 9  ;;  %v6063_v52 = vld [vmem:[%s6164_s25 + $0xc0] sm:$0xff]  }
  0xc0   : > { %v7287_v11 = vsel %vm6494_vm7, %v2828_v19, %v2829_v29  ;;  %v2840_v58 = vrot.slane %v6829_v61, 5  ;;  %v2843_v23 = vrot.slane %v6881_v50, 5  ;;  %v5279_v36 = vrot.slane %v5263_v26, 9  ;;  %v5268_v19 = vld [vmem:[%s6164_s25 + $0x84] sm:$0xe] }
  0xc1   : > { %v5293_v5 = vcombine.low %v7275_v18, %v7287_v11  ;;  %v7297_v41 = vsel %vm6494_vm7, %v5277_v56, %v2833_v33  ;;  %v2835_v60 = vrot.slane %v2833_v33, 4  ;;  %v2847_v25 = vrot.slane %v6847_v1, 5 }
  0xc2   : > { %5844 = vmatmul.mubr.msk.bf16.gmra.mxu0 %vm695_vm3, %v5235_v17  ;;  %v7304_v61 = vsel %vm6494_vm7, %v5278_v59, %v2840_v58  ;;  %v2842_v50 = vrot.slane %v2840_v58, 4  ;;  %v2850_v17 = vrot.slane %v6895_v8, 5  ;;  %v5280_v63 = vrot.slane %v5264_v6, 9  ;;  %v8779_v59 = vld [vmem:[#allocation4_spill] sm:$0xff] }
  0xc3   : > { %5847 = vmatprep.mubr.msk.bf16.mxu0 %vm695_vm3, %v5236_v51  ;;  %v7309_v10 = vsel %vm6494_vm7, %v2835_v60, %v2836_v2  ;;  %v7313_v3 = vsel %vm6494_vm7, %v5279_v36, %v2847_v25  ;;  %v2849_v1 = vrot.slane %v2847_v25, 4  ;;  %v2854_v20 = vrot.slane %v6890_v40, 5  ;;  %v5266_v51 = vld [vmem:[%s6164_s25 + $0x6c] sm:$0xe]  ;;  %v6059_v58 = vld [vmem:[%s6164_s25 + $0x90] sm:$0xff]  }
  0xc4   : > { %v5294_v48 = vcombine.low %v7297_v41, %v7309_v10  ;;  %v7322_v8 = vsel %vm6494_vm7, %v2842_v50, %v2843_v23  ;;  %v2857_v62 = vrot.slane %v6912_v35, 5  ;;  %v5281_v38 = vrot.slane %v5265_v13, 9  ;;  %v8780_v36 = vld [vmem:[#allocation3_spill] sm:$0xff]  ;;  %v5269_v60 = vld [vmem:[%s6164_s25 + $0x90] sm:$0xe]  ;;  %v8781_v50 = vld [vmem:[#allocation6_spill] sm:$0xff] }
  0xc5   : > { %5810 = vmatmul.mubr.msk.bf16.gmra.mxu1 %vm695_vm3, %v6057_v57  ;;  %v5295_v40 = vcombine.low %v7304_v61, %v7322_v8  ;;  %v7331_v7 = vsel %vm6494_vm7, %v2849_v1, %v2850_v17  ;;  %v7335_v24 = vsel %vm6494_vm7, %v5280_v63, %v2854_v20  ;;  %v2856_v14 = vrot.slane %v2854_v20, 4 }
  0xc6   : > { %5813 = vmatprep.mubr.msk.bf16.mxu1 %vm695_vm3, %v6058_v53  ;;  %v5296_v35 = vcombine.low %v7313_v3, %v7331_v7  ;;  %v2861_v29 = vrot.slane %v6925_v28, 5  ;;  %v2864_v56 = vrot.slane %v6947_v30, 5  ;;  %v5282_v26 = vrot.slane %v5266_v51, 9  ;;  %v8782_v51 = vld [vmem:[#allocation5_spill] sm:$0xff]  ;;  %v5400_v3 = vld [vmem:[%s6164_s25 + $0x48] sm:$0xf] }
  0xc7   : > { %v7344_v33 = vsel %vm6494_vm7, %v2856_v14, %v2857_v62  ;;  %v2868_v2 = vrot.slane %v6944_v27, 5  ;;  %v2871_v6 = vrot.slane %v8779_v59, 5  ;;  %v5283_v57 = vrot.slane %v5267_v55, 9  ;;  %v6060_v27 = vld [vmem:[%s6164_s25 + $0x9c] sm:$0xff]   ;;  %v8790_v55 = vld [vmem:[#allocation15_spill] sm:$0xff] }
  0xc8   : > { %v5297_v23 = vcombine.low %v7335_v24, %v7344_v33  ;;  %v7353_v28 = vsel %vm6494_vm7, %v5281_v38, %v2861_v29  ;;  %v2863_v30 = vrot.slane %v2861_v29, 4  ;;  %v2875_v53 = vrot.slane %v8780_v36, 5  ;;  %v5270_v38 = vld [vmem:[%s6164_s25 + $0x9c] sm:$0xe]  ;;  %v8785_v36 = vld [vmem:[#allocation12_spill] sm:$0xff] }
  0xc9   : > { %v7362_v25 = vsel %vm6494_vm7, %v5282_v26, %v2868_v2  ;;  %v2870_v13 = vrot.slane %v2868_v2, 4  ;;  %v2878_v17 = vrot.slane %v8781_v50, 5  ;;  %v5284_v63 = vrot.slane %v5268_v19, 9  ;;  %v5271_v26 = vld [vmem:[%s6164_s25 + $0xa8] sm:$0xe] }
  0xca   : > { %5848 = vmatmul.mubr.msk.bf16.gmra.mxu0 %vm695_vm3, %v7245_v43  ;;  %v7369_v1 = vsel %vm6494_vm7, %v2863_v30, %v2864_v56  ;;  %v7373_v43 = vsel %vm6494_vm7, %v5283_v57, %v2875_v53  ;;  %v2877_v20 = vrot.slane %v2875_v53, 4  ;;  %v2882_v62 = vrot.slane %v8782_v51, 5  ;;  %v5273_v57 = vld [vmem:[%s6164_s25 + $0xc0] sm:$0xe]  ;;  %v6061_v19 = vld [vmem:[%s6164_s25 + $0xa8] sm:$0xff]  }
  0xcb   : > { %5851 = vmatprep.mubr.msk.bf16.mxu0 %vm695_vm3, %v7252_v54  ;;  %v7381_v14 = vsel %vm6494_vm7, %v2870_v13, %v2871_v6  ;;  %v8783_v54 = vld [vmem:[#allocation8_spill] sm:$0xff]  ;;  %v5285_v56 = vrot.slane %v5269_v60, 9  ;;  %v2892_v53 = vrot.slane %v8785_v36, 5  ;;  %v5286_v60 = vrot.slane %v5270_v38, 9  ;;  %v8788_v38 = vld [vmem:[#allocation13_spill] sm:$0xff] }
  0xcc   : > { %v2885_v29 = vrot.slane %v8783_v54, 5  ;;  %v7390_v2 = vsel %vm6494_vm7, %v2877_v20, %v2878_v17  ;;  %v7394_v59 = vsel %vm6494_vm7, %v5284_v63, %v2882_v62  ;;  %v2884_v6 = vrot.slane %v2882_v62, 4  ;;  %v5272_v13 = vld [vmem:[%s6164_s25 + $0xb4] sm:$0xe]  ;;  %v8786_v17 = vld [vmem:[#allocation10_spill] sm:$0xff] }
  0xcd   : > { %5814 = vmatmul.mubr.msk.bf16.gmra.mxu1 %vm695_vm3, %v6059_v58  ;;  %v8784_v58 = vld [vmem:[#allocation7_spill] sm:$0xff]  ;;  %v2896_v63 = vrot.slane %v8786_v17, 5  ;;  %v8787_v20 = vld [vmem:[#allocation2_spill] sm:$0xff]  ;;  %v5287_v62 = vrot.slane %v5271_v26, 9  ;;  %v2903_v36 = vrot.slane %v8788_v38, 5  ;;  %v5288_v26 = vrot.slane %v5272_v13, 9 }
  0xce   : > { %5817 = vmatprep.mubr.msk.bf16.mxu1 %vm695_vm3, %v6060_v27  ;;  %v2889_v30 = vrot.slane %v8784_v58, 5  ;;  %v7404_v50 = vsel %vm6494_vm7, %v2884_v6, %v2885_v29  ;;  %v2899_v51 = vrot.slane %v8787_v20, 5  ;;  %v8789_v17 = vld [vmem:[#allocation14_spill] sm:$0xff]  ;;  %v6062_v27 = vld [vmem:[%s6164_s25 + $0xb4] sm:$0xff]   ;;  %v2816_v39 = vsel %vm6494_vm7, %v7271_v44, %v2815_v34  ;;  %v7621_v7 = vld [vmem:[%s6164_s25 + $0x4c] sm:$0xf] }
  0xcf   : > { %v7419_v29 = vsel %vm6494_vm7, %v5286_v60, %v2896_v63  ;;  %v2898_v6 = vrot.slane %v2896_v63, 4  ;;  %v2906_v20 = vrot.slane %v8789_v17, 5  ;;  %v2905_v38 = vrot.slane %v2903_v36, 4  ;;  %v6081_v44 = vld [vmem:[%s6164_s25 + $0x20] sm:$0x1] }
  0xd0   : > { %v7412_v54 = vsel %vm6494_vm7, %v5285_v56, %v2889_v30  ;;  %v2891_v58 = vrot.slane %v2889_v30, 4  ;;  %v7431_v30 = vsel %vm6494_vm7, %v5287_v62, %v2903_v36  ;;  %v2910_v60 = vrot.slane %v8790_v55, 5 }
  0xd1   : > { %v5289_v63 = vrot.slane %v5273_v57, 9  ;;  %v7447_v55 = vsel %vm6494_vm7, %v2905_v38, %v2906_v20  ;;  %v2917_v57 = vrot.slane %v7166_v22, 5  ;;  %v2813_v22 = vsel %vm6494_vm7, %v5274_v37, %v2812_v46  ;;  %v6066_v38 = vld [vmem:[%s6164_s25 + $0x30] sm:$0xff]  }
  0xd2   : > { %5852 = vmatmul.mubr.msk.bf16.gmra.mxu0 %vm695_vm3, %v7254_v42  ;;  %v7427_v56 = vsel %vm6494_vm7, %v2891_v58, %v2892_v53  ;;  %v7440_v42 = vsel %vm6494_vm7, %v2898_v6, %v2899_v51  ;;  %v2913_v53 = vrot.slane %v7157_v4, 5  ;;  %v2912_v58 = vrot.slane %v2910_v60, 4 }
  0xd3   : > { %5855 = vmatprep.mubr.msk.bf16.mxu0 %vm695_vm3, %v7260_v15  ;;  %v7451_v15 = vsel %vm6494_vm7, %v5288_v26, %v2910_v60  ;;  %v2920_v51 = vrot.slane %v7178_v45, 5  ;;  %v5259_v45 = vld [vmem:[%s6164_s25 + $0x18] sm:$0xe]  ;;  %v7491_v9 = vsel %vm6494_vm7, %v5289_v63, %v2917_v57  ;;  %v2919_v46 = vrot.slane %v2917_v57, 4  ;;  %v6065_v26 = vld [vmem:[%s6164_s25 + $0x24] sm:$0xff]  }
  0xd4   : > { %v7479_v32 = vsel %vm6494_vm7, %v2912_v58, %v2913_v53  ;;  %v5275_v37 = vrot.slane %v5259_v45, 9  ;;  %v5291_v34 = vcombine.low %v2813_v22, %v2816_v39  ;;  %v8791_v60 = vld [vmem:[#allocation9_spill] sm:$0xff] }
  0xd5   : > { %5818 = vmatmul.mubr.msk.bf16.gmra.mxu1 %vm695_vm3, %v6061_v19  ;;  %v5241_v19 = vcombine.low %v2441_v16, %v2451_v21  ;;  %v7496_v47 = vsel %vm6494_vm7, %v2919_v46, %v2920_v51  ;;  %v2822_v21 = vrot.slane %v6081_v44, 5  ;;  %v4579_v53 = vsel %vm744_vm0, %v8791_v60, 0  ;;  %v5388_v63 = vld [vmem:[%s6164_s25 + $0x18] sm:$0xf]  ;;  %v5389_v57 = vld [vmem:[%s6164_s25 + $0x1c] sm:$0xf] }
  0xd6   : > { %5821 = vmatprep.mubr.msk.bf16.mxu1 %vm695_vm3, %v6062_v27  ;;  %v6080_v27 = vld [vmem:[%s6164_s25 + $0x1c] sm:$0xf]  ;;  %v5391_v51 = vld [vmem:[%s6164_s25 + $0x24] sm:$0xf]  ;;  %v3627_v45 = vshrl.u32 %v5388_v63, 16  ;;  %v3636_v39 = vshll.u32 %v5389_v57, 16 }
  0xd7   : > { %v2819_v36 = vrot.slane %v6080_v27, 5  ;;  %v3630_v27 = vshll.u32 %v5388_v63, 16  ;;  %v3651_v46 = vshrl.u32 %v5391_v51, 16  ;;  %v6068_v44 = vld [vmem:[%s6164_s25 + $0x48] sm:$0xff]   ;;  %v5469_v60 = vld [vmem:[%s6164_s25 + $0x18] sm:$0xe] }
  0xd8   : > { %v7537_v63 = vld [vmem:[%s6164_s25 + $0x2c] sm:$0x1] }
  0xd9   : > { %v2821_v16 = vrot.slane %v2819_v36, 4  ;;  %v2820_v17 = vsel %vm6494_vm7, %v5275_v37, %v2819_v36  ;;  %v7521_v36 = vld [vmem:[%s6164_s25 + $0x28] sm:$0xf]  ;;  %v6067_v37 = vld [vmem:[%s6164_s25 + $0x3c] sm:$0xff]   ;;  %v3653_v18 = vrot.slane %v3651_v46, 4 }
  0xda   : > { %5856 = vmatmul.mubr.msk.bf16.gmra.mxu0 %vm695_vm3, %v5241_v19  ;;  %v8792_v19 = vld [vmem:[#allocation11_spill] sm:$0xff] }
  0xdb   : > { %5895 = vmatprep.mubr.msk.bf16.mxu0 %vm695_vm3, %v6064_v49  ;;  %v2823_v20 = vsel %vm6494_vm7, %v2821_v16, %v2822_v21  ;;  %v4109_v22 = vsel %vm744_vm0, %v8792_v19, 0  ;;  %v3640_v49 = vshrl.u32 %v5389_v57, 16  ;;  %v3664_v16 = vshrl.u32 %v7521_v36, 16  ;;  %v5390_v21 = vld [vmem:[%s6164_s25 + $0x20] sm:$0x1] }
  0xdc   : > { %v5292_v58 = vcombine.low %v2820_v17, %v2823_v20  ;;  %v3629_v17 = vrot.slane %v3627_v45, 4  ;;  %v3632_v20 = vrot.slane %v3630_v27, 5  ;;  %v5394_v19 = vld [vmem:[%s6164_s25 + $0x30] sm:$0xf]  ;;  %v3646_v45 = vshll.u32 %v5390_v21, 16 }
  0xdd   : > { %5822 = vmatmul.mubr.msk.bf16.gmra.mxu1 %vm695_vm3, %v6063_v52  ;;  %v3654_v52 = vshll.u32 %v5391_v51, 16  ;;  %v3666_v51 = vrot.slane %v3664_v16, 4  ;;  %v5485_v27 = vrot.slane %v5469_v60, 9  ;;  %v4373_v46 = vrot.slane %v5390_v21, 5  ;;  %v5470_v16 = vld [vmem:[%s6164_s25 + $0x24] sm:$0xe] }
  0xde   : > { %5861 = vmatprep.mubr.msk.bf16.mxu1 %vm695_vm3, %v5291_v34  ;;  %v3660_v34 = vshll.u32 %v7521_v36, 16  ;;  %v6069_v21 = vld [vmem:[%s6164_s25 + $0x54] sm:$0xff]   ;;  %v3678_v10 = vshll.u32 %v5394_v19, 16  ;;  %v6070_v60 = vld [vmem:[%s6164_s25 + $0x60] sm:$0xff]  }
  0xdf   : > { %v3656_v11 = vrot.slane %v3654_v52, 5  ;;  %v3670_v52 = vshll.u32 %v7537_v63, 16 }
  0xe2   : > { %5896 = vmatmul.mubr.msk.bf16.vlgmr.msra.gmra.mxu0 %vm695_vm3, %v6065_v26  ;;  %v7533_v26 = vrot.slane %v3636_v39, 5 }
  0xe3   : > { %5962 = vmatpush3.bf16.msra.mxu0 %v4579_v53  ;;  %5899 = vmatprep.mubr.msk.bf16.mxu0 %vm695_vm3, %v6066_v38  ;;  %v3642_v38 = vrot.slane %v3640_v49, 4  ;;  %v4370_v53 = vrot.slane %v5389_v57, 5  ;;  %v7547_v57 = vld [vmem:[%s6164_s25 + $0x34] sm:$0xf] }
  0xe5   : > { %5862 = vmatmul.mubr.msk.bf16.vlgmr.msra.gmra.mxu1 %vm695_vm3, %v5292_v58  ;;  %v7542_v58 = vrot.slane %v3660_v34, 5  ;;  %v3643_v39 = vor.u32 %v3642_v38, %v7533_v26  ;;  %v4372_v49 = vrot.slane %v4370_v53, 4  ;;  %v3657_v34 = vor.u32 %v3656_v11, %v3653_v18 }
  0xe6   : > { %5928 = vmatpush3.bf16.msra.mxu1 %v4109_v22  ;;  %5865 = vmatprep.mubr.msk.bf16.mxu1 %vm695_vm3, %v5293_v5  ;;  %v7540_v5 = vpop.f32.mrf.mxu0  ;;  %v3633_v22 = vor.u32 %v3632_v20, %v3629_v17  ;;  %v3675_v17 = vshrl.u32 %v5394_v19, 16  ;;  %v3688_v38 = vshrl.u32 %v7547_v57, 16  ;;  %v7572_v61 = vsel %vm6494_vm7, %v5485_v27, %v4370_v53  ;;  %v5397_v19 = vld [vmem:[%s6164_s25 + $0x3c] sm:$0xf] }
  0xe7   : > { %v3667_v41 = vor.u32 %v3666_v51, %v7542_v58  ;;  %v3644_v8 = vrot.slane %v3643_v39, 4  ;;  %v3672_v11 = vrot.slane %v3670_v52, 5  ;;  %v5486_v51 = vrot.slane %v5470_v16, 9  ;;  %v7586_v39 = vld [vmem:[%s6164_s25 + $0x38] sm:$0x1] }
  0xe8   : > { %v7564_v20 = vpop.f32.mrf.mxu0  ;;  %v3634_v18 = vrot.slane %v3633_v22, 4  ;;  %v3658_v12 = vrot.slane %v3657_v34, 4  ;;  %v4380_v22 = vrot.slane %v7537_v63, 5  ;;  %v3690_v52 = vrot.slane %v3688_v38, 4 }
  0xe9   : > { %v3668_v27 = vrot.slane %v3667_v41, 4  ;;  %v3699_v34 = vshrl.u32 %v5397_v19, 16  ;;  %v3702_v16 = vshll.u32 %v5397_v19, 16  ;;  %v7599_v41 = vld [vmem:[%s6164_s25 + $0x40] sm:$0xf] }
  0xea   : > { %5900 = vmatmul.mubr.msk.bf16.gmra.mxu0 %vm695_vm3, %v6067_v37  ;;  %v7583_v53 = vpop.f32.mrf.mxu0  ;;  %v3639_v63 = vsel %vm6208_vm4, %v3634_v18, %v7533_v26  ;;  %v3663_v26 = vsel %vm6208_vm4, %v3658_v12, %v7542_v58  ;;  %v5471_v18 = vld [vmem:[%s6164_s25 + $0x30] sm:$0xe]  ;;  %v3708_v24 = vshll.u32 %v7599_v41, 16  ;;  %v3712_v33 = vshrl.u32 %v7599_v41, 16 }
  0xeb   : > { %5903 = vmatprep.mubr.msk.bf16.mxu0 %vm695_vm3, %v6068_v44  ;;  %v7555_v37 = vpop.f32.mrf.mxu1  ;;  %v4377_v44 = vrot.slane %v7521_v36, 5  ;;  %v3648_v36 = vrot.slane %v3646_v45, 5  ;;  %v3677_v45 = vrot.slane %v3675_v17, 4  ;;  %v3673_v58 = vsel %vm6208_vm4, %v3668_v27, %v3672_v11 }
  0xec   : > { %8793 = vst [vmem:[#allocation4_spill] sm:$0xff] %v7555_v37  ;;  %v7628_v12 = vpop.f32.mrf.mxu0  ;;  %v3704_v19 = vrot.slane %v3702_v16, 5  ;;  %v3736_v11 = vshrl.u32 %v7621_v7, 16 }
  0xed   : > { %5866 = vmatmul.mubr.msk.bf16.gmra.mxu1 %vm695_vm3, %v5294_v48  ;;  %v3684_v48 = vshll.u32 %v7547_v57, 16  ;;  %v7579_v6 = vpop.f32.mrf.mxu1  ;;  %v4379_v4 = vrot.slane %v4377_v44, 4  ;;  %v3649_v17 = vsel %vm6208_vm4, %v3644_v8, %v3648_v36  ;;  %v4384_v36 = vrot.slane %v7547_v57, 5  ;;  %v6072_v8 = vld [vmem:[%s6164_s25 + $0x78] sm:$0xff]  }
  0xee   : > { %5869 = vmatprep.mubr.msk.bf16.mxu1 %vm695_vm3, %v5295_v40  ;;  %v7576_v40 = vsel %vm6494_vm7, %v4372_v49, %v4373_v46  ;;  %8794 = vst [vmem:[#allocation3_spill] sm:$0xff] %v7579_v6  ;;  %v3680_v49 = vrot.slane %v3678_v10, 5  ;;  %v7642_v27 = vcombine.low %v3639_v63, %v3649_v17  ;;  %v7644_v57 = vcombine.low %v3663_v26, %v3673_v58  ;;  %v7658_v17 = vld [vmem:[%s6164_s25 + $0x58] sm:$0xf]  ;;  %v7664_v58 = vld [vmem:[%s6164_s25 + $0x44] sm:$0x1] }
  0xef   : > { %v7588_v46 = vrot.slane %v3684_v48, 5  ;;  %v7605_v10 = vpop.f32.mrf.mxu1  ;;  %v7612_v48 = vsel %vm6494_vm7, %v5486_v51, %v4377_v44  ;;  %v7616_v38 = vsel %vm6494_vm7, %v4379_v4, %v4380_v22  ;;  %v3701_v51 = vrot.slane %v3699_v34, 4  ;;  %v5403_v34 = vld [vmem:[%s6164_s25 + $0x54] sm:$0xf] }
  0xf0   : > { %8795 = vst [vmem:[#allocation6_spill] sm:$0xff] %v7605_v10  ;;  %v3681_v44 = vor.u32 %v3680_v49, %v3677_v45  ;;  %v3726_v22 = vshll.u32 %v5400_v3, 16  ;;  %v4386_v13 = vrot.slane %v4384_v36, 4  ;;  %v4387_v63 = vrot.slane %v7586_v39, 5  ;;  %v5472_v49 = vld [vmem:[%s6164_s25 + $0x3c] sm:$0xe] }
  0xf1   : > { %v3691_v4 = vor.u32 %v3690_v52, %v7588_v46  ;;  %v7640_v45 = vpop.f32.mrf.mxu1  ;;  %v5487_v52 = vrot.slane %v5471_v18, 9  ;;  %v3705_v18 = vor.u32 %v3704_v19, %v3701_v51  ;;  %v8798_v6 = vcombine.low %v7353_v28, %v7369_v1 }
  0xf2   : > { %5904 = vmatmul.mubr.msk.bf16.gmra.mxu0 %vm695_vm3, %v6069_v21  ;;  %v3732_v21 = vshll.u32 %v7621_v7, 16  ;;  %8796 = vst [vmem:[#allocation5_spill] sm:$0xff] %v7640_v45  ;;  %v3728_v45 = vrot.slane %v3726_v22, 5  ;;  %v3747_v51 = vshrl.u32 %v5403_v34, 16  ;;  %v3750_v19 = vshll.u32 %v5403_v34, 16 }
  0xf3   : > { %5907 = vmatprep.mubr.msk.bf16.mxu0 %vm695_vm3, %v6070_v60  ;;  %v3694_v60 = vshll.u32 %v7586_v39, 16  ;;  %v7661_v26 = vrot.slane %v3691_v4, 4  ;;  %v3738_v39 = vrot.slane %v3736_v11, 4  ;;  %v7699_v22 = vsel %vm6494_vm7, %v4386_v13, %v4387_v63 }
  0xf4   : > { %v7669_v10 = vrot.slane %v3732_v21, 5  ;;  %v8800_v21 = vcombine.low %v7362_v25, %v7381_v14  ;;  %v4391_v25 = vrot.slane %v7599_v41, 5  ;;  %v6074_v14 = vld [vmem:[%s6164_s25 + $0x90] sm:$0xff]   ;;  %v5488_v1 = vrot.slane %v5472_v49, 9  ;;  %v5406_v41 = vld [vmem:[%s6164_s25 + $0x60] sm:$0xf] }
  0xf5   : > { %5870 = vmatmul.mubr.msk.bf16.gmra.mxu1 %vm695_vm3, %v5296_v35  ;;  %v6071_v35 = vld [vmem:[%s6164_s25 + $0x6c] sm:$0xff]   ;;  %v7654_v62 = vrot.slane %v3694_v60, 5  ;;  %v3749_v37 = vrot.slane %v3747_v51, 4 }
  0xf6   : > { %5873 = vmatprep.mubr.msk.bf16.mxu1 %vm695_vm3, %v5297_v23  ;;  %v3723_v23 = vshrl.u32 %v5400_v3, 16  ;;  %v7652_v3 = vrot.slane %v3681_v44, 4  ;;  %v3714_v44 = vrot.slane %v3712_v33, 4  ;;  %v3760_v33 = vshrl.u32 %v7658_v17, 16 }
  0xf7   : > { %v7650_v16 = vpop.f32.mrf.mxu0  ;;  %v3739_v13 = vor.u32 %v3738_v39, %v7669_v10  ;;  %v4398_v39 = vrot.slane %v7621_v7, 5  ;;  %v8804_v7 = vcombine.low %v7373_v43, %v7390_v2  ;;  %v8806_v43 = vcombine.low %v7394_v59, %v7404_v50  ;;  %v6075_v2 = vld [vmem:[%s6164_s25 + $0x9c] sm:$0xff]  }
  0xf8   : > { %8797 = vst [vmem:[#allocation8_spill] sm:$0xff] %v7650_v16  ;;  %v3725_v60 = vrot.slane %v3723_v23, 4  ;;  %v6073_v23 = vld [vmem:[%s6164_s25 + $0x84] sm:$0xff]   ;;  %v7726_v16 = vld [vmem:[%s6164_s25 + $0x5c] sm:$0x1]  ;;  %v4405_v59 = vrot.slane %v7658_v17, 5 }
  0xf9   : > { %v7687_v28 = vpop.f32.mrf.mxu0 }
  0xfa   : > { %5908 = vmatmul.mubr.msk.bf16.gmra.mxu0 %vm695_vm3, %v6071_v35  ;;  %v7666_v35 = vrot.slane %v3708_v24, 5  ;;  %v3756_v24 = vshll.u32 %v7658_v17, 16  ;;  %8801 = vst [vmem:[#allocation12_spill] sm:$0xff] %v7687_v28  ;;  %v3752_v28 = vrot.slane %v3750_v19, 5 }
  0xfb   : > { %5911 = vmatprep.mubr.msk.bf16.mxu0 %vm695_vm3, %v6072_v8  ;;  %v7675_v4 = vpop.f32.mrf.mxu1  ;;  %v7678_v8 = vld [vmem:[%s6164_s25 + $0x50] sm:$0x1]  ;;  %v7719_v49 = vpop.f32.mrf.mxu0 }
  0xfc   : > { %8799 = vst [vmem:[#allocation7_spill] sm:$0xff] %v7675_v4  ;;  %v3715_v34 = vor.u32 %v3714_v44, %v7666_v35  ;;  %v7709_v4 = vrot.slane %v3705_v18, 4  ;;  %v7716_v11 = vrot.slane %v3756_v24, 5  ;;  %v3762_v44 = vrot.slane %v3760_v33, 4  ;;  %8803 = vst [vmem:[#allocation2_spill] sm:$0xff] %v7719_v49 }
  0xfd   : > { %5874 = vmatmul.mubr.msk.bf16.gmra.mxu1 %vm695_vm3, %v8798_v6  ;;  %v7695_v6 = vsel %vm6494_vm7, %v5487_v52, %v4384_v36  ;;  %v3729_v36 = vor.u32 %v3728_v45, %v3725_v60  ;;  %v3742_v52 = vshll.u32 %v7678_v8, 16  ;;  %v7714_v63 = vpop.f32.mrf.mxu1  ;;  %v4393_v18 = vrot.slane %v4391_v25, 4  ;;  %v5473_v24 = vld [vmem:[%s6164_s25 + $0x48] sm:$0xe] }
  0xfe   : > { %5877 = vmatprep.mubr.msk.bf16.mxu1 %vm695_vm3, %v8800_v21  ;;  %v3718_v21 = vshll.u32 %v7664_v58, 16  ;;  %8802 = vst [vmem:[#allocation10_spill] sm:$0xff] %v7714_v63  ;;  %v4394_v60 = vrot.slane %v7664_v58, 5  ;;  %v3716_v51 = vrot.slane %v3715_v34, 4  ;;  %v3771_v33 = vshrl.u32 %v5406_v41, 16 }
  0xff   : > { %v7732_v63 = vsel %vm6494_vm7, %v5488_v1, %v4391_v25  ;;  %v3730_v45 = vrot.slane %v3729_v36, 4  ;;  %v3740_v49 = vrot.slane %v3739_v13, 4  ;;  %v3744_v58 = vrot.slane %v3742_v52, 5  ;;  %v7747_v36 = vld [vmem:[%s6164_s25 + $0x64] sm:$0xf]  ;;  %v7754_v13 = vpop.f32.mrf.mxu0 }
 0x100   : > { %v3720_v19 = vrot.slane %v3718_v21, 5  ;;  %v3711_v34 = vsel %vm6208_vm4, %v7709_v4, %v7666_v35  ;;  %v3753_v21 = vor.u32 %v3752_v28, %v3749_v37  ;;  %v3763_v1 = vor.u32 %v3762_v44, %v7716_v11  ;;  %8807 = vst [vmem:[#allocation14_spill] sm:$0xff] %v7754_v13  ;;  %v5474_v28 = vld [vmem:[%s6164_s25 + $0x54] sm:$0xe]  ;;  %v6079_v13 = vld [vmem:[%s6164_s25 + $0xcc] sm:$0xff]  }
 0x101   : > { %v3766_v25 = vshll.u32 %v7726_v16, 16  ;;  %v7758_v52 = vsel %vm6494_vm7, %v4393_v18, %v4394_v60  ;;  %v5489_v35 = vrot.slane %v5473_v24, 9  ;;  %v4400_v37 = vrot.slane %v4398_v39, 4 }
 0x102   : > { %5912 = vmatmul.mubr.msk.bf16.gmra.mxu0 %vm695_vm3, %v6073_v23  ;;  %v3774_v23 = vshll.u32 %v5406_v41, 16  ;;  %v4401_v4 = vrot.slane %v7678_v8, 5  ;;  %v6076_v41 = vld [vmem:[%s6164_s25 + $0xa8] sm:$0xff]   ;;  %v3721_v44 = vsel %vm6208_vm4, %v3716_v51, %v3720_v19  ;;  %v3773_v50 = vrot.slane %v3771_v33, 4 }
 0x103   : > { %5915 = vmatprep.mubr.msk.bf16.mxu0 %vm695_vm3, %v6074_v14  ;;  %v7738_v14 = vpop.f32.mrf.mxu1  ;;  %v3745_v18 = vsel %vm6208_vm4, %v3740_v49, %v3744_v58  ;;  %v3780_v60 = vshll.u32 %v7747_v36, 16  ;;  %v3784_v8 = vshrl.u32 %v7747_v36, 16  ;;  %v3764_v51 = vrot.slane %v3763_v1, 4  ;;  %v7776_v33 = vld [vmem:[%s6164_s25 + $0x68] sm:$0x1] }
 0x104   : > { %8805 = vst [vmem:[#allocation13_spill] sm:$0xff] %v7738_v14  ;;  %v3754_v14 = vrot.slane %v3753_v21, 4  ;;  %v3768_v17 = vrot.slane %v3766_v25, 5  ;;  %v5490_v19 = vrot.slane %v5474_v28, 9  ;;  %v8810_v49 = vsel %vm6208_vm4, %v7661_v26, %v7654_v62  ;;  %v5409_v25 = vld [vmem:[%s6164_s25 + $0x6c] sm:$0xf] }
 0x105   : > { %5878 = vmatmul.mubr.msk.bf16.gmra.mxu1 %vm695_vm3, %v8804_v7  ;;  %v3776_v7 = vrot.slane %v3774_v23, 5  ;;  %v7773_v24 = vpop.f32.mrf.mxu1  ;;  %v7797_v21 = vsel %vm6494_vm7, %v5489_v35, %v4398_v39  ;;  %v7801_v1 = vsel %vm6494_vm7, %v4400_v37, %v4401_v4  ;;  %v7804_v62 = vcombine.low %v3711_v34, %v3721_v44  ;;  %v5475_v4 = vld [vmem:[%s6164_s25 + $0x60] sm:$0xe]  ;;  %v5415_v44 = vld [vmem:[%s6164_s25 + $0x84] sm:$0xf] }
 0x106   : > { %5881 = vmatprep.mubr.msk.bf16.mxu1 %vm695_vm3, %v8806_v43  ;;  %v3735_v43 = vsel %vm6208_vm4, %v3730_v45, %v7669_v10  ;;  %8808 = vst [vmem:[#allocation15_spill] sm:$0xff] %v7773_v24  ;;  %v8811_v45 = vsel %vm6208_vm4, %v7652_v3, %v7588_v46  ;;  %v4407_v46 = vrot.slane %v4405_v59, 4  ;;  %v4408_v3 = vrot.slane %v7726_v16, 5 }
 0x107   : > { %v7791_v23 = vcombine.low %v8811_v45, %v8810_v49  ;;  %8812 = vst [vmem:[#allocation11_spill] sm:$0xff] %v7804_v62  ;;  %v3777_v26 = vor.u32 %v3776_v7, %v3773_v50  ;;  %v7811_v28 = vcombine.low %v3735_v43, %v3745_v18  ;;  %v7813_v39 = vrot.slane %v3780_v60, 5 }
 0x108   : > { %v7779_v10 = vpop.f32.mrf.mxu0  ;;  %v7815_v35 = vrot.slane %v3784_v8, 4  ;;  %v3790_v37 = vshll.u32 %v7776_v33, 16  ;;  %v8814_v34 = vcombine.low %v7412_v54, %v7427_v56  ;;  %v3759_v50 = vsel %vm6208_vm4, %v3754_v14, %v7716_v11  ;;  %v5412_v54 = vld [vmem:[%s6164_s25 + $0x78] sm:$0xf] }
 0x109   : > { %8809 = vst [vmem:[#allocation9_spill] sm:$0xff] %v7779_v10  ;;  %8813 = vst [vmem:[#allocation16_spill] sm:$0xff] %v7811_v28  ;;  %v3769_v7 = vsel %vm6208_vm4, %v3764_v51, %v3768_v17  ;;  %v7835_v43 = vsel %vm6494_vm7, %v5490_v19, %v4405_v59  ;;  %v8816_v56 = vcombine.low %v7419_v29, %v7440_v42  ;;  %v3795_v60 = vshrl.u32 %v5409_v25, 16  ;;  %v7847_v51 = vld [vmem:[%s6164_s25 + $0x7c] sm:$0xf]  ;;  %v6078_v59 = vld [vmem:[%s6164_s25 + $0xc0] sm:$0xff]  }
 0x10a   : > { %5916 = vmatmul.mubr.msk.bf16.gmra.mxu0 %vm695_vm3, %v6075_v2  ;;  %v7809_v2 = vld [vmem:[%s6164_s25 + $0x70] sm:$0xf]  ;;  %v7842_v18 = vpop.f32.mrf.mxu0  ;;  %v3798_v8 = vshll.u32 %v5409_v25, 16  ;;  %v7852_v17 = vsel %vm6494_vm7, %v4407_v46, %v4408_v3  ;;  %v7854_v29 = vrot.slane %v3777_v26, 4  ;;  %v5491_v42 = vrot.slane %v5475_v4, 9 }
 0x10b   : > { %5919 = vmatprep.mubr.msk.bf16.mxu0 %vm695_vm3, %v6076_v41  ;;  %v6077_v41 = vld [vmem:[%s6164_s25 + $0xb4] sm:$0xff]   ;;  %8817 = vst [vmem:[#allocation18_spill] sm:$0xff] %v7842_v18  ;;  %v3804_v11 = vshll.u32 %v7809_v2, 16  ;;  %v3808_v14 = vshrl.u32 %v7809_v2, 16  ;;  %v4412_v19 = vrot.slane %v7747_v36, 5  ;;  %v7857_v49 = vcombine.low %v3759_v50, %v3769_v7 }
 0x10c   : > { %v3787_v45 = vor.u32 %v7815_v35, %v7813_v39  ;;  %v7861_v25 = vrot.slane %v3790_v37, 5  ;;  %v3819_v46 = vshrl.u32 %v5412_v54, 16  ;;  %v3822_v3 = vshll.u32 %v5412_v54, 16  ;;  %v7873_v4 = vld [vmem:[%s6164_s25 + $0x88] sm:$0xf]  ;;  %v7876_v35 = vpop.f32.mrf.mxu0 }
 0x10d   : > { %5882 = vmatmul.mubr.msk.bf16.gmra.mxu1 %vm695_vm3, %v8814_v34  ;;  %v7823_v16 = vpop.f32.mrf.mxu1  ;;  %8818 = vst [vmem:[#allocation19_spill] sm:$0xff] %v7857_v49  ;;  %v4415_v34 = vrot.slane %v7776_v33, 5  ;;  %v3828_v36 = vshll.u32 %v7847_v51, 16  ;;  %v3832_v26 = vshrl.u32 %v7847_v51, 16  ;;  %8820 = vst [vmem:[#allocation21_spill] sm:$0xff] %v7876_v35  ;;  %v3797_v33 = vrot.slane %v3795_v60, 4 }
 0x10e   : > { %8815 = vst [vmem:[#allocation17_spill] sm:$0xff] %v7823_v16  ;;  %5885 = vmatprep.mubr.msk.bf16.mxu1 %vm695_vm3, %v8816_v56  ;;  %v7865_v56 = vld [vmem:[%s6164_s25 + $0x74] sm:$0x1]  ;;  %v3800_v37 = vrot.slane %v3798_v8, 5  ;;  %v7878_v50 = vrot.slane %v3804_v11, 5  ;;  %v3810_v7 = vrot.slane %v3808_v14, 4  ;;  %v8821_v54 = vcombine.low %v7431_v30, %v7447_v55  ;;  %v7906_v49 = vpop.f32.mrf.mxu0 }
 0x10f   : > { %v7868_v58 = vpop.f32.mrf.mxu1  ;;  %v4414_v16 = vrot.slane %v4412_v19, 4  ;;  %v7891_v60 = vld [vmem:[%s6164_s25 + $0x80] sm:$0x1]  ;;  %v7894_v8 = vld [vmem:[%s6164_s25 + $0x6c] sm:$0xe]  ;;  %v3843_v11 = vshrl.u32 %v5415_v44, 16 }
 0x110   : > { %8819 = vst [vmem:[#allocation20_spill] sm:$0xff] %v7868_v58  ;;  %v7887_v58 = vsel %vm6494_vm7, %v5491_v42, %v4412_v19  ;;  %v3846_v14 = vshll.u32 %v5415_v44, 16  ;;  %v3856_v24 = vshrl.u32 %v7873_v4, 16  ;;  %v3821_v19 = vrot.slane %v3819_v46, 4  ;;  %8823 = vst [vmem:[#allocation23_spill] sm:$0xff] %v7906_v49 }
 0x111   : > { %v7902_v42 = vpop.f32.mrf.mxu1  ;;  %v3824_v35 = vrot.slane %v3822_v3, 5  ;;  %v7904_v18 = vrot.slane %v3828_v36, 5  ;;  %v3834_v10 = vrot.slane %v3832_v26, 4  ;;  %v8824_v44 = vcombine.low %v7451_v15, %v7479_v32  ;;  %v7925_v32 = vld [vmem:[%s6164_s25 + $0x8c] sm:$0x1] }
 0x112   : > { %5920 = vmatmul.mubr.msk.bf16.gmra.mxu0 %vm695_vm3, %v6077_v41  ;;  %v3814_v41 = vshll.u32 %v7865_v56, 16  ;;  %8822 = vst [vmem:[#allocation22_spill] sm:$0xff] %v7902_v42  ;;  %v3801_v30 = vor.u32 %v3800_v37, %v3797_v33  ;;  %v3811_v55 = vor.u32 %v3810_v7, %v7878_v50  ;;  %v3838_v46 = vshll.u32 %v7891_v60, 16  ;;  %v5477_v33 = vld [vmem:[%s6164_s25 + $0x78] sm:$0xe] }
 0x113   : > { %5923 = vmatprep.mubr.msk.bf16.mxu0 %vm695_vm3, %v6078_v59  ;;  %v3852_v59 = vshll.u32 %v7873_v4, 16  ;;  %v7916_v3 = vrot.slane %v3787_v45, 4  ;;  %v7920_v36 = vsel %vm6494_vm7, %v4414_v16, %v4415_v34  ;;  %v5492_v26 = vrot.slane %v7894_v8, 9  ;;  %v7930_v42 = vpop.f32.mrf.mxu1  ;;  %v5418_v8 = vld [vmem:[%s6164_s25 + $0x90] sm:$0xf] }
 0x114   : > { %v4426_v15 = vrot.slane %v7847_v51, 5  ;;  %v3845_v37 = vrot.slane %v3843_v11, 4  ;;  %v3848_v7 = vrot.slane %v3846_v14, 5  ;;  %8825 = vst [vmem:[#allocation24_spill] sm:$0xff] %v7930_v42  ;;  %v3816_v45 = vrot.slane %v3814_v41, 5 }
 0x115   : > { %5886 = vmatmul.mubr.msk.bf16.gmra.mxu1 %vm695_vm3, %v8821_v54  ;;  %v4419_v54 = vrot.slane %v7809_v2, 5  ;;  %v7928_v2 = vrot.slane %v3852_v59, 5  ;;  %v4422_v49 = vrot.slane %v7865_v56, 5  ;;  %v3825_v16 = vor.u32 %v3824_v35, %v3821_v19  ;;  %v7939_v59 = vld [vmem:[%s6164_s25 + $0x94] sm:$0xf] }
 0x116   : > { %5889 = vmatprep.mubr.msk.bf16.mxu1 %vm695_vm3, %v8824_v44  ;;  %v3858_v44 = vrot.slane %v3856_v24, 4  ;;  %v3835_v34 = vor.u32 %v3834_v10, %v7904_v18  ;;  %v3802_v51 = vrot.slane %v3801_v30, 4  ;;  %v3812_v11 = vrot.slane %v3811_v55, 4 }
 0x117   : > { %v4421_v62 = vrot.slane %v4419_v54, 4  ;;  %v3840_v14 = vrot.slane %v3838_v46, 5  ;;  %v8826_v24 = vcombine.low %v7572_v61, %v7576_v40  ;;  %v5493_v56 = vrot.slane %v5477_v33, 9 }
 0x118   : > { %v4428_v35 = vrot.slane %v4426_v15, 4  ;;  %v4429_v10 = vrot.slane %v7891_v60, 5  ;;  %v3862_v41 = vshll.u32 %v7925_v32, 16  ;;  %v3859_v30 = vor.u32 %v3858_v44, %v7928_v2 }
 0x119   : > { %v3867_v55 = vshrl.u32 %v5418_v8, 16  ;;  %v3870_v46 = vshll.u32 %v5418_v8, 16  ;;  %v8828_v61 = vcombine.low %v7491_v9, %v7496_v47  ;;  %v3826_v40 = vrot.slane %v3825_v16, 4 }
 0x11a   : > { %v7935_v28 = vpop.f32.mrf.mxu0  ;;  %5924 = vmatmul.mubr.msk.bf16.gmra.mxu0 %vm695_vm3, %v6079_v13  ;;  %v3849_v13 = vor.u32 %v3848_v7, %v3845_v37  ;;  %v3836_v33 = vrot.slane %v3835_v34, 4  ;;  %v3876_v60 = vshll.u32 %v7939_v59, 16  ;;  %v3793_v37 = vsel %vm6208_vm4, %v7916_v3, %v7861_v25 }
 0x11b   : > { %5963 = vmatprep.mubr.msk.bf16.mxu0 %vm695_vm3, %v8826_v24  ;;  %v3880_v24 = vshrl.u32 %v7939_v59, 16  ;;  %v3807_v9 = vsel %vm6208_vm4, %v3802_v51, %v7878_v50  ;;  %v7971_v47 = vsel %vm6494_vm7, %v5492_v26, %v4419_v54  ;;  %v7975_v7 = vsel %vm6494_vm7, %v4421_v62, %v4422_v49  ;;  %v5478_v54 = vld [vmem:[%s6164_s25 + $0x84] sm:$0xe]  ;;  %v8867_v31 = vld [vmem:[#allocation24_spill] sm:$0xff] }
 0x11c   : > { %v7947_v19 = vpop.f32.mrf.mxu0  ;;  %v7983_v25 = vsel %vm6494_vm7, %v5493_v56, %v4426_v15  ;;  %v7987_v50 = vsel %vm6494_vm7, %v4428_v35, %v4429_v10  ;;  %v3864_v3 = vrot.slane %v3862_v41, 5  ;;  %v3850_v62 = vrot.slane %v3849_v13, 4  ;;  %v8011_v13 = vld [vmem:[%s6164_s25 + $0x98] sm:$0x1] }
 0x11d   : > { %8827 = vst [vmem:[#allocation25_spill] sm:$0xff] %v7947_v19  ;;  %v7950_v42 = vpop.f32.mrf.mxu1  ;;  %5890 = vmatmul.mubr.msk.bf16.gmra.mxu1 %vm695_vm3, %v8828_v61  ;;  %v3860_v49 = vrot.slane %v3859_v30, 4  ;;  %v3869_v16 = vrot.slane %v3867_v55, 4  ;;  %v3872_v34 = vrot.slane %v3870_v46, 5  ;;  %v3831_v15 = vsel %vm6208_vm4, %v3826_v40, %v7904_v18  ;;  %v5421_v30 = vld [vmem:[%s6164_s25 + $0x9c] sm:$0xf] }
 0x11e   : > { %v7958_v19 = vpop.f32.mrf.mxu0  ;;  %5929 = vmatprep.mubr.msk.bf16.mxu1 %vm695_vm3, %v7642_v27  ;;  %v3817_v27 = vsel %vm6208_vm4, %v3812_v11, %v3816_v45  ;;  %v3841_v45 = vsel %vm6208_vm4, %v3836_v33, %v3840_v14  ;;  %v7999_v51 = vrot.slane %v3876_v60, 5  ;;  %v3882_v11 = vrot.slane %v3880_v24, 4  ;;  %v8042_v24 = vld [vmem:[%s6164_s25 + $0xa0] sm:$0xf] }
 0x11f   : > { %v7977_v44 = vpop.f32.mrf.mxu1  ;;  %v8829_v35 = vcombine.low %v7612_v48, %v7616_v38  ;;  %v5507_v10 = vcombine.low %v7835_v43, %v7852_v17  ;;  %v5508_v41 = vcombine.low %v7887_v58, %v7920_v36  ;;  %v5494_v18 = vrot.slane %v5478_v54, 9 }
 0x120   : > { %v7990_v26 = vpop.f32.mrf.mxu0  ;;  %v4433_v14 = vrot.slane %v7873_v4, 5  ;;  %v8830_v48 = vcombine.low %v7695_v6, %v7699_v22  ;;  %v8831_v38 = vsel %vm6208_vm4, %v7854_v29, %v7813_v39  ;;  %v8027_v61 = vcombine.low %v3807_v9, %v3817_v27  ;;  %v5479_v29 = vld [vmem:[%s6164_s25 + $0x90] sm:$0xe]  ;;  %v8838_v4 = vld [vmem:[#allocation2_spill] sm:$0xff] }
 0x121   : > { %v7992_v8 = vpop.f32.mrf.mxu1  ;;  %v8025_v46 = vcombine.low %v8831_v38, %v3793_v37  ;;  %v8033_v60 = vcombine.low %v3831_v15, %v3841_v45  ;;  %v3855_v6 = vsel %vm6208_vm4, %v3850_v62, %v7928_v2  ;;  %v3865_v22 = vsel %vm6208_vm4, %v3860_v49, %v3864_v3 }
 0x122   : > { %v5761_v56 = vpop.f32.mrf.mxu0  ;;  %5964 = vmatmul.mubr.msk.bf16.vlgmr.msra.gmra.mxu0 %vm695_vm3, %v8829_v35  ;;  %v3873_v39 = vor.u32 %v3872_v34, %v3869_v16  ;;  %v3883_v9 = vor.u32 %v3882_v11, %v7999_v51  ;;  %v3886_v27 = vshll.u32 %v8011_v13, 16  ;;  %v3891_v54 = vshrl.u32 %v5421_v30, 16 }
 0x123   : > { %v8014_v55 = vpop.f32.mrf.mxu1  ;;  %5967 = vmatprep.mubr.msk.bf16.mxu0 %vm695_vm3, %v8830_v48  ;;  %v3894_v15 = vshll.u32 %v5421_v30, 16  ;;  %v8053_v3 = vsel %vm6494_vm7, %v5494_v18, %v4433_v14  ;;  %v4435_v62 = vrot.slane %v4433_v14, 4  ;;  %v4436_v49 = vrot.slane %v7925_v32, 5 }
 0x124   : > { %v1499_v33 = vpop.f32.mrf.mxu0  ;;  %v5495_v16 = vrot.slane %v5479_v29, 9  ;;  %v4440_v34 = vrot.slane %v7939_v59, 5  ;;  %v3900_v11 = vshll.u32 %v8042_v24, 16  ;;  %v3904_v35 = vshrl.u32 %v8042_v24, 16 }
 0x125   : > { %v5727_v37 = vpop.f32.mrf.mxu1  ;;  %5930 = vmatmul.mubr.msk.bf16.vlgmr.msra.gmra.mxu1 %vm695_vm3, %v7644_v57  ;;  %v8062_v48 = vcombine.low %v3855_v6, %v3865_v22  ;;  %v8064_v18 = vrot.slane %v3873_v39, 4  ;;  %v3884_v32 = vrot.slane %v3883_v9, 4  ;;  %v3888_v38 = vrot.slane %v3886_v27, 5  ;;  %v5424_v22 = vld [vmem:[%s6164_s25 + $0xa8] sm:$0xf] }
 0x126   : > { %v1083_v45 = vadd.f32 %v5727_v37, %v7540_v5  ;;  %v5762_v2 = vpop.f32.mrf.mxu0  ;;  %5933 = vmatprep.mubr.msk.bf16.mxu1 %vm695_vm3, %v7791_v23  ;;  %v3893_v29 = vrot.slane %v3891_v54, 4  ;;  %v3896_v59 = vrot.slane %v3894_v15, 5  ;;  %v4443_v6 = vrot.slane %v8011_v13, 5  ;;  %v8090_v27 = vld [vmem:[%s6164_s25 + $0xac] sm:$0xf] }
 0x127   : > { %v1074_v57 = vpop.f32.mrf.mxu1  ;;  %v3906_v9 = vrot.slane %v3904_v35, 4  ;;  %v8835_v35 = vld [vmem:[#allocation8_spill] sm:$0xff] }
 0x128   : > { %v8059_v5 = vadd.f32 %v5761_v56, %v1083_v45  ;;  %v1075_v23 = vadd.f32 %v1074_v57, %v7564_v20  ;;  %v1502_v30 = vpop.f32.mrf.mxu0  ;;  %v8832_v45 = vcombine.low %v7732_v63, %v7758_v52  ;;  %v8075_v20 = vsel %vm6494_vm7, %v4435_v62, %v4436_v49  ;;  %v5480_v62 = vld [vmem:[%s6164_s25 + $0x9c] sm:$0xe] }
 0x129   : > { %v5728_v14 = vpop.f32.mrf.mxu1  ;;  %v4442_v63 = vrot.slane %v4440_v34, 4  ;;  %v8087_v52 = vrot.slane %v3900_v11, 5  ;;  %v4447_v49 = vrot.slane %v8042_v24, 5  ;;  %v3924_v24 = vshll.u32 %v8090_v27, 16 }
 0x12a   : > { %v8066_v37 = vadd.f32 %v1499_v33, %v1075_v23  ;;  %v1086_v40 = vadd.f32 %v5728_v14, %v7583_v53  ;;  %v5765_v56 = vpop.f32.mrf.mxu0  ;;  %5968 = vmatmul.mubr.msk.bf16.gmra.mxu0 %vm695_vm3, %v8832_v45  ;;  %v8833_v33 = vcombine.low %v7797_v21, %v7801_v1  ;;  %v8085_v53 = vsel %vm6494_vm7, %v5495_v16, %v4440_v34  ;;  %v5423_v1 = vld [vmem:[%s6164_s25 + $0xa4] sm:$0x1]  ;;  %v8834_v16 = vld [vmem:[#allocation11_spill] sm:$0xff] }
 0x12b   : > { %v1077_v39 = vpop.f32.mrf.mxu1  ;;  %v3879_v21 = vsel %vm6208_vm4, %v8064_v18, %v7999_v51  ;;  %v3915_v34 = vshrl.u32 %v5424_v22, 16  ;;  %v8836_v51 = vld [vmem:[#allocation16_spill] sm:$0xff]  ;;  %v3928_v18 = vshrl.u32 %v8090_v27, 16 }
 0x12c   : > { %5971 = vmatprep.mubr.msk.bf16.mxu0 %vm695_vm3, %v8833_v33  ;;  %v8092_v54 = vadd.f32 %v5762_v2, %v1086_v40  ;;  %v1078_v13 = vadd.f32 %v1077_v39, %v7628_v12  ;;  %v1515_v15 = vpop.f32.mrf.mxu0  ;;  %v3889_v40 = vsel %vm6208_vm4, %v3884_v32, %v3888_v38  ;;  %v3897_v2 = vor.u32 %v3896_v59, %v3893_v29  ;;  %v8837_v59 = vld [vmem:[#allocation12_spill] sm:$0xff] }
 0x12d   : > { %v5731_v57 = vpop.f32.mrf.mxu1  ;;  %5934 = vmatmul.mubr.msk.bf16.gmra.mxu1 %vm695_vm3, %v8834_v16  ;;  %v3918_v12 = vshll.u32 %v5424_v22, 16  ;;  %v8115_v39 = vsel %vm6494_vm7, %v4442_v63, %v4443_v6  ;;  %v3907_v32 = vor.u32 %v3906_v9, %v8087_v52  ;;  %v3910_v38 = vshll.u32 %v5423_v1, 16 }
 0x12e   : > { %v8106_v11 = vadd.f32 %v1502_v30, %v1078_v13  ;;  %v1099_v23 = vadd.f32 %v5731_v57, %v8835_v35  ;;  %v5766_v14 = vpop.f32.mrf.mxu0  ;;  %5937 = vmatprep.mubr.msk.bf16.mxu1 %vm695_vm3, %v8836_v51  ;;  %v5496_v30 = vrot.slane %v5480_v62, 9  ;;  %v4449_v13 = vrot.slane %v4447_v49, 4 }
 0x12f   : > { %v1090_v45 = vpop.f32.mrf.mxu1  ;;  %v4450_v57 = vrot.slane %v5423_v1, 5  ;;  %v8123_v51 = vrot.slane %v3897_v2, 4  ;;  %v3917_v6 = vrot.slane %v3915_v34, 4  ;;  %v3920_v63 = vrot.slane %v3918_v12, 5  ;;  %v8133_v1 = vld [vmem:[%s6164_s25 + $0xb0] sm:$0x1] }
 0x130   : > { %v8118_v29 = vadd.f32 %v5765_v56, %v1099_v23  ;;  %v1091_v22 = vadd.f32 %v1090_v45, %v8837_v59  ;;  %v1518_v33 = vpop.f32.mrf.mxu0  ;;  %v8135_v23 = vrot.slane %v3924_v24, 5  ;;  %v3930_v2 = vrot.slane %v3928_v18, 4  ;;  %v8839_v12 = vld [vmem:[#allocation14_spill] sm:$0xff] }
 0x131   : > { %v5732_v16 = vpop.f32.mrf.mxu1  ;;  %v8145_v43 = vrot.slane %v3907_v32, 4  ;;  %v8147_v17 = vrot.slane %v3910_v38, 5  ;;  %v8155_v58 = vsel %vm6494_vm7, %v5496_v30, %v4447_v49  ;;  %v8159_v36 = vsel %vm6494_vm7, %v4449_v13, %v4450_v57  ;;  %v8171_v30 = vld [vmem:[%s6164_s25 + $0xb8] sm:$0xf] }
 0x132   : > { %v8125_v9 = vadd.f32 %v1515_v15, %v1091_v22  ;;  %v1102_v62 = vadd.f32 %v5732_v16, %v8838_v4  ;;  %v5769_v56 = vpop.f32.mrf.mxu0  ;;  %5972 = vmatmul.mubr.msk.bf16.gmra.mxu0 %vm695_vm3, %v5507_v10  ;;  %v8141_v15 = vcombine.low %v3879_v21, %v3889_v40  ;;  %v5481_v10 = vld [vmem:[%s6164_s25 + $0xa8] sm:$0xe]  ;;  %v3921_v32 = vor.u32 %v3920_v63, %v3917_v6  ;;  %v8841_v22 = vld [vmem:[#allocation9_spill] sm:$0xff] }
 0x133   : > { %v1093_v45 = vpop.f32.mrf.mxu1  ;;  %5975 = vmatprep.mubr.msk.bf16.mxu0 %vm695_vm3, %v5508_v41  ;;  %v5427_v41 = vld [vmem:[%s6164_s25 + $0xb4] sm:$0xf]  ;;  %v8840_v40 = vld [vmem:[#allocation19_spill] sm:$0xff]  ;;  %v3934_v38 = vshll.u32 %v8133_v1, 16  ;;  %v4454_v49 = vrot.slane %v8090_v27, 5  ;;  %v3931_v16 = vor.u32 %v3930_v2, %v8135_v23  ;;  %v3913_v27 = vsel %vm6208_vm4, %v8145_v43, %v8147_v17 }
 0x134   : > { %v8150_v34 = vadd.f32 %v5766_v14, %v1102_v62  ;;  %v1094_v24 = vadd.f32 %v1093_v45, %v8839_v12  ;;  %v1531_v18 = vpop.f32.mrf.mxu0  ;;  %v5497_v62 = vrot.slane %v5481_v10, 9  ;;  %v3939_v6 = vshrl.u32 %v5427_v41, 16 }
 0x135   : > { %v5735_v21 = vpop.f32.mrf.mxu1  ;;  %5938 = vmatmul.mubr.msk.bf16.gmra.mxu1 %vm695_vm3, %v8840_v40  ;;  %v3942_v63 = vshll.u32 %v5427_v41, 16  ;;  %v3948_v2 = vshll.u32 %v8171_v30, 16  ;;  %v3952_v10 = vshrl.u32 %v8171_v30, 16  ;;  %v5430_v40 = vld [vmem:[%s6164_s25 + $0xc0] sm:$0xf]  ;;  %v3922_v4 = vrot.slane %v3921_v32, 4 }
 0x136   : > { %v8173_v59 = vadd.f32 %v1518_v33, %v1094_v24  ;;  %v1115_v13 = vadd.f32 %v5735_v21, %v8841_v22  ;;  %v5770_v57 = vpop.f32.mrf.mxu0  ;;  %5941 = vmatprep.mubr.msk.bf16.mxu1 %vm695_vm3, %v8025_v46  ;;  %v8843_v24 = vld [vmem:[#allocation18_spill] sm:$0xff]  ;;  %v3936_v43 = vrot.slane %v3934_v38, 5  ;;  %v4456_v17 = vrot.slane %v4454_v49, 4 }
 0x137   : > { %v1106_v45 = vpop.f32.mrf.mxu1  ;;  %v4457_v33 = vrot.slane %v8133_v1, 5  ;;  %v8201_v14 = vsel %vm6494_vm7, %v5497_v62, %v4454_v49  ;;  %v8204_v32 = vld [vmem:[%s6164_s25 + $0xc4] sm:$0xf]  ;;  %v8847_v1 = vcombine.low %v7983_v25, %v7987_v50  ;;  %v8216_v62 = vrot.slane %v3948_v2, 5 }
 0x138   : > { %v8185_v12 = vadd.f32 %v5769_v56, %v1115_v13  ;;  %v1107_v21 = vadd.f32 %v1106_v45, %v8843_v24  ;;  %v1534_v46 = vpop.f32.mrf.mxu0  ;;  %v8845_v56 = vld [vmem:[#allocation21_spill] sm:$0xff]  ;;  %v8846_v45 = vcombine.low %v7971_v47, %v7975_v7  ;;  %v3932_v24 = vrot.slane %v3931_v16, 4  ;;  %v8848_v16 = vld [vmem:[#allocation23_spill] sm:$0xff] }
 0x139   : > { %v5736_v22 = vpop.f32.mrf.mxu1  ;;  %v3963_v47 = vshrl.u32 %v5430_v40, 16  ;;  %v3966_v7 = vshll.u32 %v5430_v40, 16  ;;  %v3927_v25 = vsel %vm6208_vm4, %v3922_v4, %v8135_v23  ;;  %v8225_v50 = vsel %vm6494_vm7, %v4456_v17, %v4457_v33  ;;  %v5482_v40 = vld [vmem:[%s6164_s25 + $0xb4] sm:$0xe] }
 0x13a   : > { %8842 = vst [vmem:[#allocation11_spill] sm:$0xff] %v8185_v12  ;;  %v8192_v35 = vadd.f32 %v1531_v18, %v1107_v21  ;;  %v1118_v41 = vadd.f32 %v5736_v22, %v8845_v56  ;;  %v5773_v13 = vpop.f32.mrf.mxu0  ;;  %5976 = vmatmul.mubr.msk.bf16.gmra.mxu0 %vm695_vm3, %v8846_v45  ;;  %v8211_v18 = vld [vmem:[%s6164_s25 + $0xbc] sm:$0x1]  ;;  %v3941_v21 = vrot.slane %v3939_v6, 4  ;;  %v3944_v22 = vrot.slane %v3942_v63, 5 }
 0x13b   : > { %v1109_v38 = vpop.f32.mrf.mxu1  ;;  %5979 = vmatprep.mubr.msk.bf16.mxu0 %vm695_vm3, %v8847_v1  ;;  %v3976_v6 = vshrl.u32 %v8204_v32, 16  ;;  %v3958_v23 = vshll.u32 %v8211_v18, 16  ;;  %v4461_v17 = vrot.slane %v8171_v30, 5  ;;  %v8849_v1 = vld [vmem:[#allocation25_spill] sm:$0xff] }
 0x13c   : > { %8844 = vst [vmem:[#allocation8_spill] sm:$0xff] %v8192_v35  ;;  %v8213_v56 = vadd.f32 %v5770_v57, %v1118_v41  ;;  %v1110_v45 = vadd.f32 %v1109_v38, %v8848_v16  ;;  %v1547_v49 = vpop.f32.mrf.mxu0  ;;  %v3954_v35 = vrot.slane %v3952_v10, 4  ;;  %v3972_v57 = vshll.u32 %v8204_v32, 16 }
 0x13d   : > { %v5739_v12 = vpop.f32.mrf.mxu1  ;;  %5942 = vmatmul.mubr.msk.bf16.gmra.mxu1 %vm695_vm3, %v8027_v61  ;;  %v3937_v61 = vsel %vm6208_vm4, %v3932_v24, %v3936_v43  ;;  %v3945_v33 = vor.u32 %v3944_v22, %v3941_v21  ;;  %v3965_v41 = vrot.slane %v3963_v47, 4  ;;  %v3968_v38 = vrot.slane %v3966_v7, 5 }
 0x13e   : > { %v8229_v63 = vadd.f32 %v1534_v46, %v1110_v45  ;;  %v1131_v2 = vadd.f32 %v5739_v12, %v7935_v28  ;;  %v5774_v10 = vpop.f32.mrf.mxu0  ;;  %5945 = vmatprep.mubr.msk.bf16.mxu1 %vm695_vm3, %v8033_v60  ;;  %v8850_v60 = vsel %vm6208_vm4, %v8123_v51, %v8087_v52  ;;  %v3955_v24 = vor.u32 %v3954_v35, %v8216_v62 }
 0x13f   : > { %v1122_v4 = vpop.f32.mrf.mxu1  ;;  %v8247_v43 = vcombine.low %v8850_v60, %v3913_v27  ;;  %v8250_v30 = vcombine.low %v3927_v25, %v3937_v61  ;;  %v8254_v22 = vrot.slane %v3972_v57, 5  ;;  %v3978_v47 = vrot.slane %v3976_v6, 4  ;;  %v5432_v27 = vld [vmem:[%s6164_s25 + $0xc8] sm:$0x1] }
 0x140   : > { %v8239_v46 = vadd.f32 %v5773_v13, %v1131_v2  ;;  %v1123_v28 = vadd.f32 %v1122_v4, %v8849_v1  ;;  %v1550_v12 = vpop.f32.mrf.mxu0  ;;  %v5514_v13 = vcombine.low %v8201_v14, %v8225_v50  ;;  %v8851_v52 = vcombine.low %v8053_v3, %v8075_v20  ;;  %v5433_v14 = vld [vmem:[%s6164_s25 + $0xcc] sm:$0xf]  ;;  %v8275_v20 = vld [vmem:[%s6164_s25 + $0xd0] sm:$0xf]  ;;  %v5483_v4 = vld [vmem:[%s6164_s25 + $0xc0] sm:$0xe] }
 0x141   : > { %v5740_v21 = vpop.f32.mrf.mxu1  ;;  %v8263_v35 = vrot.slane %v3958_v23, 5  ;;  %v5498_v51 = vrot.slane %v5482_v40, 9  ;;  %v8852_v50 = vcombine.low %v8085_v53, %v8115_v39  ;;  %v4464_v57 = vrot.slane %v8211_v18, 5 }
 0x142   : > { %v8256_v7 = vadd.f32 %v1547_v49, %v1123_v28  ;;  %v1134_v16 = vadd.f32 %v5740_v21, %v7958_v19  ;;  %v5777_v45 = vpop.f32.mrf.mxu0  ;;  %5980 = vmatmul.mubr.msk.bf16.gmra.mxu0 %vm695_vm3, %v8851_v52  ;;  %v8271_v49 = vrot.slane %v3945_v33, 4  ;;  %v4463_v19 = vrot.slane %v4461_v17, 4 }
 0x143   : > { %v1125_v25 = vpop.f32.mrf.mxu1  ;;  %5983 = vmatprep.mubr.msk.bf16.mxu0 %vm695_vm3, %v8852_v50  ;;  %v3969_v3 = vor.u32 %v3968_v38, %v3965_v41  ;;  %v8280_v23 = vrot.slane %v3955_v24, 4  ;;  %v4468_v53 = vrot.slane %v8204_v32, 5  ;;  %v3979_v33 = vor.u32 %v3978_v47, %v8254_v22 }
 0x144   : > { %v8277_v6 = vadd.f32 %v5774_v10, %v1134_v16  ;;  %v1126_v2 = vadd.f32 %v1125_v25, %v7990_v26  ;;  %v1563_v61 = vpop.f32.mrf.mxu0  ;;  %v3982_v18 = vshll.u32 %v5432_v27, 16  ;;  %v3987_v40 = vshrl.u32 %v5433_v14, 16  ;;  %v8855_v10 = vld [vmem:[#allocation4_spill] sm:$0xff]  ;;  %v8856_v16 = vld [vmem:[#allocation3_spill] sm:$0xff] }
 0x145   : > { %v5743_v39 = vpop.f32.mrf.mxu1  ;;  %5946 = vmatmul.mubr.msk.bf16.gmra.mxu1 %vm695_vm3, %v8062_v48  ;;  %v3990_v41 = vshll.u32 %v5433_v14, 16  ;;  %v3996_v28 = vshll.u32 %v8275_v20, 16  ;;  %v4000_v32 = vshrl.u32 %v8275_v20, 16  ;;  %v4462_v48 = vsel %vm6494_vm7, %v5498_v51, %v4461_v17  ;;  %v8857_v17 = vld [vmem:[#allocation6_spill] sm:$0xff] }
 0x146   : > { %8853 = vst [vmem:[#allocation16_spill] sm:$0xff] %v8277_v6  ;;  %v8287_v38 = vadd.f32 %v1550_v12, %v1126_v2  ;;  %v1147_v1 = vadd.f32 %v5743_v39, %v8855_v10  ;;  %v5778_v26 = vpop.f32.mrf.mxu0  ;;  %5949 = vmatprep.mubr.msk.bf16.mxu1 %vm695_vm3, %v8141_v15  ;;  %v4465_v24 = vsel %vm6494_vm7, %v4463_v19, %v4464_v57  ;;  %v3970_v21 = vrot.slane %v3969_v3, 4 }
 0x147   : > { %v1138_v60 = vpop.f32.mrf.mxu1  ;;  %v5499_v12 = vrot.slane %v5483_v4, 9  ;;  %v4470_v25 = vrot.slane %v4468_v53, 4  ;;  %v4471_v15 = vrot.slane %v5432_v27, 5  ;;  %v3980_v2 = vrot.slane %v3979_v33, 4  ;;  %v5435_v33 = vld [vmem:[%s6164_s25 + $0xd4] sm:$0x1] }
 0x148   : > { %8854 = vst [vmem:[#allocation12_spill] sm:$0xff] %v8287_v38  ;;  %v8298_v47 = vadd.f32 %v5777_v45, %v1147_v1  ;;  %v1139_v52 = vadd.f32 %v1138_v60, %v8856_v16  ;;  %v1566_v14 = vpop.f32.mrf.mxu0  ;;  %v3984_v39 = vrot.slane %v3982_v18, 5  ;;  %v3989_v10 = vrot.slane %v3987_v40, 4  ;;  %v8859_v18 = vld [vmem:[#allocation5_spill] sm:$0xff] }
 0x149   : > { %v5744_v50 = vpop.f32.mrf.mxu1  ;;  %v3992_v38 = vrot.slane %v3990_v41, 5  ;;  %v8858_v45 = vcombine.low %v8155_v58, %v8159_v36  ;;  %v8308_v57 = vrot.slane %v3996_v28, 5  ;;  %v4002_v27 = vrot.slane %v4000_v32, 4 }
 0x14a   : > { %v8301_v6 = vadd.f32 %v1563_v61, %v1139_v52  ;;  %v1150_v51 = vadd.f32 %v5744_v50, %v8857_v17  ;;  %v5781_v19 = vpop.f32.mrf.mxu0  ;;  %v3951_v61 = vsel %vm6208_vm4, %v8271_v49, %v8216_v62  ;;  %v3961_v4 = vsel %vm6208_vm4, %v8280_v23, %v8263_v35  ;;  %v5484_v62 = vld [vmem:[%s6164_s25 + $0xcc] sm:$0xe] }
 0x14b   : > { %5984 = vmatmul.mubr.msk.bf16.gmra.mxu0 %vm695_vm3, %v8858_v45  ;;  %v1141_v3 = vpop.f32.mrf.mxu1  ;;  %v4475_v58 = vrot.slane %v8275_v20, 5  ;;  %v4472_v1 = vsel %vm6494_vm7, %v4470_v25, %v4471_v15  ;;  %v5515_v35 = vcombine.low %v4462_v48, %v4465_v24  ;;  %v3975_v20 = vsel %vm6208_vm4, %v3970_v21, %v8254_v22  ;;  %v8861_v25 = vld [vmem:[#allocation10_spill] sm:$0xff] }
 0x14c   : > { %5987 = vmatprep.mubr.msk.bf16.mxu0 %vm695_vm3, %v5514_v13  ;;  %v8321_v36 = vadd.f32 %v5778_v26, %v1150_v51  ;;  %v1142_v40 = vadd.f32 %v1141_v3, %v8859_v18  ;;  %v1579_v41 = vpop.f32.mrf.mxu0  ;;  %v4469_v13 = vsel %vm6494_vm7, %v5499_v12, %v4468_v53  ;;  %v3985_v23 = vsel %vm6208_vm4, %v3980_v2, %v3984_v39  ;;  %v8860_v53 = vld [vmem:[#allocation7_spill] sm:$0xff] }
 0x14d   : > { %v5747_v49 = vpop.f32.mrf.mxu1  ;;  %5950 = vmatmul.mubr.msk.bf16.gmra.mxu1 %vm695_vm3, %v8247_v43  ;;  %v3993_v26 = vor.u32 %v3992_v38, %v3989_v10  ;;  %v4003_v12 = vor.u32 %v4002_v27, %v8308_v57  ;;  %v4006_v43 = vshll.u32 %v5435_v33, 16  ;;  %v5516_v24 = vcombine.low %v4469_v13, %v4472_v1 }
 0x14e   : > { %v8336_v28 = vadd.f32 %v1566_v14, %v1142_v40  ;;  %v1163_v32 = vadd.f32 %v5747_v49, %v8860_v53  ;;  %v5782_v60 = vpop.f32.mrf.mxu0  ;;  %5953 = vmatprep.mubr.msk.bf16.mxu1 %vm695_vm3, %v8250_v30  ;;  %v5500_v16 = vrot.slane %v5484_v62, 9  ;;  %v4477_v52 = vrot.slane %v4475_v58, 4  ;;  %v8862_v30 = vld [vmem:[#allocation13_spill] sm:$0xff] }
 0x14f   : > { %v1154_v48 = vpop.f32.mrf.mxu1  ;;  %v4478_v22 = vrot.slane %v5435_v33, 5  ;;  %v5450_v50 = vcombine.low %v3951_v61, %v3961_v4  ;;  %v5451_v2 = vcombine.low %v3975_v20, %v3985_v23  ;;  %v3994_v39 = vrot.slane %v3993_v26, 4  ;;  %v8863_v33 = vld [vmem:[#allocation15_spill] sm:$0xff]  ;;  %v8864_v62 = vld [vmem:[#allocation17_spill] sm:$0xff]  ;;  %v8865_v26 = vld [vmem:[#allocation20_spill] sm:$0xff] }
 0x150   : > { %v8342_v21 = vadd.f32 %v5781_v19, %v1163_v32  ;;  %v1155_v38 = vadd.f32 %v1154_v48, %v8861_v25  ;;  %v1582_v14 = vpop.f32.mrf.mxu0  ;;  %v4004_v45 = vrot.slane %v4003_v12, 4  ;;  %v4008_v27 = vrot.slane %v4006_v43, 5  ;;  %v8866_v43 = vld [vmem:[#allocation22_spill] sm:$0xff] }
 0x151   : > { %v5748_v15 = vpop.f32.mrf.mxu1  ;;  %v4476_v19 = vsel %vm6494_vm7, %v5500_v16, %v4475_v58  ;;  %v4479_v61 = vsel %vm6494_vm7, %v4477_v52, %v4478_v22  ;;  %v3999_v13 = vsel %vm6208_vm4, %v3994_v39, %v8308_v57 }
 0x152   : > { %v8345_v10 = vadd.f32 %v1579_v41, %v1155_v38  ;;  %v1166_v17 = vadd.f32 %v5748_v15, %v8862_v30  ;;  %v5785_v51 = vpop.f32.mrf.mxu0  ;;  %v4009_v0 = vsel %vm6208_vm4, %v4004_v45, %v4008_v27 }
 0x153   : > { %5988 = vmatmul.mubr.msk.bf16.gmra.mxu0 %vm695_vm3, %v5515_v35  ;;  %v1157_v3 = vpop.f32.mrf.mxu1  ;;  %v5517_v35 = vcombine.low %v4476_v19, %v4479_v61  ;;  %v5452_v12 = vcombine.low %v3999_v13, %v4009_v0 }
 0x154   : > { %5991 = vmatprep.mubr.msk.bf16.mxu0 %vm695_vm3, %v5516_v24  ;;  %v8354_v4 = vadd.f32 %v5782_v60, %v1166_v17  ;;  %v1158_v18 = vadd.f32 %v1157_v3, %v8863_v33  ;;  %v1595_v40 = vpop.f32.mrf.mxu0 }
 0x155   : > { %v5751_v41 = vpop.f32.mrf.mxu1  ;;  %5954 = vmatmul.mubr.msk.bf16.gmra.mxu1 %vm695_vm3, %v5450_v50 }
 0x156   : > { %v8361_v1 = vadd.f32 %v1582_v14, %v1158_v18  ;;  %v1179_v49 = vadd.f32 %v5751_v41, %v8864_v62  ;;  %v5786_v58 = vpop.f32.mrf.mxu0  ;;  %5957 = vmatprep.mubr.msk.bf16.mxu1 %vm695_vm3, %v5451_v2 }
 0x157   : > { %v1170_v20 = vpop.f32.mrf.mxu1 }
 0x158   : > { %v8367_v23 = vadd.f32 %v5785_v51, %v1179_v49  ;;  %v1171_v53 = vadd.f32 %v1170_v20, %v8865_v26  ;;  %v1598_v32 = vpop.f32.mrf.mxu0 }
 0x159   : > { %v5752_v60 = vpop.f32.mrf.mxu1 }
 0x15a   : > { %v8370_v57 = vadd.f32 %v1595_v40, %v1171_v53  ;;  %v1182_v48 = vadd.f32 %v5752_v60, %v8866_v43  ;;  %v5789_v24 = vpop.f32.mrf.mxu0 }
 0x15b   : > { %5992 = vmatmul.mubr.msk.bf16.gmra.mxu0 %vm695_vm3, %v5517_v35  ;;  %v1173_v16 = vpop.f32.mrf.mxu1 }
 0x15c   : > { %v8374_v52 = vadd.f32 %v5786_v58, %v1182_v48  ;;  %v1174_v22 = vadd.f32 %v1173_v16, %v8867_v31  ;;  %v1611_v25 = vpop.f32.mrf.mxu0 }
 0x15d   : > { %v5755_v38 = vpop.f32.mrf.mxu1  ;;  %5958 = vmatmul.mubr.msk.bf16.gmra.mxu1 %vm695_vm3, %v5452_v12 }
 0x15e   : > { %v8378_v14 = vadd.f32 %v1598_v32, %v1174_v22  ;;  %v1195_v15 = vadd.f32 %v5755_v38, %v7950_v42  ;;  %v5790_v50 = vpop.f32.mrf.mxu0 }
 0x15f   : > { %v1186_v2 = vpop.f32.mrf.mxu1 }
 0x160   : > { %v8381_v39 = vadd.f32 %v5789_v24, %v1195_v15  ;;  %v1187_v30 = vadd.f32 %v1186_v2, %v7977_v44  ;;  %v1614_v17 = vpop.f32.mrf.mxu0 }
 0x161   : > { %v5756_v51 = vpop.f32.mrf.mxu1 }
 0x162   : > { %v8384_v45 = vadd.f32 %v1611_v25, %v1187_v30  ;;  %v1198_v27 = vadd.f32 %v5756_v51, %v7992_v8  ;;  %v5829_v3 = vpop.f32.mrf.mxu0  ;;  %v8868_v30 = vld [vmem:[#allocation11_spill] sm:$0xff] }
 0x163   : > { %v1189_v19 = vpop.f32.mrf.mxu1 }
 0x164   : > { %v8387_v61 = vadd.f32 %v5790_v50, %v1198_v27  ;;  %v1190_v33 = vadd.f32 %v1189_v19, %v8014_v55  ;;  %v2587_v18 = vpop.f32.mrf.mxu0 }
 0x165   : > { %v5795_v42 = vpop.f32.mrf.mxu1 }
 0x166   : > { %v8390_v40 = vadd.f32 %v1614_v17, %v1190_v33  ;;  %v1990_v41 = vadd.f32 %v5795_v42, %v8059_v5  ;;  %v5830_v13 = vpop.f32.mrf.mxu0 }
 0x167   : > { %v1861_v44 = vpop.f32.mrf.mxu1 }
 0x168   : > { %v8393_v62 = vadd.f32 %v5829_v3, %v1990_v41  ;;  %v1988_v49 = vadd.f32 %v1861_v44, %v8066_v37  ;;  %v2590_v58 = vpop.f32.mrf.mxu0  ;;  %v8869_v3 = vld [vmem:[#allocation8_spill] sm:$0xff] }
 0x169   : > { %v5796_v8 = vpop.f32.mrf.mxu1 }
 0x16a   : > { %v8396_v0 = vadd.f32 %v2587_v18, %v1988_v49  ;;  %v1991_v35 = vadd.f32 %v5796_v8, %v8092_v54  ;;  %v5833_v20 = vpop.f32.mrf.mxu0 }
 0x16b   : > { %v1864_v55 = vpop.f32.mrf.mxu1 }
 0x16c   : > { %v8399_v26 = vadd.f32 %v5830_v13, %v1991_v35  ;;  %v1989_v53 = vadd.f32 %v1864_v55, %v8106_v11  ;;  %v2603_v32 = vpop.f32.mrf.mxu0 }
 0x16d   : > { %v5799_v5 = vpop.f32.mrf.mxu1 }
 0x16e   : > { %v8402_v60 = vadd.f32 %v2590_v58, %v1989_v53  ;;  %v1994_v12 = vadd.f32 %v5799_v5, %v8118_v29  ;;  %v5834_v43 = vpop.f32.mrf.mxu0 }
 0x16f   : > { %v1877_v37 = vpop.f32.mrf.mxu1 }
 0x170   : > { %v8405_v48 = vadd.f32 %v5833_v20, %v1994_v12  ;;  %v1992_v24 = vadd.f32 %v1877_v37, %v8125_v9  ;;  %v2606_v16 = vpop.f32.mrf.mxu0 }
 0x171   : > { %v5800_v54 = vpop.f32.mrf.mxu1 }
 0x172   : > { %v8408_v31 = vadd.f32 %v2603_v32, %v1992_v24  ;;  %v1995_v22 = vadd.f32 %v5800_v54, %v8150_v34  ;;  %v5837_v25 = vpop.f32.mrf.mxu0  ;;  %v8871_v54 = vld [vmem:[#allocation12_spill] sm:$0xff] }
 0x173   : > { %v1880_v11 = vpop.f32.mrf.mxu1 }
 0x174   : > { %v8411_v38 = vadd.f32 %v5834_v43, %v1995_v22  ;;  %v1993_v15 = vadd.f32 %v1880_v11, %v8173_v59  ;;  %v2619_v50 = vpop.f32.mrf.mxu0  ;;  %v8870_v43 = vld [vmem:[#allocation16_spill] sm:$0xff] }
 0x175   : > { %v5803_v29 = vpop.f32.mrf.mxu1 }
 0x176   : > { %v8414_v2 = vadd.f32 %v2606_v16, %v1993_v15  ;;  %v1998_v17 = vadd.f32 %v5803_v29, %v8868_v30  ;;  %v5838_v51 = vpop.f32.mrf.mxu0 }
 0x177   : > { %v1893_v9 = vpop.f32.mrf.mxu1 }
 0x178   : > { %v8417_v27 = vadd.f32 %v5837_v25, %v1998_v17  ;;  %v1996_v19 = vadd.f32 %v1893_v9, %v8869_v3  ;;  %v2622_v33 = vpop.f32.mrf.mxu0 }
 0x179   : > { %v5804_v34 = vpop.f32.mrf.mxu1 }
 0x17a   : > { %v8420_v18 = vadd.f32 %v2619_v50, %v1996_v19  ;;  %v1999_v42 = vadd.f32 %v5804_v34, %v8213_v56  ;;  %v5841_v41 = vpop.f32.mrf.mxu0 }
 0x17b   : > { %v1896_v59 = vpop.f32.mrf.mxu1 }
 0x17c   : > { %v8423_v13 = vadd.f32 %v5838_v51, %v1999_v42  ;;  %v1997_v44 = vadd.f32 %v1896_v59, %v8229_v63  ;;  %v2635_v49 = vpop.f32.mrf.mxu0 }
 0x17d   : > { %v5807_v58 = vpop.f32.mrf.mxu1 }
 0x17e   : > { %v8426_v8 = vadd.f32 %v2622_v33, %v1997_v44  ;;  %v2002_v35 = vadd.f32 %v5807_v58, %v8239_v46  ;;  %v5842_v20 = vpop.f32.mrf.mxu0 }
 0x17f   : > { %v1909_v55 = vpop.f32.mrf.mxu1 }
 0x180   : > { %v8429_v53 = vadd.f32 %v5841_v41, %v2002_v35  ;;  %v2000_v32 = vadd.f32 %v1909_v55, %v8256_v7  ;;  %v2638_v5 = vpop.f32.mrf.mxu0 }
 0x181   : > { %v5808_v56 = vpop.f32.mrf.mxu1 }
 0x182   : > { %v8432_v12 = vadd.f32 %v2635_v49, %v2000_v32  ;;  %v2003_v37 = vadd.f32 %v5808_v56, %v8870_v43  ;;  %v5845_v24 = vpop.f32.mrf.mxu0 }
 0x183   : > { %v1912_v63 = vpop.f32.mrf.mxu1 }
 0x184   : > { %v8435_v16 = vadd.f32 %v5842_v20, %v2003_v37  ;;  %v2001_v22 = vadd.f32 %v1912_v63, %v8871_v54  ;;  %v2651_v25 = vpop.f32.mrf.mxu0 }
 0x185   : > { %v5811_v46 = vpop.f32.mrf.mxu1 }
 0x186   : > { %v8438_v11 = vadd.f32 %v2638_v5, %v2001_v22  ;;  %v2006_v15 = vadd.f32 %v5811_v46, %v8298_v47  ;;  %v5846_v50 = vpop.f32.mrf.mxu0 }
 0x187   : > { %v1925_v7 = vpop.f32.mrf.mxu1 }
 0x188   : > { %v8441_v29 = vadd.f32 %v5845_v24, %v2006_v15  ;;  %v2004_v30 = vadd.f32 %v1925_v7, %v8301_v6  ;;  %v2654_v17 = vpop.f32.mrf.mxu0 }
 0x189   : > { %v5812_v51 = vpop.f32.mrf.mxu1 }
 0x18a   : > { %v8444_v9 = vadd.f32 %v2651_v25, %v2004_v30  ;;  %v2007_v3 = vadd.f32 %v5812_v51, %v8321_v36  ;;  %v5849_v19 = vpop.f32.mrf.mxu0 }
 0x18b   : > { %v1928_v33 = vpop.f32.mrf.mxu1 }
 0x18c   : > { %v8447_v34 = vadd.f32 %v5846_v50, %v2007_v3  ;;  %v2005_v42 = vadd.f32 %v1928_v33, %v8336_v28  ;;  %v2667_v41 = vpop.f32.mrf.mxu0 }
 0x18d   : > { %v5815_v47 = vpop.f32.mrf.mxu1 }
 0x18e   : > { %v8450_v59 = vadd.f32 %v2654_v17, %v2005_v42  ;;  %v2010_v44 = vadd.f32 %v5815_v47, %v8342_v21  ;;  %v5850_v49 = vpop.f32.mrf.mxu0 }
 0x18f   : > { %v1941_v6 = vpop.f32.mrf.mxu1 }
 0x190   : > { %v8453_v58 = vadd.f32 %v5849_v19, %v2010_v44  ;;  %v2008_v35 = vadd.f32 %v1941_v6, %v8345_v10  ;;  %v2670_v20 = vpop.f32.mrf.mxu0 }
 0x191   : > { %v5816_v36 = vpop.f32.mrf.mxu1 }
 0x192   : > { %v8456_v55 = vadd.f32 %v2667_v41, %v2008_v35  ;;  %v2011_v32 = vadd.f32 %v5816_v36, %v8354_v4  ;;  %v5853_v5 = vpop.f32.mrf.mxu0 }
 0x193   : > { %v1944_v28 = vpop.f32.mrf.mxu1 }
 0x194   : > { %v8459_v56 = vadd.f32 %v5850_v49, %v2011_v32  ;;  %v2009_v43 = vadd.f32 %v1944_v28, %v8361_v1  ;;  %v2683_v37 = vpop.f32.mrf.mxu0 }
 0x195   : > { %v5819_v21 = vpop.f32.mrf.mxu1 }
 0x196   : > { %v8462_v24 = vadd.f32 %v2670_v20, %v2009_v43  ;;  %v2014_v63 = vadd.f32 %v5819_v21, %v8367_v23  ;;  %v5854_v54 = vpop.f32.mrf.mxu0 }
 0x197   : > { %v1957_v10 = vpop.f32.mrf.mxu1 }
 0x198   : > { %v8465_v22 = vadd.f32 %v5853_v5, %v2014_v63  ;;  %v2012_v25 = vadd.f32 %v1957_v10, %v8370_v57  ;;  %v2686_v46 = vpop.f32.mrf.mxu0 }
 0x199   : > { %v5820_v4 = vpop.f32.mrf.mxu1 }
 0x19a   : > { %v8468_v15 = vadd.f32 %v2683_v37, %v2012_v25  ;;  %v2015_v50 = vadd.f32 %v5820_v4, %v8374_v52  ;;  %v5857_v7 = vpop.f32.mrf.mxu0 }
 0x19b   : > { %v1960_v1 = vpop.f32.mrf.mxu1 }
 0x19c   : > { %8872 = vst [vmem:[#allocation2_spill] sm:$0xff] %v8468_v15  ;;  %v8471_v30 = vadd.f32 %v5854_v54, %v2015_v50  ;;  %v2013_v17 = vadd.f32 %v1960_v1, %v8378_v14  ;;  %v2699_v51 = vpop.f32.mrf.mxu0 }
 0x19d   : > { %v5823_v23 = vpop.f32.mrf.mxu1 }
 0x19e   : > { %v8474_v3 = vadd.f32 %v2686_v46, %v2013_v17  ;;  %v2018_v19 = vadd.f32 %v5823_v23, %v8381_v39  ;;  %v5858_v33 = vpop.f32.mrf.mxu0 }
 0x19f   : > { %v1973_v57 = vpop.f32.mrf.mxu1 }
 0x1a0   : > { %8873 = vst [vmem:[#allocation14_spill] sm:$0xff] %v8474_v3  ;;  %v8477_v42 = vadd.f32 %v5857_v7, %v2018_v19  ;;  %v2016_v41 = vadd.f32 %v1973_v57, %v8384_v45  ;;  %v2702_v47 = vpop.f32.mrf.mxu0 }
 0x1a1   : > { %v5824_v52 = vpop.f32.mrf.mxu1 }
 0x1a2   : > { %v8480_v44 = vadd.f32 %v2699_v51, %v2016_v41  ;;  %v2019_v49 = vadd.f32 %v5824_v52, %v8387_v61  ;;  %v5897_v6 = vpop.f32.mrf.mxu0 }
 0x1a3   : > { %v1976_v14 = vpop.f32.mrf.mxu1 }
 0x1a4   : > { %8874 = vst [vmem:[#allocation19_spill] sm:$0xff] %v8480_v44  ;;  %v8483_v35 = vadd.f32 %v5858_v33, %v2019_v49  ;;  %v2017_v20 = vadd.f32 %v1976_v14, %v8390_v40  ;;  %v3419_v36 = vpop.f32.mrf.mxu0 }
 0x1a5   : > { %v5863_v39 = vpop.f32.mrf.mxu1 }
 0x1a6   : > { %v8486_v32 = vadd.f32 %v2702_v47, %v2017_v20  ;;  %v3186_v5 = vadd.f32 %v5863_v39, %v8393_v62  ;;  %v5898_v28 = vpop.f32.mrf.mxu0 }
 0x1a7   : > { %v3057_v45 = vpop.f32.mrf.mxu1 }
 0x1a8   : > { %8875 = vst [vmem:[#allocation9_spill] sm:$0xff] %v8486_v32  ;;  %v8489_v43 = vadd.f32 %v5897_v6, %v3186_v5  ;;  %v3184_v37 = vadd.f32 %v3057_v45, %v8396_v0  ;;  %v8492_v21 = vpop.f32.mrf.mxu0 }
 0x1a9   : > { %v5864_v61 = vpop.f32.mrf.mxu1 }
 0x1aa   : > { %v8494_v63 = vadd.f32 %v3419_v36, %v3184_v37  ;;  %v3187_v54 = vadd.f32 %v5864_v61, %v8399_v26  ;;  %v5901_v40 = vpop.f32.mrf.mxu0 }
 0x1ab   : > { %v8497_v10 = vpop.f32.mrf.mxu1 }
 0x1ac   : > { %v8499_v25 = vadd.f32 %v5898_v28, %v3187_v54  ;;  %v8501_v46 = vpop.f32.mrf.mxu0 }
 0x1ad   : > { %v5867_v62 = vpop.f32.mrf.mxu1 }
 0x1ae   : > { %v3190_v4 = vadd.f32 %v5867_v62, %v8405_v48  ;;  %v5902_v50 = vpop.f32.mrf.mxu0 }
 0x1af   : > { %v8504_v7 = vpop.f32.mrf.mxu1 }
 0x1b0   : > { %v8506_v0 = vadd.f32 %v5901_v40, %v3190_v4  ;;  %v8508_v1 = vpop.f32.mrf.mxu0 }
 0x1b1   : > { %v5868_v17 = vpop.f32.mrf.mxu1 }
 0x1b2   : > { %v3191_v26 = vadd.f32 %v5868_v17, %v8411_v38  ;;  %v5905_v51 = vpop.f32.mrf.mxu0 }
 0x1b3   : > { %v8511_v23 = vpop.f32.mrf.mxu1 }
 0x1b4   : > { %v8513_v19 = vadd.f32 %v5902_v50, %v3191_v26  ;;  %v8515_v33 = vpop.f32.mrf.mxu0 }
 0x1b5   : > { %v5871_v57 = vpop.f32.mrf.mxu1 }
 0x1b6   : > { %v3194_v48 = vadd.f32 %v5871_v57, %v8417_v27  ;;  %v5906_v41 = vpop.f32.mrf.mxu0 }
 0x1b7   : > { %v8518_v47 = vpop.f32.mrf.mxu1 }
 0x1b8   : > { %v8520_v52 = vadd.f32 %v5905_v51, %v3194_v48  ;;  %v8522_v49 = vpop.f32.mrf.mxu0 }
 0x1b9   : > { %v5872_v6 = vpop.f32.mrf.mxu1 }
 0x1ba   : > { %v3195_v38 = vadd.f32 %v5872_v6, %v8423_v13  ;;  %v5909_v14 = vpop.f32.mrf.mxu0 }
 0x1bb   : > { %v8525_v20 = vpop.f32.mrf.mxu1 }
 0x1bc   : > { %v8527_v36 = vadd.f32 %v5906_v41, %v3195_v38  ;;  %v8529_v39 = vpop.f32.mrf.mxu0 }
 0x1bd   : > { %v5875_v5 = vpop.f32.mrf.mxu1 }
 0x1be   : > { %v3198_v27 = vadd.f32 %v5875_v5, %v8429_v53  ;;  %v5910_v28 = vpop.f32.mrf.mxu0 }
 0x1bf   : > { %v8532_v45 = vpop.f32.mrf.mxu1 }
 0x1c0   : > { %v8534_v37 = vadd.f32 %v5909_v14, %v3198_v27  ;;  %v8536_v61 = vpop.f32.mrf.mxu0 }
 0x1c1   : > { %v5876_v54 = vpop.f32.mrf.mxu1 }
 0x1c2   : > { %v3199_v13 = vadd.f32 %v5876_v54, %v8435_v16  ;;  %v5913_v40 = vpop.f32.mrf.mxu0 }
 0x1c3   : > { %v8539_v62 = vpop.f32.mrf.mxu1 }
 0x1c4   : > { %v8541_v4 = vadd.f32 %v5910_v28, %v3199_v13  ;;  %v8543_v50 = vpop.f32.mrf.mxu0 }
 0x1c5   : > { %v5879_v17 = vpop.f32.mrf.mxu1 }
 0x1c6   : > { %v3202_v53 = vadd.f32 %v5879_v17, %v8441_v29  ;;  %v5914_v26 = vpop.f32.mrf.mxu0 }
 0x1c7   : > { %v8546_v51 = vpop.f32.mrf.mxu1 }
 0x1c8   : > { %v8548_v57 = vadd.f32 %v5913_v40, %v3202_v53  ;;  %v8550_v48 = vpop.f32.mrf.mxu0 }
 0x1c9   : > { %v5880_v41 = vpop.f32.mrf.mxu1 }
 0x1ca   : > { %v3203_v16 = vadd.f32 %v5880_v41, %v8447_v34  ;;  %v5917_v6 = vpop.f32.mrf.mxu0 }
 0x1cb   : > { %v8553_v38 = vpop.f32.mrf.mxu1 }
 0x1cc   : > { %v8555_v14 = vadd.f32 %v5914_v26, %v3203_v16  ;;  %v8557_v5 = vpop.f32.mrf.mxu0 }
 0x1cd   : > { %v5883_v27 = vpop.f32.mrf.mxu1 }
 0x1ce   : > { %v3206_v29 = vadd.f32 %v5883_v27, %v8453_v58  ;;  %v5918_v28 = vpop.f32.mrf.mxu0 }
 0x1cf   : > { %v8560_v54 = vpop.f32.mrf.mxu1 }
 0x1d0   : > { %v8562_v13 = vadd.f32 %v5917_v6, %v3206_v29  ;;  %v8564_v40 = vpop.f32.mrf.mxu0 }
 0x1d1   : > { %v5884_v17 = vpop.f32.mrf.mxu1 }
 0x1d2   : > { %8876 = vst [vmem:[#allocation18_spill] sm:$0xff] %v8562_v13  ;;  %v3207_v34 = vadd.f32 %v5884_v17, %v8459_v56  ;;  %v5921_v53 = vpop.f32.mrf.mxu0 }
 0x1d3   : > { %v8567_v41 = vpop.f32.mrf.mxu1 }
 0x1d4   : > { %v8569_v26 = vadd.f32 %v5918_v28, %v3207_v34  ;;  %v8571_v16 = vpop.f32.mrf.mxu0 }
 0x1d5   : > { %8878 = vst [vmem:[#allocation23_spill] sm:$0xff] %v8571_v16  ;;  %v5887_v32 = vpop.f32.mrf.mxu1 }
 0x1d6   : > { %8877 = vst [vmem:[#allocation21_spill] sm:$0xff] %v8569_v26  ;;  %v3210_v58 = vadd.f32 %v5887_v32, %v8465_v22  ;;  %v5922_v27 = vpop.f32.mrf.mxu0 }
 0x1d7   : > { %v8574_v44 = vpop.f32.mrf.mxu1 }
 0x1d8   : > { %8879 = vst [vmem:[#allocation25_spill] sm:$0xff] %v8574_v44  ;;  %v8576_v6 = vadd.f32 %v5921_v53, %v3210_v58  ;;  %v8578_v29 = vpop.f32.mrf.mxu0 }
 0x1d9   : > { %8881 = vst [vmem:[#allocation3_spill] sm:$0xff] %v8578_v29  ;;  %v5888_v3 = vpop.f32.mrf.mxu1 }
 0x1da   : > { %8880 = vst [vmem:[#allocation4_spill] sm:$0xff] %v8576_v6  ;;  %v3211_v56 = vadd.f32 %v5888_v3, %v8471_v30  ;;  %v5925_v17 = vpop.f32.mrf.mxu0 }
 0x1db   : > { %v8581_v13 = vpop.f32.mrf.mxu1 }
 0x1dc   : > { %8882 = vst [vmem:[#allocation6_spill] sm:$0xff] %v8581_v13  ;;  %v8583_v28 = vadd.f32 %v5922_v27, %v3211_v56  ;;  %v8585_v34 = vpop.f32.mrf.mxu0 }
 0x1dd   : > { %8884 = vst [vmem:[#allocation7_spill] sm:$0xff] %v8585_v34  ;;  %v5891_v16 = vpop.f32.mrf.mxu1 }
 0x1de   : > { %8883 = vst [vmem:[#allocation5_spill] sm:$0xff] %v8583_v28  ;;  %v3214_v22 = vadd.f32 %v5891_v16, %v8477_v42  ;;  %v5926_v32 = vpop.f32.mrf.mxu0  ;;  %v3185_v42 = vadd.f32 %v8497_v10, %v8402_v60  ;;  %v3189_v10 = vadd.f32 %v8511_v23, %v8414_v2 }
 0x1df   : > { %v8588_v26 = vpop.f32.mrf.mxu1 }
 0x1e0   : > { %8885 = vst [vmem:[#allocation10_spill] sm:$0xff] %v8588_v26  ;;  %v8590_v53 = vadd.f32 %v5925_v17, %v3214_v22  ;;  %v8592_v58 = vpop.f32.mrf.mxu0 }
 0x1e1   : > { %8887 = vst [vmem:[#allocation15_spill] sm:$0xff] %v8592_v58  ;;  %v5892_v6 = vpop.f32.mrf.mxu1  ;;  %v3547_v58 = vadd.f32 %v8492_v21, %v3185_v42 }
 0x1e2   : > { %8886 = vst [vmem:[#allocation13_spill] sm:$0xff] %v8590_v53  ;;  %v3215_v30 = vadd.f32 %v5892_v6, %v8483_v35  ;;  %v5965_v3 = vpop.f32.mrf.mxu0  ;;  %v3188_v35 = vadd.f32 %v8504_v7, %v8408_v31 }
 0x1e3   : > { %v8595_v29 = vpop.f32.mrf.mxu1 }
 0x1e4   : > { %8888 = vst [vmem:[#allocation17_spill] sm:$0xff] %v8595_v29  ;;  %v8597_v27 = vadd.f32 %v5926_v32, %v3215_v30  ;;  %v4615_v56 = vpop.f32.mrf.mxu0 }
 0x1e5   : > { %v5931_v34 = vpop.f32.mrf.mxu1 }
 0x1e6   : > { %8889 = vst [vmem:[#allocation20_spill] sm:$0xff] %v8597_v27  ;;  %v5966_v16 = vpop.f32.mrf.mxu0  ;;  %v4274_v6 = vadd.f32 %v5931_v34, %v8489_v43 }
 0x1e7   : > { %v4145_v28 = vpop.f32.mrf.mxu1 }
 0x1e8   : > { %v4272_v17 = vadd.f32 %v4145_v28, %v8494_v63  ;;  %v4618_v22 = vpop.f32.mrf.mxu0  ;;  %v3550_v28 = vadd.f32 %v8501_v46, %v3188_v35  ;;  %v4744_v13 = vadd.f32 %v5965_v3, %v4274_v6 }
 0x1e9   : > { %v5932_v53 = vpop.f32.mrf.mxu1 }
 0x1ea   : > { %v5969_v32 = vpop.f32.mrf.mxu0  ;;  %v4275_v30 = vadd.f32 %v5932_v53, %v8499_v25  ;;  %v4742_v29 = vadd.f32 %v4615_v56, %v4272_v17  ;;  %v3551_v53 = vadd.f32 %v8508_v1, %v3189_v10  ;;  %v4814_v56 = vmul.f32 %v4744_v13, %v4744_v13 }
 0x1eb   : > { %v4148_v27 = vpop.f32.mrf.mxu1 }
 0x1ec   : > { %v4273_v26 = vadd.f32 %v4148_v27, %v3547_v58  ;;  %v4631_v60 = vpop.f32.mrf.mxu0  ;;  %v4745_v44 = vadd.f32 %v5966_v16, %v4275_v30  ;;  %v4812_v7 = vmul.f32 %v4742_v29, %v4742_v29 }
 0x1ed   : > { %v5935_v63 = vpop.f32.mrf.mxu1 }
 0x1ee   : > { %v4743_v21 = vadd.f32 %v4618_v22, %v4273_v26  ;;  %v5970_v42 = vpop.f32.mrf.mxu0  ;;  %v4278_v58 = vadd.f32 %v5935_v63, %v8506_v0  ;;  %v3192_v26 = vadd.f32 %v8518_v47, %v8420_v18  ;;  %v4815_v3 = vmul.f32 %v4745_v44, %v4745_v44 }
 0x1ef   : > { %v4161_v31 = vpop.f32.mrf.mxu1  ;;  %v3193_v0 = vadd.f32 %v8525_v20, %v8426_v8 }
 0x1f0   : > { %v4774_v43 = vadd.f32 %v4743_v21, %v4742_v29  ;;  %v4813_v34 = vmul.f32 %v4743_v21, %v4743_v21  ;;  %v4276_v15 = vadd.f32 %v4161_v31, %v3550_v28  ;;  %v4634_v25 = vpop.f32.mrf.mxu0  ;;  %v4748_v1 = vadd.f32 %v5969_v32, %v4278_v58 }
 0x1f1   : > { %v5936_v27 = vpop.f32.mrf.mxu1  ;;  %v3554_v18 = vadd.f32 %v8515_v33, %v3192_v26 }
 0x1f2   : > { %v4775_v2 = vadd.f32 %v4774_v43, %v4744_v13  ;;  %v4844_v23 = vadd.f32 %v4813_v34, %v4812_v7  ;;  %v4746_v17 = vadd.f32 %v4631_v60, %v4276_v15  ;;  %v5973_v46 = vpop.f32.mrf.mxu0  ;;  %v4279_v35 = vadd.f32 %v5936_v27, %v8513_v19 }
 0x1f3   : > { %v4164_v16 = vpop.f32.mrf.mxu1  ;;  %v3196_v43 = vadd.f32 %v8532_v45, %v8432_v12  ;;  %v3555_v34 = vadd.f32 %v8522_v49, %v3193_v0 }
 0x1f4   : > { %v4845_v22 = vadd.f32 %v4844_v23, %v4814_v56  ;;  %v4776_v29 = vadd.f32 %v4775_v2, %v4745_v44  ;;  %v4277_v6 = vadd.f32 %v4164_v16, %v3551_v53  ;;  %v4647_v30 = vpop.f32.mrf.mxu0  ;;  %v4816_v63 = vmul.f32 %v4746_v17, %v4746_v17 }
 0x1f5   : > { %v5939_v10 = vpop.f32.mrf.mxu1  ;;  %v4749_v31 = vadd.f32 %v5970_v42, %v4279_v35  ;;  %v4818_v53 = vmul.f32 %v4748_v1, %v4748_v1  ;;  %v3558_v12 = vadd.f32 %v8529_v39, %v3196_v43  ;;  %v3200_v39 = vadd.f32 %v8546_v51, %v8444_v9 }
 0x1f6   : > { %v4777_v13 = vadd.f32 %v4776_v29, %v4746_v17  ;;  %v4846_v15 = vadd.f32 %v4845_v22, %v4815_v3  ;;  %v4747_v60 = vadd.f32 %v4634_v25, %v4277_v6  ;;  %v5974_v28 = vpop.f32.mrf.mxu0  ;;  %v4282_v8 = vadd.f32 %v5939_v10, %v8520_v52 }
 0x1f7   : > { %v4177_v47 = vpop.f32.mrf.mxu1  ;;  %v4819_v2 = vmul.f32 %v4749_v31, %v4749_v31  ;;  %v3197_v6 = vadd.f32 %v8539_v62, %v8438_v11  ;;  %v3562_v43 = vadd.f32 %v8543_v50, %v3200_v39 }
 0x1f8   : > { %v4847_v21 = vadd.f32 %v4846_v15, %v4816_v63  ;;  %v4778_v44 = vadd.f32 %v4777_v13, %v4747_v60  ;;  %v4817_v7 = vmul.f32 %v4747_v60, %v4747_v60  ;;  %v4650_v19 = vpop.f32.mrf.mxu0  ;;  %v4280_v20 = vadd.f32 %v4177_v47, %v3554_v18 }
 0x1f9   : > { %v5940_v32 = vpop.f32.mrf.mxu1  ;;  %v4752_v52 = vadd.f32 %v5973_v46, %v4282_v8 }
 0x1fa   : > { %v4779_v25 = vadd.f32 %v4778_v44, %v4748_v1  ;;  %v4848_v58 = vadd.f32 %v4847_v21, %v4817_v7  ;;  %v5977_v27 = vpop.f32.mrf.mxu0  ;;  %v4750_v33 = vadd.f32 %v4647_v30, %v4280_v20  ;;  %v4283_v56 = vadd.f32 %v5940_v32, %v8527_v36 }
 0x1fb   : > { %v4180_v42 = vpop.f32.mrf.mxu1  ;;  %v4822_v15 = vmul.f32 %v4752_v52, %v4752_v52  ;;  %v3201_v20 = vadd.f32 %v8553_v38, %v8450_v59 }
 0x1fc   : > { %v4849_v23 = vadd.f32 %v4848_v58, %v4818_v53  ;;  %v4780_v17 = vadd.f32 %v4779_v25, %v4749_v31  ;;  %v4281_v26 = vadd.f32 %v4180_v42, %v3555_v34  ;;  %v4663_v3 = vpop.f32.mrf.mxu0  ;;  %v4820_v22 = vmul.f32 %v4750_v33, %v4750_v33 }
 0x1fd   : > { %v5943_v45 = vpop.f32.mrf.mxu1  ;;  %v4753_v30 = vadd.f32 %v5974_v28, %v4283_v56  ;;  %v3559_v31 = vadd.f32 %v8536_v61, %v3197_v6 }
 0x1fe   : > { %v4781_v16 = vadd.f32 %v4780_v17, %v4750_v33  ;;  %v4850_v49 = vadd.f32 %v4849_v23, %v4819_v2  ;;  %v4751_v29 = vadd.f32 %v4650_v19, %v4281_v26  ;;  %v5978_v35 = vpop.f32.mrf.mxu0  ;;  %v4286_v11 = vadd.f32 %v5943_v45, %v8534_v37 }
 0x1ff   : > { %v4193_v36 = vpop.f32.mrf.mxu1  ;;  %v4823_v28 = vmul.f32 %v4753_v30, %v4753_v30  ;;  %v3204_v26 = vadd.f32 %v8560_v54, %v8456_v55  ;;  %v3205_v55 = vadd.f32 %v8567_v41, %v8462_v24 }
 0x200   : > { %v4851_v0 = vadd.f32 %v4850_v49, %v4820_v22  ;;  %v4782_v1 = vadd.f32 %v4781_v16, %v4751_v29  ;;  %v4821_v10 = vmul.f32 %v4751_v29, %v4751_v29  ;;  %v4284_v13 = vadd.f32 %v4193_v36, %v3558_v12  ;;  %v4666_v63 = vpop.f32.mrf.mxu0 }
 0x201   : > { %v5944_v46 = vpop.f32.mrf.mxu1  ;;  %v4756_v25 = vadd.f32 %v5977_v27, %v4286_v11 }
 0x202   : > { %v4783_v60 = vadd.f32 %v4782_v1, %v4752_v52  ;;  %v4852_v18 = vadd.f32 %v4851_v0, %v4821_v10  ;;  %v4754_v47 = vadd.f32 %v4663_v3, %v4284_v13  ;;  %v5981_v21 = vpop.f32.mrf.mxu0  ;;  %v4287_v8 = vadd.f32 %v5944_v46, %v8541_v4 }
 0x203   : > { %v4196_v62 = vpop.f32.mrf.mxu1  ;;  %v3563_v4 = vadd.f32 %v8550_v48, %v3201_v20  ;;  %v4826_v3 = vmul.f32 %v4756_v25, %v4756_v25  ;;  %v3566_v48 = vadd.f32 %v8557_v5, %v3204_v26  ;;  %v8890_v5 = vld [vmem:[#allocation2_spill] sm:$0xff] }
 0x204   : > { %v4853_v44 = vadd.f32 %v4852_v18, %v4822_v15  ;;  %v4784_v7 = vadd.f32 %v4783_v60, %v4753_v30  ;;  %v4679_v19 = vpop.f32.mrf.mxu0  ;;  %v4285_v9 = vadd.f32 %v4196_v62, %v3559_v31  ;;  %v4824_v34 = vmul.f32 %v4754_v47, %v4754_v47  ;;  %v8891_v31 = vld [vmem:[#allocation25_spill] sm:$0xff] }
 0x205   : > { %v5947_v51 = vpop.f32.mrf.mxu1  ;;  %v4757_v2 = vadd.f32 %v5978_v35, %v4287_v8  ;;  %v3208_v11 = vadd.f32 %v8891_v31, %v8890_v5 }
 0x206   : > { %v4785_v32 = vadd.f32 %v4784_v7, %v4754_v47  ;;  %v4854_v53 = vadd.f32 %v4853_v44, %v4823_v28  ;;  %v5982_v61 = vpop.f32.mrf.mxu0  ;;  %v4755_v37 = vadd.f32 %v4666_v63, %v4285_v9  ;;  %v4290_v59 = vadd.f32 %v5947_v51, %v8548_v57  ;;  %v8892_v28 = vld [vmem:[#allocation18_spill] sm:$0xff] }
 0x207   : > { %v4209_v58 = vpop.f32.mrf.mxu1  ;;  %v4827_v49 = vmul.f32 %v4757_v2, %v4757_v2  ;;  %v3567_v47 = vadd.f32 %v8564_v40, %v3205_v55  ;;  %v8894_v40 = vld [vmem:[#allocation23_spill] sm:$0xff] }
 0x208   : > { %v4855_v33 = vadd.f32 %v4854_v53, %v4824_v34  ;;  %v4288_v56 = vadd.f32 %v4209_v58, %v3562_v43  ;;  %v4682_v42 = vpop.f32.mrf.mxu0  ;;  %v4786_v23 = vadd.f32 %v4785_v32, %v4755_v37  ;;  %v4825_v50 = vmul.f32 %v4755_v37, %v4755_v37  ;;  %v8893_v32 = vld [vmem:[#allocation21_spill] sm:$0xff]  ;;  %v8896_v37 = vld [vmem:[#allocation6_spill] sm:$0xff] }
 0x209   : > { %v5948_v17 = vpop.f32.mrf.mxu1  ;;  %v4760_v57 = vadd.f32 %v5981_v21, %v4290_v59 }
 0x20a   : > { %v4787_v12 = vadd.f32 %v4786_v23, %v4756_v25  ;;  %v4856_v27 = vadd.f32 %v4855_v33, %v4825_v50  ;;  %v4758_v52 = vadd.f32 %v4679_v19, %v4288_v56  ;;  %v4291_v6 = vadd.f32 %v5948_v17, %v8555_v14  ;;  %v8895_v25 = vld [vmem:[#allocation14_spill] sm:$0xff] }
 0x20b   : > { %v5985_v38 = vpop.f32.mrf.mxu0  ;;  %v4212_v45 = vpop.f32.mrf.mxu1  ;;  %v4830_v24 = vmul.f32 %v4760_v57, %v4760_v57  ;;  %v3209_v58 = vadd.f32 %v8896_v37, %v8895_v25 }
 0x20c   : > { %v4289_v16 = vadd.f32 %v4212_v45, %v3563_v4  ;;  %v4857_v29 = vadd.f32 %v4856_v27, %v4826_v3  ;;  %v4788_v35 = vadd.f32 %v4787_v12, %v4757_v2  ;;  %v4828_v1 = vmul.f32 %v4758_v52, %v4758_v52  ;;  %v8897_v45 = vld [vmem:[#allocation3_spill] sm:$0xff] }
 0x20d   : > { %v4695_v22 = vpop.f32.mrf.mxu0  ;;  %v5951_v30 = vpop.f32.mrf.mxu1  ;;  %v4761_v60 = vadd.f32 %v5982_v61, %v4291_v6  ;;  %v3570_v61 = vadd.f32 %v8894_v40, %v3208_v11  ;;  %v8906_v40 = vld [vmem:[#allocation13_spill] sm:$0xff] }
 0x20e   : > { %v4759_v54 = vadd.f32 %v4682_v42, %v4289_v16  ;;  %v4789_v0 = vadd.f32 %v4788_v35, %v4758_v52  ;;  %v4858_v10 = vadd.f32 %v4857_v29, %v4827_v49  ;;  %v4294_v44 = vadd.f32 %v5951_v30, %v8892_v28  ;;  %v8899_v49 = vld [vmem:[#allocation10_spill] sm:$0xff]  ;;  %v8900_v35 = vld [vmem:[#allocation4_spill] sm:$0xff] }
 0x20f   : > { %v5986_v36 = vpop.f32.mrf.mxu0  ;;  %v4225_v13 = vpop.f32.mrf.mxu1  ;;  %v4831_v9 = vmul.f32 %v4761_v60, %v4761_v60  ;;  %v3571_v16 = vadd.f32 %v8897_v45, %v3209_v58 }
 0x210   : > { %v4829_v63 = vmul.f32 %v4759_v54, %v4759_v54  ;;  %v4292_v39 = vadd.f32 %v4225_v13, %v3566_v48  ;;  %v4859_v15 = vadd.f32 %v4858_v10, %v4828_v1  ;;  %v4790_v18 = vadd.f32 %v4789_v0, %v4759_v54 }
 0x211   : > { %v4698_v46 = vpop.f32.mrf.mxu0  ;;  %v5952_v14 = vpop.f32.mrf.mxu1  ;;  %v4764_v42 = vadd.f32 %v5985_v38, %v4294_v44 }
 0x212   : > { %v4791_v21 = vadd.f32 %v4790_v18, %v4760_v57  ;;  %v4860_v62 = vadd.f32 %v4859_v15, %v4829_v63  ;;  %v4762_v7 = vadd.f32 %v4695_v22, %v4292_v39  ;;  %v4295_v34 = vadd.f32 %v5952_v14, %v8893_v32  ;;  %v8898_v22 = vld [vmem:[#allocation19_spill] sm:$0xff]  ;;  %v8903_v18 = vld [vmem:[#allocation9_spill] sm:$0xff] }
 0x213   : > { %v5989_v41 = vpop.f32.mrf.mxu0  ;;  %v4228_v19 = vpop.f32.mrf.mxu1  ;;  %v3212_v29 = vadd.f32 %v8899_v49, %v8898_v22  ;;  %v4834_v38 = vmul.f32 %v4764_v42, %v4764_v42  ;;  %v8902_v15 = vld [vmem:[#allocation7_spill] sm:$0xff]  ;;  %v8904_v14 = vld [vmem:[#allocation17_spill] sm:$0xff] }
 0x214   : > { %v4293_v43 = vadd.f32 %v4228_v19, %v3567_v47  ;;  %v4861_v51 = vadd.f32 %v4860_v62, %v4830_v24  ;;  %v4792_v20 = vadd.f32 %v4791_v21, %v4761_v60  ;;  %v4832_v23 = vmul.f32 %v4762_v7, %v4762_v7 }
 0x215   : > { %v4711_v8 = vpop.f32.mrf.mxu0  ;;  %v5955_v53 = vpop.f32.mrf.mxu1  ;;  %v4765_v12 = vadd.f32 %v5986_v36, %v4295_v34  ;;  %v8901_v36 = vld [vmem:[#allocation5_spill] sm:$0xff]  ;;  %v3574_v60 = vadd.f32 %v8902_v15, %v3212_v29  ;;  %v3213_v47 = vadd.f32 %v8904_v14, %v8903_v18 }
 0x216   : > { %v4763_v33 = vadd.f32 %v4698_v46, %v4293_v43  ;;  %v4793_v2 = vadd.f32 %v4792_v20, %v4762_v7  ;;  %v4862_v50 = vadd.f32 %v4861_v51, %v4831_v9  ;;  %v4298_v6 = vadd.f32 %v5955_v53, %v8900_v35  ;;  %v8905_v51 = vld [vmem:[#allocation15_spill] sm:$0xff] }
 0x217   : > { %v5990_v56 = vpop.f32.mrf.mxu0  ;;  %v4241_v17 = vpop.f32.mrf.mxu1  ;;  %v4835_v1 = vmul.f32 %v4765_v12, %v4765_v12  ;;  %v3575_v20 = vadd.f32 %v8905_v51, %v3213_v47 }
 0x218   : > { %v4833_v4 = vmul.f32 %v4763_v33, %v4763_v33  ;;  %v4296_v26 = vadd.f32 %v4241_v17, %v3570_v61  ;;  %v4863_v3 = vadd.f32 %v4862_v50, %v4832_v23  ;;  %v4794_v27 = vadd.f32 %v4793_v2, %v4763_v33  ;;  %v8907_v2 = vld [vmem:[#allocation20_spill] sm:$0xff] }
 0x219   : > { %v4714_v59 = vpop.f32.mrf.mxu0  ;;  %v5956_v52 = vpop.f32.mrf.mxu1  ;;  %v4768_v5 = vadd.f32 %v5989_v41, %v4298_v6 }
 0x21a   : > { %v4795_v48 = vadd.f32 %v4794_v27, %v4764_v42  ;;  %v4864_v55 = vadd.f32 %v4863_v3, %v4833_v4  ;;  %v4766_v57 = vadd.f32 %v4711_v8, %v4296_v26  ;;  %v4299_v63 = vadd.f32 %v5956_v52, %v8901_v36 }
 0x21b   : > { %v5993_v30 = vpop.f32.mrf.mxu0  ;;  %v4244_v54 = vpop.f32.mrf.mxu1  ;;  %v4838_v32 = vmul.f32 %v4768_v5, %v4768_v5 }
 0x21c   : > { %v4297_v0 = vadd.f32 %v4244_v54, %v3571_v16  ;;  %v4865_v10 = vadd.f32 %v4864_v55, %v4834_v38  ;;  %v4796_v13 = vadd.f32 %v4795_v48, %v4765_v12  ;;  %v4836_v24 = vmul.f32 %v4766_v57, %v4766_v57 }
 0x21d   : > { %v5959_v39 = vpop.f32.mrf.mxu1  ;;  %v4727_v46 = vpop.f32.mrf.mxu0  ;;  %v4769_v19 = vadd.f32 %v5990_v56, %v4299_v63 }
 0x21e   : > { %v4767_v31 = vadd.f32 %v4714_v59, %v4297_v0  ;;  %v4797_v11 = vadd.f32 %v4796_v13, %v4766_v57  ;;  %v4866_v21 = vadd.f32 %v4865_v10, %v4835_v1  ;;  %v4302_v61 = vadd.f32 %v5959_v39, %v8906_v40 }
 0x21f   : > { %v4257_v62 = vpop.f32.mrf.mxu1  ;;  %v5994_v9 = vpop.f32.mrf.mxu0  ;;  %v4839_v58 = vmul.f32 %v4769_v19, %v4769_v19 }
 0x220   : > { %v4837_v28 = vmul.f32 %v4767_v31, %v4767_v31  ;;  %v4300_v44 = vadd.f32 %v4257_v62, %v3574_v60  ;;  %v4867_v7 = vadd.f32 %v4866_v21, %v4836_v24  ;;  %v4798_v43 = vadd.f32 %v4797_v11, %v4767_v31 }
 0x221   : > { %v5960_v8 = vpop.f32.mrf.mxu1  ;;  %v4730_v50 = vpop.f32.mrf.mxu0  ;;  %v4772_v17 = vadd.f32 %v5993_v30, %v4302_v61 }
 0x222   : > { %v4799_v34 = vadd.f32 %v4798_v43, %v4768_v5  ;;  %v4868_v53 = vadd.f32 %v4867_v7, %v4837_v28  ;;  %v4770_v41 = vadd.f32 %v4727_v46, %v4300_v44  ;;  %v4303_v23 = vadd.f32 %v5960_v8, %v8907_v2 }
 0x223   : > { %v4260_v25 = vpop.f32.mrf.mxu1  ;;  %v4842_v45 = vmul.f32 %v4772_v17, %v4772_v17 }
 0x224   : > { %v4301_v37 = vadd.f32 %v4260_v25, %v3575_v20  ;;  %v4869_v33 = vadd.f32 %v4868_v53, %v4838_v32  ;;  %v4800_v42 = vadd.f32 %v4799_v34, %v4769_v19  ;;  %v4840_v26 = vmul.f32 %v4770_v41, %v4770_v41 }
 0x225   : > { %v4773_v27 = vadd.f32 %v5994_v9, %v4303_v23 }
 0x226   : > { %v4771_v56 = vadd.f32 %v4730_v50, %v4301_v37  ;;  %v4801_v4 = vadd.f32 %v4800_v42, %v4770_v41  ;;  %v4870_v59 = vadd.f32 %v4869_v33, %v4839_v58 }
 0x227   : > { %v4843_v49 = vmul.f32 %v4773_v27, %v4773_v27 }
 0x228   : > { %v4841_v3 = vmul.f32 %v4771_v56, %v4771_v56  ;;  %v4871_v12 = vadd.f32 %v4870_v59, %v4840_v26  ;;  %v4802_v52 = vadd.f32 %v4801_v4, %v4771_v56 }
 0x22a   : > { %v4803_v16 = vadd.f32 %v4802_v52, %v4772_v17  ;;  %v4872_v22 = vadd.f32 %v4871_v12, %v4841_v3 }
 0x22c   : > { %v4804_v29 = vadd.f32 %v4803_v16, %v4773_v27  ;;  %v4873_v35 = vadd.f32 %v4872_v22, %v4842_v45 }
 0x22e   : > { %v4805_v6 = vrot.slane %v4804_v29, 4  ;;  %v4874_v38 = vadd.f32 %v4873_v35, %v4843_v49 }
 0x230   : > { %v4806_v48 = vadd.f32 %v4805_v6, %v4804_v29  ;;  %v4875_v55 = vrot.slane %v4874_v38, 4 }
 0x232   : > { %v4807_v30 = vrot.slane %v4806_v48, 2  ;;  %v4876_v57 = vadd.f32 %v4875_v55, %v4874_v38 }
 0x234   : > { %v4808_v54 = vadd.f32 %v4807_v30, %v4806_v48  ;;  %v4877_v0 = vrot.slane %v4876_v57, 2 }
 0x236   : > { %v4809_v1 = vrot.slane %v4808_v54, 1  ;;  %v4878_v10 = vadd.f32 %v4877_v0, %v4876_v57 }
 0x238   : > { %v4810_v13 = vadd.f32 %v4809_v1, %v4808_v54  ;;  %v4879_v36 = vrot.slane %v4878_v10, 1 }
 0x23a   : > { %4811 = vst [vmem:[%s197_s17] sm:$0x1] %v4810_v13  ;;  %v4880_v63 = vadd.f32 %v4879_v36, %v4878_v10 }
 0x23c   : > { %4881 = vst [vmem:[%s203_s20] sm:$0x1] %v4880_v63 }
 0x23d PF: > { %s14_s14 = sadd.s32 1, %s6104_s14   ;;  %s8908_s12 = smov %s6100_s13 }
 0x23e   : > { %p11_p5 = scmp.ge.s32.totalorder %s14_s14, 4   ;;  %s8909_s13 = smov %s8911_s15 }
 0x240   :  { %13 = sbr.rel (!%p11_p5) target bundleno = 2 (0x2), region = 81 }

</bundles_post_ra>
